<compile_context>
chip_gen: v7x
topology: tpu7x:2x2x1
jax: 0.10.0
libtpu: 0.0.40
codegen_flags: <defaults>
</compile_context>

<pallas_src>
import functools
import math
from typing import NamedTuple, Tuple

import jax
import jax.numpy as jnp
import numpy as np
from jax.experimental import pallas as pl
from jax.experimental.pallas import tpu as pltpu

# (KH, KW, stride, pad) for the four conv layers.
_CONV_META = ((5, 5, 2, 4), (3, 3, 2, 1), (3, 3, 2, 1), (3, 3, 2, 1))
_IMG_HW = (28, 28)
_HIDDEN = 32
_ALIGN = 128          # lane width: every in-kernel feature slice is 128-aligned
_TB = 256             # max batch-tile rows per grid step


def _round_up(x, m):
    return -(-x // m) * m


# ----------------------------- static layer metadata ------------------------------ #
class _LayerMeta(NamedTuple):
    starts: Tuple[int, ...]   # per-band aligned feature offset into the layer input
    K: int                    # feature-window width fed to each band matmul
    N: int                    # output features per band (W_out * Cout)
    n_bands: int              # H_out
    in_feats: int             # (padded) input feature count the kernel expects
    out_feats: int            # n_bands * N
    geom: Tuple[int, ...]     # (H_in, W_in, Cin, Cout, kh, kw, stride, pad)


def _make_layer_meta(H_in, W_in, Cin, Cout, kh, kw, stride, pad):
    H_out = (H_in + 2 * pad - kh) // stride + 1
    W_out = (W_in + 2 * pad - kw) // stride + 1
    natural = H_in * W_in * Cin
    starts, spans = [], []
    for oy in range(H_out):
        r0 = stride * oy - pad
        f_lo = max(r0, 0) * W_in * Cin
        f_hi = min(r0 + kh, H_in) * W_in * Cin
        a = (f_lo // _ALIGN) * _ALIGN         # 128-aligned window start
        starts.append(a)
        spans.append(f_hi - a)
    K = max(spans)
    in_feats = _round_up(max(natural, max(s + K for s in starts)), _ALIGN)
    return _LayerMeta(tuple(starts), K, W_out * Cout, H_out, in_feats,
                      H_out * W_out * Cout,
                      (H_in, W_in, Cin, Cout, kh, kw, stride, pad))


def _build_metas(hidden=_HIDDEN, img_hw=_IMG_HW):
    c1, c2, c3 = hidden // 2, hidden, hidden * 2
    chans = ((1, c1), (c1, c2), (c2, c3), (c3, c3))
    h, w = img_hw
    metas = []
    for (kh, kw, s, p), (cin, cout) in zip(_CONV_META, chans):
        metas.append(_make_layer_meta(h, w, cin, cout, kh, kw, s, p))
        h = (h + 2 * p - kh) // s + 1
        w = (w + 2 * p - kw) // s + 1
    metas = tuple(metas)
    for l in range(1, 4):
        # activation width produced by layer l-1 is exactly what layer l reads
        assert metas[l].in_feats == metas[l - 1].out_feats
    return metas


_METAS = _build_metas()


# --------------------------------- parameters -------------------------------------- #
def init_params(key, hidden_features=32, out_dim=1):
    """PyTorch-layout parameters: conv weights HWIO, linear weights (in, out)."""
    c1, c2, c3 = hidden_features // 2, hidden_features, hidden_features * 2
    defs = {
        "conv1": (5, 5, 1, c1), "conv2": (3, 3, c1, c2),
        "conv3": (3, 3, c2, c3), "conv4": (3, 3, c3, c3),
        "fc1": (c3 * 4, c3), "fc2": (c3, out_dim),
    }
    params = {}
    for name, shape in defs.items():
        key, k_w, k_b = jax.random.split(key, 3)
        scale = 1.0 / math.sqrt(math.prod(shape[:-1]))
        params[name + "_w"] = scale * jax.random.normal(k_w, shape, jnp.float32)
        params[name + "_b"] = scale * jax.random.normal(k_b, (shape[-1],), jnp.float32)
    return params


def _band_matrices(w_hwio, meta):
    """Host-side (numpy) lowering of one conv layer to per-output-row band GEMMs."""
    H_in, W_in, Cin, Cout, kh, kw, stride, pad = meta.geom
    W_out = meta.N // Cout
    w = np.asarray(w_hwio, np.float32)
    mats = np.zeros((meta.n_bands, meta.K, meta.N), np.float32)
    for oy in range(meta.n_bands):
        a = meta.starts[oy]
        for ky in range(kh):
            iy = stride * oy + ky - pad
            if iy < 0 or iy >= H_in:
                continue                                  # vertical padding tap
            for ox in range(W_out):
                for kx in range(kw):
                    ix = stride * ox + kx - pad
                    if ix < 0 or ix >= W_in:
                        continue                          # horizontal padding tap
                    r = (iy * W_in + ix) * Cin - a
                    c = ox * Cout
                    mats[oy, r:r + Cin, c:c + Cout] += w[ky, kx]
    return mats


def prepare_params(params):
    """One-time repack (host side, hoisted out of the forward)."""
    prep = {}
    for l, meta in enumerate(_METAS, start=1):
        w = params[f"conv{l}_w"]
        cout = w.shape[-1]
        prep[f"conv{l}_w"] = jnp.asarray(_band_matrices(w, meta), jnp.bfloat16)
        b = np.tile(np.asarray(params[f"conv{l}_b"], np.float32), meta.N // cout)
        prep[f"conv{l}_b"] = jnp.asarray(b.reshape(1, meta.N))
    # fc1 rows: PyTorch NCHW flatten order -> kernel's NHWC flatten order.
    H_in, W_in, Cin, Cout = _METAS[3].geom[:4]
    H_out, W_out = _METAS[3].n_bands, _METAS[3].N // Cout
    w1 = np.asarray(params["fc1_w"], np.float32)
    assert w1.shape[0] == Cout * H_out * W_out, "fc1 implies 28x28-style inputs"
    w1 = w1.reshape(Cout, H_out, W_out, -1).transpose(1, 2, 0, 3).reshape(w1.shape[0], -1)
    prep["fc1_w"] = jnp.asarray(w1, jnp.bfloat16)
    prep["fc1_b"] = jnp.asarray(np.asarray(params["fc1_b"], np.float32).reshape(1, -1))
    assert params["fc2_w"].shape[1] == 1, "fused VPU head assumes out_dim == 1"
    prep["fc2_w"] = jnp.asarray(params["fc2_w"], jnp.float32).T        # (1, c3), f32 VPU path
    prep["fc2_b"] = jnp.asarray(params["fc2_b"], jnp.float32).reshape(1, 1)
    return prep


# ------------------------------- fused forward kernel ------------------------------- #
def _fused_forward_kernel(x_ref, c1w, c1b, c2w, c2b, c3w, c3b, c4w, c4b,
                          f1w, f1b, f2w, f2b, o_ref, a1, a2, a3, a4, *, metas):
    def swish(v):
        # sigmoid = 1 / (1 + exp(-v)): exp and approx reciprocal both go to the EUP,
        # keeping the epilogue off the VALU.
        return v * pl.reciprocal(1.0 + jnp.exp(-v), approx=True)

    def band_conv(src, w_ref, b_ref, dst, m):
        rows = dst.shape[0]
        bias = jnp.broadcast_to(b_ref[...], (rows, m.N))   # hoisted out of the band loop
        for bi, fs in enumerate(m.starts):
            acc = jnp.dot(src[:, fs:fs + m.K], w_ref[bi],
                          preferred_element_type=jnp.float32)
            dst[:, bi * m.N:(bi + 1) * m.N] = swish(acc + bias).astype(dst.dtype)

    band_conv(x_ref, c1w, c1b, a1, metas[0])
    band_conv(a1, c2w, c2b, a2, metas[1])
    band_conv(a2, c3w, c3b, a3, metas[2])
    band_conv(a3, c4w, c4b, a4, metas[3])

    # fc head: 256->64 matmul + Swish (MXU/f32), then the out_dim=1 projection as a
    # VPU multiply + lane reduction (no padded N=1 matmul); fc2 bias is an SMEM scalar.
    h = jnp.dot(a4[...], f1w[...], preferred_element_type=jnp.float32)
    h = swish(h + f1b[...])
    o_ref[...] = jnp.sum(h * f2w[...], axis=-1, keepdims=True) + f2b[0, 0]


def _vmem_limit_bytes():
    try:
        cap = int(pltpu.get_tpu_info().vmem_capacity_bytes)
    except Exception:
        cap = 64 * 1024 * 1024          # conservative (v7x-sized) fallback
    return int(min(cap - 16 * 1024 * 1024, 96 * 1024 * 1024))


def _pick_batch_tile(B):
    if B >= 16:
        # >= 2 grid steps so both v7x TensorCores get work; rows rounded to sublanes.
        return min(_TB, _round_up(-(-B // 2), 8))
    return B


# ------------------------------------ forward --------------------------------------- #
def deep_energy_forward(prep, x_nchw):
    """Forward pass == CNNModel.forward; returns per-image energy, shape (B,)."""
    B = x_nchw.shape[0]
    in_feats = _METAS[0].in_feats
    # NCHW flatten == NHWC flatten for Cin=1; zero-pad to the aligned window width.
    x = x_nchw.reshape(B, -1).astype(jnp.bfloat16)
    x = jnp.pad(x, ((0, 0), (0, in_feats - x.shape[1])))
    tb = _pick_batch_tile(B)
    grid = (-(-B // tb),)

    def _full(nd):
        return lambda i: (0,) * nd

    in_specs = [pl.BlockSpec((tb, in_feats), lambda i: (i, 0))]
    operands = [x]
    for l in range(1, 5):
        w, b = prep[f"conv{l}_w"], prep[f"conv{l}_b"]
        in_specs += [pl.BlockSpec(w.shape, _full(3)), pl.BlockSpec(b.shape, _full(2))]
        operands += [w, b]
    in_specs += [pl.BlockSpec(prep["fc1_w"].shape, _full(2)),
                 pl.BlockSpec(prep["fc1_b"].shape, _full(2)),
                 pl.BlockSpec(prep["fc2_w"].shape, _full(2)),
                 pl.BlockSpec(memory_space=pltpu.MemorySpace.SMEM)]
    operands += [prep["fc1_w"], prep["fc1_b"], prep["fc2_w"], prep["fc2_b"]]

    out = pl.pallas_call(
        functools.partial(_fused_forward_kernel, metas=_METAS),
        out_shape=jax.ShapeDtypeStruct((B, 1), jnp.float32),
        grid=grid,
        in_specs=in_specs,
        out_specs=pl.BlockSpec((tb, 1), lambda i: (i, 0)),
        scratch_shapes=[pltpu.VMEM((tb, m.out_feats), jnp.bfloat16) for m in _METAS],
        compiler_params=pltpu.CompilerParams(
            dimension_semantics=("parallel",),
            vmem_limit_bytes=_vmem_limit_bytes()),
    )(*operands)
    return out[:, 0]                    # == .squeeze(dim=-1) with out_dim == 1


# ------------------------------ pure-JAX reference ---------------------------------- #
def reference_forward(params, x_nchw):
    """Reference mirroring the kernel's dtype recipe (bf16 matmul operands, f32
    accumulation/epilogue); only deviation from the exact f32 PyTorch forward is
    the bf16 operand rounding and the approximate reciprocal in the kernel."""
    x = jnp.transpose(x_nchw, (0, 2, 3, 1)).astype(jnp.bfloat16)

    def conv_swish(x, w, b, s, p):
        y = jax.lax.conv_general_dilated(
            x, w.astype(jnp.bfloat16), (s, s), [(p, p), (p, p)],
            dimension_numbers=("NHWC", "HWIO", "NHWC"),
            preferred_element_type=jnp.float32) + b
        return (y * jax.nn.sigmoid(y)).astype(jnp.bfloat16)

    x = conv_swish(x, params["conv1_w"], params["conv1_b"], 2, 4)
    x = conv_swish(x, params["conv2_w"], params["conv2_b"], 2, 1)
    x = conv_swish(x, params["conv3_w"], params["conv3_b"], 2, 1)
    x = conv_swish(x, params["conv4_w"], params["conv4_b"], 2, 1)
    B = x.shape[0]
    x = jnp.transpose(x, (0, 3, 1, 2)).reshape(B, -1)          # PyTorch NCHW flatten
    h = jnp.dot(x, params["fc1_w"].astype(jnp.bfloat16),
                preferred_element_type=jnp.float32) + params["fc1_b"]
    h = h * jax.nn.sigmoid(h)
    out = h @ params["fc2_w"] + params["fc2_b"]
    return out[:, 0]


# TODO(synk): Sampler.generate_samples / sample_new_exmps (Langevin MCMC) require
# autograd w.r.t. the inputs and a stateful RNG/replay buffer; only the forward
# energy network is implemented here.

if __name__ == "__main__":
    key = jax.random.PRNGKey(0)
    pkey, xkey = jax.random.split(key)
    params = init_params(pkey, hidden_features=32, out_dim=1)
    prep = prepare_params(params)              # one-time repack, outside the forward

    # img_shape = (1, 28, 28) (implied by Linear(c_hid3*4, c_hid3)), batch = 2
    x = jax.random.uniform(xkey, (2, 1, 28, 28), jnp.float32) * 2.0 - 1.0

    fwd = jax.jit(deep_energy_forward)
    out = jax.block_until_ready(fwd(prep, x))

    ref = jax.block_until_ready(reference_forward(params, x))
    np.testing.assert_allclose(np.asarray(out, np.float32), np.asarray(ref, np.float32),
                               rtol=2e-2, atol=2e-2)
    assert out.shape == (2,)
    print("KERNEL_OK")
</pallas_src>

<mosaic_0001>
module attributes {stable_mosaic.version = 11 : i64} {
  func.func @_fused_forward_kernel(%arg0: i32, %arg1: memref<2x1024xbf16, #tpu.memory_space<vmem>>, %arg2: memref<16x260x256xbf16, #tpu.memory_space<vmem>>, %arg3: memref<1x256xf32, #tpu.memory_space<vmem>>, %arg4: memref<8x768x256xbf16, #tpu.memory_space<vmem>>, %arg5: memref<1x256xf32, #tpu.memory_space<vmem>>, %arg6: memref<4x768x256xbf16, #tpu.memory_space<vmem>>, %arg7: memref<1x256xf32, #tpu.memory_space<vmem>>, %arg8: memref<2x768x128xbf16, #tpu.memory_space<vmem>>, %arg9: memref<1x128xf32, #tpu.memory_space<vmem>>, %arg10: memref<256x64xbf16, #tpu.memory_space<vmem>>, %arg11: memref<1x64xf32, #tpu.memory_space<vmem>>, %arg12: memref<1x64xf32, #tpu.memory_space<vmem>>, %arg13: memref<1x1xf32, #tpu.memory_space<smem>>, %arg14: memref<2x1xf32, #tpu.memory_space<vmem>>, %arg15: memref<2x4096xbf16, #tpu.memory_space<vmem>>, %arg16: memref<2x2048xbf16, #tpu.memory_space<vmem>>, %arg17: memref<2x1024xbf16, #tpu.memory_space<vmem>>, %arg18: memref<2x256xbf16, #tpu.memory_space<vmem>>) attributes {dimension_semantics = [#tpu.dimension_semantics<parallel>], iteration_bounds = array<i64: 1>, scalar_prefetch = 0 : i64, scratch_operands = 4 : i64, tpu.core_type = #tpu.core_type<tc>, window_params = [{transform_indices = @transform_0, window_bounds = array<i64: 2, 1024>}, {pipeline_mode = #tpu.pipeline_mode<synchronous>, transform_indices = @transform_1, window_bounds = array<i64: 16, 260, 256>}, {pipeline_mode = #tpu.pipeline_mode<synchronous>, transform_indices = @transform_2, window_bounds = array<i64: 1, 256>}, {pipeline_mode = #tpu.pipeline_mode<synchronous>, transform_indices = @transform_3, window_bounds = array<i64: 8, 768, 256>}, {pipeline_mode = #tpu.pipeline_mode<synchronous>, transform_indices = @transform_4, window_bounds = array<i64: 1, 256>}, {pipeline_mode = #tpu.pipeline_mode<synchronous>, transform_indices = @transform_5, window_bounds = array<i64: 4, 768, 256>}, {pipeline_mode = #tpu.pipeline_mode<synchronous>, transform_indices = @transform_6, window_bounds = array<i64: 1, 256>}, {pipeline_mode = #tpu.pipeline_mode<synchronous>, transform_indices = @transform_7, window_bounds = array<i64: 2, 768, 128>}, {pipeline_mode = #tpu.pipeline_mode<synchronous>, transform_indices = @transform_8, window_bounds = array<i64: 1, 128>}, {pipeline_mode = #tpu.pipeline_mode<synchronous>, transform_indices = @transform_9, window_bounds = array<i64: 256, 64>}, {pipeline_mode = #tpu.pipeline_mode<synchronous>, transform_indices = @transform_10, window_bounds = array<i64: 1, 64>}, {pipeline_mode = #tpu.pipeline_mode<synchronous>, transform_indices = @transform_11, window_bounds = array<i64: 1, 64>}, {transform_indices = @transform_12, window_bounds = array<i64: 1, 1>}, {transform_indices = @transform_13, window_bounds = array<i64: 2, 1>}]} {
    %c0 = arith.constant 0 : index
    %c0_0 = arith.constant 0 : index
    %0 = vector.load %arg3[%c0, %c0_0] : memref<1x256xf32, #tpu.memory_space<vmem>>, vector<1x256xf32>
    %1 = vector.shape_cast %0 : vector<1x256xf32> to vector<1x256xf32>
    %2 = vector.broadcast %1 : vector<1x256xf32> to vector<2x256xf32>
    %c0_1 = arith.constant 0 : index
    %c0_2 = arith.constant 0 : index
    %3 = vector.load %arg1[%c0_1, %c0_2] : memref<2x1024xbf16, #tpu.memory_space<vmem>>, vector<2x260xbf16>
    %c0_3 = arith.constant 0 : index
    %c0_4 = arith.constant 0 : index
    %c0_5 = arith.constant 0 : index
    %4 = vector.load %arg2[%c0_3, %c0_4, %c0_5] : memref<16x260x256xbf16, #tpu.memory_space<vmem>>, vector<1x260x256xbf16>
    %5 = vector.shape_cast %4 : vector<1x260x256xbf16> to vector<260x256xbf16>
    %cst = arith.constant dense<0.000000e+00> : vector<2x256xf32>
    %6 = tpu.matmul %3, %5, %cst {dimension_numbers = #tpu.dot_dimension_numbers<[1], [0], [0], [1], [0, 0, 1, 1], [], []>} : vector<2x260xbf16>, vector<260x256xbf16>, vector<2x256xf32> -> vector<2x256xf32>
    %7 = arith.addf %6, %2 : vector<2x256xf32>
    %cst_6 = arith.constant 0.000000e+00 : f32
    %8 = vector.broadcast %cst_6 : f32 to vector<2x256xf32>
    %9 = arith.subf %8, %7 : vector<2x256xf32>
    %10 = math.exp %9 : vector<2x256xf32>
    %cst_7 = arith.constant 1.000000e+00 : f32
    %11 = vector.broadcast %cst_7 : f32 to vector<2x256xf32>
    %12 = arith.addf %11, %10 : vector<2x256xf32>
    %13 = tpu.reciprocal %12 {approx = true} : vector<2x256xf32> -> vector<2x256xf32>
    %14 = arith.mulf %7, %13 : vector<2x256xf32>
    %15 = arith.truncf %14 : vector<2x256xf32> to vector<2x256xbf16>
    %c0_8 = arith.constant 0 : index
    %c0_9 = arith.constant 0 : index
    %16 = vector.load %arg15[%c0_8, %c0_9] : memref<2x4096xbf16, #tpu.memory_space<vmem>>, vector<2x256xbf16>
    tpu.vector_store %arg15[%c0_8, %c0_9], %15 {strides = array<i32>} : memref<2x4096xbf16, #tpu.memory_space<vmem>>, vector<2x256xbf16>,
    %c0_10 = arith.constant 0 : index
    %c0_11 = arith.constant 0 : index
    %17 = vector.load %arg1[%c0_10, %c0_11] : memref<2x1024xbf16, #tpu.memory_space<vmem>>, vector<2x260xbf16>
    %c1 = arith.constant 1 : index
    %c0_12 = arith.constant 0 : index
    %c0_13 = arith.constant 0 : index
    %18 = vector.load %arg2[%c1, %c0_12, %c0_13] : memref<16x260x256xbf16, #tpu.memory_space<vmem>>, vector<1x260x256xbf16>
    %19 = vector.shape_cast %18 : vector<1x260x256xbf16> to vector<260x256xbf16>
    %cst_14 = arith.constant dense<0.000000e+00> : vector<2x256xf32>
    %20 = tpu.matmul %17, %19, %cst_14 {dimension_numbers = #tpu.dot_dimension_numbers<[1], [0], [0], [1], [0, 0, 1, 1], [], []>} : vector<2x260xbf16>, vector<260x256xbf16>, vector<2x256xf32> -> vector<2x256xf32>
    %21 = arith.addf %20, %2 : vector<2x256xf32>
    %cst_15 = arith.constant 0.000000e+00 : f32
    %22 = vector.broadcast %cst_15 : f32 to vector<2x256xf32>
    %23 = arith.subf %22, %21 : vector<2x256xf32>
    %24 = math.exp %23 : vector<2x256xf32>
    %cst_16 = arith.constant 1.000000e+00 : f32
    %25 = vector.broadcast %cst_16 : f32 to vector<2x256xf32>
    %26 = arith.addf %25, %24 : vector<2x256xf32>
    %27 = tpu.reciprocal %26 {approx = true} : vector<2x256xf32> -> vector<2x256xf32>
    %28 = arith.mulf %21, %27 : vector<2x256xf32>
    %29 = arith.truncf %28 : vector<2x256xf32> to vector<2x256xbf16>
    %c0_17 = arith.constant 0 : index
    %c256 = arith.constant 256 : index
    %30 = vector.load %arg15[%c0_17, %c256] : memref<2x4096xbf16, #tpu.memory_space<vmem>>, vector<2x256xbf16>
    tpu.vector_store %arg15[%c0_17, %c256], %29 {strides = array<i32>} : memref<2x4096xbf16, #tpu.memory_space<vmem>>, vector<2x256xbf16>,
    %c0_18 = arith.constant 0 : index
    %c0_19 = arith.constant 0 : index
    %31 = vector.load %arg1[%c0_18, %c0_19] : memref<2x1024xbf16, #tpu.memory_space<vmem>>, vector<2x260xbf16>
    %c2 = arith.constant 2 : index
    %c0_20 = arith.constant 0 : index
    %c0_21 = arith.constant 0 : index
    %32 = vector.load %arg2[%c2, %c0_20, %c0_21] : memref<16x260x256xbf16, #tpu.memory_space<vmem>>, vector<1x260x256xbf16>
    %33 = vector.shape_cast %32 : vector<1x260x256xbf16> to vector<260x256xbf16>
    %cst_22 = arith.constant dense<0.000000e+00> : vector<2x256xf32>
    %34 = tpu.matmul %31, %33, %cst_22 {dimension_numbers = #tpu.dot_dimension_numbers<[1], [0], [0], [1], [0, 0, 1, 1], [], []>} : vector<2x260xbf16>, vector<260x256xbf16>, vector<2x256xf32> -> vector<2x256xf32>
    %35 = arith.addf %34, %2 : vector<2x256xf32>
    %cst_23 = arith.constant 0.000000e+00 : f32
    %36 = vector.broadcast %cst_23 : f32 to vector<2x256xf32>
    %37 = arith.subf %36, %35 : vector<2x256xf32>
    %38 = math.exp %37 : vector<2x256xf32>
    %cst_24 = arith.constant 1.000000e+00 : f32
    %39 = vector.broadcast %cst_24 : f32 to vector<2x256xf32>
    %40 = arith.addf %39, %38 : vector<2x256xf32>
    %41 = tpu.reciprocal %40 {approx = true} : vector<2x256xf32> -> vector<2x256xf32>
    %42 = arith.mulf %35, %41 : vector<2x256xf32>
    %43 = arith.truncf %42 : vector<2x256xf32> to vector<2x256xbf16>
    %c0_25 = arith.constant 0 : index
    %c512 = arith.constant 512 : index
    %44 = vector.load %arg15[%c0_25, %c512] : memref<2x4096xbf16, #tpu.memory_space<vmem>>, vector<2x256xbf16>
    tpu.vector_store %arg15[%c0_25, %c512], %43 {strides = array<i32>} : memref<2x4096xbf16, #tpu.memory_space<vmem>>, vector<2x256xbf16>,
    %c0_26 = arith.constant 0 : index
    %c0_27 = arith.constant 0 : index
    %45 = vector.load %arg1[%c0_26, %c0_27] : memref<2x1024xbf16, #tpu.memory_space<vmem>>, vector<2x260xbf16>
    %c3 = arith.constant 3 : index
    %c0_28 = arith.constant 0 : index
    %c0_29 = arith.constant 0 : index
    %46 = vector.load %arg2[%c3, %c0_28, %c0_29] : memref<16x260x256xbf16, #tpu.memory_space<vmem>>, vector<1x260x256xbf16>
    %47 = vector.shape_cast %46 : vector<1x260x256xbf16> to vector<260x256xbf16>
    %cst_30 = arith.constant dense<0.000000e+00> : vector<2x256xf32>
    %48 = tpu.matmul %45, %47, %cst_30 {dimension_numbers = #tpu.dot_dimension_numbers<[1], [0], [0], [1], [0, 0, 1, 1], [], []>} : vector<2x260xbf16>, vector<260x256xbf16>, vector<2x256xf32> -> vector<2x256xf32>
    %49 = arith.addf %48, %2 : vector<2x256xf32>
    %cst_31 = arith.constant 0.000000e+00 : f32
    %50 = vector.broadcast %cst_31 : f32 to vector<2x256xf32>
    %51 = arith.subf %50, %49 : vector<2x256xf32>
    %52 = math.exp %51 : vector<2x256xf32>
    %cst_32 = arith.constant 1.000000e+00 : f32
    %53 = vector.broadcast %cst_32 : f32 to vector<2x256xf32>
    %54 = arith.addf %53, %52 : vector<2x256xf32>
    %55 = tpu.reciprocal %54 {approx = true} : vector<2x256xf32> -> vector<2x256xf32>
    %56 = arith.mulf %49, %55 : vector<2x256xf32>
    %57 = arith.truncf %56 : vector<2x256xf32> to vector<2x256xbf16>
    %c0_33 = arith.constant 0 : index
    %c768 = arith.constant 768 : index
    %58 = vector.load %arg15[%c0_33, %c768] : memref<2x4096xbf16, #tpu.memory_space<vmem>>, vector<2x256xbf16>
    tpu.vector_store %arg15[%c0_33, %c768], %57 {strides = array<i32>} : memref<2x4096xbf16, #tpu.memory_space<vmem>>, vector<2x256xbf16>,
    %c0_34 = arith.constant 0 : index
    %c0_35 = arith.constant 0 : index
    %59 = vector.load %arg1[%c0_34, %c0_35] : memref<2x1024xbf16, #tpu.memory_space<vmem>>, vector<2x260xbf16>
    %c4 = arith.constant 4 : index
    %c0_36 = arith.constant 0 : index
    %c0_37 = arith.constant 0 : index
    %60 = vector.load %arg2[%c4, %c0_36, %c0_37] : memref<16x260x256xbf16, #tpu.memory_space<vmem>>, vector<1x260x256xbf16>
    %61 = vector.shape_cast %60 : vector<1x260x256xbf16> to vector<260x256xbf16>
    %cst_38 = arith.constant dense<0.000000e+00> : vector<2x256xf32>
    %62 = tpu.matmul %59, %61, %cst_38 {dimension_numbers = #tpu.dot_dimension_numbers<[1], [0], [0], [1], [0, 0, 1, 1], [], []>} : vector<2x260xbf16>, vector<260x256xbf16>, vector<2x256xf32> -> vector<2x256xf32>
    %63 = arith.addf %62, %2 : vector<2x256xf32>
    %cst_39 = arith.constant 0.000000e+00 : f32
    %64 = vector.broadcast %cst_39 : f32 to vector<2x256xf32>
    %65 = arith.subf %64, %63 : vector<2x256xf32>
    %66 = math.exp %65 : vector<2x256xf32>
    %cst_40 = arith.constant 1.000000e+00 : f32
    %67 = vector.broadcast %cst_40 : f32 to vector<2x256xf32>
    %68 = arith.addf %67, %66 : vector<2x256xf32>
    %69 = tpu.reciprocal %68 {approx = true} : vector<2x256xf32> -> vector<2x256xf32>
    %70 = arith.mulf %63, %69 : vector<2x256xf32>
    %71 = arith.truncf %70 : vector<2x256xf32> to vector<2x256xbf16>
    %c0_41 = arith.constant 0 : index
    %c1024 = arith.constant 1024 : index
    %72 = vector.load %arg15[%c0_41, %c1024] : memref<2x4096xbf16, #tpu.memory_space<vmem>>, vector<2x256xbf16>
    tpu.vector_store %arg15[%c0_41, %c1024], %71 {strides = array<i32>} : memref<2x4096xbf16, #tpu.memory_space<vmem>>, vector<2x256xbf16>,
    %c0_42 = arith.constant 0 : index
    %c128 = arith.constant 128 : index
    %73 = vector.load %arg1[%c0_42, %c128] : memref<2x1024xbf16, #tpu.memory_space<vmem>>, vector<2x260xbf16>
    %c5 = arith.constant 5 : index
    %c0_43 = arith.constant 0 : index
    %c0_44 = arith.constant 0 : index
    %74 = vector.load %arg2[%c5, %c0_43, %c0_44] : memref<16x260x256xbf16, #tpu.memory_space<vmem>>, vector<1x260x256xbf16>
    %75 = vector.shape_cast %74 : vector<1x260x256xbf16> to vector<260x256xbf16>
    %cst_45 = arith.constant dense<0.000000e+00> : vector<2x256xf32>
    %76 = tpu.matmul %73, %75, %cst_45 {dimension_numbers = #tpu.dot_dimension_numbers<[1], [0], [0], [1], [0, 0, 1, 1], [], []>} : vector<2x260xbf16>, vector<260x256xbf16>, vector<2x256xf32> -> vector<2x256xf32>
    %77 = arith.addf %76, %2 : vector<2x256xf32>
    %cst_46 = arith.constant 0.000000e+00 : f32
    %78 = vector.broadcast %cst_46 : f32 to vector<2x256xf32>
    %79 = arith.subf %78, %77 : vector<2x256xf32>
    %80 = math.exp %79 : vector<2x256xf32>
    %cst_47 = arith.constant 1.000000e+00 : f32
    %81 = vector.broadcast %cst_47 : f32 to vector<2x256xf32>
    %82 = arith.addf %81, %80 : vector<2x256xf32>
    %83 = tpu.reciprocal %82 {approx = true} : vector<2x256xf32> -> vector<2x256xf32>
    %84 = arith.mulf %77, %83 : vector<2x256xf32>
    %85 = arith.truncf %84 : vector<2x256xf32> to vector<2x256xbf16>
    %c0_48 = arith.constant 0 : index
    %c1280 = arith.constant 1280 : index
    %86 = vector.load %arg15[%c0_48, %c1280] : memref<2x4096xbf16, #tpu.memory_space<vmem>>, vector<2x256xbf16>
    tpu.vector_store %arg15[%c0_48, %c1280], %85 {strides = array<i32>} : memref<2x4096xbf16, #tpu.memory_space<vmem>>, vector<2x256xbf16>,
    %c0_49 = arith.constant 0 : index
    %c128_50 = arith.constant 128 : index
    %87 = vector.load %arg1[%c0_49, %c128_50] : memref<2x1024xbf16, #tpu.memory_space<vmem>>, vector<2x260xbf16>
    %c6 = arith.constant 6 : index
    %c0_51 = arith.constant 0 : index
    %c0_52 = arith.constant 0 : index
    %88 = vector.load %arg2[%c6, %c0_51, %c0_52] : memref<16x260x256xbf16, #tpu.memory_space<vmem>>, vector<1x260x256xbf16>
    %89 = vector.shape_cast %88 : vector<1x260x256xbf16> to vector<260x256xbf16>
    %cst_53 = arith.constant dense<0.000000e+00> : vector<2x256xf32>
    %90 = tpu.matmul %87, %89, %cst_53 {dimension_numbers = #tpu.dot_dimension_numbers<[1], [0], [0], [1], [0, 0, 1, 1], [], []>} : vector<2x260xbf16>, vector<260x256xbf16>, vector<2x256xf32> -> vector<2x256xf32>
    %91 = arith.addf %90, %2 : vector<2x256xf32>
    %cst_54 = arith.constant 0.000000e+00 : f32
    %92 = vector.broadcast %cst_54 : f32 to vector<2x256xf32>
    %93 = arith.subf %92, %91 : vector<2x256xf32>
    %94 = math.exp %93 : vector<2x256xf32>
    %cst_55 = arith.constant 1.000000e+00 : f32
    %95 = vector.broadcast %cst_55 : f32 to vector<2x256xf32>
    %96 = arith.addf %95, %94 : vector<2x256xf32>
    %97 = tpu.reciprocal %96 {approx = true} : vector<2x256xf32> -> vector<2x256xf32>
    %98 = arith.mulf %91, %97 : vector<2x256xf32>
    %99 = arith.truncf %98 : vector<2x256xf32> to vector<2x256xbf16>
    %c0_56 = arith.constant 0 : index
    %c1536 = arith.constant 1536 : index
    %100 = vector.load %arg15[%c0_56, %c1536] : memref<2x4096xbf16, #tpu.memory_space<vmem>>, vector<2x256xbf16>
    tpu.vector_store %arg15[%c0_56, %c1536], %99 {strides = array<i32>} : memref<2x4096xbf16, #tpu.memory_space<vmem>>, vector<2x256xbf16>,
    %c0_57 = arith.constant 0 : index
    %c256_58 = arith.constant 256 : index
    %101 = vector.load %arg1[%c0_57, %c256_58] : memref<2x1024xbf16, #tpu.memory_space<vmem>>, vector<2x260xbf16>
    %c7 = arith.constant 7 : index
    %c0_59 = arith.constant 0 : index
    %c0_60 = arith.constant 0 : index
    %102 = vector.load %arg2[%c7, %c0_59, %c0_60] : memref<16x260x256xbf16, #tpu.memory_space<vmem>>, vector<1x260x256xbf16>
    %103 = vector.shape_cast %102 : vector<1x260x256xbf16> to vector<260x256xbf16>
    %cst_61 = arith.constant dense<0.000000e+00> : vector<2x256xf32>
    %104 = tpu.matmul %101, %103, %cst_61 {dimension_numbers = #tpu.dot_dimension_numbers<[1], [0], [0], [1], [0, 0, 1, 1], [], []>} : vector<2x260xbf16>, vector<260x256xbf16>, vector<2x256xf32> -> vector<2x256xf32>
    %105 = arith.addf %104, %2 : vector<2x256xf32>
    %cst_62 = arith.constant 0.000000e+00 : f32
    %106 = vector.broadcast %cst_62 : f32 to vector<2x256xf32>
    %107 = arith.subf %106, %105 : vector<2x256xf32>
    %108 = math.exp %107 : vector<2x256xf32>
    %cst_63 = arith.constant 1.000000e+00 : f32
    %109 = vector.broadcast %cst_63 : f32 to vector<2x256xf32>
    %110 = arith.addf %109, %108 : vector<2x256xf32>
    %111 = tpu.reciprocal %110 {approx = true} : vector<2x256xf32> -> vector<2x256xf32>
    %112 = arith.mulf %105, %111 : vector<2x256xf32>
    %113 = arith.truncf %112 : vector<2x256xf32> to vector<2x256xbf16>
    %c0_64 = arith.constant 0 : index
    %c1792 = arith.constant 1792 : index
    %114 = vector.load %arg15[%c0_64, %c1792] : memref<2x4096xbf16, #tpu.memory_space<vmem>>, vector<2x256xbf16>
    tpu.vector_store %arg15[%c0_64, %c1792], %113 {strides = array<i32>} : memref<2x4096xbf16, #tpu.memory_space<vmem>>, vector<2x256xbf16>,
    %c0_65 = arith.constant 0 : index
    %c256_66 = arith.constant 256 : index
    %115 = vector.load %arg1[%c0_65, %c256_66] : memref<2x1024xbf16, #tpu.memory_space<vmem>>, vector<2x260xbf16>
    %c8 = arith.constant 8 : index
    %c0_67 = arith.constant 0 : index
    %c0_68 = arith.constant 0 : index
    %116 = vector.load %arg2[%c8, %c0_67, %c0_68] : memref<16x260x256xbf16, #tpu.memory_space<vmem>>, vector<1x260x256xbf16>
    %117 = vector.shape_cast %116 : vector<1x260x256xbf16> to vector<260x256xbf16>
    %cst_69 = arith.constant dense<0.000000e+00> : vector<2x256xf32>
    %118 = tpu.matmul %115, %117, %cst_69 {dimension_numbers = #tpu.dot_dimension_numbers<[1], [0], [0], [1], [0, 0, 1, 1], [], []>} : vector<2x260xbf16>, vector<260x256xbf16>, vector<2x256xf32> -> vector<2x256xf32>
    %119 = arith.addf %118, %2 : vector<2x256xf32>
    %cst_70 = arith.constant 0.000000e+00 : f32
    %120 = vector.broadcast %cst_70 : f32 to vector<2x256xf32>
    %121 = arith.subf %120, %119 : vector<2x256xf32>
    %122 = math.exp %121 : vector<2x256xf32>
    %cst_71 = arith.constant 1.000000e+00 : f32
    %123 = vector.broadcast %cst_71 : f32 to vector<2x256xf32>
    %124 = arith.addf %123, %122 : vector<2x256xf32>
    %125 = tpu.reciprocal %124 {approx = true} : vector<2x256xf32> -> vector<2x256xf32>
    %126 = arith.mulf %119, %125 : vector<2x256xf32>
    %127 = arith.truncf %126 : vector<2x256xf32> to vector<2x256xbf16>
    %c0_72 = arith.constant 0 : index
    %c2048 = arith.constant 2048 : index
    %128 = vector.load %arg15[%c0_72, %c2048] : memref<2x4096xbf16, #tpu.memory_space<vmem>>, vector<2x256xbf16>
    tpu.vector_store %arg15[%c0_72, %c2048], %127 {strides = array<i32>} : memref<2x4096xbf16, #tpu.memory_space<vmem>>, vector<2x256xbf16>,
    %c0_73 = arith.constant 0 : index
    %c384 = arith.constant 384 : index
    %129 = vector.load %arg1[%c0_73, %c384] : memref<2x1024xbf16, #tpu.memory_space<vmem>>, vector<2x260xbf16>
    %c9 = arith.constant 9 : index
    %c0_74 = arith.constant 0 : index
    %c0_75 = arith.constant 0 : index
    %130 = vector.load %arg2[%c9, %c0_74, %c0_75] : memref<16x260x256xbf16, #tpu.memory_space<vmem>>, vector<1x260x256xbf16>
    %131 = vector.shape_cast %130 : vector<1x260x256xbf16> to vector<260x256xbf16>
    %cst_76 = arith.constant dense<0.000000e+00> : vector<2x256xf32>
    %132 = tpu.matmul %129, %131, %cst_76 {dimension_numbers = #tpu.dot_dimension_numbers<[1], [0], [0], [1], [0, 0, 1, 1], [], []>} : vector<2x260xbf16>, vector<260x256xbf16>, vector<2x256xf32> -> vector<2x256xf32>
    %133 = arith.addf %132, %2 : vector<2x256xf32>
    %cst_77 = arith.constant 0.000000e+00 : f32
    %134 = vector.broadcast %cst_77 : f32 to vector<2x256xf32>
    %135 = arith.subf %134, %133 : vector<2x256xf32>
    %136 = math.exp %135 : vector<2x256xf32>
    %cst_78 = arith.constant 1.000000e+00 : f32
    %137 = vector.broadcast %cst_78 : f32 to vector<2x256xf32>
    %138 = arith.addf %137, %136 : vector<2x256xf32>
    %139 = tpu.reciprocal %138 {approx = true} : vector<2x256xf32> -> vector<2x256xf32>
    %140 = arith.mulf %133, %139 : vector<2x256xf32>
    %141 = arith.truncf %140 : vector<2x256xf32> to vector<2x256xbf16>
    %c0_79 = arith.constant 0 : index
    %c2304 = arith.constant 2304 : index
    %142 = vector.load %arg15[%c0_79, %c2304] : memref<2x4096xbf16, #tpu.memory_space<vmem>>, vector<2x256xbf16>
    tpu.vector_store %arg15[%c0_79, %c2304], %141 {strides = array<i32>} : memref<2x4096xbf16, #tpu.memory_space<vmem>>, vector<2x256xbf16>,
    %c0_80 = arith.constant 0 : index
    %c384_81 = arith.constant 384 : index
    %143 = vector.load %arg1[%c0_80, %c384_81] : memref<2x1024xbf16, #tpu.memory_space<vmem>>, vector<2x260xbf16>
    %c10 = arith.constant 10 : index
    %c0_82 = arith.constant 0 : index
    %c0_83 = arith.constant 0 : index
    %144 = vector.load %arg2[%c10, %c0_82, %c0_83] : memref<16x260x256xbf16, #tpu.memory_space<vmem>>, vector<1x260x256xbf16>
    %145 = vector.shape_cast %144 : vector<1x260x256xbf16> to vector<260x256xbf16>
    %cst_84 = arith.constant dense<0.000000e+00> : vector<2x256xf32>
    %146 = tpu.matmul %143, %145, %cst_84 {dimension_numbers = #tpu.dot_dimension_numbers<[1], [0], [0], [1], [0, 0, 1, 1], [], []>} : vector<2x260xbf16>, vector<260x256xbf16>, vector<2x256xf32> -> vector<2x256xf32>
    %147 = arith.addf %146, %2 : vector<2x256xf32>
    %cst_85 = arith.constant 0.000000e+00 : f32
    %148 = vector.broadcast %cst_85 : f32 to vector<2x256xf32>
    %149 = arith.subf %148, %147 : vector<2x256xf32>
    %150 = math.exp %149 : vector<2x256xf32>
    %cst_86 = arith.constant 1.000000e+00 : f32
    %151 = vector.broadcast %cst_86 : f32 to vector<2x256xf32>
    %152 = arith.addf %151, %150 : vector<2x256xf32>
    %153 = tpu.reciprocal %152 {approx = true} : vector<2x256xf32> -> vector<2x256xf32>
    %154 = arith.mulf %147, %153 : vector<2x256xf32>
    %155 = arith.truncf %154 : vector<2x256xf32> to vector<2x256xbf16>
    %c0_87 = arith.constant 0 : index
    %c2560 = arith.constant 2560 : index
    %156 = vector.load %arg15[%c0_87, %c2560] : memref<2x4096xbf16, #tpu.memory_space<vmem>>, vector<2x256xbf16>
    tpu.vector_store %arg15[%c0_87, %c2560], %155 {strides = array<i32>} : memref<2x4096xbf16, #tpu.memory_space<vmem>>, vector<2x256xbf16>,
    %c0_88 = arith.constant 0 : index
    %c384_89 = arith.constant 384 : index
    %157 = vector.load %arg1[%c0_88, %c384_89] : memref<2x1024xbf16, #tpu.memory_space<vmem>>, vector<2x260xbf16>
    %c11 = arith.constant 11 : index
    %c0_90 = arith.constant 0 : index
    %c0_91 = arith.constant 0 : index
    %158 = vector.load %arg2[%c11, %c0_90, %c0_91] : memref<16x260x256xbf16, #tpu.memory_space<vmem>>, vector<1x260x256xbf16>
    %159 = vector.shape_cast %158 : vector<1x260x256xbf16> to vector<260x256xbf16>
    %cst_92 = arith.constant dense<0.000000e+00> : vector<2x256xf32>
    %160 = tpu.matmul %157, %159, %cst_92 {dimension_numbers = #tpu.dot_dimension_numbers<[1], [0], [0], [1], [0, 0, 1, 1], [], []>} : vector<2x260xbf16>, vector<260x256xbf16>, vector<2x256xf32> -> vector<2x256xf32>
    %161 = arith.addf %160, %2 : vector<2x256xf32>
    %cst_93 = arith.constant 0.000000e+00 : f32
    %162 = vector.broadcast %cst_93 : f32 to vector<2x256xf32>
    %163 = arith.subf %162, %161 : vector<2x256xf32>
    %164 = math.exp %163 : vector<2x256xf32>
    %cst_94 = arith.constant 1.000000e+00 : f32
    %165 = vector.broadcast %cst_94 : f32 to vector<2x256xf32>
    %166 = arith.addf %165, %164 : vector<2x256xf32>
    %167 = tpu.reciprocal %166 {approx = true} : vector<2x256xf32> -> vector<2x256xf32>
    %168 = arith.mulf %161, %167 : vector<2x256xf32>
    %169 = arith.truncf %168 : vector<2x256xf32> to vector<2x256xbf16>
    %c0_95 = arith.constant 0 : index
    %c2816 = arith.constant 2816 : index
    %170 = vector.load %arg15[%c0_95, %c2816] : memref<2x4096xbf16, #tpu.memory_space<vmem>>, vector<2x256xbf16>
    tpu.vector_store %arg15[%c0_95, %c2816], %169 {strides = array<i32>} : memref<2x4096xbf16, #tpu.memory_space<vmem>>, vector<2x256xbf16>,
    %c0_96 = arith.constant 0 : index
    %c512_97 = arith.constant 512 : index
    %171 = vector.load %arg1[%c0_96, %c512_97] : memref<2x1024xbf16, #tpu.memory_space<vmem>>, vector<2x260xbf16>
    %c12 = arith.constant 12 : index
    %c0_98 = arith.constant 0 : index
    %c0_99 = arith.constant 0 : index
    %172 = vector.load %arg2[%c12, %c0_98, %c0_99] : memref<16x260x256xbf16, #tpu.memory_space<vmem>>, vector<1x260x256xbf16>
    %173 = vector.shape_cast %172 : vector<1x260x256xbf16> to vector<260x256xbf16>
    %cst_100 = arith.constant dense<0.000000e+00> : vector<2x256xf32>
    %174 = tpu.matmul %171, %173, %cst_100 {dimension_numbers = #tpu.dot_dimension_numbers<[1], [0], [0], [1], [0, 0, 1, 1], [], []>} : vector<2x260xbf16>, vector<260x256xbf16>, vector<2x256xf32> -> vector<2x256xf32>
    %175 = arith.addf %174, %2 : vector<2x256xf32>
    %cst_101 = arith.constant 0.000000e+00 : f32
    %176 = vector.broadcast %cst_101 : f32 to vector<2x256xf32>
    %177 = arith.subf %176, %175 : vector<2x256xf32>
    %178 = math.exp %177 : vector<2x256xf32>
    %cst_102 = arith.constant 1.000000e+00 : f32
    %179 = vector.broadcast %cst_102 : f32 to vector<2x256xf32>
    %180 = arith.addf %179, %178 : vector<2x256xf32>
    %181 = tpu.reciprocal %180 {approx = true} : vector<2x256xf32> -> vector<2x256xf32>
    %182 = arith.mulf %175, %181 : vector<2x256xf32>
    %183 = arith.truncf %182 : vector<2x256xf32> to vector<2x256xbf16>
    %c0_103 = arith.constant 0 : index
    %c3072 = arith.constant 3072 : index
    %184 = vector.load %arg15[%c0_103, %c3072] : memref<2x4096xbf16, #tpu.memory_space<vmem>>, vector<2x256xbf16>
    tpu.vector_store %arg15[%c0_103, %c3072], %183 {strides = array<i32>} : memref<2x4096xbf16, #tpu.memory_space<vmem>>, vector<2x256xbf16>,
    %c0_104 = arith.constant 0 : index
    %c512_105 = arith.constant 512 : index
    %185 = vector.load %arg1[%c0_104, %c512_105] : memref<2x1024xbf16, #tpu.memory_space<vmem>>, vector<2x260xbf16>
    %c13 = arith.constant 13 : index
    %c0_106 = arith.constant 0 : index
    %c0_107 = arith.constant 0 : index
    %186 = vector.load %arg2[%c13, %c0_106, %c0_107] : memref<16x260x256xbf16, #tpu.memory_space<vmem>>, vector<1x260x256xbf16>
    %187 = vector.shape_cast %186 : vector<1x260x256xbf16> to vector<260x256xbf16>
    %cst_108 = arith.constant dense<0.000000e+00> : vector<2x256xf32>
    %188 = tpu.matmul %185, %187, %cst_108 {dimension_numbers = #tpu.dot_dimension_numbers<[1], [0], [0], [1], [0, 0, 1, 1], [], []>} : vector<2x260xbf16>, vector<260x256xbf16>, vector<2x256xf32> -> vector<2x256xf32>
    %189 = arith.addf %188, %2 : vector<2x256xf32>
    %cst_109 = arith.constant 0.000000e+00 : f32
    %190 = vector.broadcast %cst_109 : f32 to vector<2x256xf32>
    %191 = arith.subf %190, %189 : vector<2x256xf32>
    %192 = math.exp %191 : vector<2x256xf32>
    %cst_110 = arith.constant 1.000000e+00 : f32
    %193 = vector.broadcast %cst_110 : f32 to vector<2x256xf32>
    %194 = arith.addf %193, %192 : vector<2x256xf32>
    %195 = tpu.reciprocal %194 {approx = true} : vector<2x256xf32> -> vector<2x256xf32>
    %196 = arith.mulf %189, %195 : vector<2x256xf32>
    %197 = arith.truncf %196 : vector<2x256xf32> to vector<2x256xbf16>
    %c0_111 = arith.constant 0 : index
    %c3328 = arith.constant 3328 : index
    %198 = vector.load %arg15[%c0_111, %c3328] : memref<2x4096xbf16, #tpu.memory_space<vmem>>, vector<2x256xbf16>
    tpu.vector_store %arg15[%c0_111, %c3328], %197 {strides = array<i32>} : memref<2x4096xbf16, #tpu.memory_space<vmem>>, vector<2x256xbf16>,
    %c0_112 = arith.constant 0 : index
    %c640 = arith.constant 640 : index
    %199 = vector.load %arg1[%c0_112, %c640] : memref<2x1024xbf16, #tpu.memory_space<vmem>>, vector<2x260xbf16>
    %c14 = arith.constant 14 : index
    %c0_113 = arith.constant 0 : index
    %c0_114 = arith.constant 0 : index
    %200 = vector.load %arg2[%c14, %c0_113, %c0_114] : memref<16x260x256xbf16, #tpu.memory_space<vmem>>, vector<1x260x256xbf16>
    %201 = vector.shape_cast %200 : vector<1x260x256xbf16> to vector<260x256xbf16>
    %cst_115 = arith.constant dense<0.000000e+00> : vector<2x256xf32>
    %202 = tpu.matmul %199, %201, %cst_115 {dimension_numbers = #tpu.dot_dimension_numbers<[1], [0], [0], [1], [0, 0, 1, 1], [], []>} : vector<2x260xbf16>, vector<260x256xbf16>, vector<2x256xf32> -> vector<2x256xf32>
    %203 = arith.addf %202, %2 : vector<2x256xf32>
    %cst_116 = arith.constant 0.000000e+00 : f32
    %204 = vector.broadcast %cst_116 : f32 to vector<2x256xf32>
    %205 = arith.subf %204, %203 : vector<2x256xf32>
    %206 = math.exp %205 : vector<2x256xf32>
    %cst_117 = arith.constant 1.000000e+00 : f32
    %207 = vector.broadcast %cst_117 : f32 to vector<2x256xf32>
    %208 = arith.addf %207, %206 : vector<2x256xf32>
    %209 = tpu.reciprocal %208 {approx = true} : vector<2x256xf32> -> vector<2x256xf32>
    %210 = arith.mulf %203, %209 : vector<2x256xf32>
    %211 = arith.truncf %210 : vector<2x256xf32> to vector<2x256xbf16>
    %c0_118 = arith.constant 0 : index
    %c3584 = arith.constant 3584 : index
    %212 = vector.load %arg15[%c0_118, %c3584] : memref<2x4096xbf16, #tpu.memory_space<vmem>>, vector<2x256xbf16>
    tpu.vector_store %arg15[%c0_118, %c3584], %211 {strides = array<i32>} : memref<2x4096xbf16, #tpu.memory_space<vmem>>, vector<2x256xbf16>,
    %c0_119 = arith.constant 0 : index
    %c640_120 = arith.constant 640 : index
    %213 = vector.load %arg1[%c0_119, %c640_120] : memref<2x1024xbf16, #tpu.memory_space<vmem>>, vector<2x260xbf16>
    %c15 = arith.constant 15 : index
    %c0_121 = arith.constant 0 : index
    %c0_122 = arith.constant 0 : index
    %214 = vector.load %arg2[%c15, %c0_121, %c0_122] : memref<16x260x256xbf16, #tpu.memory_space<vmem>>, vector<1x260x256xbf16>
    %215 = vector.shape_cast %214 : vector<1x260x256xbf16> to vector<260x256xbf16>
    %cst_123 = arith.constant dense<0.000000e+00> : vector<2x256xf32>
    %216 = tpu.matmul %213, %215, %cst_123 {dimension_numbers = #tpu.dot_dimension_numbers<[1], [0], [0], [1], [0, 0, 1, 1], [], []>} : vector<2x260xbf16>, vector<260x256xbf16>, vector<2x256xf32> -> vector<2x256xf32>
    %217 = arith.addf %216, %2 : vector<2x256xf32>
    %cst_124 = arith.constant 0.000000e+00 : f32
    %218 = vector.broadcast %cst_124 : f32 to vector<2x256xf32>
    %219 = arith.subf %218, %217 : vector<2x256xf32>
    %220 = math.exp %219 : vector<2x256xf32>
    %cst_125 = arith.constant 1.000000e+00 : f32
    %221 = vector.broadcast %cst_125 : f32 to vector<2x256xf32>
    %222 = arith.addf %221, %220 : vector<2x256xf32>
    %223 = tpu.reciprocal %222 {approx = true} : vector<2x256xf32> -> vector<2x256xf32>
    %224 = arith.mulf %217, %223 : vector<2x256xf32>
    %225 = arith.truncf %224 : vector<2x256xf32> to vector<2x256xbf16>
    %c0_126 = arith.constant 0 : index
    %c3840 = arith.constant 3840 : index
    %226 = vector.load %arg15[%c0_126, %c3840] : memref<2x4096xbf16, #tpu.memory_space<vmem>>, vector<2x256xbf16>
    tpu.vector_store %arg15[%c0_126, %c3840], %225 {strides = array<i32>} : memref<2x4096xbf16, #tpu.memory_space<vmem>>, vector<2x256xbf16>,
    %c0_127 = arith.constant 0 : index
    %c0_128 = arith.constant 0 : index
    %227 = vector.load %arg5[%c0_127, %c0_128] : memref<1x256xf32, #tpu.memory_space<vmem>>, vector<1x256xf32>
    %228 = vector.shape_cast %227 : vector<1x256xf32> to vector<1x256xf32>
    %229 = vector.broadcast %228 : vector<1x256xf32> to vector<2x256xf32>
    %c0_129 = arith.constant 0 : index
    %c0_130 = arith.constant 0 : index
    %230 = vector.load %arg15[%c0_129, %c0_130] : memref<2x4096xbf16, #tpu.memory_space<vmem>>, vector<2x768xbf16>
    %c0_131 = arith.constant 0 : index
    %c0_132 = arith.constant 0 : index
    %c0_133 = arith.constant 0 : index
    %231 = vector.load %arg4[%c0_131, %c0_132, %c0_133] : memref<8x768x256xbf16, #tpu.memory_space<vmem>>, vector<1x768x256xbf16>
    %232 = vector.shape_cast %231 : vector<1x768x256xbf16> to vector<768x256xbf16>
    %cst_134 = arith.constant dense<0.000000e+00> : vector<2x256xf32>
    %233 = tpu.matmul %230, %232, %cst_134 {dimension_numbers = #tpu.dot_dimension_numbers<[1], [0], [0], [1], [0, 0, 1, 1], [], []>} : vector<2x768xbf16>, vector<768x256xbf16>, vector<2x256xf32> -> vector<2x256xf32>
    %234 = arith.addf %233, %229 : vector<2x256xf32>
    %cst_135 = arith.constant 0.000000e+00 : f32
    %235 = vector.broadcast %cst_135 : f32 to vector<2x256xf32>
    %236 = arith.subf %235, %234 : vector<2x256xf32>
    %237 = math.exp %236 : vector<2x256xf32>
    %cst_136 = arith.constant 1.000000e+00 : f32
    %238 = vector.broadcast %cst_136 : f32 to vector<2x256xf32>
    %239 = arith.addf %238, %237 : vector<2x256xf32>
    %240 = tpu.reciprocal %239 {approx = true} : vector<2x256xf32> -> vector<2x256xf32>
    %241 = arith.mulf %234, %240 : vector<2x256xf32>
    %242 = arith.truncf %241 : vector<2x256xf32> to vector<2x256xbf16>
    %c0_137 = arith.constant 0 : index
    %c0_138 = arith.constant 0 : index
    %243 = vector.load %arg16[%c0_137, %c0_138] : memref<2x2048xbf16, #tpu.memory_space<vmem>>, vector<2x256xbf16>
    tpu.vector_store %arg16[%c0_137, %c0_138], %242 {strides = array<i32>} : memref<2x2048xbf16, #tpu.memory_space<vmem>>, vector<2x256xbf16>,
    %c0_139 = arith.constant 0 : index
    %c256_140 = arith.constant 256 : index
    %244 = vector.load %arg15[%c0_139, %c256_140] : memref<2x4096xbf16, #tpu.memory_space<vmem>>, vector<2x768xbf16>
    %c1_141 = arith.constant 1 : index
    %c0_142 = arith.constant 0 : index
    %c0_143 = arith.constant 0 : index
    %245 = vector.load %arg4[%c1_141, %c0_142, %c0_143] : memref<8x768x256xbf16, #tpu.memory_space<vmem>>, vector<1x768x256xbf16>
    %246 = vector.shape_cast %245 : vector<1x768x256xbf16> to vector<768x256xbf16>
    %cst_144 = arith.constant dense<0.000000e+00> : vector<2x256xf32>
    %247 = tpu.matmul %244, %246, %cst_144 {dimension_numbers = #tpu.dot_dimension_numbers<[1], [0], [0], [1], [0, 0, 1, 1], [], []>} : vector<2x768xbf16>, vector<768x256xbf16>, vector<2x256xf32> -> vector<2x256xf32>
    %248 = arith.addf %247, %229 : vector<2x256xf32>
    %cst_145 = arith.constant 0.000000e+00 : f32
    %249 = vector.broadcast %cst_145 : f32 to vector<2x256xf32>
    %250 = arith.subf %249, %248 : vector<2x256xf32>
    %251 = math.exp %250 : vector<2x256xf32>
    %cst_146 = arith.constant 1.000000e+00 : f32
    %252 = vector.broadcast %cst_146 : f32 to vector<2x256xf32>
    %253 = arith.addf %252, %251 : vector<2x256xf32>
    %254 = tpu.reciprocal %253 {approx = true} : vector<2x256xf32> -> vector<2x256xf32>
    %255 = arith.mulf %248, %254 : vector<2x256xf32>
    %256 = arith.truncf %255 : vector<2x256xf32> to vector<2x256xbf16>
    %c0_147 = arith.constant 0 : index
    %c256_148 = arith.constant 256 : index
    %257 = vector.load %arg16[%c0_147, %c256_148] : memref<2x2048xbf16, #tpu.memory_space<vmem>>, vector<2x256xbf16>
    tpu.vector_store %arg16[%c0_147, %c256_148], %256 {strides = array<i32>} : memref<2x2048xbf16, #tpu.memory_space<vmem>>, vector<2x256xbf16>,
    %c0_149 = arith.constant 0 : index
    %c768_150 = arith.constant 768 : index
    %258 = vector.load %arg15[%c0_149, %c768_150] : memref<2x4096xbf16, #tpu.memory_space<vmem>>, vector<2x768xbf16>
    %c2_151 = arith.constant 2 : index
    %c0_152 = arith.constant 0 : index
    %c0_153 = arith.constant 0 : index
    %259 = vector.load %arg4[%c2_151, %c0_152, %c0_153] : memref<8x768x256xbf16, #tpu.memory_space<vmem>>, vector<1x768x256xbf16>
    %260 = vector.shape_cast %259 : vector<1x768x256xbf16> to vector<768x256xbf16>
    %cst_154 = arith.constant dense<0.000000e+00> : vector<2x256xf32>
    %261 = tpu.matmul %258, %260, %cst_154 {dimension_numbers = #tpu.dot_dimension_numbers<[1], [0], [0], [1], [0, 0, 1, 1], [], []>} : vector<2x768xbf16>, vector<768x256xbf16>, vector<2x256xf32> -> vector<2x256xf32>
    %262 = arith.addf %261, %229 : vector<2x256xf32>
    %cst_155 = arith.constant 0.000000e+00 : f32
    %263 = vector.broadcast %cst_155 : f32 to vector<2x256xf32>
    %264 = arith.subf %263, %262 : vector<2x256xf32>
    %265 = math.exp %264 : vector<2x256xf32>
    %cst_156 = arith.constant 1.000000e+00 : f32
    %266 = vector.broadcast %cst_156 : f32 to vector<2x256xf32>
    %267 = arith.addf %266, %265 : vector<2x256xf32>
    %268 = tpu.reciprocal %267 {approx = true} : vector<2x256xf32> -> vector<2x256xf32>
    %269 = arith.mulf %262, %268 : vector<2x256xf32>
    %270 = arith.truncf %269 : vector<2x256xf32> to vector<2x256xbf16>
    %c0_157 = arith.constant 0 : index
    %c512_158 = arith.constant 512 : index
    %271 = vector.load %arg16[%c0_157, %c512_158] : memref<2x2048xbf16, #tpu.memory_space<vmem>>, vector<2x256xbf16>
    tpu.vector_store %arg16[%c0_157, %c512_158], %270 {strides = array<i32>} : memref<2x2048xbf16, #tpu.memory_space<vmem>>, vector<2x256xbf16>,
    %c0_159 = arith.constant 0 : index
    %c1280_160 = arith.constant 1280 : index
    %272 = vector.load %arg15[%c0_159, %c1280_160] : memref<2x4096xbf16, #tpu.memory_space<vmem>>, vector<2x768xbf16>
    %c3_161 = arith.constant 3 : index
    %c0_162 = arith.constant 0 : index
    %c0_163 = arith.constant 0 : index
    %273 = vector.load %arg4[%c3_161, %c0_162, %c0_163] : memref<8x768x256xbf16, #tpu.memory_space<vmem>>, vector<1x768x256xbf16>
    %274 = vector.shape_cast %273 : vector<1x768x256xbf16> to vector<768x256xbf16>
    %cst_164 = arith.constant dense<0.000000e+00> : vector<2x256xf32>
    %275 = tpu.matmul %272, %274, %cst_164 {dimension_numbers = #tpu.dot_dimension_numbers<[1], [0], [0], [1], [0, 0, 1, 1], [], []>} : vector<2x768xbf16>, vector<768x256xbf16>, vector<2x256xf32> -> vector<2x256xf32>
    %276 = arith.addf %275, %229 : vector<2x256xf32>
    %cst_165 = arith.constant 0.000000e+00 : f32
    %277 = vector.broadcast %cst_165 : f32 to vector<2x256xf32>
    %278 = arith.subf %277, %276 : vector<2x256xf32>
    %279 = math.exp %278 : vector<2x256xf32>
    %cst_166 = arith.constant 1.000000e+00 : f32
    %280 = vector.broadcast %cst_166 : f32 to vector<2x256xf32>
    %281 = arith.addf %280, %279 : vector<2x256xf32>
    %282 = tpu.reciprocal %281 {approx = true} : vector<2x256xf32> -> vector<2x256xf32>
    %283 = arith.mulf %276, %282 : vector<2x256xf32>
    %284 = arith.truncf %283 : vector<2x256xf32> to vector<2x256xbf16>
    %c0_167 = arith.constant 0 : index
    %c768_168 = arith.constant 768 : index
    %285 = vector.load %arg16[%c0_167, %c768_168] : memref<2x2048xbf16, #tpu.memory_space<vmem>>, vector<2x256xbf16>
    tpu.vector_store %arg16[%c0_167, %c768_168], %284 {strides = array<i32>} : memref<2x2048xbf16, #tpu.memory_space<vmem>>, vector<2x256xbf16>,
    %c0_169 = arith.constant 0 : index
    %c1792_170 = arith.constant 1792 : index
    %286 = vector.load %arg15[%c0_169, %c1792_170] : memref<2x4096xbf16, #tpu.memory_space<vmem>>, vector<2x768xbf16>
    %c4_171 = arith.constant 4 : index
    %c0_172 = arith.constant 0 : index
    %c0_173 = arith.constant 0 : index
    %287 = vector.load %arg4[%c4_171, %c0_172, %c0_173] : memref<8x768x256xbf16, #tpu.memory_space<vmem>>, vector<1x768x256xbf16>
    %288 = vector.shape_cast %287 : vector<1x768x256xbf16> to vector<768x256xbf16>
    %cst_174 = arith.constant dense<0.000000e+00> : vector<2x256xf32>
    %289 = tpu.matmul %286, %288, %cst_174 {dimension_numbers = #tpu.dot_dimension_numbers<[1], [0], [0], [1], [0, 0, 1, 1], [], []>} : vector<2x768xbf16>, vector<768x256xbf16>, vector<2x256xf32> -> vector<2x256xf32>
    %290 = arith.addf %289, %229 : vector<2x256xf32>
    %cst_175 = arith.constant 0.000000e+00 : f32
    %291 = vector.broadcast %cst_175 : f32 to vector<2x256xf32>
    %292 = arith.subf %291, %290 : vector<2x256xf32>
    %293 = math.exp %292 : vector<2x256xf32>
    %cst_176 = arith.constant 1.000000e+00 : f32
    %294 = vector.broadcast %cst_176 : f32 to vector<2x256xf32>
    %295 = arith.addf %294, %293 : vector<2x256xf32>
    %296 = tpu.reciprocal %295 {approx = true} : vector<2x256xf32> -> vector<2x256xf32>
    %297 = arith.mulf %290, %296 : vector<2x256xf32>
    %298 = arith.truncf %297 : vector<2x256xf32> to vector<2x256xbf16>
    %c0_177 = arith.constant 0 : index
    %c1024_178 = arith.constant 1024 : index
    %299 = vector.load %arg16[%c0_177, %c1024_178] : memref<2x2048xbf16, #tpu.memory_space<vmem>>, vector<2x256xbf16>
    tpu.vector_store %arg16[%c0_177, %c1024_178], %298 {strides = array<i32>} : memref<2x2048xbf16, #tpu.memory_space<vmem>>, vector<2x256xbf16>,
    %c0_179 = arith.constant 0 : index
    %c2304_180 = arith.constant 2304 : index
    %300 = vector.load %arg15[%c0_179, %c2304_180] : memref<2x4096xbf16, #tpu.memory_space<vmem>>, vector<2x768xbf16>
    %c5_181 = arith.constant 5 : index
    %c0_182 = arith.constant 0 : index
    %c0_183 = arith.constant 0 : index
    %301 = vector.load %arg4[%c5_181, %c0_182, %c0_183] : memref<8x768x256xbf16, #tpu.memory_space<vmem>>, vector<1x768x256xbf16>
    %302 = vector.shape_cast %301 : vector<1x768x256xbf16> to vector<768x256xbf16>
    %cst_184 = arith.constant dense<0.000000e+00> : vector<2x256xf32>
    %303 = tpu.matmul %300, %302, %cst_184 {dimension_numbers = #tpu.dot_dimension_numbers<[1], [0], [0], [1], [0, 0, 1, 1], [], []>} : vector<2x768xbf16>, vector<768x256xbf16>, vector<2x256xf32> -> vector<2x256xf32>
    %304 = arith.addf %303, %229 : vector<2x256xf32>
    %cst_185 = arith.constant 0.000000e+00 : f32
    %305 = vector.broadcast %cst_185 : f32 to vector<2x256xf32>
    %306 = arith.subf %305, %304 : vector<2x256xf32>
    %307 = math.exp %306 : vector<2x256xf32>
    %cst_186 = arith.constant 1.000000e+00 : f32
    %308 = vector.broadcast %cst_186 : f32 to vector<2x256xf32>
    %309 = arith.addf %308, %307 : vector<2x256xf32>
    %310 = tpu.reciprocal %309 {approx = true} : vector<2x256xf32> -> vector<2x256xf32>
    %311 = arith.mulf %304, %310 : vector<2x256xf32>
    %312 = arith.truncf %311 : vector<2x256xf32> to vector<2x256xbf16>
    %c0_187 = arith.constant 0 : index
    %c1280_188 = arith.constant 1280 : index
    %313 = vector.load %arg16[%c0_187, %c1280_188] : memref<2x2048xbf16, #tpu.memory_space<vmem>>, vector<2x256xbf16>
    tpu.vector_store %arg16[%c0_187, %c1280_188], %312 {strides = array<i32>} : memref<2x2048xbf16, #tpu.memory_space<vmem>>, vector<2x256xbf16>,
    %c0_189 = arith.constant 0 : index
    %c2816_190 = arith.constant 2816 : index
    %314 = vector.load %arg15[%c0_189, %c2816_190] : memref<2x4096xbf16, #tpu.memory_space<vmem>>, vector<2x768xbf16>
    %c6_191 = arith.constant 6 : index
    %c0_192 = arith.constant 0 : index
    %c0_193 = arith.constant 0 : index
    %315 = vector.load %arg4[%c6_191, %c0_192, %c0_193] : memref<8x768x256xbf16, #tpu.memory_space<vmem>>, vector<1x768x256xbf16>
    %316 = vector.shape_cast %315 : vector<1x768x256xbf16> to vector<768x256xbf16>
    %cst_194 = arith.constant dense<0.000000e+00> : vector<2x256xf32>
    %317 = tpu.matmul %314, %316, %cst_194 {dimension_numbers = #tpu.dot_dimension_numbers<[1], [0], [0], [1], [0, 0, 1, 1], [], []>} : vector<2x768xbf16>, vector<768x256xbf16>, vector<2x256xf32> -> vector<2x256xf32>
    %318 = arith.addf %317, %229 : vector<2x256xf32>
    %cst_195 = arith.constant 0.000000e+00 : f32
    %319 = vector.broadcast %cst_195 : f32 to vector<2x256xf32>
    %320 = arith.subf %319, %318 : vector<2x256xf32>
    %321 = math.exp %320 : vector<2x256xf32>
    %cst_196 = arith.constant 1.000000e+00 : f32
    %322 = vector.broadcast %cst_196 : f32 to vector<2x256xf32>
    %323 = arith.addf %322, %321 : vector<2x256xf32>
    %324 = tpu.reciprocal %323 {approx = true} : vector<2x256xf32> -> vector<2x256xf32>
    %325 = arith.mulf %318, %324 : vector<2x256xf32>
    %326 = arith.truncf %325 : vector<2x256xf32> to vector<2x256xbf16>
    %c0_197 = arith.constant 0 : index
    %c1536_198 = arith.constant 1536 : index
    %327 = vector.load %arg16[%c0_197, %c1536_198] : memref<2x2048xbf16, #tpu.memory_space<vmem>>, vector<2x256xbf16>
    tpu.vector_store %arg16[%c0_197, %c1536_198], %326 {strides = array<i32>} : memref<2x2048xbf16, #tpu.memory_space<vmem>>, vector<2x256xbf16>,
    %c0_199 = arith.constant 0 : index
    %c3328_200 = arith.constant 3328 : index
    %328 = vector.load %arg15[%c0_199, %c3328_200] : memref<2x4096xbf16, #tpu.memory_space<vmem>>, vector<2x768xbf16>
    %c7_201 = arith.constant 7 : index
    %c0_202 = arith.constant 0 : index
    %c0_203 = arith.constant 0 : index
    %329 = vector.load %arg4[%c7_201, %c0_202, %c0_203] : memref<8x768x256xbf16, #tpu.memory_space<vmem>>, vector<1x768x256xbf16>
    %330 = vector.shape_cast %329 : vector<1x768x256xbf16> to vector<768x256xbf16>
    %cst_204 = arith.constant dense<0.000000e+00> : vector<2x256xf32>
    %331 = tpu.matmul %328, %330, %cst_204 {dimension_numbers = #tpu.dot_dimension_numbers<[1], [0], [0], [1], [0, 0, 1, 1], [], []>} : vector<2x768xbf16>, vector<768x256xbf16>, vector<2x256xf32> -> vector<2x256xf32>
    %332 = arith.addf %331, %229 : vector<2x256xf32>
    %cst_205 = arith.constant 0.000000e+00 : f32
    %333 = vector.broadcast %cst_205 : f32 to vector<2x256xf32>
    %334 = arith.subf %333, %332 : vector<2x256xf32>
    %335 = math.exp %334 : vector<2x256xf32>
    %cst_206 = arith.constant 1.000000e+00 : f32
    %336 = vector.broadcast %cst_206 : f32 to vector<2x256xf32>
    %337 = arith.addf %336, %335 : vector<2x256xf32>
    %338 = tpu.reciprocal %337 {approx = true} : vector<2x256xf32> -> vector<2x256xf32>
    %339 = arith.mulf %332, %338 : vector<2x256xf32>
    %340 = arith.truncf %339 : vector<2x256xf32> to vector<2x256xbf16>
    %c0_207 = arith.constant 0 : index
    %c1792_208 = arith.constant 1792 : index
    %341 = vector.load %arg16[%c0_207, %c1792_208] : memref<2x2048xbf16, #tpu.memory_space<vmem>>, vector<2x256xbf16>
    tpu.vector_store %arg16[%c0_207, %c1792_208], %340 {strides = array<i32>} : memref<2x2048xbf16, #tpu.memory_space<vmem>>, vector<2x256xbf16>,
    %c0_209 = arith.constant 0 : index
    %c0_210 = arith.constant 0 : index
    %342 = vector.load %arg7[%c0_209, %c0_210] : memref<1x256xf32, #tpu.memory_space<vmem>>, vector<1x256xf32>
    %343 = vector.shape_cast %342 : vector<1x256xf32> to vector<1x256xf32>
    %344 = vector.broadcast %343 : vector<1x256xf32> to vector<2x256xf32>
    %c0_211 = arith.constant 0 : index
    %c0_212 = arith.constant 0 : index
    %345 = vector.load %arg16[%c0_211, %c0_212] : memref<2x2048xbf16, #tpu.memory_space<vmem>>, vector<2x768xbf16>
    %c0_213 = arith.constant 0 : index
    %c0_214 = arith.constant 0 : index
    %c0_215 = arith.constant 0 : index
    %346 = vector.load %arg6[%c0_213, %c0_214, %c0_215] : memref<4x768x256xbf16, #tpu.memory_space<vmem>>, vector<1x768x256xbf16>
    %347 = vector.shape_cast %346 : vector<1x768x256xbf16> to vector<768x256xbf16>
    %cst_216 = arith.constant dense<0.000000e+00> : vector<2x256xf32>
    %348 = tpu.matmul %345, %347, %cst_216 {dimension_numbers = #tpu.dot_dimension_numbers<[1], [0], [0], [1], [0, 0, 1, 1], [], []>} : vector<2x768xbf16>, vector<768x256xbf16>, vector<2x256xf32> -> vector<2x256xf32>
    %349 = arith.addf %348, %344 : vector<2x256xf32>
    %cst_217 = arith.constant 0.000000e+00 : f32
    %350 = vector.broadcast %cst_217 : f32 to vector<2x256xf32>
    %351 = arith.subf %350, %349 : vector<2x256xf32>
    %352 = math.exp %351 : vector<2x256xf32>
    %cst_218 = arith.constant 1.000000e+00 : f32
    %353 = vector.broadcast %cst_218 : f32 to vector<2x256xf32>
    %354 = arith.addf %353, %352 : vector<2x256xf32>
    %355 = tpu.reciprocal %354 {approx = true} : vector<2x256xf32> -> vector<2x256xf32>
    %356 = arith.mulf %349, %355 : vector<2x256xf32>
    %357 = arith.truncf %356 : vector<2x256xf32> to vector<2x256xbf16>
    %c0_219 = arith.constant 0 : index
    %c0_220 = arith.constant 0 : index
    %358 = vector.load %arg17[%c0_219, %c0_220] : memref<2x1024xbf16, #tpu.memory_space<vmem>>, vector<2x256xbf16>
    tpu.vector_store %arg17[%c0_219, %c0_220], %357 {strides = array<i32>} : memref<2x1024xbf16, #tpu.memory_space<vmem>>, vector<2x256xbf16>,
    %c0_221 = arith.constant 0 : index
    %c256_222 = arith.constant 256 : index
    %359 = vector.load %arg16[%c0_221, %c256_222] : memref<2x2048xbf16, #tpu.memory_space<vmem>>, vector<2x768xbf16>
    %c1_223 = arith.constant 1 : index
    %c0_224 = arith.constant 0 : index
    %c0_225 = arith.constant 0 : index
    %360 = vector.load %arg6[%c1_223, %c0_224, %c0_225] : memref<4x768x256xbf16, #tpu.memory_space<vmem>>, vector<1x768x256xbf16>
    %361 = vector.shape_cast %360 : vector<1x768x256xbf16> to vector<768x256xbf16>
    %cst_226 = arith.constant dense<0.000000e+00> : vector<2x256xf32>
    %362 = tpu.matmul %359, %361, %cst_226 {dimension_numbers = #tpu.dot_dimension_numbers<[1], [0], [0], [1], [0, 0, 1, 1], [], []>} : vector<2x768xbf16>, vector<768x256xbf16>, vector<2x256xf32> -> vector<2x256xf32>
    %363 = arith.addf %362, %344 : vector<2x256xf32>
    %cst_227 = arith.constant 0.000000e+00 : f32
    %364 = vector.broadcast %cst_227 : f32 to vector<2x256xf32>
    %365 = arith.subf %364, %363 : vector<2x256xf32>
    %366 = math.exp %365 : vector<2x256xf32>
    %cst_228 = arith.constant 1.000000e+00 : f32
    %367 = vector.broadcast %cst_228 : f32 to vector<2x256xf32>
    %368 = arith.addf %367, %366 : vector<2x256xf32>
    %369 = tpu.reciprocal %368 {approx = true} : vector<2x256xf32> -> vector<2x256xf32>
    %370 = arith.mulf %363, %369 : vector<2x256xf32>
    %371 = arith.truncf %370 : vector<2x256xf32> to vector<2x256xbf16>
    %c0_229 = arith.constant 0 : index
    %c256_230 = arith.constant 256 : index
    %372 = vector.load %arg17[%c0_229, %c256_230] : memref<2x1024xbf16, #tpu.memory_space<vmem>>, vector<2x256xbf16>
    tpu.vector_store %arg17[%c0_229, %c256_230], %371 {strides = array<i32>} : memref<2x1024xbf16, #tpu.memory_space<vmem>>, vector<2x256xbf16>,
    %c0_231 = arith.constant 0 : index
    %c768_232 = arith.constant 768 : index
    %373 = vector.load %arg16[%c0_231, %c768_232] : memref<2x2048xbf16, #tpu.memory_space<vmem>>, vector<2x768xbf16>
    %c2_233 = arith.constant 2 : index
    %c0_234 = arith.constant 0 : index
    %c0_235 = arith.constant 0 : index
    %374 = vector.load %arg6[%c2_233, %c0_234, %c0_235] : memref<4x768x256xbf16, #tpu.memory_space<vmem>>, vector<1x768x256xbf16>
    %375 = vector.shape_cast %374 : vector<1x768x256xbf16> to vector<768x256xbf16>
    %cst_236 = arith.constant dense<0.000000e+00> : vector<2x256xf32>
    %376 = tpu.matmul %373, %375, %cst_236 {dimension_numbers = #tpu.dot_dimension_numbers<[1], [0], [0], [1], [0, 0, 1, 1], [], []>} : vector<2x768xbf16>, vector<768x256xbf16>, vector<2x256xf32> -> vector<2x256xf32>
    %377 = arith.addf %376, %344 : vector<2x256xf32>
    %cst_237 = arith.constant 0.000000e+00 : f32
    %378 = vector.broadcast %cst_237 : f32 to vector<2x256xf32>
    %379 = arith.subf %378, %377 : vector<2x256xf32>
    %380 = math.exp %379 : vector<2x256xf32>
    %cst_238 = arith.constant 1.000000e+00 : f32
    %381 = vector.broadcast %cst_238 : f32 to vector<2x256xf32>
    %382 = arith.addf %381, %380 : vector<2x256xf32>
    %383 = tpu.reciprocal %382 {approx = true} : vector<2x256xf32> -> vector<2x256xf32>
    %384 = arith.mulf %377, %383 : vector<2x256xf32>
    %385 = arith.truncf %384 : vector<2x256xf32> to vector<2x256xbf16>
    %c0_239 = arith.constant 0 : index
    %c512_240 = arith.constant 512 : index
    %386 = vector.load %arg17[%c0_239, %c512_240] : memref<2x1024xbf16, #tpu.memory_space<vmem>>, vector<2x256xbf16>
    tpu.vector_store %arg17[%c0_239, %c512_240], %385 {strides = array<i32>} : memref<2x1024xbf16, #tpu.memory_space<vmem>>, vector<2x256xbf16>,
    %c0_241 = arith.constant 0 : index
    %c1280_242 = arith.constant 1280 : index
    %387 = vector.load %arg16[%c0_241, %c1280_242] : memref<2x2048xbf16, #tpu.memory_space<vmem>>, vector<2x768xbf16>
    %c3_243 = arith.constant 3 : index
    %c0_244 = arith.constant 0 : index
    %c0_245 = arith.constant 0 : index
    %388 = vector.load %arg6[%c3_243, %c0_244, %c0_245] : memref<4x768x256xbf16, #tpu.memory_space<vmem>>, vector<1x768x256xbf16>
    %389 = vector.shape_cast %388 : vector<1x768x256xbf16> to vector<768x256xbf16>
    %cst_246 = arith.constant dense<0.000000e+00> : vector<2x256xf32>
    %390 = tpu.matmul %387, %389, %cst_246 {dimension_numbers = #tpu.dot_dimension_numbers<[1], [0], [0], [1], [0, 0, 1, 1], [], []>} : vector<2x768xbf16>, vector<768x256xbf16>, vector<2x256xf32> -> vector<2x256xf32>
    %391 = arith.addf %390, %344 : vector<2x256xf32>
    %cst_247 = arith.constant 0.000000e+00 : f32
    %392 = vector.broadcast %cst_247 : f32 to vector<2x256xf32>
    %393 = arith.subf %392, %391 : vector<2x256xf32>
    %394 = math.exp %393 : vector<2x256xf32>
    %cst_248 = arith.constant 1.000000e+00 : f32
    %395 = vector.broadcast %cst_248 : f32 to vector<2x256xf32>
    %396 = arith.addf %395, %394 : vector<2x256xf32>
    %397 = tpu.reciprocal %396 {approx = true} : vector<2x256xf32> -> vector<2x256xf32>
    %398 = arith.mulf %391, %397 : vector<2x256xf32>
    %399 = arith.truncf %398 : vector<2x256xf32> to vector<2x256xbf16>
    %c0_249 = arith.constant 0 : index
    %c768_250 = arith.constant 768 : index
    %400 = vector.load %arg17[%c0_249, %c768_250] : memref<2x1024xbf16, #tpu.memory_space<vmem>>, vector<2x256xbf16>
    tpu.vector_store %arg17[%c0_249, %c768_250], %399 {strides = array<i32>} : memref<2x1024xbf16, #tpu.memory_space<vmem>>, vector<2x256xbf16>,
    %c0_251 = arith.constant 0 : index
    %c0_252 = arith.constant 0 : index
    %401 = vector.load %arg9[%c0_251, %c0_252] : memref<1x128xf32, #tpu.memory_space<vmem>>, vector<1x128xf32>
    %402 = vector.shape_cast %401 : vector<1x128xf32> to vector<1x128xf32>
    %403 = vector.broadcast %402 : vector<1x128xf32> to vector<2x128xf32>
    %c0_253 = arith.constant 0 : index
    %c0_254 = arith.constant 0 : index
    %404 = vector.load %arg17[%c0_253, %c0_254] : memref<2x1024xbf16, #tpu.memory_space<vmem>>, vector<2x768xbf16>
    %c0_255 = arith.constant 0 : index
    %c0_256 = arith.constant 0 : index
    %c0_257 = arith.constant 0 : index
    %405 = vector.load %arg8[%c0_255, %c0_256, %c0_257] : memref<2x768x128xbf16, #tpu.memory_space<vmem>>, vector<1x768x128xbf16>
    %406 = vector.shape_cast %405 : vector<1x768x128xbf16> to vector<768x128xbf16>
    %cst_258 = arith.constant dense<0.000000e+00> : vector<2x128xf32>
    %407 = tpu.matmul %404, %406, %cst_258 {dimension_numbers = #tpu.dot_dimension_numbers<[1], [0], [0], [1], [0, 0, 1, 1], [], []>} : vector<2x768xbf16>, vector<768x128xbf16>, vector<2x128xf32> -> vector<2x128xf32>
    %408 = arith.addf %407, %403 : vector<2x128xf32>
    %cst_259 = arith.constant 0.000000e+00 : f32
    %409 = vector.broadcast %cst_259 : f32 to vector<2x128xf32>
    %410 = arith.subf %409, %408 : vector<2x128xf32>
    %411 = math.exp %410 : vector<2x128xf32>
    %cst_260 = arith.constant 1.000000e+00 : f32
    %412 = vector.broadcast %cst_260 : f32 to vector<2x128xf32>
    %413 = arith.addf %412, %411 : vector<2x128xf32>
    %414 = tpu.reciprocal %413 {approx = true} : vector<2x128xf32> -> vector<2x128xf32>
    %415 = arith.mulf %408, %414 : vector<2x128xf32>
    %416 = arith.truncf %415 : vector<2x128xf32> to vector<2x128xbf16>
    %c0_261 = arith.constant 0 : index
    %c0_262 = arith.constant 0 : index
    %417 = vector.load %arg18[%c0_261, %c0_262] : memref<2x256xbf16, #tpu.memory_space<vmem>>, vector<2x128xbf16>
    tpu.vector_store %arg18[%c0_261, %c0_262], %416 {strides = array<i32>} : memref<2x256xbf16, #tpu.memory_space<vmem>>, vector<2x128xbf16>,
    %c0_263 = arith.constant 0 : index
    %c256_264 = arith.constant 256 : index
    %418 = vector.load %arg17[%c0_263, %c256_264] : memref<2x1024xbf16, #tpu.memory_space<vmem>>, vector<2x768xbf16>
    %c1_265 = arith.constant 1 : index
    %c0_266 = arith.constant 0 : index
    %c0_267 = arith.constant 0 : index
    %419 = vector.load %arg8[%c1_265, %c0_266, %c0_267] : memref<2x768x128xbf16, #tpu.memory_space<vmem>>, vector<1x768x128xbf16>
    %420 = vector.shape_cast %419 : vector<1x768x128xbf16> to vector<768x128xbf16>
    %cst_268 = arith.constant dense<0.000000e+00> : vector<2x128xf32>
    %421 = tpu.matmul %418, %420, %cst_268 {dimension_numbers = #tpu.dot_dimension_numbers<[1], [0], [0], [1], [0, 0, 1, 1], [], []>} : vector<2x768xbf16>, vector<768x128xbf16>, vector<2x128xf32> -> vector<2x128xf32>
    %422 = arith.addf %421, %403 : vector<2x128xf32>
    %cst_269 = arith.constant 0.000000e+00 : f32
    %423 = vector.broadcast %cst_269 : f32 to vector<2x128xf32>
    %424 = arith.subf %423, %422 : vector<2x128xf32>
    %425 = math.exp %424 : vector<2x128xf32>
    %cst_270 = arith.constant 1.000000e+00 : f32
    %426 = vector.broadcast %cst_270 : f32 to vector<2x128xf32>
    %427 = arith.addf %426, %425 : vector<2x128xf32>
    %428 = tpu.reciprocal %427 {approx = true} : vector<2x128xf32> -> vector<2x128xf32>
    %429 = arith.mulf %422, %428 : vector<2x128xf32>
    %430 = arith.truncf %429 : vector<2x128xf32> to vector<2x128xbf16>
    %c0_271 = arith.constant 0 : index
    %c128_272 = arith.constant 128 : index
    %431 = vector.load %arg18[%c0_271, %c128_272] : memref<2x256xbf16, #tpu.memory_space<vmem>>, vector<2x128xbf16>
    tpu.vector_store %arg18[%c0_271, %c128_272], %430 {strides = array<i32>} : memref<2x256xbf16, #tpu.memory_space<vmem>>, vector<2x128xbf16>,
    %c0_273 = arith.constant 0 : index
    %c0_274 = arith.constant 0 : index
    %432 = vector.load %arg18[%c0_273, %c0_274] : memref<2x256xbf16, #tpu.memory_space<vmem>>, vector<2x256xbf16>
    %c0_275 = arith.constant 0 : index
    %c0_276 = arith.constant 0 : index
    %433 = vector.load %arg10[%c0_275, %c0_276] : memref<256x64xbf16, #tpu.memory_space<vmem>>, vector<256x64xbf16>
    %cst_277 = arith.constant dense<0.000000e+00> : vector<2x64xf32>
    %434 = tpu.matmul %432, %433, %cst_277 {dimension_numbers = #tpu.dot_dimension_numbers<[1], [0], [0], [1], [0, 0, 1, 1], [], []>} : vector<2x256xbf16>, vector<256x64xbf16>, vector<2x64xf32> -> vector<2x64xf32>
    %c0_278 = arith.constant 0 : index
    %c0_279 = arith.constant 0 : index
    %435 = vector.load %arg11[%c0_278, %c0_279] : memref<1x64xf32, #tpu.memory_space<vmem>>, vector<1x64xf32>
    %436 = vector.broadcast %435 : vector<1x64xf32> to vector<2x64xf32>
    %437 = arith.addf %434, %436 : vector<2x64xf32>
    %cst_280 = arith.constant 0.000000e+00 : f32
    %438 = vector.broadcast %cst_280 : f32 to vector<2x64xf32>
    %439 = arith.subf %438, %437 : vector<2x64xf32>
    %440 = math.exp %439 : vector<2x64xf32>
    %cst_281 = arith.constant 1.000000e+00 : f32
    %441 = vector.broadcast %cst_281 : f32 to vector<2x64xf32>
    %442 = arith.addf %441, %440 : vector<2x64xf32>
    %443 = tpu.reciprocal %442 {approx = true} : vector<2x64xf32> -> vector<2x64xf32>
    %444 = arith.mulf %437, %443 : vector<2x64xf32>
    %c0_282 = arith.constant 0 : index
    %c0_283 = arith.constant 0 : index
    %445 = vector.load %arg12[%c0_282, %c0_283] : memref<1x64xf32, #tpu.memory_space<vmem>>, vector<1x64xf32>
    %446 = vector.broadcast %445 : vector<1x64xf32> to vector<2x64xf32>
    %447 = arith.mulf %444, %446 : vector<2x64xf32>
    %cst_284 = arith.constant dense<0.000000e+00> : vector<2xf32>
    %448 = vector.multi_reduction <add>, %447, %cst_284 [1] : vector<2x64xf32> to vector<2xf32>
    %449 = vector.shape_cast %448 : vector<2xf32> to vector<2x1xf32>
    %c0_285 = arith.constant 0 : index
    %c0_286 = arith.constant 0 : index
    %450 = memref.load %arg13[%c0_285, %c0_286] : memref<1x1xf32, #tpu.memory_space<smem>>
    %451 = vector.broadcast %450 : f32 to vector<2x1xf32>
    %452 = arith.addf %449, %451 : vector<2x1xf32>
    %c0_287 = arith.constant 0 : index
    %c0_288 = arith.constant 0 : index
    %453 = vector.load %arg14[%c0_287, %c0_288] : memref<2x1xf32, #tpu.memory_space<vmem>>, vector<2x1xf32>
    tpu.vector_store %arg14[%c0_287, %c0_288], %452 {strides = array<i32>} : memref<2x1xf32, #tpu.memory_space<vmem>>, vector<2x1xf32>,
    return
  }
  func.func @transform_0(%arg0: i32) -> (i32, i32) {
    %c0_i32 = arith.constant 0 : i32
    %c0_i32_0 = arith.constant 0 : i32
    return %arg0, %c0_i32 : i32, i32
  }
  func.func @transform_1(%arg0: i32) -> (i32, i32, i32) {
    %c0_i32 = arith.constant 0 : i32
    %c0_i32_0 = arith.constant 0 : i32
    %c0_i32_1 = arith.constant 0 : i32
    %c0_i32_2 = arith.constant 0 : i32
    return %c0_i32, %c0_i32_0, %c0_i32_1 : i32, i32, i32
  }
  func.func @transform_2(%arg0: i32) -> (i32, i32) {
    %c0_i32 = arith.constant 0 : i32
    %c0_i32_0 = arith.constant 0 : i32
    %c0_i32_1 = arith.constant 0 : i32
    return %c0_i32, %c0_i32_0 : i32, i32
  }
  func.func @transform_3(%arg0: i32) -> (i32, i32, i32) {
    %c0_i32 = arith.constant 0 : i32
    %c0_i32_0 = arith.constant 0 : i32
    %c0_i32_1 = arith.constant 0 : i32
    %c0_i32_2 = arith.constant 0 : i32
    return %c0_i32, %c0_i32_0, %c0_i32_1 : i32, i32, i32
  }
  func.func @transform_4(%arg0: i32) -> (i32, i32) {
    %c0_i32 = arith.constant 0 : i32
    %c0_i32_0 = arith.constant 0 : i32
    %c0_i32_1 = arith.constant 0 : i32
    return %c0_i32, %c0_i32_0 : i32, i32
  }
  func.func @transform_5(%arg0: i32) -> (i32, i32, i32) {
    %c0_i32 = arith.constant 0 : i32
    %c0_i32_0 = arith.constant 0 : i32
    %c0_i32_1 = arith.constant 0 : i32
    %c0_i32_2 = arith.constant 0 : i32
    return %c0_i32, %c0_i32_0, %c0_i32_1 : i32, i32, i32
  }
  func.func @transform_6(%arg0: i32) -> (i32, i32) {
    %c0_i32 = arith.constant 0 : i32
    %c0_i32_0 = arith.constant 0 : i32
    %c0_i32_1 = arith.constant 0 : i32
    return %c0_i32, %c0_i32_0 : i32, i32
  }
  func.func @transform_7(%arg0: i32) -> (i32, i32, i32) {
    %c0_i32 = arith.constant 0 : i32
    %c0_i32_0 = arith.constant 0 : i32
    %c0_i32_1 = arith.constant 0 : i32
    %c0_i32_2 = arith.constant 0 : i32
    return %c0_i32, %c0_i32_0, %c0_i32_1 : i32, i32, i32
  }
  func.func @transform_8(%arg0: i32) -> (i32, i32) {
    %c0_i32 = arith.constant 0 : i32
    %c0_i32_0 = arith.constant 0 : i32
    %c0_i32_1 = arith.constant 0 : i32
    return %c0_i32, %c0_i32_0 : i32, i32
  }
  func.func @transform_9(%arg0: i32) -> (i32, i32) {
    %c0_i32 = arith.constant 0 : i32
    %c0_i32_0 = arith.constant 0 : i32
    %c0_i32_1 = arith.constant 0 : i32
    return %c0_i32, %c0_i32_0 : i32, i32
  }
  func.func @transform_10(%arg0: i32) -> (i32, i32) {
    %c0_i32 = arith.constant 0 : i32
    %c0_i32_0 = arith.constant 0 : i32
    %c0_i32_1 = arith.constant 0 : i32
    return %c0_i32, %c0_i32_0 : i32, i32
  }
  func.func @transform_11(%arg0: i32) -> (i32, i32) {
    %c0_i32 = arith.constant 0 : i32
    %c0_i32_0 = arith.constant 0 : i32
    %c0_i32_1 = arith.constant 0 : i32
    return %c0_i32, %c0_i32_0 : i32, i32
  }
  func.func @transform_12(%arg0: i32) -> (i32, i32) {
    %c0_i32 = arith.constant 0 : i32
    %c0_i32_0 = arith.constant 0 : i32
    %c0_i32_1 = arith.constant 0 : i32
    return %c0_i32, %c0_i32_0 : i32, i32
  }
  func.func @transform_13(%arg0: i32) -> (i32, i32) {
    %c0_i32 = arith.constant 0 : i32
    %c0_i32_0 = arith.constant 0 : i32
    return %arg0, %c0_i32 : i32, i32
  }
}

</mosaic_0001>

<bundles_post_ra>
// kernel: deep_energy_forward.1
= control target key start
LH: loop header
LB: loop body
LE: loop exit
PB: predicated region body
PF: predicated region fallthrough
CT: control target
= control target key end

     0   :  { %19 = vsyncpa [#allocation8], 0  ;;  %s22983_s25 = smov [#allocation7]   ;;  %s28222_s0 = inlined_call_operand.vmem [shape: bf16[2,1024], index: 0, kind: input, shape index: {}]   ;;  %s28223_s1 = inlined_call_operand.vmem [shape: bf16[16,260,256], index: 1, kind: input, shape index: {}]   ;;  %s28224_s2 = inlined_call_operand.vmem [shape: f32[1,256], index: 2, kind: input, shape index: {}]   ;;  %s28225_s3 = inlined_call_operand.vmem [shape: bf16[8,768,256], index: 3, kind: input, shape index: {}]   ;;  %s28226_s4 = inlined_call_operand.vmem [shape: f32[1,256], index: 4, kind: input, shape index: {}]   ;;  %s28227_s5 = inlined_call_operand.hbm [shape: bf16[4,768,256], index: 5, kind: input, shape index: {}]   ;;  %s28228_s6 = inlined_call_operand.vmem [shape: f32[1,256], index: 6, kind: input, shape index: {}]   ;;  %s28229_s7 = inlined_call_operand.vmem [shape: bf16[2,768,128], index: 7, kind: input, shape index: {}]   ;;  %s28230_s8 = inlined_call_operand.vmem [shape: f32[1,128], index: 8, kind: input, shape index: {}]   ;;  %s28231_s9 = inlined_call_operand.vmem [shape: bf16[256,64], index: 9, kind: input, shape index: {}]   ;;  %s28232_s10 = inlined_call_operand.vmem [shape: f32[1,64], index: 10, kind: input, shape index: {}]   ;;  %s28233_s11 = inlined_call_operand.vmem [shape: f32[1,64], index: 11, kind: input, shape index: {}]   ;;  %s28234_s12 = inlined_call_operand.<no memory space> [shape: f32[1,1], index: 12, kind: input, shape index: {}]   ;;  %s28235_s13 = inlined_call_operand.vmem [shape: f32[2,1], index: 13, kind: output, shape index: {}]  }
   0x1   :  { %s35_s26 = sshll.u32 %s22983_s25, 4  ;;  %s22959_s29 = scalar_lea.hbm %s28227_s5, 49152  ;;  %s36_s26 = int_to_ptr.vmem [resolvable:$true] %s35_s26 }
   0x2   :  { %p22960_p0 = scmp.ne.s32.totalorder %s28227_s5, %s22959_s29  ;;  %p22963_p1 = scmp.lt.u32.totalorder %s22959_s29, %s28227_s5 }
   0x4   :  { %p22965_p2 = pnand %p22963_p1, %p22960_p0 }
   0x6   :  { %22968 = shalt.err (!%p22965_p2)
}
   0x7   :  { %s22969_s17 = scalar_lea.vmem %s36_s26, 49152  ;;  %p22974_p4 = scmp.lt.s32.totalorder %s36_s26, %s36_s26 }
   0x8   :  { %p22970_p3 = scmp.ne.s32.totalorder %s36_s26, %s22969_s17  ;;  %p22975_p5 = scmp.lt.s32.totalorder %s22969_s17, %s22969_s17 }
   0xa   :  { %p22976_p6 = por %p22975_p5, %p22974_p4 }
   0xc   :  { %p22977_p7 = pnand %p22976_p6, %p22970_p3 }
   0xe   :  { %22980 = shalt.err (!%p22977_p7)
}
   0xf   :  { %s22984_s18 = smov 128   ;;  %s22985_s19 = smov 8  }
  0x10   :  { %41 = dma.hbm_to_vmem [thread:$0]  %s28227_s5, 49152, %s36_s26, [#allocation8], %s22984_s18, %s22984_s18, %s22985_s19  }
  0x11   :  { %22981 = dma.done.wait [#allocation8], 49152  }
  0x12   :  { %22982 = vsyncadd [#allocation8], 4294918144  ;;  %v62_v0 = vlaneseq  ;;  %v22986_v1 = vmov 0   ;;  %v22987_v2 = vmov 1966171168   ;;  %vm301_vm0 = vcmask 1041408  }
  0x13   :  { %381 = vmatprep.mubr.bf16.mxu1 %v22986_v1  ;;  %v116_v3 = vunpack.c.l.s4 %v22987_v2  ;;  %v20072_v6 = vld [vmem:[%s28223_s1 + $0x4] ss:$8 sps:$4 sm:$0xff]   ;;  %v20075_v9 = vld [vmem:[%s28223_s1] ss:$8 sps:$4 sm:$0xff]   ;;  %v20077_v12 = vld [vmem:[%s28223_s1 + $0x14] ss:$8 sps:$4 sm:$0xff]  }
  0x14   :  { %v23071_v4 = vshrl.u32 %v62_v0, 7  ;;  %v105_v8 = vld [vmem:[%s28223_s1 + $0x100] sm:$0x33]  ;;  %308 = vmatprep.subr.bf16.mxu0 %v20072_v6  ;;  %v20079_v16 = vld [vmem:[%s28223_s1 + $0x108] ss:$8 sps:$4 sm:$0xff]   ;;  %vm297_vm1 = vcmask 31744  }
  0x15   :  { %v117_v5 = vunpack.c.0.s8 %v116_v3  ;;  %v16556_v10 = vcombine.high %v105_v8, %v105_v8  ;;  %v16555_v11 = vcombine.low %v105_v8, %v105_v8  ;;  %309 = vmatpush1.bf16.msra.mxu0 %v20075_v9  ;;  %v16522_v13 = vld.sshfl [vmem:[%s28222_s0] sm:$0x13 pattern:$0x75316420]  ;;  %v20081_v17 = vld [vmem:[%s28223_s1 + $0x10c] ss:$8 sps:$4 sm:$0xff]  }
  0x16   :  { %310 = vmatprep.subr.bf16.mxu0 %v20077_v12  ;;  %v114_v18 = vcombine.high %v16522_v13, %v16522_v13  ;;  %v20082_v19 = vld [vmem:[%s28223_s1 + $0x10] ss:$8 sps:$4 sm:$0xff]   ;;  %v20083_v20 = vld [vmem:[%s28223_s1 + $0x24] ss:$8 sps:$4 sm:$0xff]   ;;  %v20088_v24 = vld [vmem:[%s28223_s1 + $0x20] ss:$8 sps:$4 sm:$0xff]  }
  0x17   :  { %v23077_v7 = vsub.s32 %v117_v5, %v23071_v4  ;;  %16557 = vmatprep.subr.msk.bf16.mxu1 %vm301_vm0, %v16556_v10  ;;  %v303_v14 = vsel %vm301_vm0, %v16555_v11, 0  ;;  %v20087_v22 = vld [vmem:[%s28223_s1 + $0x11c] ss:$8 sps:$4 sm:$0xff]   ;;  %v20085_v26 = vld [vmem:[%s28223_s1 + $0x118] ss:$8 sps:$4 sm:$0xff]   ;;  %vm16508_vm2 = vcmask 517120  }
  0x18   :  { %350 = vmatpush1.bf16.msra.mxu1 %v303_v14  ;;  %v20089_v25 = vld [vmem:[%s28223_s1 + $0x34] ss:$8 sps:$4 sm:$0xff]   ;;  %v20094_v28 = vld [vmem:[%s28223_s1 + $0x30] ss:$8 sps:$4 sm:$0xff]   ;;  %v20095_v29 = vld [vmem:[%s28223_s1 + $0x44] ss:$8 sps:$4 sm:$0xff]  }
  0x19   :  { %v23094_v15 = vrot.slane %v16522_v13, %v23077_v7  ;;  %658 = vmatprep.subr.bf16.mxu1 %v20081_v17  ;;  %v23116_v23 = vrot.slane %v114_v18, %v23077_v7  ;;  %311 = vmatpush1.bf16.msra.mxu0 %v20082_v19  ;;  %v20093_v27 = vld [vmem:[%s28223_s1 + $0x12c] ss:$8 sps:$4 sm:$0xff]   ;;  %v20091_v30 = vld [vmem:[%s28223_s1 + $0x128] ss:$8 sps:$4 sm:$0xff]   ;;  %v20099_v31 = vld [vmem:[%s28223_s1 + $0x13c] ss:$8 sps:$4 sm:$0xff]  }
  0x1a   :  { %312 = vmatprep.subr.bf16.mxu0 %v20083_v20  ;;  %v20100_v32 = vld [vmem:[%s28223_s1 + $0x40] ss:$8 sps:$4 sm:$0xff]   ;;  %v20101_v33 = vld [vmem:[%s28223_s1 + $0x54] ss:$8 sps:$4 sm:$0xff]   ;;  %v20106_v36 = vld [vmem:[%s28223_s1 + $0x50] ss:$8 sps:$4 sm:$0xff]  }
  0x1b   :  { %v23110_v21 = vcombine.high %v23094_v15, %v23094_v15  ;;  %340 = vmatprep.mubr.bf16.mxu0 %v23116_v23  ;;  %v20097_v34 = vld [vmem:[%s28223_s1 + $0x138] ss:$8 sps:$4 sm:$0xff]   ;;  %v20105_v35 = vld [vmem:[%s28223_s1 + $0x14c] ss:$8 sps:$4 sm:$0xff]   ;;  %v20103_v38 = vld [vmem:[%s28223_s1 + $0x148] ss:$8 sps:$4 sm:$0xff]  }
  0x1c   :  { %v20107_v37 = vld [vmem:[%s28223_s1 + $0x64] ss:$8 sps:$4 sm:$0xff]   ;;  %v20112_v40 = vld [vmem:[%s28223_s1 + $0x60] ss:$8 sps:$4 sm:$0xff]   ;;  %v20113_v41 = vld [vmem:[%s28223_s1 + $0x74] ss:$8 sps:$4 sm:$0xff]  }
  0x1d   :  { %16558 = vmatmul.mubr.msk.bf16.vlgmr.msra.gmra.mrb[0].mxu1 %vm297_vm1, %v23110_v21  ;;  %313 = vmatpush1.bf16.msra.mxu0 %v20088_v24  ;;  %v20111_v39 = vld [vmem:[%s28223_s1 + $0x15c] ss:$8 sps:$4 sm:$0xff]   ;;  %v20109_v42 = vld [vmem:[%s28223_s1 + $0x158] ss:$8 sps:$4 sm:$0xff]   ;;  %v20117_v43 = vld [vmem:[%s28223_s1 + $0x16c] ss:$8 sps:$4 sm:$0xff]  }
  0x1e   :  { %659 = vmatpush1.bf16.msra.mxu1 %v20079_v16  ;;  %690 = vmatprep.mubr.bf16.mxu1 %v23116_v23  ;;  %v20118_v44 = vld [vmem:[%s28223_s1 + $0x70] ss:$8 sps:$4 sm:$0xff]   ;;  %v20119_v45 = vld [vmem:[%s28223_s1 + $0x84] ss:$8 sps:$4 sm:$0xff]   ;;  %v20124_v48 = vld [vmem:[%s28223_s1 + $0x80] ss:$8 sps:$4 sm:$0xff]  }
  0x1f   :  { %660 = vmatprep.subr.bf16.mxu1 %v20087_v22  ;;  %314 = vmatprep.subr.bf16.mxu0 %v20089_v25  ;;  %v20115_v46 = vld [vmem:[%s28223_s1 + $0x168] ss:$8 sps:$4 sm:$0xff]   ;;  %v20123_v47 = vld [vmem:[%s28223_s1 + $0x17c] ss:$8 sps:$4 sm:$0xff]   ;;  %v20121_v50 = vld [vmem:[%s28223_s1 + $0x178] ss:$8 sps:$4 sm:$0xff]  }
  0x20   :  { %v20125_v49 = vld [vmem:[%s28223_s1 + $0x94] ss:$8 sps:$4 sm:$0xff]   ;;  %v20130_v52 = vld [vmem:[%s28223_s1 + $0x90] ss:$8 sps:$4 sm:$0xff]   ;;  %v20131_v53 = vld [vmem:[%s28223_s1 + $0xa4] ss:$8 sps:$4 sm:$0xff]  }
  0x21   :  { %315 = vmatpush1.bf16.msra.mxu0 %v20094_v28  ;;  %v20129_v51 = vld [vmem:[%s28223_s1 + $0x18c] ss:$8 sps:$4 sm:$0xff]   ;;  %v20127_v54 = vld [vmem:[%s28223_s1 + $0x188] ss:$8 sps:$4 sm:$0xff]   ;;  %v20135_v55 = vld [vmem:[%s28223_s1 + $0x19c] ss:$8 sps:$4 sm:$0xff]  }
  0x22   :  { %661 = vmatpush1.bf16.msra.mxu1 %v20085_v26  ;;  %316 = vmatprep.subr.bf16.mxu0 %v20095_v29  ;;  %v20136_v56 = vld [vmem:[%s28223_s1 + $0xa0] ss:$8 sps:$4 sm:$0xff]   ;;  %v20137_v57 = vld [vmem:[%s28223_s1 + $0xb4] ss:$8 sps:$4 sm:$0xff]   ;;  %v20142_v60 = vld [vmem:[%s28223_s1 + $0xb0] ss:$8 sps:$4 sm:$0xff]  }
  0x23   :  { %662 = vmatprep.subr.bf16.mxu1 %v20093_v27  ;;  %v20133_v58 = vld [vmem:[%s28223_s1 + $0x198] ss:$8 sps:$4 sm:$0xff]   ;;  %v20141_v59 = vld [vmem:[%s28223_s1 + $0x1ac] ss:$8 sps:$4 sm:$0xff]   ;;  %v20139_v62 = vld [vmem:[%s28223_s1 + $0x1a8] ss:$8 sps:$4 sm:$0xff]  }
  0x24   :  { %v20143_v61 = vld [vmem:[%s28223_s1 + $0xc4] ss:$8 sps:$4 sm:$0xff]   ;;  %v20148_v0 = vld [vmem:[%s28223_s1 + $0xc0] ss:$8 sps:$4 sm:$0xff]   ;;  %v20149_v2 = vld [vmem:[%s28223_s1 + $0xd4] ss:$8 sps:$4 sm:$0xff]  }
  0x25   :  { %317 = vmatpush1.bf16.msra.mxu0 %v20100_v32  ;;  %v20147_v63 = vld [vmem:[%s28223_s1 + $0x1bc] ss:$8 sps:$4 sm:$0xff]   ;;  %v20145_v3 = vld [vmem:[%s28223_s1 + $0x1b8] ss:$8 sps:$4 sm:$0xff]   ;;  %v20153_v5 = vld [vmem:[%s28223_s1 + $0x1cc] ss:$8 sps:$4 sm:$0xff]  }
  0x26   :  { %663 = vmatpush1.bf16.msra.mxu1 %v20091_v30  ;;  %318 = vmatprep.subr.bf16.mxu0 %v20101_v33  ;;  %v20154_v6 = vld [vmem:[%s28223_s1 + $0xd0] ss:$8 sps:$4 sm:$0xff]   ;;  %v20155_v8 = vld [vmem:[%s28223_s1 + $0xe4] ss:$8 sps:$4 sm:$0xff]   ;;  %v20160_v11 = vld [vmem:[%s28223_s1 + $0xe0] ss:$8 sps:$4 sm:$0xff]  }
  0x27   :  { %664 = vmatprep.subr.bf16.mxu1 %v20099_v31  ;;  %v20151_v9 = vld [vmem:[%s28223_s1 + $0x1c8] ss:$8 sps:$4 sm:$0xff]   ;;  %v20159_v10 = vld [vmem:[%s28223_s1 + $0x1dc] ss:$8 sps:$4 sm:$0xff]   ;;  %v20157_v13 = vld [vmem:[%s28223_s1 + $0x1d8] ss:$8 sps:$4 sm:$0xff]  }
  0x28   :  { %v20161_v12 = vld [vmem:[%s28223_s1 + $0xf4] ss:$8 sps:$4 sm:$0xff]   ;;  %v20166_v16 = vld [vmem:[%s28223_s1 + $0xf0] ss:$8 sps:$4 sm:$0xff]   ;;  %v16593_v22 = vld [vmem:[%s28223_s1 + $0x208] sm:$0x33] }
  0x29   :  { %319 = vmatpush1.bf16.msra.mxu0 %v20106_v36  ;;  %v20165_v14 = vld [vmem:[%s28223_s1 + $0x1ec] ss:$8 sps:$4 sm:$0xff]   ;;  %v20163_v18 = vld [vmem:[%s28223_s1 + $0x1e8] ss:$8 sps:$4 sm:$0xff]   ;;  %v20169_v19 = vld [vmem:[%s28223_s1 + $0x1fc] ss:$8 sps:$4 sm:$0xff]   ;;  %v16628_v26 = vcombine.high %v16593_v22, %v16593_v22  ;;  %v16627_v27 = vcombine.low %v16593_v22, %v16593_v22 }
  0x2a   :  { %665 = vmatpush1.bf16.msra.mxu1 %v20097_v34  ;;  %320 = vmatprep.subr.bf16.mxu0 %v20107_v37  ;;  %v20172_v17 = vld [vmem:[%s28223_s1 + $0x214] ss:$8 sps:$4 sm:$0xff]   ;;  %v20170_v20 = vld [vmem:[%s28223_s1 + $0x210] ss:$8 sps:$4 sm:$0xff]   ;;  %v20176_v24 = vld [vmem:[%s28223_s1 + $0x224] ss:$8 sps:$4 sm:$0xff]  }
  0x2b   :  { %666 = vmatprep.subr.bf16.mxu1 %v20105_v35  ;;  %v20167_v25 = vld [vmem:[%s28223_s1 + $0x1f8] ss:$8 sps:$4 sm:$0xff]   ;;  %v16665_v29 = vld [vmem:[%s28223_s1 + $0x310] sm:$0x33]  ;;  %v653_v31 = vsel %vm301_vm0, %v16627_v27, 0  ;;  %vm16515_vm3 = vcmask 1024  }
  0x2c   :  { %v20174_v28 = vld [vmem:[%s28223_s1 + $0x220] ss:$8 sps:$4 sm:$0xff]   ;;  %v20180_v30 = vld [vmem:[%s28223_s1 + $0x234] ss:$8 sps:$4 sm:$0xff]   ;;  %v16700_v32 = vcombine.high %v16665_v29, %v16665_v29  ;;  %v20178_v33 = vld [vmem:[%s28223_s1 + $0x230] ss:$8 sps:$4 sm:$0xff]   ;;  %v16699_v37 = vcombine.low %v16665_v29, %v16665_v29 }
  0x2d   :  { %321 = vmatpush1.bf16.msra.mxu0 %v20112_v40  ;;  %v20183_v34 = vld [vmem:[%s28223_s1 + $0x244] ss:$8 sps:$4 sm:$0xff]   ;;  %v20181_v35 = vld [vmem:[%s28223_s1 + $0x240] ss:$8 sps:$4 sm:$0xff]   ;;  %v20186_v36 = vld [vmem:[%s28223_s1 + $0x254] ss:$8 sps:$4 sm:$0xff]  }
  0x2e   :  { %667 = vmatpush1.bf16.msra.mxu1 %v20103_v38  ;;  %322 = vmatprep.subr.bf16.mxu0 %v20113_v41  ;;  %v20184_v38 = vld [vmem:[%s28223_s1 + $0x250] ss:$8 sps:$4 sm:$0xff]   ;;  %v1003_v40 = vsel %vm301_vm0, %v16699_v37, 0  ;;  %v20194_v41 = vld [vmem:[%s28223_s1 + $0x31c] ss:$8 sps:$4 sm:$0xff]  }
  0x2f   :  { %668 = vmatprep.subr.bf16.mxu1 %v20111_v39  ;;  %v20191_v39 = vld [vmem:[%s28223_s1 + $0x264] ss:$8 sps:$4 sm:$0xff]   ;;  %v20255_v27 = vld [vmem:[%s28223_s1 + $0x420] ss:$8 sps:$4 sm:$0xff]   ;;  %v20263_v29 = vld [vmem:[%s28223_s1 + $0x434] ss:$8 sps:$4 sm:$0xff]  }
  0x30   :  { %v20275_v37 = vld [vmem:[%s28223_s1 + $0x454] ss:$8 sps:$4 sm:$0xff]  }
  0x31   :  { %323 = vmatpush1.bf16.msra.mxu0 %v20118_v44  ;;  %v20195_v44 = vld [vmem:[%s28223_s1 + $0x270] ss:$8 sps:$4 sm:$0xff]  }
  0x32   :  { %669 = vmatpush1.bf16.msra.mxu1 %v20109_v42  ;;  %324 = vmatprep.subr.bf16.mxu0 %v20119_v45  ;;  %v20189_v42 = vld [vmem:[%s28223_s1 + $0x260] ss:$8 sps:$4 sm:$0xff]   ;;  %v20203_v45 = vld [vmem:[%s28223_s1 + $0x284] ss:$8 sps:$4 sm:$0xff]  }
  0x33   :  { %670 = vmatprep.subr.bf16.mxu1 %v20117_v43  ;;  %v20197_v43 = vld [vmem:[%s28223_s1 + $0x274] ss:$8 sps:$4 sm:$0xff]  }
  0x35   :  { %325 = vmatpush1.bf16.msra.mxu0 %v20124_v48  ;;  %v20201_v48 = vld [vmem:[%s28223_s1 + $0x280] ss:$8 sps:$4 sm:$0xff]  }
  0x36   :  { %671 = vmatpush1.bf16.msra.mxu1 %v20115_v46  ;;  %326 = vmatprep.subr.bf16.mxu0 %v20125_v49  ;;  %v20192_v46 = vld [vmem:[%s28223_s1 + $0x318] ss:$8 sps:$4 sm:$0xff]   ;;  %v20209_v49 = vld [vmem:[%s28223_s1 + $0x294] ss:$8 sps:$4 sm:$0xff]  }
  0x37   :  { %672 = vmatprep.subr.bf16.mxu1 %v20123_v47  ;;  %v20200_v47 = vld [vmem:[%s28223_s1 + $0x32c] ss:$8 sps:$4 sm:$0xff]  }
  0x39   :  { %327 = vmatpush1.bf16.msra.mxu0 %v20130_v52  ;;  %v20207_v52 = vld [vmem:[%s28223_s1 + $0x290] ss:$8 sps:$4 sm:$0xff]  }
  0x3a   :  { %673 = vmatpush1.bf16.msra.mxu1 %v20121_v50  ;;  %328 = vmatprep.subr.bf16.mxu0 %v20131_v53  ;;  %v20198_v50 = vld [vmem:[%s28223_s1 + $0x328] ss:$8 sps:$4 sm:$0xff]   ;;  %v20215_v53 = vld [vmem:[%s28223_s1 + $0x2a4] ss:$8 sps:$4 sm:$0xff]  }
  0x3b   :  { %674 = vmatprep.subr.bf16.mxu1 %v20129_v51  ;;  %v20206_v51 = vld [vmem:[%s28223_s1 + $0x33c] ss:$8 sps:$4 sm:$0xff]  }
  0x3d   :  { %329 = vmatpush1.bf16.msra.mxu0 %v20136_v56  ;;  %v20221_v56 = vld [vmem:[%s28223_s1 + $0x2b4] ss:$8 sps:$4 sm:$0xff]  }
  0x3e   :  { %675 = vmatpush1.bf16.msra.mxu1 %v20127_v54  ;;  %330 = vmatprep.subr.bf16.mxu0 %v20137_v57  ;;  %v20212_v54 = vld [vmem:[%s28223_s1 + $0x34c] ss:$8 sps:$4 sm:$0xff]   ;;  %v20210_v57 = vld [vmem:[%s28223_s1 + $0x348] ss:$8 sps:$4 sm:$0xff]  }
  0x3f   :  { %676 = vmatprep.subr.bf16.mxu1 %v20135_v55  ;;  %v20213_v55 = vld [vmem:[%s28223_s1 + $0x2a0] ss:$8 sps:$4 sm:$0xff]  }
  0x41   :  { %331 = vmatpush1.bf16.msra.mxu0 %v20142_v60  ;;  %v20227_v60 = vld [vmem:[%s28223_s1 + $0x2c4] ss:$8 sps:$4 sm:$0xff]  }
  0x42   :  { %677 = vmatpush1.bf16.msra.mxu1 %v20133_v58  ;;  %332 = vmatprep.subr.bf16.mxu0 %v20143_v61  ;;  %v20218_v58 = vld [vmem:[%s28223_s1 + $0x35c] ss:$8 sps:$4 sm:$0xff]   ;;  %v20216_v61 = vld [vmem:[%s28223_s1 + $0x358] ss:$8 sps:$4 sm:$0xff]  }
  0x43   :  { %678 = vmatprep.subr.bf16.mxu1 %v20141_v59  ;;  %v20219_v59 = vld [vmem:[%s28223_s1 + $0x2b0] ss:$8 sps:$4 sm:$0xff]  }
  0x45   :  { %333 = vmatpush1.bf16.msra.mxu0 %v20148_v0  ;;  %v20233_v0 = vld [vmem:[%s28223_s1 + $0x2d4] ss:$8 sps:$4 sm:$0xff]  }
  0x46   :  { %679 = vmatpush1.bf16.msra.mxu1 %v20139_v62  ;;  %334 = vmatprep.subr.bf16.mxu0 %v20149_v2  ;;  %v20224_v62 = vld [vmem:[%s28223_s1 + $0x36c] ss:$8 sps:$4 sm:$0xff]   ;;  %v20222_v2 = vld [vmem:[%s28223_s1 + $0x368] ss:$8 sps:$4 sm:$0xff]  }
  0x47   :  { %680 = vmatprep.subr.bf16.mxu1 %v20147_v63  ;;  %v20225_v63 = vld [vmem:[%s28223_s1 + $0x2c0] ss:$8 sps:$4 sm:$0xff]  }
  0x49   :  { %335 = vmatpush1.bf16.msra.mxu0 %v20154_v6  ;;  %v20239_v6 = vld [vmem:[%s28223_s1 + $0x2e4] ss:$8 sps:$4 sm:$0xff]  }
  0x4a   :  { %681 = vmatpush1.bf16.msra.mxu1 %v20145_v3  ;;  %336 = vmatprep.subr.bf16.mxu0 %v20155_v8  ;;  %v20230_v3 = vld [vmem:[%s28223_s1 + $0x37c] ss:$8 sps:$4 sm:$0xff]   ;;  %v20228_v8 = vld [vmem:[%s28223_s1 + $0x378] ss:$8 sps:$4 sm:$0xff]  }
  0x4b   :  { %682 = vmatprep.subr.bf16.mxu1 %v20153_v5  ;;  %v20231_v5 = vld [vmem:[%s28223_s1 + $0x2d0] ss:$8 sps:$4 sm:$0xff]  }
  0x4d   :  { %337 = vmatpush1.bf16.msra.mxu0 %v20160_v11  ;;  %v20245_v11 = vld [vmem:[%s28223_s1 + $0x2f4] ss:$8 sps:$4 sm:$0xff]  }
  0x4e   :  { %683 = vmatpush1.bf16.msra.mxu1 %v20151_v9  ;;  %338 = vmatprep.subr.bf16.mxu0 %v20161_v12  ;;  %v20236_v9 = vld [vmem:[%s28223_s1 + $0x38c] ss:$8 sps:$4 sm:$0xff]   ;;  %v20234_v12 = vld [vmem:[%s28223_s1 + $0x388] ss:$8 sps:$4 sm:$0xff]  }
  0x4f   :  { %684 = vmatprep.subr.bf16.mxu1 %v20159_v10  ;;  %v20237_v10 = vld [vmem:[%s28223_s1 + $0x2e0] ss:$8 sps:$4 sm:$0xff]  }
  0x51   :  { %339 = vmatpush1.bf16.msra.mxu0 %v20166_v16  ;;  %v20251_v16 = vld [vmem:[%s28223_s1 + $0x304] ss:$8 sps:$4 sm:$0xff]  }
  0x52   :  { %685 = vmatpush1.bf16.msra.mxu1 %v20157_v13  ;;  %1008 = vmatprep.subr.bf16.mxu0 %v20172_v17  ;;  %v20242_v13 = vld [vmem:[%s28223_s1 + $0x39c] ss:$8 sps:$4 sm:$0xff]   ;;  %v23457_v17 = vld.sshfl [vmem:[%s28222_s0] sm:$0x13 pattern:$0x75316420] }
  0x53   :  { %686 = vmatprep.subr.bf16.mxu1 %v20165_v14  ;;  %v20243_v14 = vld [vmem:[%s28223_s1 + $0x2f0] ss:$8 sps:$4 sm:$0xff]   ;;  %v1516_v22 = vcombine.high %v23457_v17, %v23457_v17 }
  0x54   :  { %341 = vmatmul.mubr.bf16.vlgmr.msra.gmra.mrb[0].mxu0 %v23094_v15 }
  0x55   :  { %1009 = vmatpush1.bf16.msra.mxu0 %v20170_v20  ;;  %1040 = vmatprep.mubr.bf16.mxu0 %v23116_v23  ;;  %v20249_v20 = vld [vmem:[%s28223_s1 + $0x300] ss:$8 sps:$4 sm:$0xff]  }
  0x56   :  { %687 = vmatpush1.bf16.msra.mxu1 %v20163_v18  ;;  %1010 = vmatprep.subr.bf16.mxu0 %v20176_v24  ;;  %v20240_v18 = vld [vmem:[%s28223_s1 + $0x398] ss:$8 sps:$4 sm:$0xff]   ;;  %v20257_v24 = vld [vmem:[%s28223_s1 + $0x424] ss:$8 sps:$4 sm:$0xff]  }
  0x57   :  { %688 = vmatprep.subr.bf16.mxu1 %v20169_v19  ;;  %v20248_v19 = vld [vmem:[%s28223_s1 + $0x3ac] ss:$8 sps:$4 sm:$0xff]  }
  0x59   :  { %1011 = vmatpush1.bf16.msra.mxu0 %v20174_v28  ;;  %v1530_v28 = vrot.slane %v1516_v22, %v23077_v7  ;;  %v20323_v22 = vld [vmem:[%s28223_s1 + $0x568] ss:$8 sps:$4 sm:$0xff]  }
  0x5a   :  { %689 = vmatpush1.bf16.msra.mxu1 %v20167_v25  ;;  %1012 = vmatprep.subr.bf16.mxu0 %v20180_v30  ;;  %v20246_v25 = vld [vmem:[%s28223_s1 + $0x3a8] ss:$8 sps:$4 sm:$0xff]   ;;  %v20252_v30 = vld [vmem:[%s28223_s1 + $0x3b8] ss:$8 sps:$4 sm:$0xff]  }
  0x5b   :  { %16629 = vmatprep.subr.msk.bf16.mxu1 %vm301_vm0, %v16628_v26  ;;  %v20254_v26 = vld [vmem:[%s28223_s1 + $0x3bc] ss:$8 sps:$4 sm:$0xff]  }
  0x5d   :  { %691 = vmatmul.mubr.bf16.vlgmr.msra.gmra.mrb[4].mxu1 %v23094_v15  ;;  %1013 = vmatpush1.bf16.msra.mxu0 %v20178_v33  ;;  %v20269_v33 = vld [vmem:[%s28223_s1 + $0x444] ss:$8 sps:$4 sm:$0xff]  }
  0x5e   :  { %700 = vmatpush1.bf16.msra.mxu1 %v653_v31  ;;  %731 = vmatprep.mubr.bf16.mxu1 %v22986_v1  ;;  %v20260_v31 = vld [vmem:[%s28223_s1 + $0x3cc] ss:$8 sps:$4 sm:$0xff]  }
  0x5f   :  { %16701 = vmatprep.subr.msk.bf16.mxu1 %vm301_vm0, %v16700_v32  ;;  %1014 = vmatprep.subr.bf16.mxu0 %v20183_v34  ;;  %v20261_v32 = vld [vmem:[%s28223_s1 + $0x430] ss:$8 sps:$4 sm:$0xff]  }
  0x60   :  { %v20258_v34 = vld [vmem:[%s28223_s1 + $0x3c8] ss:$8 sps:$4 sm:$0xff]  }
  0x61   :  { %1015 = vmatpush1.bf16.msra.mxu0 %v20181_v35  ;;  %v20266_v35 = vld [vmem:[%s28223_s1 + $0x3dc] ss:$8 sps:$4 sm:$0xff]  }
  0x62   :  { %1016 = vmatprep.subr.bf16.mxu0 %v20186_v36  ;;  %v20267_v36 = vld [vmem:[%s28223_s1 + $0x440] ss:$8 sps:$4 sm:$0xff]  }
  0x65   :  { %1017 = vmatpush1.bf16.msra.mxu0 %v20184_v38  ;;  %v20264_v38 = vld [vmem:[%s28223_s1 + $0x3d8] ss:$8 sps:$4 sm:$0xff]  }
  0x66   :  { %1018 = vmatprep.subr.bf16.mxu0 %v20191_v39  ;;  %v20272_v39 = vld [vmem:[%s28223_s1 + $0x3ec] ss:$8 sps:$4 sm:$0xff]  }
  0x69   :  { %16630 = vmatmul.mubr.msk.bf16.vlgmr.msra.gmra.mrb[4].mxu1 %vm297_vm1, %v23110_v21  ;;  %1019 = vmatpush1.bf16.msra.mxu0 %v20189_v42  ;;  %v20270_v42 = vld [vmem:[%s28223_s1 + $0x3e8] ss:$8 sps:$4 sm:$0xff]  }
  0x6a   :  { %1050 = vmatpush1.bf16.msra.mxu1 %v1003_v40  ;;  %1081 = vmatprep.mubr.bf16.mxu1 %v22986_v1  ;;  %v20273_v40 = vld [vmem:[%s28223_s1 + $0x450] ss:$8 sps:$4 sm:$0xff]  }
  0x6b   :  { %1358 = vmatprep.subr.bf16.mxu1 %v20194_v41  ;;  %1020 = vmatprep.subr.bf16.mxu0 %v20197_v43  ;;  %v20281_v41 = vld [vmem:[%s28223_s1 + $0x464] ss:$8 sps:$4 sm:$0xff]  }
  0x6c   :  { %v20278_v43 = vld [vmem:[%s28223_s1 + $0x3fc] ss:$8 sps:$4 sm:$0xff]  }
  0x6d   :  { %1021 = vmatpush1.bf16.msra.mxu0 %v20195_v44  ;;  %v20279_v44 = vld [vmem:[%s28223_s1 + $0x460] ss:$8 sps:$4 sm:$0xff]  }
  0x6e   :  { %1022 = vmatprep.subr.bf16.mxu0 %v20203_v45  ;;  %v20287_v45 = vld [vmem:[%s28223_s1 + $0x474] ss:$8 sps:$4 sm:$0xff]  }
  0x71   :  { %16702 = vmatmul.mubr.msk.bf16.vlgmr.msra.gmra.mrb[8].mxu1 %vm297_vm1, %v23110_v21  ;;  %1023 = vmatpush1.bf16.msra.mxu0 %v20201_v48  ;;  %v20285_v48 = vld [vmem:[%s28223_s1 + $0x470] ss:$8 sps:$4 sm:$0xff]  }
  0x72   :  { %1359 = vmatpush1.bf16.msra.mxu1 %v20192_v46  ;;  %1390 = vmatprep.mubr.bf16.mxu1 %v23116_v23  ;;  %v20204_v23 = vld [vmem:[%s28223_s1 + $0x338] ss:$8 sps:$4 sm:$0xff]  }
  0x73   :  { %1360 = vmatprep.subr.bf16.mxu1 %v20200_v47  ;;  %1024 = vmatprep.subr.bf16.mxu0 %v20209_v49  ;;  %v20276_v46 = vld [vmem:[%s28223_s1 + $0x3f8] ss:$8 sps:$4 sm:$0xff]   ;;  %v20284_v47 = vld [vmem:[%s28223_s1 + $0x40c] ss:$8 sps:$4 sm:$0xff]  }
  0x74   :  { %v16737_v49 = vld [vmem:[%s28223_s1 + $0x418] sm:$0x33] }
  0x75   :  { %1025 = vmatpush1.bf16.msra.mxu0 %v20207_v52  ;;  %v16772_v52 = vcombine.high %v16737_v49, %v16737_v49 }
  0x76   :  { %1361 = vmatpush1.bf16.msra.mxu1 %v20198_v50  ;;  %1026 = vmatprep.subr.bf16.mxu0 %v20215_v53  ;;  %v20292_v50 = vld [vmem:[%s28223_s1 + $0x484] ss:$8 sps:$4 sm:$0xff]   ;;  %v16771_v53 = vcombine.low %v16737_v49, %v16737_v49  ;;  %v20369_v49 = vld [vmem:[%s28223_s1 + $0x654] ss:$8 sps:$4 sm:$0xff]  }
  0x77   :  { %1362 = vmatprep.subr.bf16.mxu1 %v20206_v51  ;;  %v20282_v51 = vld [vmem:[%s28223_s1 + $0x408] ss:$8 sps:$4 sm:$0xff]  }
  0x79   :  { %1027 = vmatpush1.bf16.msra.mxu0 %v20213_v55  ;;  %v1353_v55 = vsel %vm301_vm0, %v16771_v53, 0  ;;  %v20375_v53 = vld [vmem:[%s28223_s1 + $0x664] ss:$8 sps:$4 sm:$0xff]  }
  0x7a   :  { %1363 = vmatpush1.bf16.msra.mxu1 %v20204_v23  ;;  %1028 = vmatprep.subr.bf16.mxu0 %v20221_v56  ;;  %v20290_v23 = vld [vmem:[%s28223_s1 + $0x480] ss:$8 sps:$4 sm:$0xff]   ;;  %v20301_v56 = vld [vmem:[%s28223_s1 + $0x52c] ss:$8 sps:$4 sm:$0xff]  }
  0x7b   :  { %1364 = vmatprep.subr.bf16.mxu1 %v20212_v54  ;;  %v20295_v54 = vld [vmem:[%s28223_s1 + $0x494] ss:$8 sps:$4 sm:$0xff]  }
  0x7d   :  { %1029 = vmatpush1.bf16.msra.mxu0 %v20219_v59  ;;  %v23575_v59 = vld.sshfl [vmem:[%s28222_s0 + $0x1] sm:$0x13 pattern:$0x75316420] }
  0x7e   :  { %1365 = vmatpush1.bf16.msra.mxu1 %v20210_v57  ;;  %1030 = vmatprep.subr.bf16.mxu0 %v20227_v60  ;;  %v20293_v57 = vld [vmem:[%s28223_s1 + $0x490] ss:$8 sps:$4 sm:$0xff]   ;;  %v20296_v60 = vld [vmem:[%s28223_s1 + $0x4a0] ss:$8 sps:$4 sm:$0xff]  }
  0x7f   :  { %1366 = vmatprep.subr.bf16.mxu1 %v20218_v58  ;;  %v20298_v58 = vld [vmem:[%s28223_s1 + $0x4a4] ss:$8 sps:$4 sm:$0xff]  }
  0x81   :  { %1031 = vmatpush1.bf16.msra.mxu0 %v20225_v63  ;;  %v20310_v63 = vld [vmem:[%s28223_s1 + $0x4c4] ss:$8 sps:$4 sm:$0xff]  }
  0x82   :  { %1367 = vmatpush1.bf16.msra.mxu1 %v20216_v61  ;;  %1032 = vmatprep.subr.bf16.mxu0 %v20233_v0  ;;  %v1866_v61 = vcombine.high %v23575_v59, %v23575_v59  ;;  %v20299_v0 = vld [vmem:[%s28223_s1 + $0x528] ss:$8 sps:$4 sm:$0xff]  }
  0x83   :  { %1368 = vmatprep.subr.bf16.mxu1 %v20224_v62  ;;  %v20302_v62 = vld [vmem:[%s28223_s1 + $0x4b0] ss:$8 sps:$4 sm:$0xff]  }
  0x85   :  { %1033 = vmatpush1.bf16.msra.mxu0 %v20231_v5  ;;  %v20308_v5 = vld [vmem:[%s28223_s1 + $0x4c0] ss:$8 sps:$4 sm:$0xff]  }
  0x86   :  { %1369 = vmatpush1.bf16.msra.mxu1 %v20222_v2  ;;  %1034 = vmatprep.subr.bf16.mxu0 %v20239_v6  ;;  %v23595_v2 = vrot.slane %v1866_v61, %v23077_v7  ;;  %v20316_v6 = vld [vmem:[%s28223_s1 + $0x4d4] ss:$8 sps:$4 sm:$0xff]   ;;  %v20376_v61 = vld [vmem:[%s28223_s1 + $0x608] ss:$8 sps:$4 sm:$0xff]  }
  0x87   :  { %1370 = vmatprep.subr.bf16.mxu1 %v20230_v3  ;;  %v20307_v3 = vld [vmem:[%s28223_s1 + $0x53c] ss:$8 sps:$4 sm:$0xff]  }
  0x89   :  { %1035 = vmatpush1.bf16.msra.mxu0 %v20237_v10  ;;  %v20322_v10 = vld [vmem:[%s28223_s1 + $0x4e4] ss:$8 sps:$4 sm:$0xff]  }
  0x8a   :  { %1371 = vmatpush1.bf16.msra.mxu1 %v20228_v8  ;;  %1036 = vmatprep.subr.bf16.mxu0 %v20245_v11  ;;  %v20305_v8 = vld [vmem:[%s28223_s1 + $0x538] ss:$8 sps:$4 sm:$0xff]   ;;  %v20311_v11 = vld [vmem:[%s28223_s1 + $0x548] ss:$8 sps:$4 sm:$0xff]  }
  0x8b   :  { %1372 = vmatprep.subr.bf16.mxu1 %v20236_v9  ;;  %v20313_v9 = vld [vmem:[%s28223_s1 + $0x54c] ss:$8 sps:$4 sm:$0xff]  }
  0x8d   :  { %1037 = vmatpush1.bf16.msra.mxu0 %v20243_v14  ;;  %v20328_v14 = vld [vmem:[%s28223_s1 + $0x4f4] ss:$8 sps:$4 sm:$0xff]  }
  0x8e   :  { %1373 = vmatpush1.bf16.msra.mxu1 %v20234_v12  ;;  %1038 = vmatprep.subr.bf16.mxu0 %v20251_v16  ;;  %v20319_v12 = vld [vmem:[%s28223_s1 + $0x55c] ss:$8 sps:$4 sm:$0xff]   ;;  %v20317_v16 = vld [vmem:[%s28223_s1 + $0x558] ss:$8 sps:$4 sm:$0xff]  }
  0x8f   :  { %1374 = vmatprep.subr.bf16.mxu1 %v20242_v13  ;;  %v20320_v13 = vld [vmem:[%s28223_s1 + $0x4e0] ss:$8 sps:$4 sm:$0xff]  }
  0x91   :  { %1039 = vmatpush1.bf16.msra.mxu0 %v20249_v20  ;;  %v20334_v20 = vld [vmem:[%s28223_s1 + $0x504] ss:$8 sps:$4 sm:$0xff]  }
  0x92   :  { %1375 = vmatpush1.bf16.msra.mxu1 %v20240_v18  ;;  %1708 = vmatprep.subr.bf16.mxu0 %v20257_v24  ;;  %v20325_v18 = vld [vmem:[%s28223_s1 + $0x56c] ss:$8 sps:$4 sm:$0xff]   ;;  %v20331_v24 = vld [vmem:[%s28223_s1 + $0x57c] ss:$8 sps:$4 sm:$0xff]  }
  0x93   :  { %1376 = vmatprep.subr.bf16.mxu1 %v20248_v19  ;;  %v20326_v19 = vld [vmem:[%s28223_s1 + $0x4f0] ss:$8 sps:$4 sm:$0xff]  }
  0x94   :  { %1041 = vmatmul.mubr.bf16.vlgmr.msra.gmra.mrb[4].mxu0 %v23094_v15 }
  0x95   :  { %1709 = vmatpush1.bf16.msra.mxu0 %v20255_v27  ;;  %1740 = vmatprep.mubr.bf16.mxu0 %v1530_v28  ;;  %v20329_v27 = vld [vmem:[%s28223_s1 + $0x578] ss:$8 sps:$4 sm:$0xff]  }
  0x96   :  { %1377 = vmatpush1.bf16.msra.mxu1 %v20246_v25  ;;  %1710 = vmatprep.subr.bf16.mxu0 %v20263_v29  ;;  %v20332_v25 = vld [vmem:[%s28223_s1 + $0x500] ss:$8 sps:$4 sm:$0xff]   ;;  %v20337_v29 = vld [vmem:[%s28223_s1 + $0x58c] ss:$8 sps:$4 sm:$0xff]  }
  0x97   :  { %1378 = vmatprep.subr.bf16.mxu1 %v20254_v26  ;;  %v20340_v26 = vld [vmem:[%s28223_s1 + $0x514] ss:$8 sps:$4 sm:$0xff]   ;;  %v16809_v28 = vld [vmem:[%s28223_s1 + $0x520] sm:$0x33] }
  0x99   :  { %1711 = vmatpush1.bf16.msra.mxu0 %v20261_v32  ;;  %v16843_v32 = vcombine.low %v16809_v28, %v16809_v28 }
  0x9a   :  { %1379 = vmatpush1.bf16.msra.mxu1 %v20252_v30  ;;  %1712 = vmatprep.subr.bf16.mxu0 %v20269_v33  ;;  %v20338_v30 = vld [vmem:[%s28223_s1 + $0x510] ss:$8 sps:$4 sm:$0xff]  }
  0x9b   :  { %1380 = vmatprep.subr.bf16.mxu1 %v20260_v31  ;;  %v16844_v31 = vcombine.high %v16809_v28, %v16809_v28  ;;  %v20335_v33 = vld [vmem:[%s28223_s1 + $0x588] ss:$8 sps:$4 sm:$0xff]  }
  0x9d   :  { %1713 = vmatpush1.bf16.msra.mxu0 %v20267_v36  ;;  %v20341_v36 = vld [vmem:[%s28223_s1 + $0x598] ss:$8 sps:$4 sm:$0xff]  }
  0x9e   :  { %1381 = vmatpush1.bf16.msra.mxu1 %v20258_v34  ;;  %1714 = vmatprep.subr.bf16.mxu0 %v20275_v37  ;;  %v20343_v34 = vld [vmem:[%s28223_s1 + $0x59c] ss:$8 sps:$4 sm:$0xff]   ;;  %v1703_v37 = vsel %vm301_vm0, %v16843_v32, 0  ;;  %v20408_v32 = vld [vmem:[%s28223_s1 + $0x6d0] ss:$8 sps:$4 sm:$0xff]  }
  0x9f   :  { %1382 = vmatprep.subr.bf16.mxu1 %v20266_v35  ;;  %v1523_v35 = vrot.slane %v23457_v17, %v23077_v7  ;;  %v20346_v17 = vld [vmem:[%s28223_s1 + $0x5ac] ss:$8 sps:$4 sm:$0xff]  }
  0xa1   :  { %1715 = vmatpush1.bf16.msra.mxu0 %v20273_v40  ;;  %v20349_v40 = vld [vmem:[%s28223_s1 + $0x5bc] ss:$8 sps:$4 sm:$0xff]  }
  0xa2   :  { %1383 = vmatpush1.bf16.msra.mxu1 %v20264_v38  ;;  %1716 = vmatprep.subr.bf16.mxu0 %v20281_v41  ;;  %v20357_v38 = vld [vmem:[%s28223_s1 + $0x634] ss:$8 sps:$4 sm:$0xff]   ;;  %v20347_v41 = vld [vmem:[%s28223_s1 + $0x5b8] ss:$8 sps:$4 sm:$0xff]  }
  0xa3   :  { %1384 = vmatprep.subr.bf16.mxu1 %v20272_v39  ;;  %v20344_v39 = vld [vmem:[%s28223_s1 + $0x5a8] ss:$8 sps:$4 sm:$0xff]  }
  0xa5   :  { %1717 = vmatpush1.bf16.msra.mxu0 %v20279_v44  ;;  %v20355_v44 = vld [vmem:[%s28223_s1 + $0x630] ss:$8 sps:$4 sm:$0xff]  }
  0xa6   :  { %1385 = vmatpush1.bf16.msra.mxu1 %v20270_v42  ;;  %1718 = vmatprep.subr.bf16.mxu0 %v20287_v45  ;;  %v1531_v42 = vcombine.high %v1523_v35, %v1523_v35  ;;  %v20363_v45 = vld [vmem:[%s28223_s1 + $0x644] ss:$8 sps:$4 sm:$0xff]  }
  0xa7   :  { %1386 = vmatprep.subr.bf16.mxu1 %v20278_v43  ;;  %v20354_v43 = vld [vmem:[%s28223_s1 + $0x5cc] ss:$8 sps:$4 sm:$0xff]  }
  0xa9   :  { %1719 = vmatpush1.bf16.msra.mxu0 %v20285_v48  ;;  %v20361_v48 = vld [vmem:[%s28223_s1 + $0x640] ss:$8 sps:$4 sm:$0xff]  }
  0xaa   :  { %1387 = vmatpush1.bf16.msra.mxu1 %v20276_v46  ;;  %1720 = vmatprep.subr.bf16.mxu0 %v20292_v50  ;;  %v20352_v46 = vld [vmem:[%s28223_s1 + $0x5c8] ss:$8 sps:$4 sm:$0xff]   ;;  %v20358_v50 = vld [vmem:[%s28223_s1 + $0x5d8] ss:$8 sps:$4 sm:$0xff]  }
  0xab   :  { %1388 = vmatprep.subr.bf16.mxu1 %v20284_v47  ;;  %v20360_v47 = vld [vmem:[%s28223_s1 + $0x5dc] ss:$8 sps:$4 sm:$0xff]  }
  0xad   :  { %1721 = vmatpush1.bf16.msra.mxu0 %v20290_v23  ;;  %v20364_v23 = vld [vmem:[%s28223_s1 + $0x5e8] ss:$8 sps:$4 sm:$0xff]  }
  0xae   :  { %1389 = vmatpush1.bf16.msra.mxu1 %v20282_v51  ;;  %1722 = vmatprep.subr.bf16.mxu0 %v20295_v54  ;;  %v20366_v51 = vld [vmem:[%s28223_s1 + $0x5ec] ss:$8 sps:$4 sm:$0xff]   ;;  %v20372_v54 = vld [vmem:[%s28223_s1 + $0x5fc] ss:$8 sps:$4 sm:$0xff]  }
  0xaf   :  { %16773 = vmatprep.subr.msk.bf16.mxu1 %vm301_vm0, %v16772_v52  ;;  %v20367_v52 = vld [vmem:[%s28223_s1 + $0x650] ss:$8 sps:$4 sm:$0xff]  }
  0xb1   :  { %1391 = vmatmul.mubr.bf16.vlgmr.msra.gmra.mrb[12].mxu1 %v23094_v15  ;;  %1723 = vmatpush1.bf16.msra.mxu0 %v20293_v57  ;;  %v20304_v15 = vld [vmem:[%s28223_s1 + $0x4b4] ss:$8 sps:$4 sm:$0xff]  }
  0xb2   :  { %1400 = vmatpush1.bf16.msra.mxu1 %v1353_v55  ;;  %1431 = vmatprep.mubr.bf16.mxu1 %v22986_v1  ;;  %v20370_v55 = vld [vmem:[%s28223_s1 + $0x5f8] ss:$8 sps:$4 sm:$0xff]   ;;  %v20378_v57 = vld [vmem:[%s28223_s1 + $0x60c] ss:$8 sps:$4 sm:$0xff]  }
  0xb3   :  { %2058 = vmatprep.subr.bf16.mxu1 %v20301_v56  ;;  %1724 = vmatprep.subr.bf16.mxu0 %v20298_v58  ;;  %v20373_v56 = vld [vmem:[%s28223_s1 + $0x660] ss:$8 sps:$4 sm:$0xff]   ;;  %v20381_v58 = vld [vmem:[%s28223_s1 + $0x674] ss:$8 sps:$4 sm:$0xff]  }
  0xb5   :  { %1725 = vmatpush1.bf16.msra.mxu0 %v20296_v60  ;;  %v20379_v60 = vld [vmem:[%s28223_s1 + $0x670] ss:$8 sps:$4 sm:$0xff]  }
  0xb6   :  { %1726 = vmatprep.subr.bf16.mxu0 %v20304_v15 }
  0xb9   :  { %1727 = vmatpush1.bf16.msra.mxu0 %v20302_v62  ;;  %v20387_v62 = vld [vmem:[%s28223_s1 + $0x684] ss:$8 sps:$4 sm:$0xff]  }
  0xba   :  { %1728 = vmatprep.subr.bf16.mxu0 %v20310_v63 }
  0xbd   :  { %16774 = vmatmul.mubr.msk.bf16.vlgmr.msra.gmra.mrb[12].mxu1 %vm297_vm1, %v23110_v21  ;;  %1729 = vmatpush1.bf16.msra.mxu0 %v20308_v5  ;;  %v20314_v21 = vld [vmem:[%s28223_s1 + $0x4d0] ss:$8 sps:$4 sm:$0xff]  }
  0xbe   :  { %2059 = vmatpush1.bf16.msra.mxu1 %v20299_v0  ;;  %2090 = vmatprep.mubr.bf16.mxu1 %v23595_v2  ;;  %v20384_v0 = vld [vmem:[%s28223_s1 + $0x61c] ss:$8 sps:$4 sm:$0xff]  }
  0xbf   :  { %2060 = vmatprep.subr.bf16.mxu1 %v20307_v3  ;;  %1730 = vmatprep.subr.bf16.mxu0 %v20316_v6  ;;  %v20385_v3 = vld [vmem:[%s28223_s1 + $0x680] ss:$8 sps:$4 sm:$0xff]  }
  0xc0   :  { %v16881_v6 = vld [vmem:[%s28223_s1 + $0x628] sm:$0x33] }
  0xc1   :  { %1731 = vmatpush1.bf16.msra.mxu0 %v20314_v21  ;;  %v16916_v21 = vcombine.high %v16881_v6, %v16881_v6 }
  0xc2   :  { %2061 = vmatpush1.bf16.msra.mxu1 %v20305_v8  ;;  %1732 = vmatprep.subr.bf16.mxu0 %v20322_v10  ;;  %v20392_v8 = vld [vmem:[%s28223_s1 + $0x694] ss:$8 sps:$4 sm:$0xff]   ;;  %v16915_v10 = vcombine.low %v16881_v6, %v16881_v6 }
  0xc3   :  { %2062 = vmatprep.subr.bf16.mxu1 %v20313_v9  ;;  %v20382_v9 = vld [vmem:[%s28223_s1 + $0x618] ss:$8 sps:$4 sm:$0xff]  }
  0xc5   :  { %1733 = vmatpush1.bf16.msra.mxu0 %v20320_v13  ;;  %v23787_v13 = vrot.slane %v23575_v59, %v23077_v7  ;;  %v20398_v59 = vld [vmem:[%s28223_s1 + $0x6b4] ss:$8 sps:$4 sm:$0xff]  }
  0xc6   :  { %2063 = vmatpush1.bf16.msra.mxu1 %v20311_v11  ;;  %1734 = vmatprep.subr.bf16.mxu0 %v20328_v14  ;;  %v20390_v11 = vld [vmem:[%s28223_s1 + $0x690] ss:$8 sps:$4 sm:$0xff]   ;;  %v2053_v14 = vsel %vm301_vm0, %v16915_v10, 0 }
  0xc7   :  { %2064 = vmatprep.subr.bf16.mxu1 %v20319_v12  ;;  %v20395_v12 = vld [vmem:[%s28223_s1 + $0x6a4] ss:$8 sps:$4 sm:$0xff]   ;;  %v23826_v28 = vcombine.high %v23787_v13, %v23787_v13 }
  0xc9   :  { %1735 = vmatpush1.bf16.msra.mxu0 %v20326_v19  ;;  %v23805_v19 = vld.sshfl [vmem:[%s28222_s0 + $0x2] sm:$0x13 pattern:$0x75316420] }
  0xca   :  { %2065 = vmatpush1.bf16.msra.mxu1 %v20317_v16  ;;  %1736 = vmatprep.subr.bf16.mxu0 %v20334_v20  ;;  %v20401_v16 = vld [vmem:[%s28223_s1 + $0x73c] ss:$8 sps:$4 sm:$0xff]   ;;  %v20396_v20 = vld [vmem:[%s28223_s1 + $0x6b0] ss:$8 sps:$4 sm:$0xff]  }
  0xcb   :  { %2066 = vmatprep.subr.bf16.mxu1 %v20325_v18  ;;  %v20393_v18 = vld [vmem:[%s28223_s1 + $0x6a0] ss:$8 sps:$4 sm:$0xff]  }
  0xcd   :  { %1737 = vmatpush1.bf16.msra.mxu0 %v20332_v25  ;;  %v20399_v25 = vld [vmem:[%s28223_s1 + $0x738] ss:$8 sps:$4 sm:$0xff]  }
  0xce   :  { %2067 = vmatpush1.bf16.msra.mxu1 %v20323_v22  ;;  %1738 = vmatprep.subr.bf16.mxu0 %v20340_v26  ;;  %v20404_v22 = vld [vmem:[%s28223_s1 + $0x6c4] ss:$8 sps:$4 sm:$0xff]   ;;  %v20402_v26 = vld [vmem:[%s28223_s1 + $0x6c0] ss:$8 sps:$4 sm:$0xff]  }
  0xcf   :  { %2068 = vmatprep.subr.bf16.mxu1 %v20331_v24  ;;  %v2566_v24 = vcombine.high %v23805_v19, %v23805_v19 }
  0xd1   :  { %1739 = vmatpush1.bf16.msra.mxu0 %v20338_v30  ;;  %v20407_v30 = vld [vmem:[%s28223_s1 + $0x74c] ss:$8 sps:$4 sm:$0xff]  }
  0xd2   :  { %2069 = vmatpush1.bf16.msra.mxu1 %v20329_v27  ;;  %16845 = vmatprep.subr.msk.bf16.mxu0 %vm301_vm0, %v16844_v31  ;;  %v20410_v27 = vld [vmem:[%s28223_s1 + $0x6d4] ss:$8 sps:$4 sm:$0xff]   ;;  %v20405_v31 = vld [vmem:[%s28223_s1 + $0x748] ss:$8 sps:$4 sm:$0xff]  }
  0xd3   :  { %2070 = vmatprep.subr.bf16.mxu1 %v20337_v29  ;;  %v23829_v29 = vrot.slane %v2566_v24, %v23077_v7  ;;  %v20458_v24 = vld [vmem:[%s28223_s1 + $0x7e8] ss:$8 sps:$4 sm:$0xff]  }
  0xd4   :  { %1741 = vmatmul.mubr.bf16.vlgmr.msra.gmra.mrb[8].mxu0 %v1523_v35  ;;  %v20411_v35 = vld [vmem:[%s28223_s1 + $0x758] ss:$8 sps:$4 sm:$0xff]  }
  0xd5   :  { %1750 = vmatpush1.bf16.msra.mxu0 %v1703_v37  ;;  %1781 = vmatprep.mubr.bf16.mxu0 %v22986_v1  ;;  %v20422_v37 = vld [vmem:[%s28223_s1 + $0x6f4] ss:$8 sps:$4 sm:$0xff]  }
  0xd6   :  { %2071 = vmatpush1.bf16.msra.mxu1 %v20335_v33  ;;  %2408 = vmatprep.subr.bf16.mxu0 %v20357_v38  ;;  %v20416_v33 = vld [vmem:[%s28223_s1 + $0x6e4] ss:$8 sps:$4 sm:$0xff]  }
  0xd7   :  { %2072 = vmatprep.subr.bf16.mxu1 %v20343_v34  ;;  %v20413_v34 = vld [vmem:[%s28223_s1 + $0x75c] ss:$8 sps:$4 sm:$0xff]   ;;  %v20419_v38 = vld [vmem:[%s28223_s1 + $0x76c] ss:$8 sps:$4 sm:$0xff]  }
  0xda   :  { %2073 = vmatpush1.bf16.msra.mxu1 %v20341_v36  ;;  %v20414_v36 = vld [vmem:[%s28223_s1 + $0x6e0] ss:$8 sps:$4 sm:$0xff]  }
  0xdb   :  { %2074 = vmatprep.subr.bf16.mxu1 %v20346_v17  ;;  %v20417_v17 = vld [vmem:[%s28223_s1 + $0x768] ss:$8 sps:$4 sm:$0xff]  }
  0xde   :  { %2075 = vmatpush1.bf16.msra.mxu1 %v20344_v39  ;;  %v20420_v39 = vld [vmem:[%s28223_s1 + $0x6f0] ss:$8 sps:$4 sm:$0xff]  }
  0xdf   :  { %2076 = vmatprep.subr.bf16.mxu1 %v20349_v40  ;;  %v20425_v40 = vld [vmem:[%s28223_s1 + $0x77c] ss:$8 sps:$4 sm:$0xff]  }
  0xe0   :  { %16846 = vmatmul.mubr.msk.bf16.vlgmr.msra.gmra.mrb[8].mxu0 %vm297_vm1, %v1531_v42  ;;  %v20426_v42 = vld [vmem:[%s28223_s1 + $0x700] ss:$8 sps:$4 sm:$0xff]  }
  0xe1   :  { %2409 = vmatpush1.bf16.msra.mxu0 %v20355_v44  ;;  %2440 = vmatprep.mubr.bf16.mxu0 %v23595_v2  ;;  %v20434_v44 = vld [vmem:[%s28223_s1 + $0x714] ss:$8 sps:$4 sm:$0xff]  }
  0xe2   :  { %2077 = vmatpush1.bf16.msra.mxu1 %v20347_v41  ;;  %2410 = vmatprep.subr.bf16.mxu0 %v20363_v45  ;;  %v20428_v41 = vld [vmem:[%s28223_s1 + $0x704] ss:$8 sps:$4 sm:$0xff]  }
  0xe3   :  { %2078 = vmatprep.subr.bf16.mxu1 %v20354_v43  ;;  %v20423_v43 = vld [vmem:[%s28223_s1 + $0x778] ss:$8 sps:$4 sm:$0xff]   ;;  %v20431_v45 = vld [vmem:[%s28223_s1 + $0x78c] ss:$8 sps:$4 sm:$0xff]  }
  0xe5   :  { %2411 = vmatpush1.bf16.msra.mxu0 %v20361_v48  ;;  %v20440_v48 = vld [vmem:[%s28223_s1 + $0x724] ss:$8 sps:$4 sm:$0xff]  }
  0xe6   :  { %2079 = vmatpush1.bf16.msra.mxu1 %v20352_v46  ;;  %2412 = vmatprep.subr.bf16.mxu0 %v20369_v49  ;;  %v20432_v46 = vld [vmem:[%s28223_s1 + $0x710] ss:$8 sps:$4 sm:$0xff]  }
  0xe7   :  { %2080 = vmatprep.subr.bf16.mxu1 %v20360_v47  ;;  %v20429_v47 = vld [vmem:[%s28223_s1 + $0x788] ss:$8 sps:$4 sm:$0xff]  }
  0xe8   :  { %v16953_v49 = vld [vmem:[%s28223_s1 + $0x730] sm:$0x33] }
  0xe9   :  { %2413 = vmatpush1.bf16.msra.mxu0 %v20367_v52  ;;  %v16988_v52 = vcombine.high %v16953_v49, %v16953_v49 }
  0xea   :  { %2081 = vmatpush1.bf16.msra.mxu1 %v20358_v50  ;;  %2414 = vmatprep.subr.bf16.mxu0 %v20375_v53  ;;  %v20437_v50 = vld [vmem:[%s28223_s1 + $0x79c] ss:$8 sps:$4 sm:$0xff]   ;;  %v16987_v53 = vcombine.low %v16953_v49, %v16953_v49 }
  0xeb   :  { %2082 = vmatprep.subr.bf16.mxu1 %v20366_v51  ;;  %v20438_v51 = vld [vmem:[%s28223_s1 + $0x720] ss:$8 sps:$4 sm:$0xff]  }
  0xed   :  { %2415 = vmatpush1.bf16.msra.mxu0 %v20373_v56  ;;  %v2403_v56 = vsel %vm301_vm0, %v16987_v53, 0 }
  0xee   :  { %2083 = vmatpush1.bf16.msra.mxu1 %v20364_v23  ;;  %2416 = vmatprep.subr.bf16.mxu0 %v20381_v58  ;;  %v20435_v23 = vld [vmem:[%s28223_s1 + $0x798] ss:$8 sps:$4 sm:$0xff]   ;;  %v20446_v58 = vld [vmem:[%s28223_s1 + $0x7bc] ss:$8 sps:$4 sm:$0xff]  }
  0xef   :  { %2084 = vmatprep.subr.bf16.mxu1 %v20372_v54  ;;  %v20443_v54 = vld [vmem:[%s28223_s1 + $0x7ac] ss:$8 sps:$4 sm:$0xff]  }
  0xf0   :  { %v23754_v15 = vpop.f32.mrb[0].mxu1 }
  0xf1   :  { %v23762_v63 = vpop.f32.mrb[1].mxu1  ;;  %2417 = vmatpush1.bf16.msra.mxu0 %v20379_v60  ;;  %v23922_v60 = vsub.s32 0, %v23071_v4 }
  0xf2   :  { %2085 = vmatpush1.bf16.msra.mxu1 %v20370_v55  ;;  %v387_v2 = vpop.f32.mrb[2].mxu1  ;;  %2418 = vmatprep.subr.bf16.mxu0 %v20387_v62  ;;  %v20441_v55 = vld [vmem:[%s28223_s1 + $0x7a8] ss:$8 sps:$4 sm:$0xff]   ;;  %v23928_v62 = vsub.s32 1, %v23071_v4 }
  0xf3   :  { %v388_v5 = vpop.f32.mrb[3].mxu1  ;;  %2086 = vmatprep.subr.bf16.mxu1 %v20378_v57  ;;  %v20457_v57 = vld [vmem:[%s28223_s1 + $0x844] ss:$8 sps:$4 sm:$0xff]   ;;  %v20447_v4 = vld [vmem:[%s28223_s1 + $0x7c8] ss:$8 sps:$4 sm:$0xff]  }
  0xf4   :  { %v20449_v2 = vld [vmem:[%s28223_s1 + $0x7cc] ss:$8 sps:$4 sm:$0xff]  }
  0xf5   :  { %2419 = vmatpush1.bf16.msra.mxu0 %v20385_v3 }
  0xf6   :  { %2087 = vmatpush1.bf16.msra.mxu1 %v20376_v61  ;;  %2420 = vmatprep.subr.bf16.mxu0 %v20392_v8  ;;  %v60_v61 = vld [vmem:[%s28224_s2] sm:$0x3] }
  0xf7   :  { %2088 = vmatprep.subr.bf16.mxu1 %v20384_v0  ;;  %v20444_v0 = vld [vmem:[%s28223_s1 + $0x7b8] ss:$8 sps:$4 sm:$0xff]   ;;  %v23938_v3 = vrot.slane %v60_v61, %v23922_v60  ;;  %v23941_v5 = vrot.slane %v60_v61, %v23928_v62 }
  0xf8   :  { %v20490_v61 = vld [vmem:[%s28223_s1 + $0x8a0] ss:$8 sps:$4 sm:$0xff]  }
  0xf9   :  { %2421 = vmatpush1.bf16.msra.mxu0 %v20390_v11  ;;  %v20452_v11 = vld [vmem:[%s28223_s1 + $0x7d8] ss:$8 sps:$4 sm:$0xff]  }
  0xfa   :  { %2089 = vmatpush1.bf16.msra.mxu1 %v20382_v9  ;;  %2422 = vmatprep.subr.bf16.mxu0 %v20395_v12  ;;  %v20455_v12 = vld [vmem:[%s28223_s1 + $0x840] ss:$8 sps:$4 sm:$0xff]  }
  0xfb   :  { %16917 = vmatprep.subr.msk.bf16.mxu1 %vm301_vm0, %v16916_v21  ;;  %v20454_v21 = vld [vmem:[%s28223_s1 + $0x7dc] ss:$8 sps:$4 sm:$0xff]  }
  0xfd   :  { %2091 = vmatmul.mubr.bf16.vlgmr.msra.gmra.mrb[16].mxu1 %v23787_v13  ;;  %2423 = vmatpush1.bf16.msra.mxu0 %v20393_v18 }
  0xfe   :  { %2100 = vmatpush1.bf16.msra.mxu1 %v2053_v14  ;;  %2131 = vmatprep.mubr.bf16.mxu1 %v22986_v1 }
  0xff   :  { %2758 = vmatprep.subr.bf16.mxu1 %v20401_v16  ;;  %2424 = vmatprep.subr.bf16.mxu0 %v20398_v59  ;;  %v20463_v16 = vld [vmem:[%s28223_s1 + $0x854] ss:$8 sps:$4 sm:$0xff]  }
 0x101   :  { %2425 = vmatpush1.bf16.msra.mxu0 %v20396_v20 }
 0x102   :  { %2426 = vmatprep.subr.bf16.mxu0 %v20404_v22 }
 0x105   :  { %2427 = vmatpush1.bf16.msra.mxu0 %v20402_v26  ;;  %v20469_v26 = vld [vmem:[%s28223_s1 + $0x864] ss:$8 sps:$4 sm:$0xff]  }
 0x106   :  { %2428 = vmatprep.subr.bf16.mxu0 %v20410_v27 }
 0x109   :  { %16918 = vmatmul.mubr.msk.bf16.vlgmr.msra.gmra.mrb[16].mxu1 %vm297_vm1, %v23826_v28  ;;  %2429 = vmatpush1.bf16.msra.mxu0 %v20408_v32  ;;  %v20472_v32 = vld [vmem:[%s28223_s1 + $0x80c] ss:$8 sps:$4 sm:$0xff]  }
 0x10a   :  { %2759 = vmatpush1.bf16.msra.mxu1 %v20399_v25  ;;  %2790 = vmatprep.mubr.bf16.mxu1 %v23829_v29 }
 0x10b   :  { %2760 = vmatprep.subr.bf16.mxu1 %v20407_v30  ;;  %2430 = vmatprep.subr.bf16.mxu0 %v20416_v33  ;;  %v20475_v30 = vld [vmem:[%s28223_s1 + $0x874] ss:$8 sps:$4 sm:$0xff]   ;;  %v20470_v33 = vld [vmem:[%s28223_s1 + $0x808] ss:$8 sps:$4 sm:$0xff]  }
 0x10d   :  { %2431 = vmatpush1.bf16.msra.mxu0 %v20414_v36  ;;  %v20481_v36 = vld [vmem:[%s28223_s1 + $0x884] ss:$8 sps:$4 sm:$0xff]  }
 0x10e   :  { %2761 = vmatpush1.bf16.msra.mxu1 %v20405_v31  ;;  %2432 = vmatprep.subr.bf16.mxu0 %v20422_v37  ;;  %v20464_v31 = vld [vmem:[%s28223_s1 + $0x7f8] ss:$8 sps:$4 sm:$0xff]  }
 0x10f   :  { %2762 = vmatprep.subr.bf16.mxu1 %v20413_v34  ;;  %v20473_v34 = vld [vmem:[%s28223_s1 + $0x870] ss:$8 sps:$4 sm:$0xff]   ;;  %v20479_v37 = vld [vmem:[%s28223_s1 + $0x880] ss:$8 sps:$4 sm:$0xff]  }
 0x111   :  { %2433 = vmatpush1.bf16.msra.mxu0 %v20420_v39  ;;  %v20487_v39 = vld [vmem:[%s28223_s1 + $0x894] ss:$8 sps:$4 sm:$0xff]  }
 0x112   :  { %2763 = vmatpush1.bf16.msra.mxu1 %v20411_v35  ;;  %2434 = vmatprep.subr.bf16.mxu0 %v20428_v41  ;;  %v20478_v35 = vld [vmem:[%s28223_s1 + $0x81c] ss:$8 sps:$4 sm:$0xff]  }
 0x113   :  { %2764 = vmatprep.subr.bf16.mxu1 %v20419_v38 }
 0x115   :  { %2435 = vmatpush1.bf16.msra.mxu0 %v20426_v42 }
 0x116   :  { %2765 = vmatpush1.bf16.msra.mxu1 %v20417_v17  ;;  %2436 = vmatprep.subr.bf16.mxu0 %v20434_v44  ;;  %v20476_v17 = vld [vmem:[%s28223_s1 + $0x818] ss:$8 sps:$4 sm:$0xff]  }
 0x117   :  { %2766 = vmatprep.subr.bf16.mxu1 %v20425_v40 }
 0x119   :  { %2437 = vmatpush1.bf16.msra.mxu0 %v20432_v46 }
 0x11a   :  { %2767 = vmatpush1.bf16.msra.mxu1 %v20423_v43  ;;  %2438 = vmatprep.subr.bf16.mxu0 %v20440_v48  ;;  %v20484_v43 = vld [vmem:[%s28223_s1 + $0x82c] ss:$8 sps:$4 sm:$0xff]   ;;  %v20485_v48 = vld [vmem:[%s28223_s1 + $0x890] ss:$8 sps:$4 sm:$0xff]  }
 0x11b   :  { %2768 = vmatprep.subr.bf16.mxu1 %v20431_v45 }
 0x11d   :  { %2439 = vmatpush1.bf16.msra.mxu0 %v20438_v51 }
 0x11e   :  { %2769 = vmatpush1.bf16.msra.mxu1 %v20429_v47  ;;  %16989 = vmatprep.subr.msk.bf16.mxu0 %vm301_vm0, %v16988_v52  ;;  %v17025_v52 = vld [vmem:[%s28223_s1 + $0x838] sm:$0x33] }
 0x11f   :  { %2770 = vmatprep.subr.bf16.mxu1 %v20437_v50 }
 0x120   :  { %2441 = vmatmul.mubr.bf16.vlgmr.msra.gmra.mrb[12].mxu0 %v23787_v13 }
 0x121   :  { %2450 = vmatpush1.bf16.msra.mxu0 %v2403_v56  ;;  %2481 = vmatprep.mubr.bf16.mxu0 %v22986_v1  ;;  %v20482_v56 = vld [vmem:[%s28223_s1 + $0x828] ss:$8 sps:$4 sm:$0xff]  }
 0x122   :  { %2771 = vmatpush1.bf16.msra.mxu1 %v20435_v23  ;;  %3108 = vmatprep.subr.bf16.mxu0 %v20457_v57  ;;  %v20492_v23 = vld [vmem:[%s28223_s1 + $0x8a4] ss:$8 sps:$4 sm:$0xff]   ;;  %v17060_v57 = vcombine.high %v17025_v52, %v17025_v52 }
 0x123   :  { %2772 = vmatprep.subr.bf16.mxu1 %v20443_v54 }
 0x126   :  { %2773 = vmatpush1.bf16.msra.mxu1 %v20441_v55 }
 0x127   :  { %2774 = vmatprep.subr.bf16.mxu1 %v20446_v58  ;;  %v342_v6 = vpop.f32.mrb[0].mxu0  ;;  %v17059_v58 = vcombine.low %v17025_v52, %v17025_v52  ;;  %v20523_v52 = vld [vmem:[%s28223_s1 + $0x988] ss:$8 sps:$4 sm:$0xff]  }
 0x128   :  { %v343_v8 = vadd.f32 %v342_v6, %v23938_v3  ;;  %v344_v9 = vpop.f32.mrb[1].mxu0  ;;  %v24054_v6 = vrot.slane %v23805_v19, %v23077_v7  ;;  %v20498_v19 = vld [vmem:[%s28223_s1 + $0x8c4] ss:$8 sps:$4 sm:$0xff]  }
 0x129   :  { %v345_v10 = vadd.f32 %v344_v9, %v23941_v5  ;;  %v346_v13 = vpop.f32.mrb[2].mxu0 }
 0x12a   :  { %2775 = vmatpush1.bf16.msra.mxu1 %v20444_v0  ;;  %v23958_v14 = vadd.f32 %v23754_v15, %v343_v8  ;;  %v347_v18 = vpop.f32.mrb[3].mxu0  ;;  %v20460_v15 = vld [vmem:[%s28223_s1 + $0x7ec] ss:$8 sps:$4 sm:$0xff]  }
 0x12b   :  { %2776 = vmatprep.subr.bf16.mxu1 %v20449_v2  ;;  %v23964_v59 = vadd.f32 %v23762_v63, %v345_v10  ;;  %v20461_v63 = vld [vmem:[%s28223_s1 + $0x850] ss:$8 sps:$4 sm:$0xff]   ;;  %v20495_v2 = vld [vmem:[%s28223_s1 + $0x8b4] ss:$8 sps:$4 sm:$0xff]  }
 0x12c   :  { %v390_v20 = vsub.f32 0.0, %v23958_v14  ;;  %16990 = vmatmul.mubr.msk.bf16.vlgmr.msra.gmra.mrb[12].mxu0 %vm297_vm1, %v23826_v28  ;;  %v20466_v28 = vld [vmem:[%s28223_s1 + $0x7fc] ss:$8 sps:$4 sm:$0xff]   ;;  %v20501_v10 = vld [vmem:[%s28223_s1 + $0x94c] ss:$8 sps:$4 sm:$0xff]  }
 0x12d   :  { %v391_v22 = vsub.f32 0.0, %v23964_v59  ;;  %3109 = vmatpush1.bf16.msra.mxu0 %v20455_v12  ;;  %3140 = vmatprep.mubr.bf16.mxu0 %v23829_v29  ;;  %v20467_v29 = vld [vmem:[%s28223_s1 + $0x860] ss:$8 sps:$4 sm:$0xff]  }
 0x12e   :  { %2777 = vmatpush1.bf16.msra.mxu1 %v20447_v4  ;;  %v392_v25 = vmul.f32 1.442695, %v390_v20  ;;  %3110 = vmatprep.subr.bf16.mxu0 %v20463_v16  ;;  %v24073_v18 = vld.sshfl [vmem:[%s28222_s0 + $0x3] sm:$0x13 pattern:$0x75316420] }
 0x12f   :  { %2778 = vmatprep.subr.bf16.mxu1 %v20454_v21  ;;  %v394_v27 = vmul.f32 1.442695, %v391_v22  ;;  %v2753_v21 = vsel %vm301_vm0, %v17059_v58, 0  ;;  %v20504_v22 = vld [vmem:[%s28223_s1 + $0x8d4] ss:$8 sps:$4 sm:$0xff]  }
 0x130   :  { %22715 = vpow2.f32 %v392_v25  ;;  %v20537_v58 = vld [vmem:[%s28223_s1 + $0x9ac] ss:$8 sps:$4 sm:$0xff]  }
 0x131   :  { %22717 = vpow2.f32 %v394_v27  ;;  %3111 = vmatpush1.bf16.msra.mxu0 %v20461_v63 }
 0x132   :  { %2779 = vmatpush1.bf16.msra.mxu1 %v20452_v11  ;;  %3112 = vmatprep.subr.bf16.mxu0 %v20469_v26  ;;  %v20493_v11 = vld [vmem:[%s28223_s1 + $0x8b0] ss:$8 sps:$4 sm:$0xff]   ;;  %v3266_v26 = vcombine.high %v24073_v18, %v24073_v18 }
 0x133   :  { %2780 = vmatprep.subr.bf16.mxu1 %v20460_v15  ;;  %v20496_v15 = vld [vmem:[%s28223_s1 + $0x8c0] ss:$8 sps:$4 sm:$0xff]  }
 0x135   :  { %3113 = vmatpush1.bf16.msra.mxu0 %v20467_v29  ;;  %v20502_v29 = vld [vmem:[%s28223_s1 + $0x8d0] ss:$8 sps:$4 sm:$0xff]  }
 0x136   :  { %2781 = vmatpush1.bf16.msra.mxu1 %v20458_v24  ;;  %3114 = vmatprep.subr.bf16.mxu0 %v20475_v30  ;;  %v20510_v30 = vld [vmem:[%s28223_s1 + $0x8e4] ss:$8 sps:$4 sm:$0xff]  }
 0x137   :  { %2782 = vmatprep.subr.bf16.mxu1 %v20466_v28  ;;  %v20499_v28 = vld [vmem:[%s28223_s1 + $0x948] ss:$8 sps:$4 sm:$0xff]  }
 0x139   :  { %3115 = vmatpush1.bf16.msra.mxu0 %v20473_v34  ;;  %v20505_v34 = vld [vmem:[%s28223_s1 + $0x958] ss:$8 sps:$4 sm:$0xff]  }
 0x13a   :  { %2783 = vmatpush1.bf16.msra.mxu1 %v20464_v31  ;;  %v22716_v40 = vpop.eup %22715  ;;  %3116 = vmatprep.subr.bf16.mxu0 %v20481_v36  ;;  %v24096_v31 = vcombine.high %v24054_v6, %v24054_v6  ;;  %v20516_v36 = vld [vmem:[%s28223_s1 + $0x8f4] ss:$8 sps:$4 sm:$0xff]  }
 0x13b   :  { %2784 = vmatprep.subr.bf16.mxu1 %v20472_v32  ;;  %v22718_v44 = vpop.eup %22717  ;;  %v396_v45 = vadd.f32 1.0, %v22716_v40  ;;  %v24099_v32 = vrot.slane %v3266_v26, %v23077_v7 }
 0x13c   :  { %v733_v38 = vpop.f32.mrb[4].mxu1  ;;  %v397_v49 = vadd.f32 1.0, %v22718_v44  ;;  %v20519_v44 = vld [vmem:[%s28223_s1 + $0x97c] ss:$8 sps:$4 sm:$0xff]  }
 0x13d   :  { %v24020_v41 = vadd.f32 %v733_v38, %v23938_v3  ;;  %v735_v42 = vpop.f32.mrb[5].mxu1  ;;  %22719 = vrcp.f32 %v396_v45  ;;  %3117 = vmatpush1.bf16.msra.mxu0 %v20479_v37  ;;  %v20513_v37 = vld [vmem:[%s28223_s1 + $0x96c] ss:$8 sps:$4 sm:$0xff]   ;;  %v20511_v38 = vld [vmem:[%s28223_s1 + $0x968] ss:$8 sps:$4 sm:$0xff]  }
 0x13e   :  { %2785 = vmatpush1.bf16.msra.mxu1 %v20470_v33  ;;  %v24026_v46 = vadd.f32 %v735_v42, %v23941_v5  ;;  %v737_v47 = vpop.f32.mrb[6].mxu1  ;;  %22721 = vrcp.f32 %v397_v49  ;;  %3118 = vmatprep.subr.bf16.mxu0 %v20487_v39  ;;  %v20507_v33 = vld [vmem:[%s28223_s1 + $0x95c] ss:$8 sps:$4 sm:$0xff]   ;;  %v20525_v49 = vld [vmem:[%s28223_s1 + $0x98c] ss:$8 sps:$4 sm:$0xff]  }
 0x13f   :  { %v740_v50 = vsub.f32 0.0, %v24020_v41  ;;  %2786 = vmatprep.subr.bf16.mxu1 %v20478_v35  ;;  %v738_v51 = vpop.f32.mrb[7].mxu1  ;;  %v20508_v35 = vld [vmem:[%s28223_s1 + $0x8e0] ss:$8 sps:$4 sm:$0xff]   ;;  %v20522_v39 = vld [vmem:[%s28223_s1 + $0x904] ss:$8 sps:$4 sm:$0xff]  }
 0x140   :  { %v741_v53 = vsub.f32 0.0, %v24026_v46  ;;  %v20517_v47 = vld [vmem:[%s28223_s1 + $0x978] ss:$8 sps:$4 sm:$0xff]  }
 0x141   :  { %v742_v54 = vmul.f32 1.442695, %v740_v50  ;;  %3119 = vmatpush1.bf16.msra.mxu0 %v20485_v48  ;;  %v20520_v48 = vld [vmem:[%s28223_s1 + $0x900] ss:$8 sps:$4 sm:$0xff]  }
 0x142   :  { %v744_v55 = vmul.f32 1.442695, %v741_v53  ;;  %2787 = vmatpush1.bf16.msra.mxu1 %v20476_v17  ;;  %3120 = vmatprep.subr.bf16.mxu0 %v20492_v23  ;;  %v20514_v17 = vld [vmem:[%s28223_s1 + $0x8f0] ss:$8 sps:$4 sm:$0xff]   ;;  %v20534_v53 = vld [vmem:[%s28223_s1 + $0x924] ss:$8 sps:$4 sm:$0xff]  }
 0x143   :  { %22723 = vpow2.f32 %v742_v54  ;;  %2788 = vmatprep.subr.bf16.mxu1 %v20484_v43  ;;  %v20531_v23 = vld [vmem:[%s28223_s1 + $0x99c] ss:$8 sps:$4 sm:$0xff]   ;;  %v20532_v54 = vld [vmem:[%s28223_s1 + $0x920] ss:$8 sps:$4 sm:$0xff]  }
 0x144   :  { %22725 = vpow2.f32 %v744_v55  ;;  %v24045_v0 = vpop.f32.mrb[8].mxu1  ;;  %v20529_v55 = vld [vmem:[%s28223_s1 + $0x998] ss:$8 sps:$4 sm:$0xff]  }
 0x145   :  { %v24050_v4 = vpop.f32.mrb[9].mxu1  ;;  %3121 = vmatpush1.bf16.msra.mxu0 %v20490_v61  ;;  %v20538_v61 = vld [vmem:[%s28223_s1 + $0x930] ss:$8 sps:$4 sm:$0xff]  }
 0x146   :  { %2789 = vmatpush1.bf16.msra.mxu1 %v20482_v56  ;;  %v1087_v8 = vpop.f32.mrb[10].mxu1  ;;  %3122 = vmatprep.subr.bf16.mxu0 %v20495_v2  ;;  %v20540_v56 = vld [vmem:[%s28223_s1 + $0x934] ss:$8 sps:$4 sm:$0xff]  }
 0x147   :  { %17061 = vmatprep.subr.msk.bf16.mxu1 %vm301_vm0, %v17060_v57  ;;  %v1088_v9 = vpop.f32.mrb[11].mxu1  ;;  %v22720_v12 = vpop.eup %22719  ;;  %v17097_v57 = vld [vmem:[%s28223_s1 + $0x940] sm:$0x33] }
 0x148   :  { %v22722_v13 = vpop.eup %22721  ;;  %v400_v16 = vmul.f32 %v22720_v12, %v23958_v14  ;;  %v17132_v2 = vcombine.high %v17097_v57, %v17097_v57  ;;  %v17131_v8 = vcombine.low %v17097_v57, %v17097_v57  ;;  %v20535_v9 = vld [vmem:[%s28223_s1 + $0x9a8] ss:$8 sps:$4 sm:$0xff]  }
 0x149   :  { %2791 = vmatmul.mubr.bf16.vlgmr.msra.gmra.mrb[20].mxu1 %v24054_v6  ;;  %v401_v20 = vmul.f32 %v22722_v13, %v23964_v59  ;;  %3123 = vmatpush1.bf16.msra.mxu0 %v20493_v11  ;;  %v20541_v13 = vld [vmem:[%s28223_s1 + $0x9b8] ss:$8 sps:$4 sm:$0xff]  }
 0x14a   :  { %2800 = vmatpush1.bf16.msra.mxu1 %v2753_v21  ;;  %2831 = vmatprep.mubr.bf16.mxu1 %v22986_v1 }
 0x14b   :  { %3458 = vmatprep.subr.bf16.mxu1 %v20501_v10  ;;  %3124 = vmatprep.subr.bf16.mxu0 %v20498_v19  ;;  %v16559_v63 = vpack.c.bf16 %v401_v20, %v400_v16  ;;  %v20543_v19 = vld [vmem:[%s28223_s1 + $0x9bc] ss:$8 sps:$4 sm:$0xff]  }
 0x14d   :  { %v22724_v24 = vpop.eup %22723  ;;  %v413_v59 = vrot.slane %v16559_v63, %v23077_v7  ;;  %3125 = vmatpush1.bf16.msra.mxu0 %v20496_v15 }
 0x14e   :  { %v22726_v14 = vpop.eup %22725  ;;  %v746_v25 = vadd.f32 1.0, %v22724_v24  ;;  %3126 = vmatprep.subr.bf16.mxu0 %v20504_v22  ;;  %v3103_v22 = vsel %vm301_vm0, %v17131_v8, 0  ;;  %v20557_v24 = vld [vmem:[%s28223_s1 + $0xa54] ss:$8 sps:$4 sm:$0xff]  }
 0x14f   :  { %v747_v27 = vadd.f32 1.0, %v22726_v14  ;;  %16560 = vst.sshfl [vmem:[#allocation2] sm:$0x5 pattern:$0x73625140] %v413_v59 }
 0x150   :  { %22727 = vrcp.f32 %v746_v25  ;;  %v20547_v59 = vld [vmem:[%s28223_s1 + $0x9d8] ss:$8 sps:$4 sm:$0xff]  }
 0x151   :  { %22729 = vrcp.f32 %v747_v27  ;;  %3127 = vmatpush1.bf16.msra.mxu0 %v20502_v29  ;;  %v20552_v29 = vld [vmem:[%s28223_s1 + $0x9e8] ss:$8 sps:$4 sm:$0xff]  }
 0x152   :  { %3128 = vmatprep.subr.bf16.mxu0 %v20510_v30  ;;  %v20555_v30 = vld [vmem:[%s28223_s1 + $0xa50] ss:$8 sps:$4 sm:$0xff]  }
 0x155   :  { %17062 = vmatmul.mubr.msk.bf16.vlgmr.msra.gmra.mrb[20].mxu1 %vm297_vm1, %v24096_v31  ;;  %3129 = vmatpush1.bf16.msra.mxu0 %v20508_v35  ;;  %v20558_v35 = vld [vmem:[%s28223_s1 + $0x9f8] ss:$8 sps:$4 sm:$0xff]  }
 0x156   :  { %3459 = vmatpush1.bf16.msra.mxu1 %v20499_v28  ;;  %3490 = vmatprep.mubr.bf16.mxu1 %v24099_v32  ;;  %v20554_v28 = vld [vmem:[%s28223_s1 + $0x9ec] ss:$8 sps:$4 sm:$0xff]  }
 0x157   :  { %3460 = vmatprep.subr.bf16.mxu1 %v20507_v33  ;;  %3130 = vmatprep.subr.bf16.mxu0 %v20516_v36  ;;  %v20563_v33 = vld [vmem:[%s28223_s1 + $0xa64] ss:$8 sps:$4 sm:$0xff]   ;;  %v20561_v36 = vld [vmem:[%s28223_s1 + $0xa60] ss:$8 sps:$4 sm:$0xff]  }
 0x159   :  { %3131 = vmatpush1.bf16.msra.mxu0 %v20514_v17 }
 0x15a   :  { %v22728_v40 = vpop.eup %22727  ;;  %3461 = vmatpush1.bf16.msra.mxu1 %v20505_v34  ;;  %3132 = vmatprep.subr.bf16.mxu0 %v20522_v39  ;;  %v20560_v34 = vld [vmem:[%s28223_s1 + $0x9fc] ss:$8 sps:$4 sm:$0xff]  }
 0x15b   :  { %v22730_v42 = vpop.eup %22729  ;;  %v750_v43 = vmul.f32 %v22728_v40, %v24020_v41  ;;  %3462 = vmatprep.subr.bf16.mxu1 %v20513_v37  ;;  %v20528_v41 = vld [vmem:[%s28223_s1 + $0x914] ss:$8 sps:$4 sm:$0xff]  }
 0x15c   :  { %v751_v45 = vmul.f32 %v22730_v42, %v24026_v46  ;;  %v20526_v46 = vld [vmem:[%s28223_s1 + $0x910] ss:$8 sps:$4 sm:$0xff]   ;;  %v20566_v40 = vld [vmem:[%s28223_s1 + $0xa0c] ss:$8 sps:$4 sm:$0xff]  }
 0x15d   :  { %3133 = vmatpush1.bf16.msra.mxu0 %v20520_v48  ;;  %v20567_v42 = vld [vmem:[%s28223_s1 + $0xa70] ss:$8 sps:$4 sm:$0xff]   ;;  %v20573_v48 = vld [vmem:[%s28223_s1 + $0xa80] ss:$8 sps:$4 sm:$0xff]  }
 0x15e   :  { %v16631_v50 = vpack.c.bf16 %v751_v45, %v750_v43  ;;  %3463 = vmatpush1.bf16.msra.mxu1 %v20511_v38  ;;  %3134 = vmatprep.subr.bf16.mxu0 %v20528_v41  ;;  %v20575_v43 = vld [vmem:[%s28223_s1 + $0xa84] ss:$8 sps:$4 sm:$0xff]  }
 0x15f   :  { %3464 = vmatprep.subr.bf16.mxu1 %v20519_v44  ;;  %v20564_v44 = vld [vmem:[%s28223_s1 + $0xa08] ss:$8 sps:$4 sm:$0xff]   ;;  %v20572_v45 = vld [vmem:[%s28223_s1 + $0xa1c] ss:$8 sps:$4 sm:$0xff]   ;;  %v20578_v41 = vld [vmem:[%s28223_s1 + $0xa2c] ss:$8 sps:$4 sm:$0xff]  }
 0x160   :  { %v763_v51 = vrot.slane %v16631_v50, %v23077_v7  ;;  %v20579_v50 = vld [vmem:[%s28223_s1 + $0xa90] ss:$8 sps:$4 sm:$0xff]  }
 0x161   :  { %3135 = vmatpush1.bf16.msra.mxu0 %v20526_v46  ;;  %v20576_v46 = vld [vmem:[%s28223_s1 + $0xa28] ss:$8 sps:$4 sm:$0xff]  }
 0x162   :  { %16632 = vst.sshfl [vmem:[#allocation2 + $0x2] sm:$0x5 pattern:$0x73625140] %v763_v51  ;;  %3465 = vmatpush1.bf16.msra.mxu1 %v20517_v47  ;;  %3136 = vmatprep.subr.bf16.mxu0 %v20534_v53  ;;  %v20570_v47 = vld [vmem:[%s28223_s1 + $0xa18] ss:$8 sps:$4 sm:$0xff]  }
 0x163   :  { %3466 = vmatprep.subr.bf16.mxu1 %v20525_v49  ;;  %v20581_v49 = vld [vmem:[%s28223_s1 + $0xa94] ss:$8 sps:$4 sm:$0xff]   ;;  %v20587_v51 = vld [vmem:[%s28223_s1 + $0xaa4] ss:$8 sps:$4 sm:$0xff]  }
 0x165   :  { %3137 = vmatpush1.bf16.msra.mxu0 %v20532_v54 }
 0x166   :  { %3467 = vmatpush1.bf16.msra.mxu1 %v20523_v52  ;;  %3138 = vmatprep.subr.bf16.mxu0 %v20540_v56  ;;  %v20584_v52 = vld [vmem:[%s28223_s1 + $0xa3c] ss:$8 sps:$4 sm:$0xff]  }
 0x167   :  { %3468 = vmatprep.subr.bf16.mxu1 %v20531_v23  ;;  %v1042_v21 = vpop.f32.mrb[4].mxu0  ;;  %v20585_v23 = vld [vmem:[%s28223_s1 + $0xaa0] ss:$8 sps:$4 sm:$0xff]   ;;  %v20592_v56 = vld [vmem:[%s28223_s1 + $0xab4] ss:$8 sps:$4 sm:$0xff]  }
 0x168   :  { %v1043_v10 = vadd.f32 %v1042_v21, %v23938_v3  ;;  %v1044_v11 = vpop.f32.mrb[5].mxu0  ;;  %v20590_v21 = vld [vmem:[%s28223_s1 + $0xab0] ss:$8 sps:$4 sm:$0xff]  }
 0x169   :  { %3139 = vmatpush1.bf16.msra.mxu0 %v20538_v61  ;;  %v1045_v12 = vadd.f32 %v1044_v11, %v23941_v5  ;;  %v1046_v16 = vpop.f32.mrb[6].mxu0 }
 0x16a   :  { %3469 = vmatpush1.bf16.msra.mxu1 %v20529_v55  ;;  %v24188_v20 = vadd.f32 %v24045_v0, %v1043_v10  ;;  %v1047_v15 = vpop.f32.mrb[7].mxu0  ;;  %17133 = vmatprep.subr.msk.bf16.mxu0 %vm301_vm0, %v17132_v2  ;;  %v20546_v0 = vld [vmem:[%s28223_s1 + $0x9cc] ss:$8 sps:$4 sm:$0xff]   ;;  %v20582_v2 = vld [vmem:[%s28223_s1 + $0xa38] ss:$8 sps:$4 sm:$0xff]   ;;  %v24306_v16 = vrot.slane %v24073_v18, %v23077_v7 }
 0x16b   :  { %3470 = vmatprep.subr.bf16.mxu1 %v20537_v58  ;;  %v24196_v14 = vadd.f32 %v24050_v4, %v1045_v12  ;;  %v20544_v4 = vld [vmem:[%s28223_s1 + $0x9c8] ss:$8 sps:$4 sm:$0xff]  }
 0x16c   :  { %v1090_v63 = vsub.f32 0.0, %v24188_v20  ;;  %3141 = vmatmul.mubr.bf16.vlgmr.msra.gmra.mrb[16].mxu0 %v24054_v6  ;;  %v20549_v6 = vld [vmem:[%s28223_s1 + $0x9dc] ss:$8 sps:$4 sm:$0xff]   ;;  %v17169_v58 = vld [vmem:[%s28223_s1 + $0xa48] sm:$0x33] }
 0x16d   :  { %v1091_v25 = vsub.f32 0.0, %v24196_v14  ;;  %3150 = vmatpush1.bf16.msra.mxu0 %v3103_v22  ;;  %3181 = vmatprep.mubr.bf16.mxu0 %v22986_v1  ;;  %v17204_v8 = vcombine.high %v17169_v58, %v17169_v58 }
 0x16e   :  { %3471 = vmatpush1.bf16.msra.mxu1 %v20535_v9  ;;  %v1092_v26 = vmul.f32 1.442695, %v1090_v63  ;;  %3808 = vmatprep.subr.bf16.mxu0 %v20557_v24  ;;  %v17203_v9 = vcombine.low %v17169_v58, %v17169_v58  ;;  %v20601_v63 = vld [vmem:[%s28223_s1 + $0xb5c] ss:$8 sps:$4 sm:$0xff]  }
 0x16f   :  { %3472 = vmatprep.subr.bf16.mxu1 %v20543_v19  ;;  %v1094_v27 = vmul.f32 1.442695, %v1091_v25  ;;  %v20595_v19 = vld [vmem:[%s28223_s1 + $0xac4] ss:$8 sps:$4 sm:$0xff]   ;;  %v20598_v25 = vld [vmem:[%s28223_s1 + $0xad4] ss:$8 sps:$4 sm:$0xff]  }
 0x170   :  { %22731 = vpow2.f32 %v1092_v26 }
 0x171   :  { %22733 = vpow2.f32 %v1094_v27  ;;  %v20596_v27 = vld [vmem:[%s28223_s1 + $0xad0] ss:$8 sps:$4 sm:$0xff]  }
 0x172   :  { %3473 = vmatpush1.bf16.msra.mxu1 %v20541_v13 }
 0x173   :  { %3474 = vmatprep.subr.bf16.mxu1 %v20546_v0  ;;  %v20593_v0 = vld [vmem:[%s28223_s1 + $0xac0] ss:$8 sps:$4 sm:$0xff]  }
 0x176   :  { %3475 = vmatpush1.bf16.msra.mxu1 %v20544_v4 }
 0x177   :  { %3476 = vmatprep.subr.bf16.mxu1 %v20549_v6  ;;  %v20604_v6 = vld [vmem:[%s28223_s1 + $0xae4] ss:$8 sps:$4 sm:$0xff]  }
 0x178   :  { %17134 = vmatmul.mubr.msk.bf16.vlgmr.msra.gmra.mrb[16].mxu0 %vm297_vm1, %v24096_v31  ;;  %v20569_v31 = vld [vmem:[%s28223_s1 + $0xa74] ss:$8 sps:$4 sm:$0xff]  }
 0x179   :  { %3809 = vmatpush1.bf16.msra.mxu0 %v20555_v30  ;;  %3840 = vmatprep.mubr.bf16.mxu0 %v24099_v32  ;;  %v24343_v30 = vcombine.high %v24306_v16, %v24306_v16 }
 0x17a   :  { %3477 = vmatpush1.bf16.msra.mxu1 %v20547_v59  ;;  %v22732_v37 = vpop.eup %22731  ;;  %3810 = vmatprep.subr.bf16.mxu0 %v20563_v33  ;;  %v20599_v59 = vld [vmem:[%s28223_s1 + $0xb58] ss:$8 sps:$4 sm:$0xff]   ;;  %v20607_v33 = vld [vmem:[%s28223_s1 + $0xb6c] ss:$8 sps:$4 sm:$0xff]  }
 0x17b   :  { %3478 = vmatprep.subr.bf16.mxu1 %v20554_v28  ;;  %v22734_v38 = vpop.eup %22733  ;;  %v1096_v17 = vadd.f32 1.0, %v22732_v37  ;;  %v20602_v28 = vld [vmem:[%s28223_s1 + $0xae0] ss:$8 sps:$4 sm:$0xff]  }
 0x17c   :  { %v1097_v39 = vadd.f32 1.0, %v22734_v38 }
 0x17d   :  { %22735 = vrcp.f32 %v1096_v17  ;;  %3811 = vmatpush1.bf16.msra.mxu0 %v20561_v36  ;;  %v20616_v36 = vld [vmem:[%s28223_s1 + $0xb04] ss:$8 sps:$4 sm:$0xff]  }
 0x17e   :  { %3479 = vmatpush1.bf16.msra.mxu1 %v20552_v29  ;;  %22737 = vrcp.f32 %v1097_v39  ;;  %3812 = vmatprep.subr.bf16.mxu0 %v20569_v31  ;;  %v20610_v29 = vld [vmem:[%s28223_s1 + $0xaf4] ss:$8 sps:$4 sm:$0xff]  }
 0x17f   :  { %3480 = vmatprep.subr.bf16.mxu1 %v20560_v34  ;;  %v20605_v34 = vld [vmem:[%s28223_s1 + $0xb68] ss:$8 sps:$4 sm:$0xff]   ;;  %v20613_v39 = vld [vmem:[%s28223_s1 + $0xb7c] ss:$8 sps:$4 sm:$0xff]  }
 0x181   :  { %3813 = vmatpush1.bf16.msra.mxu0 %v20567_v42  ;;  %v20614_v42 = vld [vmem:[%s28223_s1 + $0xb00] ss:$8 sps:$4 sm:$0xff]  }
 0x182   :  { %3481 = vmatpush1.bf16.msra.mxu1 %v20558_v35  ;;  %3814 = vmatprep.subr.bf16.mxu0 %v20575_v43  ;;  %v20608_v35 = vld [vmem:[%s28223_s1 + $0xaf0] ss:$8 sps:$4 sm:$0xff]   ;;  %v20619_v43 = vld [vmem:[%s28223_s1 + $0xb8c] ss:$8 sps:$4 sm:$0xff]  }
 0x183   :  { %3482 = vmatprep.subr.bf16.mxu1 %v20566_v40  ;;  %v20611_v40 = vld [vmem:[%s28223_s1 + $0xb78] ss:$8 sps:$4 sm:$0xff]  }
 0x185   :  { %3815 = vmatpush1.bf16.msra.mxu0 %v20573_v48  ;;  %v20625_v48 = vld [vmem:[%s28223_s1 + $0xb9c] ss:$8 sps:$4 sm:$0xff]  }
 0x186   :  { %3483 = vmatpush1.bf16.msra.mxu1 %v20564_v44  ;;  %3816 = vmatprep.subr.bf16.mxu0 %v20581_v49  ;;  %v20617_v44 = vld [vmem:[%s28223_s1 + $0xb88] ss:$8 sps:$4 sm:$0xff]   ;;  %v20623_v49 = vld [vmem:[%s28223_s1 + $0xb98] ss:$8 sps:$4 sm:$0xff]  }
 0x187   :  { %3484 = vmatprep.subr.bf16.mxu1 %v20572_v45  ;;  %v22736_v53 = vpop.eup %22735  ;;  %v20620_v45 = vld [vmem:[%s28223_s1 + $0xb10] ss:$8 sps:$4 sm:$0xff]  }
 0x188   :  { %v22738_v54 = vpop.eup %22737  ;;  %v1100_v55 = vmul.f32 %v22736_v53, %v24188_v20 }
 0x189   :  { %v1101_v57 = vmul.f32 %v22738_v54, %v24196_v14  ;;  %3817 = vmatpush1.bf16.msra.mxu0 %v20579_v50  ;;  %v3453_v14 = vsel %vm301_vm0, %v17203_v9, 0  ;;  %v20634_v50 = vld [vmem:[%s28223_s1 + $0xb34] ss:$8 sps:$4 sm:$0xff]  }
 0x18a   :  { %3485 = vmatpush1.bf16.msra.mxu1 %v20570_v47  ;;  %3818 = vmatprep.subr.bf16.mxu0 %v20587_v51  ;;  %v20628_v47 = vld [vmem:[%s28223_s1 + $0xb24] ss:$8 sps:$4 sm:$0xff]  }
 0x18b   :  { %3486 = vmatprep.subr.bf16.mxu1 %v20578_v41  ;;  %v16703_v61 = vpack.c.bf16 %v1101_v57, %v1100_v55  ;;  %v20626_v41 = vld [vmem:[%s28223_s1 + $0xb20] ss:$8 sps:$4 sm:$0xff]   ;;  %v17241_v57 = vld [vmem:[%s28223_s1 + $0xb50] sm:$0x33] }
 0x18c   :  { %v20629_v55 = vld [vmem:[%s28223_s1 + $0xba8] ss:$8 sps:$4 sm:$0xff]   ;;  %v17275_v9 = vcombine.low %v17241_v57, %v17241_v57 }
 0x18d   :  { %v1113_v10 = vrot.slane %v16703_v61, %v23077_v7  ;;  %3819 = vmatpush1.bf16.msra.mxu0 %v20585_v23  ;;  %v20632_v23 = vld [vmem:[%s28223_s1 + $0xb30] ss:$8 sps:$4 sm:$0xff]   ;;  %v20637_v61 = vld [vmem:[%s28223_s1 + $0xbbc] ss:$8 sps:$4 sm:$0xff]  }
 0x18e   :  { %3487 = vmatpush1.bf16.msra.mxu1 %v20576_v46  ;;  %3820 = vmatprep.subr.bf16.mxu0 %v20592_v56  ;;  %v20631_v46 = vld [vmem:[%s28223_s1 + $0xbac] ss:$8 sps:$4 sm:$0xff]  }
 0x18f   :  { %3488 = vmatprep.subr.bf16.mxu1 %v20584_v52  ;;  %16704 = vst.sshfl [vmem:[#allocation2 + $0x4] sm:$0x5 pattern:$0x73625140] %v1113_v10  ;;  %v20640_v56 = vld [vmem:[%s28223_s1 + $0xb44] ss:$8 sps:$4 sm:$0xff]  }
 0x190   :  { %v1433_v11 = vpop.f32.mrb[12].mxu1  ;;  %v20635_v10 = vld [vmem:[%s28223_s1 + $0xbb8] ss:$8 sps:$4 sm:$0xff]  }
 0x191   :  { %v24302_v12 = vadd.f32 %v1433_v11, %v23938_v3  ;;  %v1435_v13 = vpop.f32.mrb[13].mxu1  ;;  %3821 = vmatpush1.bf16.msra.mxu0 %v20590_v21  ;;  %v17276_v21 = vcombine.high %v17241_v57, %v17241_v57  ;;  %v20684_v57 = vld [vmem:[%s28223_s1 + $0xc4c] ss:$8 sps:$4 sm:$0xff]  }
 0x192   :  { %3489 = vmatpush1.bf16.msra.mxu1 %v20582_v2  ;;  %v24309_v20 = vadd.f32 %v1435_v13, %v23941_v5  ;;  %v1437_v15 = vpop.f32.mrb[14].mxu1  ;;  %3822 = vmatprep.subr.bf16.mxu0 %v20595_v19 }
 0x193   :  { %v1440_v22 = vsub.f32 0.0, %v24302_v12  ;;  %17205 = vmatprep.subr.msk.bf16.mxu1 %vm301_vm0, %v17204_v8  ;;  %v1438_v24 = vpop.f32.mrb[15].mxu1  ;;  %v20638_v8 = vld [vmem:[%s28223_s1 + $0xb40] ss:$8 sps:$4 sm:$0xff]  }
 0x194   :  { %v1441_v18 = vsub.f32 0.0, %v24309_v20  ;;  %v3803_v24 = vsel %vm301_vm0, %v17275_v9, 0  ;;  %v17313_v9 = vld [vmem:[%s28223_s1 + $0xc58] sm:$0x33] }
 0x195   :  { %v1442_v26 = vmul.f32 1.442695, %v1440_v22  ;;  %3491 = vmatmul.mubr.bf16.vlgmr.msra.gmra.mrb[24].mxu1 %v24306_v16  ;;  %3823 = vmatpush1.bf16.msra.mxu0 %v20593_v0 }
 0x196   :  { %v1444_v4 = vmul.f32 1.442695, %v1441_v18  ;;  %3500 = vmatpush1.bf16.msra.mxu1 %v3453_v14  ;;  %3531 = vmatprep.mubr.bf16.mxu1 %v22986_v1  ;;  %v20657_v18 = vld [vmem:[%s28223_s1 + $0xc64] ss:$8 sps:$4 sm:$0xff]  }
 0x197   :  { %22739 = vpow2.f32 %v1442_v26  ;;  %4158 = vmatprep.subr.bf16.mxu1 %v20601_v63  ;;  %3824 = vmatprep.subr.bf16.mxu0 %v20598_v25  ;;  %v20646_v26 = vld [vmem:[%s28223_s1 + $0xbdc] ss:$8 sps:$4 sm:$0xff]  }
 0x198   :  { %22741 = vpow2.f32 %v1444_v4 }
 0x199   :  { %3825 = vmatpush1.bf16.msra.mxu0 %v20596_v27  ;;  %v20644_v27 = vld [vmem:[%s28223_s1 + $0xbd8] ss:$8 sps:$4 sm:$0xff]  }
 0x19a   :  { %3826 = vmatprep.subr.bf16.mxu0 %v20604_v6  ;;  %v24453_v6 = vld.sshfl [vmem:[%s28222_s0 + $0x4] sm:$0x13 pattern:$0x75316420] }
 0x19d   :  { %3827 = vmatpush1.bf16.msra.mxu0 %v20602_v28  ;;  %v4316_v28 = vcombine.high %v24453_v6, %v24453_v6 }
 0x19e   :  { %3828 = vmatprep.subr.bf16.mxu0 %v20610_v29  ;;  %v20647_v29 = vld [vmem:[%s28223_s1 + $0xbe8] ss:$8 sps:$4 sm:$0xff]  }
 0x1a1   :  { %v22740_v37 = vpop.eup %22739  ;;  %17206 = vmatmul.mubr.msk.bf16.vlgmr.msra.gmra.mrb[24].mxu1 %vm297_vm1, %v24343_v30  ;;  %3829 = vmatpush1.bf16.msra.mxu0 %v20608_v35  ;;  %v20655_v35 = vld [vmem:[%s28223_s1 + $0xc60] ss:$8 sps:$4 sm:$0xff]  }
 0x1a2   :  { %v22742_v31 = vpop.eup %22741  ;;  %v1446_v38 = vadd.f32 1.0, %v22740_v37  ;;  %4159 = vmatpush1.bf16.msra.mxu1 %v20599_v59  ;;  %4190 = vmatprep.mubr.bf16.mxu1 %v24099_v32  ;;  %v20622_v32 = vld [vmem:[%s28223_s1 + $0xb14] ss:$8 sps:$4 sm:$0xff]  }
 0x1a3   :  { %v1447_v17 = vadd.f32 1.0, %v22742_v31  ;;  %4160 = vmatprep.subr.bf16.mxu1 %v20607_v33  ;;  %3830 = vmatprep.subr.bf16.mxu0 %v20616_v36  ;;  %v20649_v59 = vld [vmem:[%s28223_s1 + $0xbec] ss:$8 sps:$4 sm:$0xff]   ;;  %v20654_v33 = vld [vmem:[%s28223_s1 + $0xbfc] ss:$8 sps:$4 sm:$0xff]   ;;  %v24473_v36 = vrot.slane %v4316_v28, %v23077_v7 }
 0x1a4   :  { %22743 = vrcp.f32 %v1446_v38  ;;  %v20663_v37 = vld [vmem:[%s28223_s1 + $0xc74] ss:$8 sps:$4 sm:$0xff]  }
 0x1a5   :  { %22745 = vrcp.f32 %v1447_v17  ;;  %3831 = vmatpush1.bf16.msra.mxu0 %v20614_v42  ;;  %v20660_v38 = vld [vmem:[%s28223_s1 + $0xc0c] ss:$8 sps:$4 sm:$0xff]   ;;  %v20661_v42 = vld [vmem:[%s28223_s1 + $0xc70] ss:$8 sps:$4 sm:$0xff]  }
 0x1a6   :  { %4161 = vmatpush1.bf16.msra.mxu1 %v20605_v34  ;;  %3832 = vmatprep.subr.bf16.mxu0 %v20622_v32  ;;  %v20652_v34 = vld [vmem:[%s28223_s1 + $0xbf8] ss:$8 sps:$4 sm:$0xff]  }
 0x1a7   :  { %4162 = vmatprep.subr.bf16.mxu1 %v20613_v39 }
 0x1a9   :  { %3833 = vmatpush1.bf16.msra.mxu0 %v20620_v45  ;;  %v20667_v45 = vld [vmem:[%s28223_s1 + $0xc80] ss:$8 sps:$4 sm:$0xff]  }
 0x1aa   :  { %4163 = vmatpush1.bf16.msra.mxu1 %v20611_v40  ;;  %3834 = vmatprep.subr.bf16.mxu0 %v20628_v47  ;;  %v20658_v40 = vld [vmem:[%s28223_s1 + $0xc08] ss:$8 sps:$4 sm:$0xff]   ;;  %v20675_v47 = vld [vmem:[%s28223_s1 + $0xc94] ss:$8 sps:$4 sm:$0xff]  }
 0x1ab   :  { %4164 = vmatprep.subr.bf16.mxu1 %v20619_v43  ;;  %v20669_v43 = vld [vmem:[%s28223_s1 + $0xc84] ss:$8 sps:$4 sm:$0xff]  }
 0x1ad   :  { %3835 = vmatpush1.bf16.msra.mxu0 %v20626_v41  ;;  %v20672_v41 = vld [vmem:[%s28223_s1 + $0xc2c] ss:$8 sps:$4 sm:$0xff]  }
 0x1ae   :  { %v22744_v51 = vpop.eup %22743  ;;  %4165 = vmatpush1.bf16.msra.mxu1 %v20617_v44  ;;  %3836 = vmatprep.subr.bf16.mxu0 %v20634_v50  ;;  %v20666_v44 = vld [vmem:[%s28223_s1 + $0xc1c] ss:$8 sps:$4 sm:$0xff]   ;;  %v20673_v50 = vld [vmem:[%s28223_s1 + $0xc90] ss:$8 sps:$4 sm:$0xff]  }
 0x1af   :  { %v22746_v52 = vpop.eup %22745  ;;  %v1450_v53 = vmul.f32 %v22744_v51, %v24302_v12  ;;  %4166 = vmatprep.subr.bf16.mxu1 %v20625_v48  ;;  %v20643_v12 = vld [vmem:[%s28223_s1 + $0xbcc] ss:$8 sps:$4 sm:$0xff]   ;;  %v20664_v48 = vld [vmem:[%s28223_s1 + $0xc18] ss:$8 sps:$4 sm:$0xff]  }
 0x1b0   :  { %v1451_v54 = vmul.f32 %v22746_v52, %v24309_v20  ;;  %v20641_v20 = vld [vmem:[%s28223_s1 + $0xbc8] ss:$8 sps:$4 sm:$0xff]   ;;  %v20681_v51 = vld [vmem:[%s28223_s1 + $0xca4] ss:$8 sps:$4 sm:$0xff]  }
 0x1b1   :  { %3837 = vmatpush1.bf16.msra.mxu0 %v20632_v23  ;;  %v20679_v52 = vld [vmem:[%s28223_s1 + $0xca0] ss:$8 sps:$4 sm:$0xff]  }
 0x1b2   :  { %v16775_v58 = vpack.c.bf16 %v1451_v54, %v1450_v53  ;;  %4167 = vmatpush1.bf16.msra.mxu1 %v20623_v49  ;;  %3838 = vmatprep.subr.bf16.mxu0 %v20640_v56  ;;  %v20670_v49 = vld [vmem:[%s28223_s1 + $0xc28] ss:$8 sps:$4 sm:$0xff]   ;;  %v20676_v23 = vld [vmem:[%s28223_s1 + $0xc38] ss:$8 sps:$4 sm:$0xff]   ;;  %v20687_v54 = vld [vmem:[%s28223_s1 + $0xcb4] ss:$8 sps:$4 sm:$0xff]  }
 0x1b3   :  { %4168 = vmatprep.subr.bf16.mxu1 %v20631_v46  ;;  %v1783_v11 = vpop.f32.mrb[8].mxu0  ;;  %v20678_v46 = vld [vmem:[%s28223_s1 + $0xc3c] ss:$8 sps:$4 sm:$0xff]  }
 0x1b4   :  { %v1463_v2 = vrot.slane %v16775_v58, %v23077_v7  ;;  %v24424_v19 = vadd.f32 %v1783_v11, %v23938_v3  ;;  %v1785_v13 = vpop.f32.mrb[9].mxu0  ;;  %v17348_v11 = vcombine.high %v17313_v9, %v17313_v9 }
 0x1b5   :  { %3839 = vmatpush1.bf16.msra.mxu0 %v20638_v8  ;;  %v24433_v15 = vadd.f32 %v1785_v13, %v23941_v5  ;;  %v1787_v22 = vpop.f32.mrb[10].mxu0 }
 0x1b6   :  { %16776 = vst.sshfl [vmem:[#allocation2 + $0x6] sm:$0x5 pattern:$0x73625140] %v1463_v2  ;;  %4169 = vmatpush1.bf16.msra.mxu1 %v20629_v55  ;;  %v1790_v14 = vsub.f32 0.0, %v24424_v19  ;;  %v1788_v63 = vpop.f32.mrb[11].mxu0  ;;  %17277 = vmatprep.subr.msk.bf16.mxu0 %vm301_vm0, %v17276_v21 }
 0x1b7   :  { %4170 = vmatprep.subr.bf16.mxu1 %v20637_v61  ;;  %v1791_v0 = vsub.f32 0.0, %v24433_v15  ;;  %v20685_v61 = vld [vmem:[%s28223_s1 + $0xcb0] ss:$8 sps:$4 sm:$0xff]   ;;  %v20692_v2 = vld [vmem:[%s28223_s1 + $0xcc4] ss:$8 sps:$4 sm:$0xff]  }
 0x1b8   :  { %v1792_v25 = vmul.f32 1.442695, %v1790_v14  ;;  %3841 = vmatmul.mubr.bf16.vlgmr.msra.gmra.mrb[20].mxu0 %v24306_v16 }
 0x1b9   :  { %v1794_v4 = vmul.f32 1.442695, %v1791_v0  ;;  %3850 = vmatpush1.bf16.msra.mxu0 %v3803_v24  ;;  %3881 = vmatprep.mubr.bf16.mxu0 %v22986_v1 }
 0x1ba   :  { %4171 = vmatpush1.bf16.msra.mxu1 %v20635_v10  ;;  %22747 = vpow2.f32 %v1792_v25  ;;  %4508 = vmatprep.subr.bf16.mxu0 %v20657_v18  ;;  %v20682_v10 = vld [vmem:[%s28223_s1 + $0xc48] ss:$8 sps:$4 sm:$0xff]   ;;  %v20701_v25 = vld [vmem:[%s28223_s1 + $0xd6c] ss:$8 sps:$4 sm:$0xff]  }
 0x1bb   :  { %4172 = vmatprep.subr.bf16.mxu1 %v20643_v12  ;;  %22749 = vpow2.f32 %v1794_v4  ;;  %v20690_v12 = vld [vmem:[%s28223_s1 + $0xcc0] ss:$8 sps:$4 sm:$0xff]   ;;  %v20693_v4 = vld [vmem:[%s28223_s1 + $0xcd0] ss:$8 sps:$4 sm:$0xff]  }
 0x1be   :  { %4173 = vmatpush1.bf16.msra.mxu1 %v20641_v20  ;;  %v20695_v20 = vld [vmem:[%s28223_s1 + $0xcd4] ss:$8 sps:$4 sm:$0xff]  }
 0x1bf   :  { %4174 = vmatprep.subr.bf16.mxu1 %v20646_v26 }
 0x1c2   :  { %4175 = vmatpush1.bf16.msra.mxu1 %v20644_v27  ;;  %v20698_v27 = vld [vmem:[%s28223_s1 + $0xce4] ss:$8 sps:$4 sm:$0xff]  }
 0x1c3   :  { %4176 = vmatprep.subr.bf16.mxu1 %v20649_v59 }
 0x1c4   :  { %v22748_v31 = vpop.eup %22747  ;;  %17278 = vmatmul.mubr.msk.bf16.vlgmr.msra.gmra.mrb[20].mxu0 %vm297_vm1, %v24343_v30 }
 0x1c5   :  { %v22750_v17 = vpop.eup %22749  ;;  %v1796_v39 = vadd.f32 1.0, %v22748_v31  ;;  %4509 = vmatpush1.bf16.msra.mxu0 %v20655_v35  ;;  %4540 = vmatprep.mubr.bf16.mxu0 %v24473_v36  ;;  %v20710_v35 = vld [vmem:[%s28223_s1 + $0xd04] ss:$8 sps:$4 sm:$0xff]   ;;  %v20705_v31 = vld [vmem:[%s28223_s1 + $0xd78] ss:$8 sps:$4 sm:$0xff]  }
 0x1c6   :  { %4177 = vmatpush1.bf16.msra.mxu1 %v20647_v29  ;;  %v1797_v32 = vadd.f32 1.0, %v22750_v17  ;;  %4510 = vmatprep.subr.bf16.mxu0 %v20663_v37  ;;  %v20696_v29 = vld [vmem:[%s28223_s1 + $0xce0] ss:$8 sps:$4 sm:$0xff]   ;;  %v20707_v37 = vld [vmem:[%s28223_s1 + $0xd7c] ss:$8 sps:$4 sm:$0xff]  }
 0x1c7   :  { %4178 = vmatprep.subr.bf16.mxu1 %v20654_v33  ;;  %22751 = vrcp.f32 %v1796_v39  ;;  %v20704_v33 = vld [vmem:[%s28223_s1 + $0xcf4] ss:$8 sps:$4 sm:$0xff]  }
 0x1c8   :  { %22753 = vrcp.f32 %v1797_v32  ;;  %v20716_v17 = vld [vmem:[%s28223_s1 + $0xd14] ss:$8 sps:$4 sm:$0xff]  }
 0x1c9   :  { %4511 = vmatpush1.bf16.msra.mxu0 %v20661_v42 }
 0x1ca   :  { %4179 = vmatpush1.bf16.msra.mxu1 %v20652_v34  ;;  %4512 = vmatprep.subr.bf16.mxu0 %v20669_v43  ;;  %v20702_v34 = vld [vmem:[%s28223_s1 + $0xcf0] ss:$8 sps:$4 sm:$0xff]   ;;  %v20713_v43 = vld [vmem:[%s28223_s1 + $0xd8c] ss:$8 sps:$4 sm:$0xff]  }
 0x1cb   :  { %4180 = vmatprep.subr.bf16.mxu1 %v20660_v38  ;;  %v20708_v38 = vld [vmem:[%s28223_s1 + $0xd00] ss:$8 sps:$4 sm:$0xff]  }
 0x1cd   :  { %4513 = vmatpush1.bf16.msra.mxu0 %v20667_v45  ;;  %v20719_v45 = vld [vmem:[%s28223_s1 + $0xd9c] ss:$8 sps:$4 sm:$0xff]  }
 0x1ce   :  { %4181 = vmatpush1.bf16.msra.mxu1 %v20658_v40  ;;  %4514 = vmatprep.subr.bf16.mxu0 %v20675_v47  ;;  %v20717_v47 = vld [vmem:[%s28223_s1 + $0xd98] ss:$8 sps:$4 sm:$0xff]  }
 0x1cf   :  { %4182 = vmatprep.subr.bf16.mxu1 %v20666_v44  ;;  %v20711_v44 = vld [vmem:[%s28223_s1 + $0xd88] ss:$8 sps:$4 sm:$0xff]  }
 0x1d1   :  { %v22752_v53 = vpop.eup %22751  ;;  %4515 = vmatpush1.bf16.msra.mxu0 %v20673_v50  ;;  %v20726_v50 = vld [vmem:[%s28223_s1 + $0xd30] ss:$8 sps:$4 sm:$0xff]  }
 0x1d2   :  { %4183 = vmatpush1.bf16.msra.mxu1 %v20664_v48  ;;  %v22754_v55 = vpop.eup %22753  ;;  %v1800_v56 = vmul.f32 %v22752_v53, %v24424_v19  ;;  %4516 = vmatprep.subr.bf16.mxu0 %v20681_v51  ;;  %v17347_v19 = vcombine.low %v17313_v9, %v17313_v9  ;;  %v20720_v48 = vld [vmem:[%s28223_s1 + $0xd20] ss:$8 sps:$4 sm:$0xff]   ;;  %v20734_v51 = vld [vmem:[%s28223_s1 + $0xd44] ss:$8 sps:$4 sm:$0xff]  }
 0x1d3   :  { %4184 = vmatprep.subr.bf16.mxu1 %v20672_v41  ;;  %v1801_v58 = vmul.f32 %v22754_v55, %v24433_v15  ;;  %v20728_v41 = vld [vmem:[%s28223_s1 + $0xd34] ss:$8 sps:$4 sm:$0xff]   ;;  %v20732_v55 = vld [vmem:[%s28223_s1 + $0xd40] ss:$8 sps:$4 sm:$0xff]  }
 0x1d4   :  { %v4153_v0 = vsel %vm301_vm0, %v17347_v19, 0  ;;  %v20735_v19 = vld [vmem:[%s28223_s1 + $0xdc8] ss:$8 sps:$4 sm:$0xff]  }
 0x1d5   :  { %v16847_v8 = vpack.c.bf16 %v1801_v58, %v1800_v56  ;;  %4517 = vmatpush1.bf16.msra.mxu0 %v20679_v52  ;;  %v20731_v52 = vld [vmem:[%s28223_s1 + $0xdbc] ss:$8 sps:$4 sm:$0xff]  }
 0x1d6   :  { %4185 = vmatpush1.bf16.msra.mxu1 %v20670_v49  ;;  %4518 = vmatprep.subr.bf16.mxu0 %v20687_v54  ;;  %v20725_v49 = vld [vmem:[%s28223_s1 + $0xdac] ss:$8 sps:$4 sm:$0xff]  }
 0x1d7   :  { %4186 = vmatprep.subr.bf16.mxu1 %v20678_v46  ;;  %v1813_v21 = vrot.slane %v16847_v8, %v23077_v7  ;;  %v20723_v46 = vld [vmem:[%s28223_s1 + $0xda8] ss:$8 sps:$4 sm:$0xff]   ;;  %v20740_v58 = vld [vmem:[%s28223_s1 + $0xd54] ss:$8 sps:$4 sm:$0xff]  }
 0x1d8   :  { %v20737_v8 = vld [vmem:[%s28223_s1 + $0xdcc] ss:$8 sps:$4 sm:$0xff]  }
 0x1d9   :  { %16848 = vst.sshfl [vmem:[#allocation2 + $0x8] sm:$0x5 pattern:$0x73625140] %v1813_v21  ;;  %4519 = vmatpush1.bf16.msra.mxu0 %v20685_v61  ;;  %v17385_v61 = vld [vmem:[%s28223_s1 + $0xd60] sm:$0x33] }
 0x1da   :  { %4187 = vmatpush1.bf16.msra.mxu1 %v20676_v23  ;;  %4520 = vmatprep.subr.bf16.mxu0 %v20692_v2  ;;  %v20738_v21 = vld [vmem:[%s28223_s1 + $0xd50] ss:$8 sps:$4 sm:$0xff]  }
 0x1db   :  { %4188 = vmatprep.subr.bf16.mxu1 %v20684_v57  ;;  %v20729_v57 = vld [vmem:[%s28223_s1 + $0xdb8] ss:$8 sps:$4 sm:$0xff]  }
 0x1dc   :  { %v2133_v13 = vpop.f32.mrb[16].mxu1 }
 0x1dd   :  { %v24554_v15 = vadd.f32 %v2133_v13, %v23938_v3  ;;  %v2135_v22 = vpop.f32.mrb[17].mxu1  ;;  %4521 = vmatpush1.bf16.msra.mxu0 %v20690_v12 }
 0x1de   :  { %4189 = vmatpush1.bf16.msra.mxu1 %v20682_v10  ;;  %v24557_v24 = vadd.f32 %v2135_v22, %v23941_v5  ;;  %v2137_v14 = vpop.f32.mrb[18].mxu1  ;;  %4522 = vmatprep.subr.bf16.mxu0 %v20695_v20  ;;  %v17419_v10 = vcombine.low %v17385_v61, %v17385_v61  ;;  %v20743_v20 = vld [vmem:[%s28223_s1 + $0xddc] ss:$8 sps:$4 sm:$0xff]   ;;  %v24675_v22 = vrot.slane %v24453_v6, %v23077_v7 }
 0x1df   :  { %v2140_v63 = vsub.f32 0.0, %v24554_v15  ;;  %17349 = vmatprep.subr.msk.bf16.mxu1 %vm301_vm0, %v17348_v11  ;;  %v2138_v18 = vpop.f32.mrb[19].mxu1  ;;  %v17420_v11 = vcombine.high %v17385_v61, %v17385_v61  ;;  %v20757_v6 = vld [vmem:[%s28223_s1 + $0xe74] ss:$8 sps:$4 sm:$0xff]   ;;  %v20787_v61 = vld [vmem:[%s28223_s1 + $0xec4] ss:$8 sps:$4 sm:$0xff]  }
 0x1e0   :  { %v2141_v26 = vsub.f32 0.0, %v24557_v24  ;;  %v4503_v18 = vsel %vm301_vm0, %v17419_v10, 0  ;;  %v20785_v10 = vld [vmem:[%s28223_s1 + $0xec0] ss:$8 sps:$4 sm:$0xff]  }
 0x1e1   :  { %v2142_v59 = vmul.f32 1.442695, %v2140_v63  ;;  %4191 = vmatmul.mubr.bf16.vlgmr.msra.gmra.mrb[28].mxu1 %v24306_v16  ;;  %4523 = vmatpush1.bf16.msra.mxu0 %v20693_v4  ;;  %v20699_v16 = vld [vmem:[%s28223_s1 + $0xd68] ss:$8 sps:$4 sm:$0xff]  }
 0x1e2   :  { %v2144_v28 = vmul.f32 1.442695, %v2141_v26  ;;  %4200 = vmatpush1.bf16.msra.mxu1 %v4153_v0  ;;  %4231 = vmatprep.mubr.bf16.mxu1 %v22986_v1 }
 0x1e3   :  { %22755 = vpow2.f32 %v2142_v59  ;;  %4858 = vmatprep.subr.bf16.mxu1 %v20701_v25  ;;  %4524 = vmatprep.subr.bf16.mxu0 %v20698_v27  ;;  %v20746_v27 = vld [vmem:[%s28223_s1 + $0xdec] ss:$8 sps:$4 sm:$0xff]  }
 0x1e4   :  { %22757 = vpow2.f32 %v2144_v28  ;;  %v20744_v28 = vld [vmem:[%s28223_s1 + $0xde8] ss:$8 sps:$4 sm:$0xff]  }
 0x1e5   :  { %4525 = vmatpush1.bf16.msra.mxu0 %v20696_v29  ;;  %v24701_v29 = vld.sshfl [vmem:[%s28222_s0 + $0x5] sm:$0x13 pattern:$0x75316420] }
 0x1e6   :  { %4526 = vmatprep.subr.bf16.mxu0 %v20704_v33  ;;  %v20749_v33 = vld [vmem:[%s28223_s1 + $0xdfc] ss:$8 sps:$4 sm:$0xff]  }
 0x1e9   :  { %4527 = vmatpush1.bf16.msra.mxu0 %v20702_v34  ;;  %v20747_v34 = vld [vmem:[%s28223_s1 + $0xdf8] ss:$8 sps:$4 sm:$0xff]  }
 0x1ea   :  { %4528 = vmatprep.subr.bf16.mxu0 %v20710_v35  ;;  %v24713_v35 = vcombine.high %v24675_v22, %v24675_v22 }
 0x1ed   :  { %v22756_v39 = vpop.eup %22755  ;;  %17350 = vmatmul.mubr.msk.bf16.vlgmr.msra.gmra.mrb[28].mxu1 %vm297_vm1, %v24343_v30  ;;  %4529 = vmatpush1.bf16.msra.mxu0 %v20708_v38  ;;  %v20714_v30 = vld [vmem:[%s28223_s1 + $0xd10] ss:$8 sps:$4 sm:$0xff]  }
 0x1ee   :  { %v22758_v40 = vpop.eup %22757  ;;  %v2146_v42 = vadd.f32 1.0, %v22756_v39  ;;  %4859 = vmatpush1.bf16.msra.mxu1 %v20699_v16  ;;  %4890 = vmatprep.mubr.bf16.mxu1 %v24473_v36  ;;  %v20722_v36 = vld [vmem:[%s28223_s1 + $0xd24] ss:$8 sps:$4 sm:$0xff]   ;;  %v5016_v16 = vcombine.high %v24701_v29, %v24701_v29  ;;  %v20755_v38 = vld [vmem:[%s28223_s1 + $0xe70] ss:$8 sps:$4 sm:$0xff]  }
 0x1ef   :  { %v2147_v32 = vadd.f32 1.0, %v22758_v40  ;;  %4860 = vmatprep.subr.bf16.mxu1 %v20707_v37  ;;  %4530 = vmatprep.subr.bf16.mxu0 %v20716_v17  ;;  %v20754_v37 = vld [vmem:[%s28223_s1 + $0xe0c] ss:$8 sps:$4 sm:$0xff]  }
 0x1f0   :  { %22759 = vrcp.f32 %v2146_v42  ;;  %v24725_v17 = vrot.slane %v5016_v16, %v23077_v7  ;;  %v20763_v39 = vld [vmem:[%s28223_s1 + $0xe84] ss:$8 sps:$4 sm:$0xff]  }
 0x1f1   :  { %22761 = vrcp.f32 %v2147_v32  ;;  %4531 = vmatpush1.bf16.msra.mxu0 %v20714_v30  ;;  %v20760_v42 = vld [vmem:[%s28223_s1 + $0xe1c] ss:$8 sps:$4 sm:$0xff]   ;;  %v20761_v30 = vld [vmem:[%s28223_s1 + $0xe80] ss:$8 sps:$4 sm:$0xff]  }
 0x1f2   :  { %4861 = vmatpush1.bf16.msra.mxu1 %v20705_v31  ;;  %4532 = vmatprep.subr.bf16.mxu0 %v20722_v36  ;;  %v20752_v31 = vld [vmem:[%s28223_s1 + $0xe08] ss:$8 sps:$4 sm:$0xff]  }
 0x1f3   :  { %4862 = vmatprep.subr.bf16.mxu1 %v20713_v43 }
 0x1f5   :  { %4533 = vmatpush1.bf16.msra.mxu0 %v20720_v48  ;;  %v20767_v48 = vld [vmem:[%s28223_s1 + $0xe90] ss:$8 sps:$4 sm:$0xff]  }
 0x1f6   :  { %4863 = vmatpush1.bf16.msra.mxu1 %v20711_v44  ;;  %4534 = vmatprep.subr.bf16.mxu0 %v20728_v41  ;;  %v20758_v44 = vld [vmem:[%s28223_s1 + $0xe18] ss:$8 sps:$4 sm:$0xff]   ;;  %v20775_v41 = vld [vmem:[%s28223_s1 + $0xea4] ss:$8 sps:$4 sm:$0xff]  }
 0x1f7   :  { %4864 = vmatprep.subr.bf16.mxu1 %v20719_v45  ;;  %v20769_v45 = vld [vmem:[%s28223_s1 + $0xe94] ss:$8 sps:$4 sm:$0xff]  }
 0x1f9   :  { %4535 = vmatpush1.bf16.msra.mxu0 %v20726_v50  ;;  %v20772_v50 = vld [vmem:[%s28223_s1 + $0xe3c] ss:$8 sps:$4 sm:$0xff]  }
 0x1fa   :  { %v22760_v53 = vpop.eup %22759  ;;  %4865 = vmatpush1.bf16.msra.mxu1 %v20717_v47  ;;  %4536 = vmatprep.subr.bf16.mxu0 %v20734_v51  ;;  %v20766_v47 = vld [vmem:[%s28223_s1 + $0xe2c] ss:$8 sps:$4 sm:$0xff]   ;;  %v20773_v51 = vld [vmem:[%s28223_s1 + $0xea0] ss:$8 sps:$4 sm:$0xff]  }
 0x1fb   :  { %v22762_v23 = vpop.eup %22761  ;;  %v2150_v54 = vmul.f32 %v22760_v53, %v24554_v15  ;;  %4866 = vmatprep.subr.bf16.mxu1 %v20725_v49  ;;  %v20764_v49 = vld [vmem:[%s28223_s1 + $0xe28] ss:$8 sps:$4 sm:$0xff]   ;;  %v20778_v53 = vld [vmem:[%s28223_s1 + $0xe4c] ss:$8 sps:$4 sm:$0xff]  }
 0x1fc   :  { %v2151_v56 = vmul.f32 %v22762_v23, %v24557_v24  ;;  %v20741_v24 = vld [vmem:[%s28223_s1 + $0xdd8] ss:$8 sps:$4 sm:$0xff]  }
 0x1fd   :  { %4537 = vmatpush1.bf16.msra.mxu0 %v20732_v55  ;;  %v20779_v55 = vld [vmem:[%s28223_s1 + $0xeb0] ss:$8 sps:$4 sm:$0xff]  }
 0x1fe   :  { %v16919_v2 = vpack.c.bf16 %v2151_v56, %v2150_v54  ;;  %4867 = vmatpush1.bf16.msra.mxu1 %v20723_v46  ;;  %4538 = vmatprep.subr.bf16.mxu0 %v20740_v58  ;;  %v20770_v46 = vld [vmem:[%s28223_s1 + $0xe38] ss:$8 sps:$4 sm:$0xff]   ;;  %v20776_v54 = vld [vmem:[%s28223_s1 + $0xe48] ss:$8 sps:$4 sm:$0xff]   ;;  %v20784_v58 = vld [vmem:[%s28223_s1 + $0xe5c] ss:$8 sps:$4 sm:$0xff]  }
 0x1ff   :  { %4868 = vmatprep.subr.bf16.mxu1 %v20731_v52  ;;  %v2483_v12 = vpop.f32.mrb[12].mxu0  ;;  %v20781_v52 = vld [vmem:[%s28223_s1 + $0xeb4] ss:$8 sps:$4 sm:$0xff]  }
 0x200   :  { %v2163_v9 = vrot.slane %v16919_v2, %v23077_v7  ;;  %v24668_v13 = vadd.f32 %v2483_v12, %v23938_v3  ;;  %v2485_v15 = vpop.f32.mrb[13].mxu0 }
 0x201   :  { %4539 = vmatpush1.bf16.msra.mxu0 %v20738_v21  ;;  %v24681_v14 = vadd.f32 %v2485_v15, %v23941_v5  ;;  %v2487_v63 = vpop.f32.mrb[14].mxu0  ;;  %v20782_v21 = vld [vmem:[%s28223_s1 + $0xe58] ss:$8 sps:$4 sm:$0xff]  }
 0x202   :  { %16920 = vst.sshfl [vmem:[#allocation2 + $0xa] sm:$0x5 pattern:$0x73625140] %v2163_v9  ;;  %4869 = vmatpush1.bf16.msra.mxu1 %v20729_v57  ;;  %v2490_v0 = vsub.f32 0.0, %v24668_v13  ;;  %v2488_v25 = vpop.f32.mrb[15].mxu0  ;;  %17421 = vmatprep.subr.msk.bf16.mxu0 %vm301_vm0, %v17420_v11 }
 0x203   :  { %4870 = vmatprep.subr.bf16.mxu1 %v20737_v8  ;;  %v2491_v26 = vsub.f32 0.0, %v24681_v14  ;;  %v17457_v8 = vld [vmem:[%s28223_s1 + $0xe68] sm:$0x33]  ;;  %v20792_v11 = vld [vmem:[%s28223_s1 + $0xed4] ss:$8 sps:$4 sm:$0xff]  }
 0x204   :  { %v2492_v4 = vmul.f32 1.442695, %v2490_v0  ;;  %4541 = vmatmul.mubr.bf16.vlgmr.msra.gmra.mrb[24].mxu0 %v24675_v22  ;;  %v17491_v12 = vcombine.low %v17457_v8, %v17457_v8  ;;  %v20790_v15 = vld [vmem:[%s28223_s1 + $0xed0] ss:$8 sps:$4 sm:$0xff]   ;;  %v20795_v63 = vld [vmem:[%s28223_s1 + $0xee4] ss:$8 sps:$4 sm:$0xff]  }
 0x205   :  { %v2494_v59 = vmul.f32 1.442695, %v2491_v26  ;;  %4550 = vmatpush1.bf16.msra.mxu0 %v4503_v18  ;;  %4581 = vmatprep.mubr.bf16.mxu0 %v22986_v1 }
 0x206   :  { %4871 = vmatpush1.bf16.msra.mxu1 %v20735_v19  ;;  %22763 = vpow2.f32 %v2492_v4  ;;  %5208 = vmatprep.subr.bf16.mxu0 %v20757_v6  ;;  %v4853_v25 = vsel %vm301_vm0, %v17491_v12, 0  ;;  %v20801_v4 = vld [vmem:[%s28223_s1 + $0xf7c] ss:$8 sps:$4 sm:$0xff]   ;;  %v20835_v12 = vld [vmem:[%s28223_s1 + $0xfd8] ss:$8 sps:$4 sm:$0xff]  }
 0x207   :  { %4872 = vmatprep.subr.bf16.mxu1 %v20743_v20  ;;  %22765 = vpow2.f32 %v2494_v59  ;;  %v20793_v59 = vld [vmem:[%s28223_s1 + $0xee0] ss:$8 sps:$4 sm:$0xff]  }
 0x20a   :  { %4873 = vmatpush1.bf16.msra.mxu1 %v20741_v24 }
 0x20b   :  { %4874 = vmatprep.subr.bf16.mxu1 %v20746_v27 }
 0x20e   :  { %4875 = vmatpush1.bf16.msra.mxu1 %v20744_v28 }
 0x20f   :  { %4876 = vmatprep.subr.bf16.mxu1 %v20749_v33  ;;  %v20798_v33 = vld [vmem:[%s28223_s1 + $0xef4] ss:$8 sps:$4 sm:$0xff]  }
 0x210   :  { %v22764_v40 = vpop.eup %22763  ;;  %17422 = vmatmul.mubr.msk.bf16.vlgmr.msra.gmra.mrb[24].mxu0 %vm297_vm1, %v24713_v35 }
 0x211   :  { %v22766_v32 = vpop.eup %22765  ;;  %v2496_v43 = vadd.f32 1.0, %v22764_v40  ;;  %5209 = vmatpush1.bf16.msra.mxu0 %v20755_v38  ;;  %5240 = vmatprep.mubr.bf16.mxu0 %v24725_v17  ;;  %v20810_v38 = vld [vmem:[%s28223_s1 + $0xf14] ss:$8 sps:$4 sm:$0xff]   ;;  %v20805_v40 = vld [vmem:[%s28223_s1 + $0xf88] ss:$8 sps:$4 sm:$0xff]  }
 0x212   :  { %4877 = vmatpush1.bf16.msra.mxu1 %v20747_v34  ;;  %v2497_v36 = vadd.f32 1.0, %v22766_v32  ;;  %5210 = vmatprep.subr.bf16.mxu0 %v20763_v39  ;;  %v20796_v34 = vld [vmem:[%s28223_s1 + $0xef0] ss:$8 sps:$4 sm:$0xff]   ;;  %v20807_v39 = vld [vmem:[%s28223_s1 + $0xf8c] ss:$8 sps:$4 sm:$0xff]  }
 0x213   :  { %4878 = vmatprep.subr.bf16.mxu1 %v20754_v37  ;;  %22767 = vrcp.f32 %v2496_v43  ;;  %v20799_v37 = vld [vmem:[%s28223_s1 + $0xf78] ss:$8 sps:$4 sm:$0xff]   ;;  %v20816_v43 = vld [vmem:[%s28223_s1 + $0xf24] ss:$8 sps:$4 sm:$0xff]  }
 0x214   :  { %22769 = vrcp.f32 %v2497_v36 }
 0x215   :  { %5211 = vmatpush1.bf16.msra.mxu0 %v20761_v30 }
 0x216   :  { %4879 = vmatpush1.bf16.msra.mxu1 %v20752_v31  ;;  %5212 = vmatprep.subr.bf16.mxu0 %v20769_v45  ;;  %v20802_v31 = vld [vmem:[%s28223_s1 + $0xf00] ss:$8 sps:$4 sm:$0xff]   ;;  %v20813_v45 = vld [vmem:[%s28223_s1 + $0xf9c] ss:$8 sps:$4 sm:$0xff]  }
 0x217   :  { %4880 = vmatprep.subr.bf16.mxu1 %v20760_v42  ;;  %v20808_v42 = vld [vmem:[%s28223_s1 + $0xf10] ss:$8 sps:$4 sm:$0xff]  }
 0x219   :  { %5213 = vmatpush1.bf16.msra.mxu0 %v20767_v48  ;;  %v20819_v48 = vld [vmem:[%s28223_s1 + $0xfac] ss:$8 sps:$4 sm:$0xff]  }
 0x21a   :  { %4881 = vmatpush1.bf16.msra.mxu1 %v20758_v44  ;;  %5214 = vmatprep.subr.bf16.mxu0 %v20775_v41  ;;  %v20817_v41 = vld [vmem:[%s28223_s1 + $0xfa8] ss:$8 sps:$4 sm:$0xff]  }
 0x21b   :  { %4882 = vmatprep.subr.bf16.mxu1 %v20766_v47  ;;  %v20814_v47 = vld [vmem:[%s28223_s1 + $0xf20] ss:$8 sps:$4 sm:$0xff]  }
 0x21d   :  { %v22768_v23 = vpop.eup %22767  ;;  %5215 = vmatpush1.bf16.msra.mxu0 %v20773_v51  ;;  %v20823_v51 = vld [vmem:[%s28223_s1 + $0xfb8] ss:$8 sps:$4 sm:$0xff]  }
 0x21e   :  { %4883 = vmatpush1.bf16.msra.mxu1 %v20764_v49  ;;  %v22770_v56 = vpop.eup %22769  ;;  %v2500_v57 = vmul.f32 %v22768_v23, %v24668_v13  ;;  %5216 = vmatprep.subr.bf16.mxu0 %v20781_v52  ;;  %v17492_v13 = vcombine.high %v17457_v8, %v17457_v8  ;;  %v20820_v49 = vld [vmem:[%s28223_s1 + $0xf30] ss:$8 sps:$4 sm:$0xff]   ;;  %v20826_v52 = vld [vmem:[%s28223_s1 + $0xf40] ss:$8 sps:$4 sm:$0xff]  }
 0x21f   :  { %4884 = vmatprep.subr.bf16.mxu1 %v20772_v50  ;;  %v2501_v2 = vmul.f32 %v22770_v56, %v24681_v14  ;;  %v20828_v50 = vld [vmem:[%s28223_s1 + $0xf44] ss:$8 sps:$4 sm:$0xff]   ;;  %v17529_v8 = vld [vmem:[%s28223_s1 + $0xf70] sm:$0x33] }
 0x220   :  { %v20831_v56 = vld [vmem:[%s28223_s1 + $0xfcc] ss:$8 sps:$4 sm:$0xff]  }
 0x221   :  { %v16991_v9 = vpack.c.bf16 %v2501_v2, %v2500_v57  ;;  %5217 = vmatpush1.bf16.msra.mxu0 %v20779_v55  ;;  %v20840_v2 = vld [vmem:[%s28223_s1 + $0xf64] ss:$8 sps:$4 sm:$0xff]  }
 0x222   :  { %4885 = vmatpush1.bf16.msra.mxu1 %v20770_v46  ;;  %5218 = vmatprep.subr.bf16.mxu0 %v20787_v61  ;;  %v20825_v46 = vld [vmem:[%s28223_s1 + $0xfbc] ss:$8 sps:$4 sm:$0xff]   ;;  %v20832_v61 = vld [vmem:[%s28223_s1 + $0xf50] ss:$8 sps:$4 sm:$0xff]  }
 0x223   :  { %4886 = vmatprep.subr.bf16.mxu1 %v20778_v53  ;;  %v2513_v19 = vrot.slane %v16991_v9, %v23077_v7  ;;  %v20834_v53 = vld [vmem:[%s28223_s1 + $0xf54] ss:$8 sps:$4 sm:$0xff]  }
 0x225   :  { %16992 = vst.sshfl [vmem:[#allocation2 + $0xc] sm:$0x5 pattern:$0x73625140] %v2513_v19  ;;  %5219 = vmatpush1.bf16.msra.mxu0 %v20785_v10  ;;  %v17563_v19 = vcombine.low %v17529_v8, %v17529_v8 }
 0x226   :  { %4887 = vmatpush1.bf16.msra.mxu1 %v20776_v54  ;;  %5220 = vmatprep.subr.bf16.mxu0 %v20792_v11  ;;  %v20838_v11 = vld [vmem:[%s28223_s1 + $0xf60] ss:$8 sps:$4 sm:$0xff]  }
 0x227   :  { %4888 = vmatprep.subr.bf16.mxu1 %v20784_v58  ;;  %v20829_v58 = vld [vmem:[%s28223_s1 + $0xfc8] ss:$8 sps:$4 sm:$0xff]  }
 0x228   :  { %v2833_v20 = vpop.f32.mrb[20].mxu1 }
 0x229   :  { %v24803_v24 = vadd.f32 %v2833_v20, %v23938_v3  ;;  %v2835_v14 = vpop.f32.mrb[21].mxu1  ;;  %5221 = vmatpush1.bf16.msra.mxu0 %v20790_v15 }
 0x22a   :  { %4889 = vmatpush1.bf16.msra.mxu1 %v20782_v21  ;;  %v24809_v18 = vadd.f32 %v2835_v14, %v23941_v5  ;;  %v2837_v0 = vpop.f32.mrb[22].mxu1  ;;  %5222 = vmatprep.subr.bf16.mxu0 %v20795_v63  ;;  %v20837_v21 = vld [vmem:[%s28223_s1 + $0xfdc] ss:$8 sps:$4 sm:$0xff]   ;;  %v24927_v63 = vrot.slane %v24701_v29, %v23077_v7 }
 0x22b   :  { %v2840_v6 = vsub.f32 0.0, %v24803_v24  ;;  %17493 = vmatprep.subr.msk.bf16.mxu1 %vm301_vm0, %v17492_v13  ;;  %v2838_v26 = vpop.f32.mrb[23].mxu1  ;;  %v17564_v13 = vcombine.high %v17529_v8, %v17529_v8  ;;  %v20857_v29 = vld [vmem:[%s28225_s3 + $0x4] ss:$8 sps:$4 sm:$0xff]   ;;  %v20887_v8 = vld [vmem:[%s28225_s3 + $0x54] ss:$8 sps:$4 sm:$0xff]  }
 0x22c   :  { %v2841_v27 = vsub.f32 0.0, %v24809_v18 }
 0x22d   :  { %v2842_v28 = vmul.f32 1.442695, %v2840_v6  ;;  %4891 = vmatmul.mubr.bf16.vlgmr.msra.gmra.mrb[32].mxu1 %v24675_v22  ;;  %5223 = vmatpush1.bf16.msra.mxu0 %v20793_v59  ;;  %v20804_v22 = vld [vmem:[%s28223_s1 + $0xf04] ss:$8 sps:$4 sm:$0xff]   ;;  %v5203_v6 = vsel %vm301_vm0, %v17563_v19, 0 }
 0x22e   :  { %v2844_v16 = vmul.f32 1.442695, %v2841_v27  ;;  %4900 = vmatpush1.bf16.msra.mxu1 %v4853_v25  ;;  %4931 = vmatprep.mubr.bf16.mxu1 %v22986_v1  ;;  %v24941_v27 = vld.sshfl [vmem:[#allocation2] sm:$0x77 pattern:$0x75316420] }
 0x22f   :  { %22771 = vpow2.f32 %v2842_v28  ;;  %5558 = vmatprep.subr.bf16.mxu1 %v20801_v4  ;;  %5224 = vmatprep.subr.bf16.mxu0 %v20798_v33  ;;  %v20846_v33 = vld [vmem:[%s28223_s1 + $0xffc] ss:$8 sps:$4 sm:$0xff]   ;;  %v20885_v19 = vld [vmem:[%s28225_s3 + $0x50] ss:$8 sps:$4 sm:$0xff]  }
 0x230   :  { %22773 = vpow2.f32 %v2844_v16 }
 0x231   :  { %5225 = vmatpush1.bf16.msra.mxu0 %v20796_v34  ;;  %v20844_v34 = vld [vmem:[%s28223_s1 + $0xff8] ss:$8 sps:$4 sm:$0xff]  }
 0x232   :  { %5226 = vmatprep.subr.bf16.mxu0 %v20804_v22  ;;  %v20849_v22 = vld [vmem:[%s28223_s1 + $0x100c] ss:$8 sps:$4 sm:$0xff]  }
 0x235   :  { %5227 = vmatpush1.bf16.msra.mxu0 %v20802_v31  ;;  %v5798_v31 = vcombine.high %v24941_v27, %v24941_v27 }
 0x236   :  { %5228 = vmatprep.subr.bf16.mxu0 %v20810_v38  ;;  %v24962_v38 = vcombine.high %v24927_v63, %v24927_v63 }
 0x239   :  { %v22772_v32 = vpop.eup %22771  ;;  %17494 = vmatmul.mubr.msk.bf16.vlgmr.msra.gmra.mrb[32].mxu1 %vm297_vm1, %v24713_v35  ;;  %5229 = vmatpush1.bf16.msra.mxu0 %v20808_v42  ;;  %v20811_v35 = vld [vmem:[%s28223_s1 + $0xf98] ss:$8 sps:$4 sm:$0xff]  }
 0x23a   :  { %v22774_v44 = vpop.eup %22773  ;;  %v2846_v30 = vadd.f32 1.0, %v22772_v32  ;;  %5559 = vmatpush1.bf16.msra.mxu1 %v20799_v37  ;;  %5590 = vmatprep.mubr.bf16.mxu1 %v24725_v17  ;;  %v20822_v17 = vld [vmem:[%s28223_s1 + $0xf34] ss:$8 sps:$4 sm:$0xff]   ;;  %v20847_v37 = vld [vmem:[%s28223_s1 + $0x1008] ss:$8 sps:$4 sm:$0xff]  }
 0x23b   :  { %v2847_v36 = vadd.f32 1.0, %v22774_v44  ;;  %5560 = vmatprep.subr.bf16.mxu1 %v20807_v39  ;;  %5230 = vmatprep.subr.bf16.mxu0 %v20816_v43  ;;  %v20854_v39 = vld [vmem:[%s28223_s1 + $0x101c] ss:$8 sps:$4 sm:$0xff]   ;;  %v20855_v42 = vld [vmem:[%s28225_s3] ss:$8 sps:$4 sm:$0xff]   ;;  %v24977_v43 = vrot.slane %v5798_v31, %v23077_v7 }
 0x23c   :  { %22775 = vrcp.f32 %v2846_v30  ;;  %v20863_v32 = vld [vmem:[%s28225_s3 + $0x14] ss:$8 sps:$4 sm:$0xff]  }
 0x23d   :  { %22777 = vrcp.f32 %v2847_v36  ;;  %5231 = vmatpush1.bf16.msra.mxu0 %v20814_v47  ;;  %v20860_v30 = vld [vmem:[%s28223_s1 + $0x102c] ss:$8 sps:$4 sm:$0xff]   ;;  %v20861_v47 = vld [vmem:[%s28225_s3 + $0x10] ss:$8 sps:$4 sm:$0xff]  }
 0x23e   :  { %5561 = vmatpush1.bf16.msra.mxu1 %v20805_v40  ;;  %5232 = vmatprep.subr.bf16.mxu0 %v20822_v17  ;;  %v20852_v40 = vld [vmem:[%s28223_s1 + $0x1018] ss:$8 sps:$4 sm:$0xff]  }
 0x23f   :  { %5562 = vmatprep.subr.bf16.mxu1 %v20813_v45 }
 0x241   :  { %5233 = vmatpush1.bf16.msra.mxu0 %v20820_v49  ;;  %v20867_v49 = vld [vmem:[%s28225_s3 + $0x20] ss:$8 sps:$4 sm:$0xff]  }
 0x242   :  { %5563 = vmatpush1.bf16.msra.mxu1 %v20811_v35  ;;  %5234 = vmatprep.subr.bf16.mxu0 %v20828_v50  ;;  %v20858_v35 = vld [vmem:[%s28223_s1 + $0x1028] ss:$8 sps:$4 sm:$0xff]   ;;  %v20875_v50 = vld [vmem:[%s28225_s3 + $0x34] ss:$8 sps:$4 sm:$0xff]  }
 0x243   :  { %5564 = vmatprep.subr.bf16.mxu1 %v20819_v48  ;;  %v20869_v48 = vld [vmem:[%s28225_s3 + $0x24] ss:$8 sps:$4 sm:$0xff]  }
 0x245   :  { %5235 = vmatpush1.bf16.msra.mxu0 %v20826_v52  ;;  %v20870_v52 = vld [vmem:[%s28223_s1 + $0x1048] ss:$8 sps:$4 sm:$0xff]  }
 0x246   :  { %v22776_v23 = vpop.eup %22775  ;;  %5565 = vmatpush1.bf16.msra.mxu1 %v20817_v41  ;;  %5236 = vmatprep.subr.bf16.mxu0 %v20834_v53  ;;  %v20866_v41 = vld [vmem:[%s28223_s1 + $0x103c] ss:$8 sps:$4 sm:$0xff]   ;;  %v20873_v53 = vld [vmem:[%s28225_s3 + $0x30] ss:$8 sps:$4 sm:$0xff]  }
 0x247   :  { %v22778_v54 = vpop.eup %22777  ;;  %v2850_v55 = vmul.f32 %v22776_v23, %v24803_v24  ;;  %5566 = vmatprep.subr.bf16.mxu1 %v20825_v46  ;;  %v20843_v24 = vld [vmem:[%s28223_s1 + $0xfec] ss:$8 sps:$4 sm:$0xff]   ;;  %v20864_v46 = vld [vmem:[%s28223_s1 + $0x1038] ss:$8 sps:$4 sm:$0xff]  }
 0x248   :  { %v2851_v57 = vmul.f32 %v22778_v54, %v24809_v18  ;;  %v20841_v18 = vld [vmem:[%s28223_s1 + $0xfe8] ss:$8 sps:$4 sm:$0xff]   ;;  %v20881_v23 = vld [vmem:[%s28225_s3 + $0x44] ss:$8 sps:$4 sm:$0xff]  }
 0x249   :  { %5237 = vmatpush1.bf16.msra.mxu0 %v20832_v61  ;;  %v20878_v54 = vld [vmem:[%s28223_s1 + $0x105c] ss:$8 sps:$4 sm:$0xff]  }
 0x24a   :  { %v17063_v9 = vpack.c.bf16 %v2851_v57, %v2850_v55  ;;  %5567 = vmatpush1.bf16.msra.mxu1 %v20823_v51  ;;  %5238 = vmatprep.subr.bf16.mxu0 %v20840_v2  ;;  %v20872_v51 = vld [vmem:[%s28223_s1 + $0x104c] ss:$8 sps:$4 sm:$0xff]   ;;  %v20879_v57 = vld [vmem:[%s28225_s3 + $0x40] ss:$8 sps:$4 sm:$0xff]  }
 0x24b   :  { %5568 = vmatprep.subr.bf16.mxu1 %v20831_v56  ;;  %v3183_v20 = vpop.f32.mrb[16].mxu0  ;;  %v20876_v56 = vld [vmem:[%s28223_s1 + $0x1058] ss:$8 sps:$4 sm:$0xff]   ;;  %v20884_v2 = vld [vmem:[%s28223_s1 + $0x106c] ss:$8 sps:$4 sm:$0xff]  }
 0x24c   :  { %v2863_v10 = vrot.slane %v17063_v9, %v23077_v7  ;;  %v24920_v15 = vadd.f32 %v3183_v20, %v23938_v3  ;;  %v3185_v14 = vpop.f32.mrb[17].mxu0 }
 0x24d   :  { %5239 = vmatpush1.bf16.msra.mxu0 %v20838_v11  ;;  %v24933_v0 = vadd.f32 %v3185_v14, %v23941_v5  ;;  %v3187_v25 = vpop.f32.mrb[18].mxu0  ;;  %v20882_v11 = vld [vmem:[%s28223_s1 + $0x1068] ss:$8 sps:$4 sm:$0xff]  }
 0x24e   :  { %17064 = vst.sshfl [vmem:[#allocation2 + $0xe] sm:$0x5 pattern:$0x73625140] %v2863_v10  ;;  %5569 = vmatpush1.bf16.msra.mxu1 %v20829_v58  ;;  %v3190_v26 = vsub.f32 0.0, %v24920_v15  ;;  %v3188_v4 = vpop.f32.mrb[19].mxu0  ;;  %17565 = vmatprep.subr.msk.bf16.mxu0 %vm301_vm0, %v17564_v13 }
 0x24f   :  { %5570 = vmatprep.subr.bf16.mxu1 %v20837_v21  ;;  %v3191_v59 = vsub.f32 0.0, %v24933_v0  ;;  %v17601_v21 = vld [vmem:[%s28223_s1 + $0x1078] sm:$0x33]  ;;  %v20890_v14 = vld [vmem:[%s28225_s3 + $0x60] ss:$8 sps:$4 sm:$0xff]  }
 0x250   :  { %v3192_v28 = vmul.f32 1.442695, %v3190_v26  ;;  %5241 = vmatmul.mubr.bf16.vlgmr.msra.gmra.mrb[28].mxu0 %v24927_v63  ;;  %v17635_v20 = vcombine.low %v17601_v21, %v17601_v21  ;;  %v20895_v25 = vld [vmem:[%s28225_s3 + $0x74] ss:$8 sps:$4 sm:$0xff]  }
 0x251   :  { %v3194_v16 = vmul.f32 1.442695, %v3191_v59  ;;  %5250 = vmatpush1.bf16.msra.mxu0 %v5203_v6  ;;  %5281 = vmatprep.mubr.bf16.mxu0 %v22986_v1 }
 0x252   :  { %5571 = vmatpush1.bf16.msra.mxu1 %v20835_v12  ;;  %22779 = vpow2.f32 %v3192_v28  ;;  %6316 = vmatprep.subr.bf16.mxu0 %v20857_v29  ;;  %v20892_v12 = vld [vmem:[%s28225_s3 + $0x64] ss:$8 sps:$4 sm:$0xff]   ;;  %v5553_v4 = vsel %vm301_vm0, %v17635_v20, 0  ;;  %v20935_v20 = vld [vmem:[%s28225_s3 + $0x360] ss:$8 sps:$4 sm:$0xff]  }
 0x253   :  { %5572 = vmatprep.subr.bf16.mxu1 %v20843_v24  ;;  %22781 = vpow2.f32 %v3194_v16  ;;  %v20901_v28 = vld [vmem:[%s28225_s3 + $0x304] ss:$8 sps:$4 sm:$0xff]   ;;  %v20893_v16 = vld [vmem:[%s28225_s3 + $0x70] ss:$8 sps:$4 sm:$0xff]  }
 0x256   :  { %5573 = vmatpush1.bf16.msra.mxu1 %v20841_v18 }
 0x257   :  { %5574 = vmatprep.subr.bf16.mxu1 %v20846_v33 }
 0x25a   :  { %5575 = vmatpush1.bf16.msra.mxu1 %v20844_v34  ;;  %v25070_v34 = vld.sshfl [vmem:[#allocation2 + $0x2] sm:$0x77 pattern:$0x75316420] }
 0x25b   :  { %5576 = vmatprep.subr.bf16.mxu1 %v20849_v22 }
 0x25c   :  { %v22780_v44 = vpop.eup %22779  ;;  %17566 = vmatmul.mubr.msk.bf16.vlgmr.msra.gmra.mrb[28].mxu0 %vm297_vm1, %v24962_v38 }
 0x25d   :  { %v22782_v36 = vpop.eup %22781  ;;  %v3196_v45 = vadd.f32 1.0, %v22780_v44  ;;  %6317 = vmatpush1.bf16.msra.mxu0 %v20855_v42  ;;  %6348 = vmatprep.mubr.bf16.mxu0 %v24977_v43  ;;  %v6586_v42 = vcombine.high %v25070_v34, %v25070_v34  ;;  %v20907_v44 = vld [vmem:[%s28225_s3 + $0x314] ss:$8 sps:$4 sm:$0xff]  }
 0x25e   :  { %5577 = vmatpush1.bf16.msra.mxu1 %v20847_v37  ;;  %v3197_v17 = vadd.f32 1.0, %v22782_v36  ;;  %6318 = vmatprep.subr.bf16.mxu0 %v20863_v32  ;;  %v20898_v37 = vld [vmem:[%s28225_s3 + $0x84] ss:$8 sps:$4 sm:$0xff]   ;;  %v20905_v36 = vld [vmem:[%s28225_s3 + $0x310] ss:$8 sps:$4 sm:$0xff]  }
 0x25f   :  { %5578 = vmatprep.subr.bf16.mxu1 %v20854_v39  ;;  %22783 = vrcp.f32 %v3196_v45  ;;  %v20896_v39 = vld [vmem:[%s28225_s3 + $0x80] ss:$8 sps:$4 sm:$0xff]   ;;  %v20910_v32 = vld [vmem:[%s28225_s3 + $0xa4] ss:$8 sps:$4 sm:$0xff]  }
 0x260   :  { %22785 = vrcp.f32 %v3197_v17  ;;  %v20908_v45 = vld [vmem:[%s28225_s3 + $0xa0] ss:$8 sps:$4 sm:$0xff]  }
 0x261   :  { %6319 = vmatpush1.bf16.msra.mxu0 %v20861_v47  ;;  %v20916_v47 = vld [vmem:[%s28225_s3 + $0xb4] ss:$8 sps:$4 sm:$0xff]  }
 0x262   :  { %5579 = vmatpush1.bf16.msra.mxu1 %v20852_v40  ;;  %6320 = vmatprep.subr.bf16.mxu0 %v20869_v48  ;;  %v20899_v40 = vld [vmem:[%s28225_s3 + $0x300] ss:$8 sps:$4 sm:$0xff]  }
 0x263   :  { %5580 = vmatprep.subr.bf16.mxu1 %v20860_v30  ;;  %v25098_v30 = vrot.slane %v6586_v42, %v23077_v7  ;;  %v20953_v42 = vld [vmem:[%s28225_s3 + $0x390] ss:$8 sps:$4 sm:$0xff]  }
 0x265   :  { %6321 = vmatpush1.bf16.msra.mxu0 %v20867_v49  ;;  %v20913_v49 = vld [vmem:[%s28225_s3 + $0x324] ss:$8 sps:$4 sm:$0xff]  }
 0x266   :  { %5581 = vmatpush1.bf16.msra.mxu1 %v20858_v35  ;;  %6322 = vmatprep.subr.bf16.mxu0 %v20875_v50  ;;  %v20914_v50 = vld [vmem:[%s28225_s3 + $0xb0] ss:$8 sps:$4 sm:$0xff]  }
 0x267   :  { %5582 = vmatprep.subr.bf16.mxu1 %v20866_v41 }
 0x269   :  { %v22784_v55 = vpop.eup %22783  ;;  %6323 = vmatpush1.bf16.msra.mxu0 %v20873_v53  ;;  %v20920_v53 = vld [vmem:[%s28225_s3 + $0xc0] ss:$8 sps:$4 sm:$0xff]  }
 0x26a   :  { %5583 = vmatpush1.bf16.msra.mxu1 %v20864_v46  ;;  %v22786_v58 = vpop.eup %22785  ;;  %v3200_v61 = vmul.f32 %v22784_v55, %v24920_v15  ;;  %6324 = vmatprep.subr.bf16.mxu0 %v20881_v23  ;;  %v17636_v15 = vcombine.high %v17601_v21, %v17601_v21  ;;  %v20922_v46 = vld [vmem:[%s28225_s3 + $0xc4] ss:$8 sps:$4 sm:$0xff]   ;;  %v20928_v23 = vld [vmem:[%s28225_s3 + $0xd4] ss:$8 sps:$4 sm:$0xff]   ;;  %v20923_v55 = vld [vmem:[%s28225_s3 + $0x340] ss:$8 sps:$4 sm:$0xff]  }
 0x26b   :  { %5584 = vmatprep.subr.bf16.mxu1 %v20872_v51  ;;  %v3201_v9 = vmul.f32 %v22786_v58, %v24933_v0  ;;  %v20919_v51 = vld [vmem:[%s28225_s3 + $0x334] ss:$8 sps:$4 sm:$0xff]   ;;  %v20929_v21 = vld [vmem:[%s28225_s3 + $0x350] ss:$8 sps:$4 sm:$0xff]  }
 0x26d   :  { %v17135_v10 = vpack.c.bf16 %v3201_v9, %v3200_v61  ;;  %6325 = vmatpush1.bf16.msra.mxu0 %v20879_v57  ;;  %v20934_v57 = vld [vmem:[%s28225_s3 + $0xe4] ss:$8 sps:$4 sm:$0xff]  }
 0x26e   :  { %5585 = vmatpush1.bf16.msra.mxu1 %v20870_v52  ;;  %6326 = vmatprep.subr.bf16.mxu0 %v20887_v8  ;;  %v20917_v52 = vld [vmem:[%s28225_s3 + $0x330] ss:$8 sps:$4 sm:$0xff]   ;;  %v20931_v8 = vld [vmem:[%s28225_s3 + $0x354] ss:$8 sps:$4 sm:$0xff]  }
 0x26f   :  { %5586 = vmatprep.subr.bf16.mxu1 %v20878_v54  ;;  %v3213_v13 = vrot.slane %v17135_v10, %v23077_v7  ;;  %v20925_v54 = vld [vmem:[%s28225_s3 + $0x344] ss:$8 sps:$4 sm:$0xff]   ;;  %v20932_v10 = vld [vmem:[%s28225_s3 + $0xe0] ss:$8 sps:$4 sm:$0xff]  }
 0x271   :  { %17136 = vst.sshfl [vmem:[#allocation2 + $0x10] sm:$0x5 pattern:$0x73625140] %v3213_v13  ;;  %6327 = vmatpush1.bf16.msra.mxu0 %v20885_v19 }
 0x272   :  { %5587 = vmatpush1.bf16.msra.mxu1 %v20876_v56  ;;  %6328 = vmatprep.subr.bf16.mxu0 %v20892_v12  ;;  %v20926_v56 = vld [vmem:[%s28225_s3 + $0xd0] ss:$8 sps:$4 sm:$0xff]   ;;  %v20937_v12 = vld [vmem:[%s28225_s3 + $0x364] ss:$8 sps:$4 sm:$0xff]  }
 0x273   :  { %5588 = vmatprep.subr.bf16.mxu1 %v20884_v2 }
 0x274   :  { %v3533_v24 = vpop.f32.mrb[24].mxu1 }
 0x275   :  { %v25052_v18 = vadd.f32 %v3533_v24, %v23938_v3  ;;  %v3535_v0 = vpop.f32.mrb[25].mxu1  ;;  %6329 = vmatpush1.bf16.msra.mxu0 %v20890_v14  ;;  %v20946_v24 = vld [vmem:[%s28225_s3 + $0x104] ss:$8 sps:$4 sm:$0xff]  }
 0x276   :  { %5589 = vmatpush1.bf16.msra.mxu1 %v20882_v11  ;;  %v25058_v6 = vadd.f32 %v3535_v0, %v23941_v5  ;;  %v3537_v26 = vpop.f32.mrb[26].mxu1  ;;  %6330 = vmatprep.subr.bf16.mxu0 %v20895_v25  ;;  %v20940_v11 = vld [vmem:[%s28225_s3 + $0xf4] ss:$8 sps:$4 sm:$0xff]  }
 0x277   :  { %v3540_v29 = vsub.f32 0.0, %v25052_v18  ;;  %17637 = vmatprep.subr.msk.bf16.mxu1 %vm301_vm0, %v17636_v15  ;;  %v3538_v59 = vpop.f32.mrb[27].mxu1  ;;  %v20938_v15 = vld [vmem:[%s28225_s3 + $0xf0] ss:$8 sps:$4 sm:$0xff]   ;;  %v20943_v0 = vld [vmem:[%s28225_s3 + $0x374] ss:$8 sps:$4 sm:$0xff]  }
 0x278   :  { %v3541_v33 = vsub.f32 0.0, %v25058_v6 }
 0x279   :  { %v3542_v22 = vmul.f32 1.442695, %v3540_v29  ;;  %5591 = vmatmul.mubr.bf16.vlgmr.msra.gmra.mrb[36].mxu1 %v24927_v63  ;;  %6331 = vmatpush1.bf16.msra.mxu0 %v20893_v16  ;;  %v20904_v63 = vld [vmem:[%s28225_s3 + $0x94] ss:$8 sps:$4 sm:$0xff]   ;;  %v20944_v29 = vld [vmem:[%s28225_s3 + $0x100] ss:$8 sps:$4 sm:$0xff]  }
 0x27a   :  { %v3544_v31 = vmul.f32 1.442695, %v3541_v33  ;;  %5600 = vmatpush1.bf16.msra.mxu1 %v5553_v4  ;;  %5631 = vmatprep.mubr.bf16.mxu1 %v22986_v1  ;;  %v20902_v1 = vld [vmem:[%s28225_s3 + $0x90] ss:$8 sps:$4 sm:$0xff]   ;;  %v20952_v16 = vld [vmem:[%s28225_s3 + $0x114] ss:$8 sps:$4 sm:$0xff]  }
 0x27b   :  { %22787 = vpow2.f32 %v3542_v22  ;;  %7104 = vmatprep.subr.bf16.mxu1 %v20901_v28  ;;  %6332 = vmatprep.subr.bf16.mxu0 %v20898_v37  ;;  %v25193_v28 = vrot.slane %v24941_v27, %v23077_v7  ;;  %v5829_v37 = vcombine.high %v24977_v43, %v24977_v43  ;;  %v20949_v27 = vld [vmem:[%s28225_s3 + $0x384] ss:$8 sps:$4 sm:$0xff]   ;;  %v20947_v43 = vld [vmem:[%s28225_s3 + $0x380] ss:$8 sps:$4 sm:$0xff]  }
 0x27c   :  { %22789 = vpow2.f32 %v3544_v31 }
 0x27d   :  { %6333 = vmatpush1.bf16.msra.mxu0 %v20896_v39 }
 0x27e   :  { %6334 = vmatprep.subr.bf16.mxu0 %v20904_v63  ;;  %v20950_v63 = vld [vmem:[%s28225_s3 + $0x110] ss:$8 sps:$4 sm:$0xff]  }
 0x281   :  { %6335 = vmatpush1.bf16.msra.mxu0 %v20902_v1  ;;  %v20955_v1 = vld [vmem:[%s28225_s3 + $0x394] ss:$8 sps:$4 sm:$0xff]  }
 0x282   :  { %6336 = vmatprep.subr.bf16.mxu0 %v20910_v32  ;;  %v20956_v32 = vld [vmem:[%s28225_s3 + $0x120] ss:$8 sps:$4 sm:$0xff]  }
 0x285   :  { %v22788_v35 = vpop.eup %22787  ;;  %17638 = vmatmul.mubr.msk.bf16.vlgmr.msra.gmra.mrb[36].mxu1 %vm297_vm1, %v24962_v38  ;;  %6337 = vmatpush1.bf16.msra.mxu0 %v20908_v45  ;;  %v20911_v38 = vld [vmem:[%s28225_s3 + $0x320] ss:$8 sps:$4 sm:$0xff]  }
 0x286   :  { %v22790_v17 = vpop.eup %22789  ;;  %v3546_v48 = vadd.f32 1.0, %v22788_v35  ;;  %7105 = vmatpush1.bf16.msra.mxu1 %v20899_v40  ;;  %7136 = vmatprep.mubr.bf16.mxu1 %v25098_v30  ;;  %v20958_v40 = vld [vmem:[%s28225_s3 + $0x124] ss:$8 sps:$4 sm:$0xff]   ;;  %v20959_v45 = vld [vmem:[%s28225_s3 + $0x3a0] ss:$8 sps:$4 sm:$0xff]  }
 0x287   :  { %v3547_v41 = vadd.f32 1.0, %v22790_v17  ;;  %7106 = vmatprep.subr.bf16.mxu1 %v20907_v44  ;;  %6338 = vmatprep.subr.bf16.mxu0 %v20916_v47  ;;  %v20964_v44 = vld [vmem:[%s28225_s3 + $0x134] ss:$8 sps:$4 sm:$0xff]   ;;  %v20962_v35 = vld [vmem:[%s28225_s3 + $0x130] ss:$8 sps:$4 sm:$0xff]  }
 0x288   :  { %22791 = vrcp.f32 %v3546_v48  ;;  %v20970_v47 = vld [vmem:[%s28225_s3 + $0x144] ss:$8 sps:$4 sm:$0xff]   ;;  %v20967_v48 = vld [vmem:[%s28225_s3 + $0x3b4] ss:$8 sps:$4 sm:$0xff]  }
 0x289   :  { %22793 = vrcp.f32 %v3547_v41  ;;  %6339 = vmatpush1.bf16.msra.mxu0 %v20914_v50  ;;  %v20968_v50 = vld [vmem:[%s28225_s3 + $0x140] ss:$8 sps:$4 sm:$0xff]  }
 0x28a   :  { %7107 = vmatpush1.bf16.msra.mxu1 %v20905_v36  ;;  %6340 = vmatprep.subr.bf16.mxu0 %v20922_v46  ;;  %v20961_v36 = vld [vmem:[%s28225_s3 + $0x3a4] ss:$8 sps:$4 sm:$0xff]  }
 0x28b   :  { %7108 = vmatprep.subr.bf16.mxu1 %v20913_v49 }
 0x28d   :  { %6341 = vmatpush1.bf16.msra.mxu0 %v20920_v53  ;;  %v20974_v53 = vld [vmem:[%s28225_s3 + $0x150] ss:$8 sps:$4 sm:$0xff]  }
 0x28e   :  { %7109 = vmatpush1.bf16.msra.mxu1 %v20911_v38  ;;  %6342 = vmatprep.subr.bf16.mxu0 %v20928_v23  ;;  %v20965_v38 = vld [vmem:[%s28225_s3 + $0x3b0] ss:$8 sps:$4 sm:$0xff]   ;;  %v20982_v23 = vld [vmem:[%s28225_s3 + $0x164] ss:$8 sps:$4 sm:$0xff]  }
 0x28f   :  { %7110 = vmatprep.subr.bf16.mxu1 %v20919_v51  ;;  %v20976_v51 = vld [vmem:[%s28225_s3 + $0x154] ss:$8 sps:$4 sm:$0xff]  }
 0x291   :  { %6343 = vmatpush1.bf16.msra.mxu0 %v20926_v56  ;;  %v20977_v56 = vld [vmem:[%s28225_s3 + $0x3d0] ss:$8 sps:$4 sm:$0xff]  }
 0x292   :  { %v22792_v58 = vpop.eup %22791  ;;  %7111 = vmatpush1.bf16.msra.mxu1 %v20917_v52  ;;  %6344 = vmatprep.subr.bf16.mxu0 %v20934_v57  ;;  %v20973_v52 = vld [vmem:[%s28225_s3 + $0x3c4] ss:$8 sps:$4 sm:$0xff]   ;;  %v20980_v57 = vld [vmem:[%s28225_s3 + $0x160] ss:$8 sps:$4 sm:$0xff]  }
 0x293   :  { %v22794_v61 = vpop.eup %22793  ;;  %v3550_v2 = vmul.f32 %v22792_v58, %v25052_v18  ;;  %7112 = vmatprep.subr.bf16.mxu1 %v20925_v54  ;;  %v20971_v54 = vld [vmem:[%s28225_s3 + $0x3c0] ss:$8 sps:$4 sm:$0xff]   ;;  %v20988_v58 = vld [vmem:[%s28225_s3 + $0x174] ss:$8 sps:$4 sm:$0xff]  }
 0x294   :  { %v3551_v9 = vmul.f32 %v22794_v61, %v25058_v6  ;;  %v20941_v6 = vld [vmem:[%s28225_s3 + $0x370] ss:$8 sps:$4 sm:$0xff]   ;;  %v20985_v61 = vld [vmem:[%s28225_s3 + $0x3e4] ss:$8 sps:$4 sm:$0xff]  }
 0x295   :  { %6345 = vmatpush1.bf16.msra.mxu0 %v20932_v10 }
 0x296   :  { %v17207_v19 = vpack.c.bf16 %v3551_v9, %v3550_v2  ;;  %7113 = vmatpush1.bf16.msra.mxu1 %v20923_v55  ;;  %6346 = vmatprep.subr.bf16.mxu0 %v20940_v11  ;;  %v20979_v55 = vld [vmem:[%s28225_s3 + $0x3d4] ss:$8 sps:$4 sm:$0xff]   ;;  %v20986_v9 = vld [vmem:[%s28225_s3 + $0x170] ss:$8 sps:$4 sm:$0xff]   ;;  %v20994_v11 = vld [vmem:[%s28225_s3 + $0x184] ss:$8 sps:$4 sm:$0xff]  }
 0x297   :  { %7114 = vmatprep.subr.bf16.mxu1 %v20931_v8  ;;  %v3883_v14 = vpop.f32.mrb[20].mxu0  ;;  %v20983_v8 = vld [vmem:[%s28225_s3 + $0x3e0] ss:$8 sps:$4 sm:$0xff]  }
 0x298   :  { %v3563_v13 = vrot.slane %v17207_v19, %v23077_v7  ;;  %v25176_v18 = vadd.f32 %v3883_v14, %v23938_v3  ;;  %v3885_v25 = vpop.f32.mrb[21].mxu0 }
 0x299   :  { %6347 = vmatpush1.bf16.msra.mxu0 %v20938_v15  ;;  %v25185_v26 = vadd.f32 %v3885_v25, %v23941_v5  ;;  %v3887_v4 = vpop.f32.mrb[22].mxu0  ;;  %v20992_v15 = vld [vmem:[%s28225_s3 + $0x180] ss:$8 sps:$4 sm:$0xff]  }
 0x29a   :  { %17208 = vst.sshfl [vmem:[#allocation2 + $0x12] sm:$0x5 pattern:$0x73625140] %v3563_v13  ;;  %7115 = vmatpush1.bf16.msra.mxu1 %v20929_v21  ;;  %v3890_v59 = vsub.f32 0.0, %v25176_v18  ;;  %6357 = vmatprep.subr.bf16.mxu0 %v20946_v24  ;;  %v3888_v33 = vpop.f32.mrb[23].mxu0 }
 0x29b   :  { %7116 = vmatprep.subr.bf16.mxu1 %v20937_v12  ;;  %v3891_v22 = vsub.f32 0.0, %v25185_v26  ;;  %v20991_v12 = vld [vmem:[%s28225_s3 + $0x3f4] ss:$8 sps:$4 sm:$0xff]   ;;  %v20995_v25 = vld [vmem:[%s28225_s3 + $0x400] ss:$8 sps:$4 sm:$0xff]  }
 0x29c   :  { %v3892_v31 = vmul.f32 1.442695, %v3890_v59  ;;  %6349 = vmatmul.mubr.bf16.vlgmr.msra.gmra.mrb[32].mxu0 %v25193_v28  ;;  %v21000_v24 = vld [vmem:[%s28225_s3 + $0x194] ss:$8 sps:$4 sm:$0xff]  }
 0x29d   :  { %v3894_v39 = vmul.f32 1.442695, %v3891_v22  ;;  %6358 = vmatpush1.bf16.msra.mxu0 %v20944_v29  ;;  %6389 = vmatprep.mubr.bf16.mxu0 %v5829_v37  ;;  %v21006_v29 = vld [vmem:[%s28225_s3 + $0x1a4] ss:$8 sps:$4 sm:$0xff]   ;;  %v25322_v22 = vrot.slane %v25070_v34, %v23077_v7  ;;  %v21004_v34 = vld [vmem:[%s28225_s3 + $0x1a0] ss:$8 sps:$4 sm:$0xff]  }
 0x29e   :  { %7117 = vmatpush1.bf16.msra.mxu1 %v20935_v20  ;;  %22795 = vpow2.f32 %v3892_v31  ;;  %6359 = vmatprep.subr.bf16.mxu0 %v20952_v16  ;;  %v20989_v20 = vld [vmem:[%s28225_s3 + $0x3f0] ss:$8 sps:$4 sm:$0xff]   ;;  %v21003_v31 = vld [vmem:[%s28225_s3 + $0x414] ss:$8 sps:$4 sm:$0xff]  }
 0x29f   :  { %7118 = vmatprep.subr.bf16.mxu1 %v20943_v0  ;;  %22797 = vpow2.f32 %v3894_v39  ;;  %v6617_v39 = vcombine.high %v25098_v30, %v25098_v30  ;;  %v21009_v30 = vld [vmem:[%s28225_s3 + $0x424] ss:$8 sps:$4 sm:$0xff]  }
 0x2a1   :  { %6360 = vmatpush1.bf16.msra.mxu0 %v20950_v63  ;;  %v21001_v63 = vld [vmem:[%s28225_s3 + $0x410] ss:$8 sps:$4 sm:$0xff]  }
 0x2a2   :  { %7119 = vmatpush1.bf16.msra.mxu1 %v20941_v6  ;;  %6361 = vmatprep.subr.bf16.mxu0 %v20958_v40  ;;  %v20998_v6 = vld [vmem:[%s28225_s3 + $0x190] ss:$8 sps:$4 sm:$0xff]   ;;  %v21012_v40 = vld [vmem:[%s28225_s3 + $0x1b4] ss:$8 sps:$4 sm:$0xff]  }
 0x2a3   :  { %7120 = vmatprep.subr.bf16.mxu1 %v20949_v27 }
 0x2a5   :  { %6362 = vmatpush1.bf16.msra.mxu0 %v20956_v32  ;;  %v21010_v32 = vld [vmem:[%s28225_s3 + $0x1b0] ss:$8 sps:$4 sm:$0xff]  }
 0x2a6   :  { %7121 = vmatpush1.bf16.msra.mxu1 %v20947_v43  ;;  %6363 = vmatprep.subr.bf16.mxu0 %v20964_v44  ;;  %v21018_v44 = vld [vmem:[%s28225_s3 + $0x1c4] ss:$8 sps:$4 sm:$0xff]  }
 0x2a7   :  { %7122 = vmatprep.subr.bf16.mxu1 %v20955_v1 }
 0x2a8   :  { %v22796_v17 = vpop.eup %22795 }
 0x2a9   :  { %v22798_v41 = vpop.eup %22797  ;;  %v3896_v49 = vadd.f32 1.0, %v22796_v17  ;;  %6364 = vmatpush1.bf16.msra.mxu0 %v20962_v35  ;;  %v21016_v35 = vld [vmem:[%s28225_s3 + $0x1c0] ss:$8 sps:$4 sm:$0xff]   ;;  %v21021_v17 = vld [vmem:[%s28225_s3 + $0x444] ss:$8 sps:$4 sm:$0xff]  }
 0x2aa   :  { %7123 = vmatpush1.bf16.msra.mxu1 %v20953_v42  ;;  %v3897_v46 = vadd.f32 1.0, %v22798_v41  ;;  %6365 = vmatprep.subr.bf16.mxu0 %v20970_v47  ;;  %v21007_v42 = vld [vmem:[%s28225_s3 + $0x420] ss:$8 sps:$4 sm:$0xff]   ;;  %v21024_v47 = vld [vmem:[%s28225_s3 + $0x1d4] ss:$8 sps:$4 sm:$0xff]  }
 0x2ab   :  { %7124 = vmatprep.subr.bf16.mxu1 %v20961_v36  ;;  %22799 = vrcp.f32 %v3896_v49  ;;  %v21015_v36 = vld [vmem:[%s28225_s3 + $0x434] ss:$8 sps:$4 sm:$0xff]   ;;  %v21022_v41 = vld [vmem:[%s28225_s3 + $0x1d0] ss:$8 sps:$4 sm:$0xff]  }
 0x2ac   :  { %22801 = vrcp.f32 %v3897_v46 }
 0x2ad   :  { %6366 = vmatpush1.bf16.msra.mxu0 %v20968_v50 }
 0x2ae   :  { %7125 = vmatpush1.bf16.msra.mxu1 %v20959_v45  ;;  %6367 = vmatprep.subr.bf16.mxu0 %v20976_v51  ;;  %v21013_v45 = vld [vmem:[%s28225_s3 + $0x430] ss:$8 sps:$4 sm:$0xff]   ;;  %v22951_v51 = vld [vmem:[#allocation2] sm:$0x3f] }
 0x2af   :  { %7126 = vmatprep.subr.bf16.mxu1 %v20967_v48  ;;  %v21019_v48 = vld [vmem:[%s28225_s3 + $0x440] ss:$8 sps:$4 sm:$0xff]  }
 0x2b1   :  { %6368 = vmatpush1.bf16.msra.mxu0 %v20974_v53 }
 0x2b2   :  { %7127 = vmatpush1.bf16.msra.mxu1 %v20965_v38  ;;  %6369 = vmatprep.subr.bf16.mxu0 %v20982_v23  ;;  %v21030_v38 = vld [vmem:[%s28225_s3 + $0x1e4] ss:$8 sps:$4 sm:$0xff]   ;;  %v21027_v23 = vld [vmem:[%s28225_s3 + $0x454] ss:$8 sps:$4 sm:$0xff]  }
 0x2b3   :  { %7128 = vmatprep.subr.bf16.mxu1 %v20973_v52  ;;  %v5783_v52 = vcombine.high %v22951_v51, %v22951_v51  ;;  %v21084_v51 = vld [vmem:[%s28225_s3 + $0x274] ss:$8 sps:$4 sm:$0xff]  }
 0x2b5   :  { %v22800_v2 = vpop.eup %22799  ;;  %6370 = vmatpush1.bf16.msra.mxu0 %v20980_v57  ;;  %v25389_v57 = vrot.slane %v5783_v52, %v23077_v7 }
 0x2b6   :  { %7129 = vmatpush1.bf16.msra.mxu1 %v20971_v54  ;;  %v22802_v21 = vpop.eup %22801  ;;  %v3900_v10 = vmul.f32 %v22800_v2, %v25176_v18  ;;  %6371 = vmatprep.subr.bf16.mxu0 %v20988_v58  ;;  %v20997_v18 = vld [vmem:[%s28225_s3 + $0x404] ss:$8 sps:$4 sm:$0xff]   ;;  %v21025_v54 = vld [vmem:[%s28225_s3 + $0x450] ss:$8 sps:$4 sm:$0xff]  }
 0x2b7   :  { %7130 = vmatprep.subr.bf16.mxu1 %v20979_v55  ;;  %v3901_v19 = vmul.f32 %v22802_v21, %v25185_v26  ;;  %v21028_v55 = vld [vmem:[%s28225_s3 + $0x1e0] ss:$8 sps:$4 sm:$0xff]   ;;  %v21033_v58 = vld [vmem:[%s28225_s3 + $0x464] ss:$8 sps:$4 sm:$0xff]   ;;  %v21034_v2 = vld [vmem:[%s28225_s3 + $0x1f0] ss:$8 sps:$4 sm:$0xff]  }
 0x2b8   :  { %v21039_v21 = vld [vmem:[%s28225_s3 + $0x474] ss:$8 sps:$4 sm:$0xff]  }
 0x2b9   :  { %v17279_v13 = vpack.c.bf16 %v3901_v19, %v3900_v10  ;;  %6372 = vmatpush1.bf16.msra.mxu0 %v20986_v9  ;;  %v5799_v9 = vcombine.high %v25389_v57, %v25389_v57  ;;  %v21037_v10 = vld [vmem:[%s28225_s3 + $0x470] ss:$8 sps:$4 sm:$0xff]   ;;  %v5828_v19 = vcombine.high %v25193_v28, %v25193_v28 }
 0x2ba   :  { %7131 = vmatpush1.bf16.msra.mxu1 %v20977_v56  ;;  %6373 = vmatprep.subr.bf16.mxu0 %v20994_v11  ;;  %v21036_v56 = vld [vmem:[%s28225_s3 + $0x1f4] ss:$8 sps:$4 sm:$0xff]   ;;  %v21040_v11 = vld [vmem:[%s28225_s3 + $0x200] ss:$8 sps:$4 sm:$0xff]  }
 0x2bb   :  { %7132 = vmatprep.subr.bf16.mxu1 %v20985_v61  ;;  %v3913_v14 = vrot.slane %v17279_v13, %v23077_v7  ;;  %v21031_v61 = vld [vmem:[%s28225_s3 + $0x460] ss:$8 sps:$4 sm:$0xff]  }
 0x2bd   :  { %17280 = vst.sshfl [vmem:[#allocation2 + $0x14] sm:$0x5 pattern:$0x73625140] %v3913_v14  ;;  %6374 = vmatpush1.bf16.msra.mxu0 %v20992_v15  ;;  %v21045_v14 = vld [vmem:[%s28225_s3 + $0x484] ss:$8 sps:$4 sm:$0xff]  }
 0x2be   :  { %7133 = vmatpush1.bf16.msra.mxu1 %v20983_v8  ;;  %6375 = vmatprep.subr.bf16.mxu0 %v21000_v24  ;;  %v21042_v8 = vld [vmem:[%s28225_s3 + $0x204] ss:$8 sps:$4 sm:$0xff]  }
 0x2bf   :  { %7134 = vmatprep.subr.bf16.mxu1 %v20991_v12  ;;  %v21048_v12 = vld [vmem:[%s28225_s3 + $0x214] ss:$8 sps:$4 sm:$0xff]  }
 0x2c0   :  { %v4233_v0 = vpop.f32.mrb[28].mxu1 }
 0x2c1   :  { %v25311_v26 = vadd.f32 %v4233_v0, %v23938_v3  ;;  %v4235_v4 = vpop.f32.mrb[29].mxu1  ;;  %6376 = vmatpush1.bf16.msra.mxu0 %v20998_v6  ;;  %v21046_v0 = vld [vmem:[%s28225_s3 + $0x210] ss:$8 sps:$4 sm:$0xff]  }
 0x2c2   :  { %7135 = vmatpush1.bf16.msra.mxu1 %v20989_v20  ;;  %v25317_v59 = vadd.f32 %v4235_v4, %v23941_v5  ;;  %v4237_v33 = vpop.f32.mrb[30].mxu1  ;;  %6377 = vmatprep.subr.bf16.mxu0 %v21006_v29  ;;  %v5827_v20 = vrot.slane %v5799_v9, %v23077_v7  ;;  %v21049_v29 = vld [vmem:[%s28225_s3 + $0x490] ss:$8 sps:$4 sm:$0xff]   ;;  %v21087_v9 = vld [vmem:[%s28225_s3 + $0x4f4] ss:$8 sps:$4 sm:$0xff]  }
 0x2c3   :  { %v4240_v16 = vsub.f32 0.0, %v25311_v26  ;;  %7145 = vmatprep.subr.bf16.mxu1 %v20997_v18  ;;  %v4238_v37 = vpop.f32.mrb[31].mxu1  ;;  %v21043_v18 = vld [vmem:[%s28225_s3 + $0x480] ss:$8 sps:$4 sm:$0xff]   ;;  %v21060_v33 = vld [vmem:[%s28225_s3 + $0x234] ss:$8 sps:$4 sm:$0xff]  }
 0x2c4   :  { %v4241_v27 = vsub.f32 0.0, %v25317_v59 }
 0x2c5   :  { %v4242_v43 = vmul.f32 1.442695, %v4240_v16  ;;  %7137 = vmatmul.mubr.bf16.vlgmr.msra.gmra.mrb[40].mxu1 %v25322_v22  ;;  %6378 = vmatpush1.bf16.msra.mxu0 %v21004_v34 }
 0x2c6   :  { %v4244_v1 = vmul.f32 1.442695, %v4241_v27  ;;  %7146 = vmatpush1.bf16.msra.mxu1 %v20995_v25  ;;  %7177 = vmatprep.mubr.bf16.mxu1 %v6617_v39  ;;  %v21054_v25 = vld [vmem:[%s28225_s3 + $0x224] ss:$8 sps:$4 sm:$0xff]  }
 0x2c7   :  { %22803 = vpow2.f32 %v4242_v43  ;;  %7147 = vmatprep.subr.bf16.mxu1 %v21003_v31  ;;  %6379 = vmatprep.subr.bf16.mxu0 %v21012_v40  ;;  %v21057_v27 = vld [vmem:[%s28225_s3 + $0x4a4] ss:$8 sps:$4 sm:$0xff]   ;;  %v21058_v43 = vld [vmem:[%s28225_s3 + $0x230] ss:$8 sps:$4 sm:$0xff]  }
 0x2c8   :  { %22805 = vpow2.f32 %v4244_v1 }
 0x2c9   :  { %6380 = vmatpush1.bf16.msra.mxu0 %v21010_v32 }
 0x2ca   :  { %7148 = vmatpush1.bf16.msra.mxu1 %v21001_v63  ;;  %6381 = vmatprep.subr.bf16.mxu0 %v21018_v44  ;;  %v21055_v63 = vld [vmem:[%s28225_s3 + $0x4a0] ss:$8 sps:$4 sm:$0xff]   ;;  %v21063_v44 = vld [vmem:[%s28225_s3 + $0x4b4] ss:$8 sps:$4 sm:$0xff]  }
 0x2cb   :  { %7149 = vmatprep.subr.bf16.mxu1 %v21009_v30  ;;  %v21066_v30 = vld [vmem:[%s28225_s3 + $0x244] ss:$8 sps:$4 sm:$0xff]  }
 0x2cd   :  { %6382 = vmatpush1.bf16.msra.mxu0 %v21016_v35  ;;  %v21061_v35 = vld [vmem:[%s28225_s3 + $0x4b0] ss:$8 sps:$4 sm:$0xff]  }
 0x2ce   :  { %7150 = vmatpush1.bf16.msra.mxu1 %v21007_v42  ;;  %6383 = vmatprep.subr.bf16.mxu0 %v21024_v47  ;;  %v21072_v47 = vld [vmem:[%s28225_s3 + $0x254] ss:$8 sps:$4 sm:$0xff]  }
 0x2cf   :  { %7151 = vmatprep.subr.bf16.mxu1 %v21015_v36 }
 0x2d1   :  { %v22804_v49 = vpop.eup %22803  ;;  %6384 = vmatpush1.bf16.msra.mxu0 %v21022_v41  ;;  %v21070_v41 = vld [vmem:[%s28225_s3 + $0x250] ss:$8 sps:$4 sm:$0xff]  }
 0x2d2   :  { %v22806_v50 = vpop.eup %22805  ;;  %v4246_v46 = vadd.f32 1.0, %v22804_v49  ;;  %7152 = vmatpush1.bf16.msra.mxu1 %v21013_v45  ;;  %6385 = vmatprep.subr.bf16.mxu0 %v21030_v38  ;;  %v21064_v45 = vld [vmem:[%s28225_s3 + $0x240] ss:$8 sps:$4 sm:$0xff]   ;;  %v21078_v49 = vld [vmem:[%s28225_s3 + $0x264] ss:$8 sps:$4 sm:$0xff]  }
 0x2d3   :  { %v4247_v53 = vadd.f32 1.0, %v22806_v50  ;;  %7153 = vmatprep.subr.bf16.mxu1 %v21021_v17  ;;  %v21069_v17 = vld [vmem:[%s28225_s3 + $0x4c4] ss:$8 sps:$4 sm:$0xff]   ;;  %v21075_v38 = vld [vmem:[%s28225_s3 + $0x4d4] ss:$8 sps:$4 sm:$0xff]  }
 0x2d4   :  { %22807 = vrcp.f32 %v4246_v46  ;;  %v21073_v50 = vld [vmem:[%s28225_s3 + $0x4d0] ss:$8 sps:$4 sm:$0xff]   ;;  %v21076_v46 = vld [vmem:[%s28225_s3 + $0x260] ss:$8 sps:$4 sm:$0xff]  }
 0x2d5   :  { %22809 = vrcp.f32 %v4247_v53  ;;  %6386 = vmatpush1.bf16.msra.mxu0 %v21028_v55  ;;  %v21081_v53 = vld [vmem:[%s28225_s3 + $0x4e4] ss:$8 sps:$4 sm:$0xff]   ;;  %v21079_v55 = vld [vmem:[%s28225_s3 + $0x4e0] ss:$8 sps:$4 sm:$0xff]  }
 0x2d6   :  { %7154 = vmatpush1.bf16.msra.mxu1 %v21019_v48  ;;  %6387 = vmatprep.subr.bf16.mxu0 %v21036_v56  ;;  %v21067_v48 = vld [vmem:[%s28225_s3 + $0x4c0] ss:$8 sps:$4 sm:$0xff]   ;;  %v21082_v56 = vld [vmem:[%s28225_s3 + $0x270] ss:$8 sps:$4 sm:$0xff]  }
 0x2d7   :  { %7155 = vmatprep.subr.bf16.mxu1 %v21027_v23 }
 0x2d9   :  { %6388 = vmatpush1.bf16.msra.mxu0 %v21034_v2 }
 0x2da   :  { %7156 = vmatpush1.bf16.msra.mxu1 %v21025_v54  ;;  %6398 = vmatprep.subr.bf16.mxu0 %v21042_v8  ;;  %v21090_v8 = vld [vmem:[%s28225_s3 + $0x284] ss:$8 sps:$4 sm:$0xff]  }
 0x2db   :  { %7157 = vmatprep.subr.bf16.mxu1 %v21033_v58  ;;  %v22952_v58 = vld [vmem:[#allocation2 + $0x2] sm:$0x3f] }
 0x2dc   :  { %6390 = vmatmul.mubr.bf16.vlgmr.msra.gmra.mrb[32].mxu0 %v5828_v19  ;;  %v21085_v19 = vld [vmem:[%s28225_s3 + $0x4f0] ss:$8 sps:$4 sm:$0xff]  }
 0x2dd   :  { %6399 = vmatpush1.bf16.msra.mxu0 %v21040_v11  ;;  %6430 = vmatprep.mubr.bf16.mxu0 %v5827_v20  ;;  %v21096_v11 = vld [vmem:[%s28225_s3 + $0x294] ss:$8 sps:$4 sm:$0xff]  }
 0x2de   :  { %v22808_v13 = vpop.eup %22807  ;;  %7158 = vmatpush1.bf16.msra.mxu1 %v21031_v61  ;;  %6400 = vmatprep.subr.bf16.mxu0 %v21048_v12  ;;  %v6571_v61 = vcombine.high %v22952_v58, %v22952_v58  ;;  %v21093_v12 = vld [vmem:[%s28225_s3 + $0x504] ss:$8 sps:$4 sm:$0xff]  }
 0x2df   :  { %v22810_v15 = vpop.eup %22809  ;;  %v4250_v24 = vmul.f32 %v22808_v13, %v25311_v26  ;;  %7159 = vmatprep.subr.bf16.mxu1 %v21039_v21  ;;  %v21051_v26 = vld [vmem:[%s28225_s3 + $0x494] ss:$8 sps:$4 sm:$0xff]   ;;  %v21088_v21 = vld [vmem:[%s28225_s3 + $0x280] ss:$8 sps:$4 sm:$0xff]  }
 0x2e0   :  { %v4251_v28 = vmul.f32 %v22810_v15, %v25317_v59  ;;  %v21052_v59 = vld [vmem:[%s28225_s3 + $0x220] ss:$8 sps:$4 sm:$0xff]   ;;  %v21094_v15 = vld [vmem:[%s28225_s3 + $0x290] ss:$8 sps:$4 sm:$0xff]  }
 0x2e1   :  { %6401 = vmatpush1.bf16.msra.mxu0 %v21046_v0  ;;  %v21091_v13 = vld [vmem:[%s28225_s3 + $0x500] ss:$8 sps:$4 sm:$0xff]  }
 0x2e2   :  { %v17351_v6 = vpack.c.bf16 %v4251_v28, %v4250_v24  ;;  %7160 = vmatpush1.bf16.msra.mxu1 %v21037_v10  ;;  %6402 = vmatprep.subr.bf16.mxu0 %v21054_v25  ;;  %v25522_v10 = vrot.slane %v6571_v61, %v23077_v7  ;;  %v21102_v24 = vld [vmem:[%s28225_s3 + $0x2a4] ss:$8 sps:$4 sm:$0xff]   ;;  %v21099_v28 = vld [vmem:[%s28225_s3 + $0x514] ss:$8 sps:$4 sm:$0xff]   ;;  %v21100_v25 = vld [vmem:[%s28225_s3 + $0x2a0] ss:$8 sps:$4 sm:$0xff]  }
 0x2e3   :  { %7161 = vmatprep.subr.bf16.mxu1 %v21045_v14  ;;  %v4583_v16 = vpop.f32.mrb[24].mxu0  ;;  %v6616_v14 = vcombine.high %v25322_v22, %v25322_v22  ;;  %v21108_v22 = vld [vmem:[%s28225_s3 + $0x2b4] ss:$8 sps:$4 sm:$0xff]   ;;  %v21136_v61 = vld [vmem:[%s28225_s3 + $0x600] ss:$8 sps:$4 sm:$0xff]  }
 0x2e4   :  { %v4263_v4 = vrot.slane %v17351_v6, %v23077_v7  ;;  %v25448_v37 = vadd.f32 %v4583_v16, %v23938_v3  ;;  %v4585_v31 = vpop.f32.mrb[25].mxu0  ;;  %v6587_v20 = vcombine.high %v25522_v10, %v25522_v10  ;;  %v21106_v16 = vld [vmem:[%s28225_s3 + $0x2b0] ss:$8 sps:$4 sm:$0xff]  }
 0x2e5   :  { %6403 = vmatpush1.bf16.msra.mxu0 %v21052_v59  ;;  %v25454_v39 = vadd.f32 %v4585_v31, %v23941_v5  ;;  %v4587_v34 = vpop.f32.mrb[26].mxu0  ;;  %v21105_v59 = vld [vmem:[%s28225_s3 + $0x524] ss:$8 sps:$4 sm:$0xff]  }
 0x2e6   :  { %17352 = vst.sshfl [vmem:[#allocation2 + $0x16] sm:$0x5 pattern:$0x73625140] %v4263_v4  ;;  %7162 = vmatpush1.bf16.msra.mxu1 %v21043_v18  ;;  %v4590_v40 = vsub.f32 0.0, %v25448_v37  ;;  %v4588_v1 = vpop.f32.mrb[27].mxu0  ;;  %6404 = vmatprep.subr.bf16.mxu0 %v21060_v33  ;;  %v6615_v0 = vrot.slane %v6587_v20, %v23077_v7 }
 0x2e7   :  { %7163 = vmatprep.subr.bf16.mxu1 %v21051_v26  ;;  %v4591_v42 = vsub.f32 0.0, %v25454_v39  ;;  %v21112_v34 = vld [vmem:[%s28225_s3 + $0x2c0] ss:$8 sps:$4 sm:$0xff]   ;;  %v21120_v1 = vld [vmem:[%s28225_s3 + $0x2d4] ss:$8 sps:$4 sm:$0xff]  }
 0x2e8   :  { %v4592_v32 = vmul.f32 1.442695, %v4590_v40  ;;  %v21142_v20 = vld [vmem:[%s28225_s3 + $0x610] ss:$8 sps:$4 sm:$0xff]  }
 0x2e9   :  { %v4594_v36 = vmul.f32 1.442695, %v4591_v42  ;;  %6405 = vmatpush1.bf16.msra.mxu0 %v21058_v43 }
 0x2ea   :  { %7164 = vmatpush1.bf16.msra.mxu1 %v21049_v29  ;;  %22811 = vpow2.f32 %v4592_v32  ;;  %6406 = vmatprep.subr.bf16.mxu0 %v21066_v30  ;;  %v21097_v29 = vld [vmem:[%s28225_s3 + $0x510] ss:$8 sps:$4 sm:$0xff]  }
 0x2eb   :  { %7165 = vmatprep.subr.bf16.mxu1 %v21057_v27  ;;  %22813 = vpow2.f32 %v4594_v36  ;;  %v21103_v27 = vld [vmem:[%s28225_s3 + $0x520] ss:$8 sps:$4 sm:$0xff]   ;;  %v21109_v32 = vld [vmem:[%s28225_s3 + $0x530] ss:$8 sps:$4 sm:$0xff]  }
 0x2ed   :  { %6407 = vmatpush1.bf16.msra.mxu0 %v21064_v45 }
 0x2ee   :  { %7166 = vmatpush1.bf16.msra.mxu1 %v21055_v63  ;;  %6408 = vmatprep.subr.bf16.mxu0 %v21072_v47  ;;  %v21118_v47 = vld [vmem:[%s28225_s3 + $0x2d0] ss:$8 sps:$4 sm:$0xff]  }
 0x2ef   :  { %7167 = vmatprep.subr.bf16.mxu1 %v21063_v44  ;;  %v21117_v44 = vld [vmem:[%s28225_s3 + $0x544] ss:$8 sps:$4 sm:$0xff]  }
 0x2f1   :  { %6409 = vmatpush1.bf16.msra.mxu0 %v21070_v41  ;;  %v25603_v41 = vld.sshfl [vmem:[#allocation2 + $0x6] sm:$0x77 pattern:$0x75316420] }
 0x2f2   :  { %7168 = vmatpush1.bf16.msra.mxu1 %v21061_v35  ;;  %6410 = vmatprep.subr.bf16.mxu0 %v21078_v49  ;;  %v7374_v58 = vcombine.high %v25603_v41, %v25603_v41 }
 0x2f3   :  { %7169 = vmatprep.subr.bf16.mxu1 %v21069_v17 }
 0x2f4   :  { %v22812_v52 = vpop.eup %22811 }
 0x2f5   :  { %v22814_v23 = vpop.eup %22813  ;;  %v4596_v54 = vadd.f32 1.0, %v22812_v52  ;;  %6411 = vmatpush1.bf16.msra.mxu0 %v21076_v46  ;;  %v21124_v46 = vld [vmem:[%s28225_s3 + $0x2e0] ss:$8 sps:$4 sm:$0xff]   ;;  %v21121_v52 = vld [vmem:[%s28225_s3 + $0x550] ss:$8 sps:$4 sm:$0xff]  }
 0x2f6   :  { %7170 = vmatpush1.bf16.msra.mxu1 %v21067_v48  ;;  %v4597_v2 = vadd.f32 1.0, %v22814_v23  ;;  %6412 = vmatprep.subr.bf16.mxu0 %v21084_v51  ;;  %v21126_v48 = vld [vmem:[%s28225_s3 + $0x2e4] ss:$8 sps:$4 sm:$0xff]   ;;  %v21132_v51 = vld [vmem:[%s28225_s3 + $0x2f4] ss:$8 sps:$4 sm:$0xff]  }
 0x2f7   :  { %7171 = vmatprep.subr.bf16.mxu1 %v21075_v38  ;;  %22815 = vrcp.f32 %v4596_v54  ;;  %v21115_v38 = vld [vmem:[%s28225_s3 + $0x540] ss:$8 sps:$4 sm:$0xff]   ;;  %v21130_v23 = vld [vmem:[%s28225_s3 + $0x2f0] ss:$8 sps:$4 sm:$0xff]   ;;  %v21138_v54 = vld [vmem:[%s28225_s3 + $0x604] ss:$8 sps:$4 sm:$0xff]  }
 0x2f8   :  { %22817 = vrcp.f32 %v4597_v2 }
 0x2f9   :  { %6413 = vmatpush1.bf16.msra.mxu0 %v21082_v56  ;;  %v21135_v56 = vld [vmem:[%s28225_s3 + $0x574] ss:$8 sps:$4 sm:$0xff]  }
 0x2fa   :  { %7172 = vmatpush1.bf16.msra.mxu1 %v21073_v50  ;;  %6414 = vmatprep.subr.bf16.mxu0 %v21090_v8  ;;  %v21123_v50 = vld [vmem:[%s28225_s3 + $0x554] ss:$8 sps:$4 sm:$0xff]   ;;  %v5813_v8 = vrot.slane %v25389_v57, %v23077_v7 }
 0x2fb   :  { %7173 = vmatprep.subr.bf16.mxu1 %v21081_v53  ;;  %v21129_v53 = vld [vmem:[%s28225_s3 + $0x564] ss:$8 sps:$4 sm:$0xff]  }
 0x2fd   :  { %6415 = vmatpush1.bf16.msra.mxu0 %v21088_v21 }
 0x2fe   :  { %7174 = vmatpush1.bf16.msra.mxu1 %v21079_v55  ;;  %6416 = vmatprep.subr.bf16.mxu0 %v21096_v11  ;;  %v21127_v55 = vld [vmem:[%s28225_s3 + $0x560] ss:$8 sps:$4 sm:$0xff]  }
 0x2ff   :  { %7175 = vmatprep.subr.bf16.mxu1 %v21087_v9  ;;  %v21144_v9 = vld [vmem:[%s28225_s3 + $0x614] ss:$8 sps:$4 sm:$0xff]  }
 0x301   :  { %v22816_v18 = vpop.eup %22815  ;;  %6417 = vmatpush1.bf16.msra.mxu0 %v21094_v15  ;;  %v21150_v15 = vld [vmem:[%s28225_s3 + $0x624] ss:$8 sps:$4 sm:$0xff]  }
 0x302   :  { %7176 = vmatpush1.bf16.msra.mxu1 %v21085_v19  ;;  %v22818_v6 = vpop.eup %22817  ;;  %v4600_v26 = vmul.f32 %v22816_v18, %v25448_v37  ;;  %6418 = vmatprep.subr.bf16.mxu0 %v21102_v24  ;;  %v21114_v37 = vld [vmem:[%s28225_s3 + $0x2c4] ss:$8 sps:$4 sm:$0xff]   ;;  %v21133_v19 = vld [vmem:[%s28225_s3 + $0x570] ss:$8 sps:$4 sm:$0xff]   ;;  %v21139_v24 = vld [vmem:[%s28225_s3 + $0x580] ss:$8 sps:$4 sm:$0xff]  }
 0x303   :  { %7186 = vmatprep.subr.bf16.mxu1 %v21093_v12  ;;  %v4601_v4 = vmul.f32 %v22818_v6, %v25454_v39  ;;  %v21111_v39 = vld [vmem:[%s28225_s3 + $0x534] ss:$8 sps:$4 sm:$0xff]   ;;  %v25649_v12 = vrot.slane %v7374_v58, %v23077_v7  ;;  %v21154_v6 = vld [vmem:[%s28225_s3 + $0x630] ss:$8 sps:$4 sm:$0xff]  }
 0x304   :  { %v21156_v18 = vld [vmem:[%s28225_s3 + $0x634] ss:$8 sps:$4 sm:$0xff]  }
 0x305   :  { %7178 = vmatmul.mubr.bf16.vlgmr.msra.gmra.mrb[40].mxu1 %v6616_v14  ;;  %v17423_v33 = vpack.c.bf16 %v4601_v4, %v4600_v26  ;;  %6419 = vmatpush1.bf16.msra.mxu0 %v21100_v25  ;;  %v21147_v14 = vld [vmem:[%s28225_s3 + $0x594] ss:$8 sps:$4 sm:$0xff]   ;;  %v21153_v25 = vld [vmem:[%s28225_s3 + $0x5a4] ss:$8 sps:$4 sm:$0xff]   ;;  %v21151_v4 = vld [vmem:[%s28225_s3 + $0x5a0] ss:$8 sps:$4 sm:$0xff]  }
 0x306   :  { %7187 = vmatpush1.bf16.msra.mxu1 %v21091_v13  ;;  %7218 = vmatprep.mubr.bf16.mxu1 %v6615_v0  ;;  %v21141_v13 = vld [vmem:[%s28225_s3 + $0x584] ss:$8 sps:$4 sm:$0xff]   ;;  %v21145_v0 = vld [vmem:[%s28225_s3 + $0x590] ss:$8 sps:$4 sm:$0xff]   ;;  %v21192_v58 = vld [vmem:[%s28225_s3 + $0x694] ss:$8 sps:$4 sm:$0xff]  }
 0x307   :  { %7188 = vmatprep.subr.bf16.mxu1 %v21099_v28  ;;  %6420 = vmatprep.subr.bf16.mxu0 %v21108_v22  ;;  %v4613_v31 = vrot.slane %v17423_v33, %v23077_v7  ;;  %v21148_v28 = vld [vmem:[%s28225_s3 + $0x620] ss:$8 sps:$4 sm:$0xff]   ;;  %v21162_v26 = vld [vmem:[%s28225_s3 + $0x644] ss:$8 sps:$4 sm:$0xff]  }
 0x309   :  { %17424 = vst.sshfl [vmem:[#allocation2 + $0x18] sm:$0x5 pattern:$0x73625140] %v4613_v31  ;;  %6421 = vmatpush1.bf16.msra.mxu0 %v21106_v16  ;;  %v21168_v31 = vld [vmem:[%s28225_s3 + $0x654] ss:$8 sps:$4 sm:$0xff]  }
 0x30a   :  { %7189 = vmatpush1.bf16.msra.mxu1 %v21097_v29  ;;  %6422 = vmatprep.subr.bf16.mxu0 %v21114_v37  ;;  %v21159_v29 = vld [vmem:[%s28225_s3 + $0x5b4] ss:$8 sps:$4 sm:$0xff]   ;;  %v21160_v37 = vld [vmem:[%s28225_s3 + $0x640] ss:$8 sps:$4 sm:$0xff]  }
 0x30b   :  { %7190 = vmatprep.subr.bf16.mxu1 %v21105_v59 }
 0x30c   :  { %v4933_v63 = vpop.f32.mrb[32].mxu1 }
 0x30d   :  { %v25581_v43 = vadd.f32 %v4933_v63, %v23938_v3  ;;  %v4935_v40 = vpop.f32.mrb[33].mxu1  ;;  %6423 = vmatpush1.bf16.msra.mxu0 %v21112_v34  ;;  %v21165_v63 = vld [vmem:[%s28225_s3 + $0x5c4] ss:$8 sps:$4 sm:$0xff]  }
 0x30e   :  { %7191 = vmatpush1.bf16.msra.mxu1 %v21103_v27  ;;  %v25587_v30 = vadd.f32 %v4935_v40, %v23941_v5  ;;  %v4937_v42 = vpop.f32.mrb[34].mxu1  ;;  %6424 = vmatprep.subr.bf16.mxu0 %v21120_v1  ;;  %v21174_v40 = vld [vmem:[%s28225_s3 + $0x664] ss:$8 sps:$4 sm:$0xff]   ;;  %v21163_v1 = vld [vmem:[%s28225_s3 + $0x5c0] ss:$8 sps:$4 sm:$0xff]  }
 0x30f   :  { %v4940_v36 = vsub.f32 0.0, %v25581_v43  ;;  %v4938_v45 = vpop.f32.mrb[35].mxu1  ;;  %7192 = vmatprep.subr.bf16.mxu1 %v21111_v39  ;;  %v21157_v39 = vld [vmem:[%s28225_s3 + $0x5b0] ss:$8 sps:$4 sm:$0xff]   ;;  %v21171_v42 = vld [vmem:[%s28225_s3 + $0x5d4] ss:$8 sps:$4 sm:$0xff]  }
 0x310   :  { %v4941_v35 = vsub.f32 0.0, %v25587_v30 }
 0x311   :  { %v4942_v17 = vmul.f32 1.442695, %v4940_v36  ;;  %6425 = vmatpush1.bf16.msra.mxu0 %v21118_v47 }
 0x312   :  { %v4944_v49 = vmul.f32 1.442695, %v4941_v35  ;;  %7193 = vmatpush1.bf16.msra.mxu1 %v21109_v32  ;;  %6426 = vmatprep.subr.bf16.mxu0 %v21126_v48  ;;  %v21172_v35 = vld [vmem:[%s28225_s3 + $0x660] ss:$8 sps:$4 sm:$0xff]   ;;  %v21180_v48 = vld [vmem:[%s28225_s3 + $0x674] ss:$8 sps:$4 sm:$0xff]  }
 0x313   :  { %22819 = vpow2.f32 %v4942_v17  ;;  %7194 = vmatprep.subr.bf16.mxu1 %v21117_v44 }
 0x314   :  { %22821 = vpow2.f32 %v4944_v49 }
 0x315   :  { %6427 = vmatpush1.bf16.msra.mxu0 %v21124_v46 }
 0x316   :  { %7195 = vmatpush1.bf16.msra.mxu1 %v21115_v38  ;;  %6428 = vmatprep.subr.bf16.mxu0 %v21132_v51  ;;  %v21169_v38 = vld [vmem:[%s28225_s3 + $0x5d0] ss:$8 sps:$4 sm:$0xff]  }
 0x317   :  { %7196 = vmatprep.subr.bf16.mxu1 %v21123_v50  ;;  %v21177_v50 = vld [vmem:[%s28225_s3 + $0x5e4] ss:$8 sps:$4 sm:$0xff]  }
 0x319   :  { %6429 = vmatpush1.bf16.msra.mxu0 %v21130_v23  ;;  %v25744_v23 = vld.sshfl [vmem:[#allocation2 + $0xa] sm:$0x77 pattern:$0x75316420] }
 0x31a   :  { %7197 = vmatpush1.bf16.msra.mxu1 %v21121_v52  ;;  %7892 = vmatprep.subr.bf16.mxu0 %v21138_v54  ;;  %v21178_v52 = vld [vmem:[%s28225_s3 + $0x670] ss:$8 sps:$4 sm:$0xff]   ;;  %v21175_v54 = vld [vmem:[%s28225_s3 + $0x5e0] ss:$8 sps:$4 sm:$0xff]  }
 0x31b   :  { %7198 = vmatprep.subr.bf16.mxu1 %v21129_v53  ;;  %v21186_v53 = vld [vmem:[%s28225_s3 + $0x684] ss:$8 sps:$4 sm:$0xff]  }
 0x31c   :  { %6431 = vmatmul.mubr.bf16.vlgmr.msra.gmra.mrb[32].mxu0 %v5813_v8  ;;  %v21187_v8 = vld [vmem:[%s28225_s3 + $0x900] ss:$8 sps:$4 sm:$0xff]  }
 0x31d   :  { %v22820_v2 = vpop.eup %22819  ;;  %7893 = vmatpush1.bf16.msra.mxu0 %v21136_v61  ;;  %7924 = vmatprep.mubr.bf16.mxu0 %v25649_v12  ;;  %v21181_v61 = vld [vmem:[%s28225_s3 + $0x5f0] ss:$8 sps:$4 sm:$0xff]  }
 0x31e   :  { %v22822_v21 = vpop.eup %22821  ;;  %v4946_v11 = vadd.f32 1.0, %v22820_v2  ;;  %7199 = vmatpush1.bf16.msra.mxu1 %v21127_v55  ;;  %7894 = vmatprep.subr.bf16.mxu0 %v21144_v9  ;;  %v21183_v55 = vld [vmem:[%s28225_s3 + $0x5f4] ss:$8 sps:$4 sm:$0xff]   ;;  %v21189_v2 = vld [vmem:[%s28225_s3 + $0x904] ss:$8 sps:$4 sm:$0xff]   ;;  %v8162_v9 = vcombine.high %v25744_v23, %v25744_v23 }
 0x31f   :  { %v4947_v57 = vadd.f32 1.0, %v22822_v21  ;;  %7200 = vmatprep.subr.bf16.mxu1 %v21135_v56  ;;  %v21184_v56 = vld [vmem:[%s28225_s3 + $0x680] ss:$8 sps:$4 sm:$0xff]   ;;  %v21190_v21 = vld [vmem:[%s28225_s3 + $0x690] ss:$8 sps:$4 sm:$0xff]  }
 0x320   :  { %22823 = vrcp.f32 %v4946_v11  ;;  %v21198_v11 = vld [vmem:[%s28225_s3 + $0x6a4] ss:$8 sps:$4 sm:$0xff]  }
 0x321   :  { %22825 = vrcp.f32 %v4947_v57  ;;  %7895 = vmatpush1.bf16.msra.mxu0 %v21142_v20  ;;  %v21195_v57 = vld [vmem:[%s28225_s3 + $0x914] ss:$8 sps:$4 sm:$0xff]  }
 0x322   :  { %7201 = vmatpush1.bf16.msra.mxu1 %v21133_v19  ;;  %7896 = vmatprep.subr.bf16.mxu0 %v21150_v15 }
 0x323   :  { %7202 = vmatprep.subr.bf16.mxu1 %v21141_v13  ;;  %v6601_v13 = vrot.slane %v25522_v10, %v23077_v7  ;;  %v21204_v10 = vld [vmem:[%s28225_s3 + $0x6b4] ss:$8 sps:$4 sm:$0xff]  }
 0x325   :  { %7897 = vmatpush1.bf16.msra.mxu0 %v21148_v28 }
 0x326   :  { %7203 = vmatpush1.bf16.msra.mxu1 %v21139_v24  ;;  %7898 = vmatprep.subr.bf16.mxu0 %v21156_v18  ;;  %v25781_v24 = vrot.slane %v8162_v9, %v23077_v7  ;;  %v21193_v18 = vld [vmem:[%s28225_s3 + $0x910] ss:$8 sps:$4 sm:$0xff]   ;;  %v21244_v9 = vld [vmem:[%s28225_s3 + $0x720] ss:$8 sps:$4 sm:$0xff]  }
 0x327   :  { %7204 = vmatprep.subr.bf16.mxu1 %v21147_v14  ;;  %v21196_v14 = vld [vmem:[%s28225_s3 + $0x6a0] ss:$8 sps:$4 sm:$0xff]  }
 0x329   :  { %7899 = vmatpush1.bf16.msra.mxu0 %v21154_v6  ;;  %v21210_v6 = vld [vmem:[%s28225_s3 + $0x6c4] ss:$8 sps:$4 sm:$0xff]  }
 0x32a   :  { %v22824_v22 = vpop.eup %22823  ;;  %7205 = vmatpush1.bf16.msra.mxu1 %v21145_v0  ;;  %7900 = vmatprep.subr.bf16.mxu0 %v21162_v26  ;;  %v21201_v0 = vld [vmem:[%s28225_s3 + $0x924] ss:$8 sps:$4 sm:$0xff]   ;;  %v21199_v26 = vld [vmem:[%s28225_s3 + $0x920] ss:$8 sps:$4 sm:$0xff]  }
 0x32b   :  { %v22826_v59 = vpop.eup %22825  ;;  %v4950_v33 = vmul.f32 %v22824_v22, %v25581_v43  ;;  %7206 = vmatprep.subr.bf16.mxu1 %v21153_v25  ;;  %v21166_v43 = vld [vmem:[%s28225_s3 + $0x650] ss:$8 sps:$4 sm:$0xff]   ;;  %v21207_v22 = vld [vmem:[%s28225_s3 + $0x934] ss:$8 sps:$4 sm:$0xff]  }
 0x32c   :  { %v4951_v16 = vmul.f32 %v22826_v59, %v25587_v30  ;;  %v21202_v25 = vld [vmem:[%s28225_s3 + $0x6b0] ss:$8 sps:$4 sm:$0xff]  }
 0x32d   :  { %7901 = vmatpush1.bf16.msra.mxu0 %v21160_v37  ;;  %v21205_v59 = vld [vmem:[%s28225_s3 + $0x930] ss:$8 sps:$4 sm:$0xff]  }
 0x32e   :  { %v17495_v27 = vpack.c.bf16 %v4951_v16, %v4950_v33  ;;  %7207 = vmatpush1.bf16.msra.mxu1 %v21151_v4  ;;  %7902 = vmatprep.subr.bf16.mxu0 %v21168_v31  ;;  %v21208_v4 = vld [vmem:[%s28225_s3 + $0x6c0] ss:$8 sps:$4 sm:$0xff]   ;;  %v21213_v33 = vld [vmem:[%s28225_s3 + $0x944] ss:$8 sps:$4 sm:$0xff]   ;;  %v21214_v37 = vld [vmem:[%s28225_s3 + $0x6d0] ss:$8 sps:$4 sm:$0xff]  }
 0x32f   :  { %7208 = vmatprep.subr.bf16.mxu1 %v21159_v29  ;;  %v5283_v30 = vpop.f32.mrb[28].mxu0  ;;  %v21216_v29 = vld [vmem:[%s28225_s3 + $0x6d4] ss:$8 sps:$4 sm:$0xff]  }
 0x330   :  { %v4963_v34 = vrot.slane %v17495_v27, %v23077_v7  ;;  %v25719_v32 = vadd.f32 %v5283_v30, %v23938_v3  ;;  %v5285_v44 = vpop.f32.mrb[29].mxu0  ;;  %v21228_v30 = vld [vmem:[%s28225_s3 + $0x6f4] ss:$8 sps:$4 sm:$0xff]  }
 0x331   :  { %v25722_v36 = vadd.f32 %v5285_v44, %v23941_v5  ;;  %7903 = vmatpush1.bf16.msra.mxu0 %v21166_v43  ;;  %v5287_v45 = vpop.f32.mrb[30].mxu0  ;;  %v21219_v43 = vld [vmem:[%s28225_s3 + $0x954] ss:$8 sps:$4 sm:$0xff]   ;;  %v21225_v44 = vld [vmem:[%s28225_s3 + $0x964] ss:$8 sps:$4 sm:$0xff]  }
 0x332   :  { %17496 = vst.sshfl [vmem:[#allocation2 + $0x1a] sm:$0x5 pattern:$0x73625140] %v4963_v34  ;;  %7209 = vmatpush1.bf16.msra.mxu1 %v21157_v39  ;;  %v5290_v47 = vsub.f32 0.0, %v25719_v32  ;;  %v5288_v17 = vpop.f32.mrb[31].mxu0  ;;  %7904 = vmatprep.subr.bf16.mxu0 %v21174_v40 }
 0x333   :  { %7210 = vmatprep.subr.bf16.mxu1 %v21165_v63  ;;  %v5291_v49 = vsub.f32 0.0, %v25722_v36  ;;  %v21222_v39 = vld [vmem:[%s28225_s3 + $0x6e4] ss:$8 sps:$4 sm:$0xff]   ;;  %v21211_v34 = vld [vmem:[%s28225_s3 + $0x940] ss:$8 sps:$4 sm:$0xff]  }
 0x334   :  { %v5292_v46 = vmul.f32 1.442695, %v5290_v47  ;;  %v21226_v45 = vld [vmem:[%s28225_s3 + $0x6f0] ss:$8 sps:$4 sm:$0xff]   ;;  %v21234_v17 = vld [vmem:[%s28225_s3 + $0x704] ss:$8 sps:$4 sm:$0xff]  }
 0x335   :  { %v5294_v51 = vmul.f32 1.442695, %v5291_v49  ;;  %7905 = vmatpush1.bf16.msra.mxu0 %v21172_v35 }
 0x336   :  { %7211 = vmatpush1.bf16.msra.mxu1 %v21163_v1  ;;  %22827 = vpow2.f32 %v5292_v46  ;;  %7906 = vmatprep.subr.bf16.mxu0 %v21180_v48  ;;  %v21220_v1 = vld [vmem:[%s28225_s3 + $0x6e0] ss:$8 sps:$4 sm:$0xff]  }
 0x337   :  { %7212 = vmatprep.subr.bf16.mxu1 %v21171_v42  ;;  %22829 = vpow2.f32 %v5294_v51 }
 0x339   :  { %7907 = vmatpush1.bf16.msra.mxu0 %v21178_v52 }
 0x33a   :  { %7213 = vmatpush1.bf16.msra.mxu1 %v21169_v38  ;;  %7908 = vmatprep.subr.bf16.mxu0 %v21186_v53  ;;  %v21223_v38 = vld [vmem:[%s28225_s3 + $0x960] ss:$8 sps:$4 sm:$0xff]   ;;  %v25872_v53 = vrot.slane %v25603_v41, %v23077_v7  ;;  %v21238_v41 = vld [vmem:[%s28225_s3 + $0x710] ss:$8 sps:$4 sm:$0xff]  }
 0x33b   :  { %7214 = vmatprep.subr.bf16.mxu1 %v21177_v50 }
 0x33d   :  { %7909 = vmatpush1.bf16.msra.mxu0 %v21184_v56  ;;  %v21229_v56 = vld [vmem:[%s28225_s3 + $0x970] ss:$8 sps:$4 sm:$0xff]  }
 0x33e   :  { %7215 = vmatpush1.bf16.msra.mxu1 %v21175_v54  ;;  %7910 = vmatprep.subr.bf16.mxu0 %v21192_v58  ;;  %v21240_v54 = vld [vmem:[%s28225_s3 + $0x714] ss:$8 sps:$4 sm:$0xff]   ;;  %v7405_v58 = vcombine.high %v25649_v12, %v25649_v12  ;;  %v21246_v12 = vld [vmem:[%s28225_s3 + $0x724] ss:$8 sps:$4 sm:$0xff]  }
 0x33f   :  { %7216 = vmatprep.subr.bf16.mxu1 %v21183_v55 }
 0x340   :  { %v22828_v19 = vpop.eup %22827 }
 0x341   :  { %v22830_v20 = vpop.eup %22829  ;;  %v5296_v15 = vadd.f32 1.0, %v22828_v19  ;;  %7911 = vmatpush1.bf16.msra.mxu0 %v21190_v21  ;;  %v21252_v21 = vld [vmem:[%s28225_s3 + $0x734] ss:$8 sps:$4 sm:$0xff]   ;;  %v21249_v19 = vld [vmem:[%s28225_s3 + $0x9a4] ss:$8 sps:$4 sm:$0xff]  }
 0x342   :  { %7217 = vmatpush1.bf16.msra.mxu1 %v21181_v61  ;;  %v5297_v28 = vadd.f32 1.0, %v22830_v20  ;;  %7912 = vmatprep.subr.bf16.mxu0 %v21198_v11  ;;  %v21237_v61 = vld [vmem:[%s28225_s3 + $0x984] ss:$8 sps:$4 sm:$0xff]   ;;  %v21241_v11 = vld [vmem:[%s28225_s3 + $0x990] ss:$8 sps:$4 sm:$0xff]  }
 0x343   :  { %8680 = vmatprep.subr.bf16.mxu1 %v21189_v2  ;;  %22831 = vrcp.f32 %v5296_v15  ;;  %v21235_v2 = vld [vmem:[%s28225_s3 + $0x980] ss:$8 sps:$4 sm:$0xff]   ;;  %v21258_v20 = vld [vmem:[%s28225_s3 + $0x744] ss:$8 sps:$4 sm:$0xff]  }
 0x344   :  { %22833 = vrcp.f32 %v5297_v28  ;;  %v21247_v28 = vld [vmem:[%s28225_s3 + $0x9a0] ss:$8 sps:$4 sm:$0xff]  }
 0x345   :  { %7219 = vmatmul.mubr.bf16.vlgmr.msra.gmra.mrb[40].mxu1 %v6601_v13  ;;  %7913 = vmatpush1.bf16.msra.mxu0 %v21196_v14  ;;  %v21250_v13 = vld [vmem:[%s28225_s3 + $0x730] ss:$8 sps:$4 sm:$0xff]  }
 0x346   :  { %8681 = vmatpush1.bf16.msra.mxu1 %v21187_v8  ;;  %8712 = vmatprep.mubr.bf16.mxu1 %v25781_v24  ;;  %v21243_v8 = vld [vmem:[%s28225_s3 + $0x994] ss:$8 sps:$4 sm:$0xff]  }
 0x347   :  { %8682 = vmatprep.subr.bf16.mxu1 %v21195_v57  ;;  %7914 = vmatprep.subr.bf16.mxu0 %v21204_v10  ;;  %v21255_v10 = vld [vmem:[%s28225_s3 + $0x9b4] ss:$8 sps:$4 sm:$0xff]  }
 0x349   :  { %7915 = vmatpush1.bf16.msra.mxu0 %v21202_v25  ;;  %v21264_v25 = vld [vmem:[%s28225_s3 + $0x754] ss:$8 sps:$4 sm:$0xff]  }
 0x34a   :  { %8683 = vmatpush1.bf16.msra.mxu1 %v21193_v18  ;;  %7916 = vmatprep.subr.bf16.mxu0 %v21210_v6  ;;  %v21253_v6 = vld [vmem:[%s28225_s3 + $0x9b0] ss:$8 sps:$4 sm:$0xff]  }
 0x34b   :  { %8684 = vmatprep.subr.bf16.mxu1 %v21201_v0  ;;  %v21256_v0 = vld [vmem:[%s28225_s3 + $0x740] ss:$8 sps:$4 sm:$0xff]  }
 0x34d   :  { %v22832_v16 = vpop.eup %22831  ;;  %7917 = vmatpush1.bf16.msra.mxu0 %v21208_v4  ;;  %v21270_v4 = vld [vmem:[%s28225_s3 + $0x764] ss:$8 sps:$4 sm:$0xff]  }
 0x34e   :  { %8685 = vmatpush1.bf16.msra.mxu1 %v21199_v26  ;;  %v22834_v31 = vpop.eup %22833  ;;  %v5300_v27 = vmul.f32 %v22832_v16, %v25719_v32  ;;  %7918 = vmatprep.subr.bf16.mxu0 %v21216_v29  ;;  %v21217_v32 = vld [vmem:[%s28225_s3 + $0x950] ss:$8 sps:$4 sm:$0xff]   ;;  %v21261_v26 = vld [vmem:[%s28225_s3 + $0x9c4] ss:$8 sps:$4 sm:$0xff]   ;;  %v21259_v29 = vld [vmem:[%s28225_s3 + $0x9c0] ss:$8 sps:$4 sm:$0xff]  }
 0x34f   :  { %8686 = vmatprep.subr.bf16.mxu1 %v21207_v22  ;;  %v5301_v63 = vmul.f32 %v22834_v31, %v25722_v36  ;;  %v21262_v22 = vld [vmem:[%s28225_s3 + $0x750] ss:$8 sps:$4 sm:$0xff]   ;;  %v21268_v16 = vld [vmem:[%s28225_s3 + $0x760] ss:$8 sps:$4 sm:$0xff]  }
 0x351   :  { %v17567_v40 = vpack.c.bf16 %v5301_v63, %v5300_v27  ;;  %7919 = vmatpush1.bf16.msra.mxu0 %v21214_v37  ;;  %v21276_v37 = vld [vmem:[%s28225_s3 + $0x774] ss:$8 sps:$4 sm:$0xff]   ;;  %v21273_v63 = vld [vmem:[%s28225_s3 + $0x9e4] ss:$8 sps:$4 sm:$0xff]  }
 0x352   :  { %8687 = vmatpush1.bf16.msra.mxu1 %v21205_v59  ;;  %7920 = vmatprep.subr.bf16.mxu0 %v21222_v39  ;;  %v21267_v59 = vld [vmem:[%s28225_s3 + $0x9d4] ss:$8 sps:$4 sm:$0xff]  }
 0x353   :  { %8688 = vmatprep.subr.bf16.mxu1 %v21213_v33  ;;  %v5313_v42 = vrot.slane %v17567_v40, %v23077_v7  ;;  %v21265_v33 = vld [vmem:[%s28225_s3 + $0x9d0] ss:$8 sps:$4 sm:$0xff]  }
 0x354   :  { %v21274_v40 = vld [vmem:[%s28225_s3 + $0x770] ss:$8 sps:$4 sm:$0xff]  }
 0x355   :  { %17568 = vst.sshfl [vmem:[#allocation2 + $0x1c] sm:$0x5 pattern:$0x73625140] %v5313_v42  ;;  %7921 = vmatpush1.bf16.msra.mxu0 %v21220_v1  ;;  %v21282_v1 = vld [vmem:[%s28225_s3 + $0x784] ss:$8 sps:$4 sm:$0xff]  }
 0x356   :  { %8689 = vmatpush1.bf16.msra.mxu1 %v21211_v34  ;;  %7922 = vmatprep.subr.bf16.mxu0 %v21228_v30  ;;  %v21279_v42 = vld [vmem:[%s28225_s3 + $0x9f4] ss:$8 sps:$4 sm:$0xff]  }
 0x357   :  { %8690 = vmatprep.subr.bf16.mxu1 %v21219_v43  ;;  %v21271_v43 = vld [vmem:[%s28225_s3 + $0x9e0] ss:$8 sps:$4 sm:$0xff]  }
 0x358   :  { %v5633_v36 = vpop.f32.mrb[36].mxu1 }
 0x359   :  { %v25851_v35 = vadd.f32 %v5633_v36, %v23938_v3  ;;  %v5635_v47 = vpop.f32.mrb[37].mxu1  ;;  %v21231_v3 = vld [vmem:[%s28225_s3 + $0x974] ss:$8 sps:$4 sm:$0xff]   ;;  %7923 = vmatpush1.bf16.msra.mxu0 %v21226_v45  ;;  %v21280_v36 = vld [vmem:[%s28225_s3 + $0x780] ss:$8 sps:$4 sm:$0xff]  }
 0x35a   :  { %v25857_v48 = vadd.f32 %v5635_v47, %v23941_v5  ;;  %8691 = vmatpush1.bf16.msra.mxu1 %v21217_v32  ;;  %v5637_v49 = vpop.f32.mrb[38].mxu1  ;;  %v21232_v5 = vld [vmem:[%s28225_s3 + $0x700] ss:$8 sps:$4 sm:$0xff]   ;;  %7933 = vmatprep.subr.bf16.mxu0 %v21234_v17  ;;  %v21288_v45 = vld [vmem:[%s28225_s3 + $0x794] ss:$8 sps:$4 sm:$0xff]  }
 0x35b   :  { %v5640_v50 = vsub.f32 0.0, %v25851_v35  ;;  %v5638_v46 = vpop.f32.mrb[39].mxu1  ;;  %8692 = vmatprep.subr.bf16.mxu1 %v21225_v44  ;;  %v21277_v44 = vld [vmem:[%s28225_s3 + $0x9f0] ss:$8 sps:$4 sm:$0xff]   ;;  %v21283_v47 = vld [vmem:[%s28225_s3 + $0xa00] ss:$8 sps:$4 sm:$0xff]   ;;  %v25996_v49 = vrot.slane %v25744_v23, %v23077_v7 }
 0x35c   :  { %v5641_v51 = vsub.f32 0.0, %v25857_v48  ;;  %7925 = vmatmul.mubr.bf16.vlgmr.msra.gmra.mrb[36].mxu0 %v25872_v53  ;;  %v21286_v17 = vld [vmem:[%s28225_s3 + $0x790] ss:$8 sps:$4 sm:$0xff]   ;;  %v21300_v46 = vld [vmem:[%s28225_s3 + $0x7b4] ss:$8 sps:$4 sm:$0xff]  }
 0x35d   :  { %v5642_v52 = vmul.f32 1.442695, %v5640_v50  ;;  %7934 = vmatpush1.bf16.msra.mxu0 %v21232_v5  ;;  %7965 = vmatprep.mubr.bf16.mxu0 %v7405_v58  ;;  %v21292_v50 = vld [vmem:[%s28225_s3 + $0x7a0] ss:$8 sps:$4 sm:$0xff]   ;;  %v21289_v23 = vld [vmem:[%s28225_s3 + $0xa10] ss:$8 sps:$4 sm:$0xff]  }
 0x35e   :  { %v5644_v55 = vmul.f32 1.442695, %v5641_v51  ;;  %8693 = vmatpush1.bf16.msra.mxu1 %v21223_v38  ;;  %7935 = vmatprep.subr.bf16.mxu0 %v21240_v54  ;;  %v21291_v38 = vld [vmem:[%s28225_s3 + $0xa14] ss:$8 sps:$4 sm:$0xff]   ;;  %v21295_v51 = vld [vmem:[%s28225_s3 + $0xa20] ss:$8 sps:$4 sm:$0xff]  }
 0x35f   :  { %22835 = vpow2.f32 %v5642_v52  ;;  %8694 = vmatprep.subr.bf16.mxu1 %v21231_v3  ;;  %v8193_v3 = vcombine.high %v25781_v24, %v25781_v24  ;;  %v21297_v24 = vld [vmem:[%s28225_s3 + $0xa24] ss:$8 sps:$4 sm:$0xff]   ;;  %v21298_v5 = vld [vmem:[%s28225_s3 + $0x7b0] ss:$8 sps:$4 sm:$0xff]   ;;  %v21303_v54 = vld [vmem:[%s28225_s3 + $0xa34] ss:$8 sps:$4 sm:$0xff]  }
 0x360   :  { %22837 = vpow2.f32 %v5644_v55  ;;  %v21306_v52 = vld [vmem:[%s28225_s3 + $0x7c4] ss:$8 sps:$4 sm:$0xff]   ;;  %v21301_v55 = vld [vmem:[%s28225_s3 + $0xa30] ss:$8 sps:$4 sm:$0xff]   ;;  %v21312_v58 = vld [vmem:[%s28225_s3 + $0x7d4] ss:$8 sps:$4 sm:$0xff]  }
 0x361   :  { %7936 = vmatpush1.bf16.msra.mxu0 %v21238_v41  ;;  %v21307_v41 = vld [vmem:[%s28225_s3 + $0xa40] ss:$8 sps:$4 sm:$0xff]  }
 0x362   :  { %8695 = vmatpush1.bf16.msra.mxu1 %v21229_v56  ;;  %7937 = vmatprep.subr.bf16.mxu0 %v21246_v12  ;;  %v21304_v56 = vld [vmem:[%s28225_s3 + $0x7c0] ss:$8 sps:$4 sm:$0xff]   ;;  %v21310_v12 = vld [vmem:[%s28225_s3 + $0x7d0] ss:$8 sps:$4 sm:$0xff]  }
 0x363   :  { %8696 = vmatprep.subr.bf16.mxu1 %v21237_v61  ;;  %v21309_v61 = vld [vmem:[%s28225_s3 + $0xa44] ss:$8 sps:$4 sm:$0xff]  }
 0x365   :  { %7938 = vmatpush1.bf16.msra.mxu0 %v21244_v9 }
 0x366   :  { %8697 = vmatpush1.bf16.msra.mxu1 %v21235_v2  ;;  %7939 = vmatprep.subr.bf16.mxu0 %v21252_v21  ;;  %v21318_v2 = vld [vmem:[%s28225_s3 + $0x7e4] ss:$8 sps:$4 sm:$0xff]   ;;  %v21315_v21 = vld [vmem:[%s28225_s3 + $0xa54] ss:$8 sps:$4 sm:$0xff]  }
 0x367   :  { %8698 = vmatprep.subr.bf16.mxu1 %v21243_v8  ;;  %v22953_v8 = vld [vmem:[#allocation2 + $0x6] sm:$0x3f] }
 0x368   :  { %v7359_v9 = vcombine.high %v22953_v8, %v22953_v8 }
 0x369   :  { %v22836_v57 = vpop.eup %22835  ;;  %7940 = vmatpush1.bf16.msra.mxu0 %v21250_v13  ;;  %v21324_v13 = vld [vmem:[%s28225_s3 + $0x7f4] ss:$8 sps:$4 sm:$0xff]  }
 0x36a   :  { %v22838_v15 = vpop.eup %22837  ;;  %v5646_v14 = vadd.f32 1.0, %v22836_v57  ;;  %8699 = vmatpush1.bf16.msra.mxu1 %v21241_v11  ;;  %7941 = vmatprep.subr.bf16.mxu0 %v21258_v20  ;;  %v21313_v11 = vld [vmem:[%s28225_s3 + $0xa50] ss:$8 sps:$4 sm:$0xff]   ;;  %v26062_v57 = vrot.slane %v7359_v9, %v23077_v7  ;;  %v21321_v20 = vld [vmem:[%s28225_s3 + $0xa64] ss:$8 sps:$4 sm:$0xff]  }
 0x36b   :  { %v5647_v18 = vadd.f32 1.0, %v22838_v15  ;;  %8700 = vmatprep.subr.bf16.mxu1 %v21249_v19  ;;  %v21316_v19 = vld [vmem:[%s28225_s3 + $0x7e0] ss:$8 sps:$4 sm:$0xff]  }
 0x36c   :  { %22839 = vrcp.f32 %v5646_v14  ;;  %v21319_v15 = vld [vmem:[%s28225_s3 + $0xa60] ss:$8 sps:$4 sm:$0xff]   ;;  %v21322_v14 = vld [vmem:[%s28225_s3 + $0x7f0] ss:$8 sps:$4 sm:$0xff]  }
 0x36d   :  { %22841 = vrcp.f32 %v5647_v18  ;;  %7942 = vmatpush1.bf16.msra.mxu0 %v21256_v0  ;;  %v21327_v18 = vld [vmem:[%s28225_s3 + $0xa74] ss:$8 sps:$4 sm:$0xff]   ;;  %v21325_v0 = vld [vmem:[%s28225_s3 + $0xa70] ss:$8 sps:$4 sm:$0xff]   ;;  %v21388_v9 = vld [vmem:[%s28225_s3 + $0x8a0] ss:$8 sps:$4 sm:$0xff]  }
 0x36e   :  { %8701 = vmatpush1.bf16.msra.mxu1 %v21247_v28  ;;  %7943 = vmatprep.subr.bf16.mxu0 %v21264_v25  ;;  %v21330_v28 = vld [vmem:[%s28225_s3 + $0x804] ss:$8 sps:$4 sm:$0xff]   ;;  %v21328_v25 = vld [vmem:[%s28225_s3 + $0x800] ss:$8 sps:$4 sm:$0xff]  }
 0x36f   :  { %8702 = vmatprep.subr.bf16.mxu1 %v21255_v10  ;;  %v7375_v10 = vcombine.high %v26062_v57, %v26062_v57 }
 0x371   :  { %7944 = vmatpush1.bf16.msra.mxu0 %v21262_v22  ;;  %v7403_v22 = vrot.slane %v7375_v10, %v23077_v7  ;;  %v21397_v10 = vld [vmem:[%s28225_s3 + $0xb30] ss:$8 sps:$4 sm:$0xff]  }
 0x372   :  { %8703 = vmatpush1.bf16.msra.mxu1 %v21253_v6  ;;  %7945 = vmatprep.subr.bf16.mxu0 %v21270_v4  ;;  %v7404_v6 = vcombine.high %v25872_v53, %v25872_v53  ;;  %v21333_v4 = vld [vmem:[%s28225_s3 + $0xa84] ss:$8 sps:$4 sm:$0xff]   ;;  %v21331_v53 = vld [vmem:[%s28225_s3 + $0xa80] ss:$8 sps:$4 sm:$0xff]  }
 0x373   :  { %8704 = vmatprep.subr.bf16.mxu1 %v21261_v26  ;;  %v21336_v26 = vld [vmem:[%s28225_s3 + $0x814] ss:$8 sps:$4 sm:$0xff]  }
 0x375   :  { %7946 = vmatpush1.bf16.msra.mxu0 %v21268_v16  ;;  %v21337_v16 = vld [vmem:[%s28225_s3 + $0xa90] ss:$8 sps:$4 sm:$0xff]  }
 0x376   :  { %v22840_v31 = vpop.eup %22839  ;;  %8705 = vmatpush1.bf16.msra.mxu1 %v21259_v29  ;;  %7947 = vmatprep.subr.bf16.mxu0 %v21276_v37  ;;  %v21334_v29 = vld [vmem:[%s28225_s3 + $0x810] ss:$8 sps:$4 sm:$0xff]   ;;  %v21340_v37 = vld [vmem:[%s28225_s3 + $0x820] ss:$8 sps:$4 sm:$0xff]  }
 0x377   :  { %v22842_v27 = vpop.eup %22841  ;;  %v5650_v39 = vmul.f32 %v22840_v31, %v25851_v35  ;;  %8706 = vmatprep.subr.bf16.mxu1 %v21267_v59  ;;  %v21285_v35 = vld [vmem:[%s28225_s3 + $0xa04] ss:$8 sps:$4 sm:$0xff]   ;;  %v21348_v31 = vld [vmem:[%s28225_s3 + $0x834] ss:$8 sps:$4 sm:$0xff]  }
 0x378   :  { %v5651_v34 = vmul.f32 %v22842_v27, %v25857_v48  ;;  %v21294_v48 = vld [vmem:[%s28225_s3 + $0x7a4] ss:$8 sps:$4 sm:$0xff]  }
 0x379   :  { %7948 = vmatpush1.bf16.msra.mxu0 %v21274_v40  ;;  %v21342_v59 = vld [vmem:[%s28225_s3 + $0x824] ss:$8 sps:$4 sm:$0xff]   ;;  %v21349_v40 = vld [vmem:[%s28225_s3 + $0xab0] ss:$8 sps:$4 sm:$0xff]  }
 0x37a   :  { %v17639_v30 = vpack.c.bf16 %v5651_v34, %v5650_v39  ;;  %8707 = vmatpush1.bf16.msra.mxu1 %v21265_v33  ;;  %7949 = vmatprep.subr.bf16.mxu0 %v21282_v1  ;;  %v21339_v33 = vld [vmem:[%s28225_s3 + $0xa94] ss:$8 sps:$4 sm:$0xff]   ;;  %v21345_v27 = vld [vmem:[%s28225_s3 + $0xaa4] ss:$8 sps:$4 sm:$0xff]   ;;  %v21343_v39 = vld [vmem:[%s28225_s3 + $0xaa0] ss:$8 sps:$4 sm:$0xff]  }
 0x37b   :  { %8708 = vmatprep.subr.bf16.mxu1 %v21273_v63  ;;  %v21346_v63 = vld [vmem:[%s28225_s3 + $0x830] ss:$8 sps:$4 sm:$0xff]   ;;  %v21354_v34 = vld [vmem:[%s28225_s3 + $0x844] ss:$8 sps:$4 sm:$0xff]   ;;  %v21352_v1 = vld [vmem:[%s28225_s3 + $0x840] ss:$8 sps:$4 sm:$0xff]  }
 0x37c   :  { %v5663_v32 = vrot.slane %v17639_v30, %v23077_v7  ;;  %v21360_v30 = vld [vmem:[%s28225_s3 + $0x854] ss:$8 sps:$4 sm:$0xff]  }
 0x37d   :  { %7950 = vmatpush1.bf16.msra.mxu0 %v21280_v36  ;;  %v21366_v36 = vld [vmem:[%s28225_s3 + $0x864] ss:$8 sps:$4 sm:$0xff]  }
 0x37e   :  { %17640 = vst.sshfl [vmem:[#allocation2 + $0x1e] sm:$0x5 pattern:$0x73625140] %v5663_v32  ;;  %8709 = vmatpush1.bf16.msra.mxu1 %v21271_v43  ;;  %7951 = vmatprep.subr.bf16.mxu0 %v21288_v45  ;;  %v21351_v43 = vld [vmem:[%s28225_s3 + $0xab4] ss:$8 sps:$4 sm:$0xff]  }
 0x37f   :  { %8710 = vmatprep.subr.bf16.mxu1 %v21279_v42  ;;  %v21357_v42 = vld [vmem:[%s28225_s3 + $0xac4] ss:$8 sps:$4 sm:$0xff]   ;;  %v21355_v32 = vld [vmem:[%s28225_s3 + $0xac0] ss:$8 sps:$4 sm:$0xff]   ;;  %v21363_v45 = vld [vmem:[%s28225_s3 + $0xad4] ss:$8 sps:$4 sm:$0xff]  }
 0x381   :  { %7952 = vmatpush1.bf16.msra.mxu0 %v21286_v17  ;;  %v21372_v17 = vld [vmem:[%s28225_s3 + $0x874] ss:$8 sps:$4 sm:$0xff]  }
 0x382   :  { %8711 = vmatpush1.bf16.msra.mxu1 %v21277_v44  ;;  %7953 = vmatprep.subr.bf16.mxu0 %v21294_v48  ;;  %v21358_v44 = vld [vmem:[%s28225_s3 + $0x850] ss:$8 sps:$4 sm:$0xff]   ;;  %v21369_v48 = vld [vmem:[%s28225_s3 + $0xae4] ss:$8 sps:$4 sm:$0xff]  }
 0x383   :  { %8721 = vmatprep.subr.bf16.mxu1 %v21285_v35  ;;  %v21361_v35 = vld [vmem:[%s28225_s3 + $0xad0] ss:$8 sps:$4 sm:$0xff]  }
 0x385   :  { %8713 = vmatmul.mubr.bf16.vlgmr.msra.gmra.mrb[44].mxu1 %v25996_v49  ;;  %7954 = vmatpush1.bf16.msra.mxu0 %v21292_v50  ;;  %v22954_v50 = vld [vmem:[#allocation2 + $0xa] sm:$0x3f] }
 0x386   :  { %8722 = vmatpush1.bf16.msra.mxu1 %v21283_v47  ;;  %8753 = vmatprep.mubr.bf16.mxu1 %v8193_v3  ;;  %v21364_v47 = vld [vmem:[%s28225_s3 + $0x860] ss:$8 sps:$4 sm:$0xff]   ;;  %v21370_v3 = vld [vmem:[%s28225_s3 + $0x870] ss:$8 sps:$4 sm:$0xff]  }
 0x387   :  { %8723 = vmatprep.subr.bf16.mxu1 %v21291_v38  ;;  %7955 = vmatprep.subr.bf16.mxu0 %v21300_v46  ;;  %v21367_v38 = vld [vmem:[%s28225_s3 + $0xae0] ss:$8 sps:$4 sm:$0xff]   ;;  %v21378_v46 = vld [vmem:[%s28225_s3 + $0x884] ss:$8 sps:$4 sm:$0xff]  }
 0x389   :  { %7956 = vmatpush1.bf16.msra.mxu0 %v21298_v5 }
 0x38a   :  { %8724 = vmatpush1.bf16.msra.mxu1 %v21289_v23  ;;  %7957 = vmatprep.subr.bf16.mxu0 %v21306_v52  ;;  %v8147_v23 = vcombine.high %v22954_v50, %v22954_v50  ;;  %v21384_v52 = vld [vmem:[%s28225_s3 + $0x894] ss:$8 sps:$4 sm:$0xff]   ;;  %v21448_v50 = vld [vmem:[%s28225_s3 + $0xc40] ss:$8 sps:$4 sm:$0xff]  }
 0x38b   :  { %8725 = vmatprep.subr.bf16.mxu1 %v21297_v24  ;;  %v21375_v24 = vld [vmem:[%s28225_s3 + $0xaf4] ss:$8 sps:$4 sm:$0xff]  }
 0x38c   :  { %v26184_v5 = vrot.slane %v8147_v23, %v23077_v7  ;;  %v5673_v23 = vld [vmem:[%s28226_s4] sm:$0x3] }
 0x38d   :  { %7958 = vmatpush1.bf16.msra.mxu0 %v21304_v56  ;;  %v21379_v56 = vld [vmem:[%s28225_s3 + $0xb00] ss:$8 sps:$4 sm:$0xff]  }
 0x38e   :  { %8726 = vmatpush1.bf16.msra.mxu1 %v21295_v51  ;;  %7959 = vmatprep.subr.bf16.mxu0 %v21312_v58  ;;  %v21376_v51 = vld [vmem:[%s28225_s3 + $0x880] ss:$8 sps:$4 sm:$0xff]   ;;  %v8163_v58 = vcombine.high %v26184_v5, %v26184_v5 }
 0x38f   :  { %8727 = vmatprep.subr.bf16.mxu1 %v21303_v54  ;;  %v21373_v54 = vld [vmem:[%s28225_s3 + $0xaf0] ss:$8 sps:$4 sm:$0xff]  }
 0x390   :  { %v8191_v8 = vrot.slane %v8163_v58, %v23077_v7  ;;  %v21451_v58 = vld [vmem:[%s28225_s3 + $0xbc0] ss:$8 sps:$4 sm:$0xff]  }
 0x391   :  { %7960 = vmatpush1.bf16.msra.mxu0 %v21310_v12  ;;  %v8192_v12 = vcombine.high %v25996_v49, %v25996_v49  ;;  %v21385_v49 = vld [vmem:[%s28225_s3 + $0xb10] ss:$8 sps:$4 sm:$0xff]  }
 0x392   :  { %8728 = vmatpush1.bf16.msra.mxu1 %v21301_v55  ;;  %7961 = vmatprep.subr.bf16.mxu0 %v21318_v2  ;;  %v21381_v55 = vld [vmem:[%s28225_s3 + $0xb04] ss:$8 sps:$4 sm:$0xff]   ;;  %v21387_v2 = vld [vmem:[%s28225_s3 + $0xb14] ss:$8 sps:$4 sm:$0xff]  }
 0x393   :  { %8729 = vmatprep.subr.bf16.mxu1 %v21309_v61  ;;  %v21382_v61 = vld [vmem:[%s28225_s3 + $0x890] ss:$8 sps:$4 sm:$0xff]  }
 0x395   :  { %7962 = vmatpush1.bf16.msra.mxu0 %v21316_v19  ;;  %v21394_v19 = vld [vmem:[%s28225_s3 + $0x8b0] ss:$8 sps:$4 sm:$0xff]  }
 0x396   :  { %8730 = vmatpush1.bf16.msra.mxu1 %v21307_v41  ;;  %7963 = vmatprep.subr.bf16.mxu0 %v21324_v13  ;;  %v21390_v41 = vld [vmem:[%s28225_s3 + $0x8a4] ss:$8 sps:$4 sm:$0xff]  }
 0x397   :  { %8731 = vmatprep.subr.bf16.mxu1 %v21315_v21  ;;  %v21396_v21 = vld [vmem:[%s28225_s3 + $0x8b4] ss:$8 sps:$4 sm:$0xff]   ;;  %v21402_v13 = vld [vmem:[%s28225_s3 + $0x8c4] ss:$8 sps:$4 sm:$0xff]  }
 0x399   :  { %7964 = vmatpush1.bf16.msra.mxu0 %v21322_v14  ;;  %v21400_v14 = vld [vmem:[%s28225_s3 + $0x8c0] ss:$8 sps:$4 sm:$0xff]  }
 0x39a   :  { %8732 = vmatpush1.bf16.msra.mxu1 %v21313_v11  ;;  %7974 = vmatprep.subr.bf16.mxu0 %v21330_v28  ;;  %v21393_v11 = vld [vmem:[%s28225_s3 + $0xb24] ss:$8 sps:$4 sm:$0xff]   ;;  %v21408_v28 = vld [vmem:[%s28225_s3 + $0x8d4] ss:$8 sps:$4 sm:$0xff]  }
 0x39b   :  { %8733 = vmatprep.subr.bf16.mxu1 %v21321_v20  ;;  %v21391_v20 = vld [vmem:[%s28225_s3 + $0xb20] ss:$8 sps:$4 sm:$0xff]  }
 0x39c   :  { %7966 = vmatmul.mubr.bf16.vlgmr.msra.gmra.mrb[36].mxu0 %v7404_v6  ;;  %v26254_v6 = vld [vmem:[#allocation2 + $0xe] sm:$0x3f] }
 0x39d   :  { %7975 = vmatpush1.bf16.msra.mxu0 %v21328_v25  ;;  %8006 = vmatprep.mubr.bf16.mxu0 %v7403_v22  ;;  %v21414_v25 = vld [vmem:[%s28225_s3 + $0x8e4] ss:$8 sps:$4 sm:$0xff]   ;;  %v21411_v22 = vld [vmem:[%s28225_s3 + $0xb54] ss:$8 sps:$4 sm:$0xff]  }
 0x39e   :  { %8734 = vmatpush1.bf16.msra.mxu1 %v21319_v15  ;;  %7976 = vmatprep.subr.bf16.mxu0 %v21336_v26  ;;  %v21399_v15 = vld [vmem:[%s28225_s3 + $0xb34] ss:$8 sps:$4 sm:$0xff]   ;;  %v21403_v26 = vld [vmem:[%s28225_s3 + $0xb40] ss:$8 sps:$4 sm:$0xff]  }
 0x39f   :  { %8735 = vmatprep.subr.bf16.mxu1 %v21327_v18  ;;  %v21405_v18 = vld [vmem:[%s28225_s3 + $0xb44] ss:$8 sps:$4 sm:$0xff]  }
 0x3a1   :  { %7977 = vmatpush1.bf16.msra.mxu0 %v21334_v29  ;;  %v21409_v29 = vld [vmem:[%s28225_s3 + $0xb50] ss:$8 sps:$4 sm:$0xff]  }
 0x3a2   :  { %8736 = vmatpush1.bf16.msra.mxu1 %v21325_v0  ;;  %7978 = vmatprep.subr.bf16.mxu0 %v21342_v59  ;;  %v21406_v0 = vld [vmem:[%s28225_s3 + $0x8d0] ss:$8 sps:$4 sm:$0xff]   ;;  %v21417_v59 = vld [vmem:[%s28225_s3 + $0xb64] ss:$8 sps:$4 sm:$0xff]  }
 0x3a3   :  { %8737 = vmatprep.subr.bf16.mxu1 %v21333_v4  ;;  %v21412_v4 = vld [vmem:[%s28225_s3 + $0x8e0] ss:$8 sps:$4 sm:$0xff]  }
 0x3a5   :  { %7979 = vmatpush1.bf16.msra.mxu0 %v21340_v37  ;;  %v21426_v37 = vld [vmem:[%s28225_s3 + $0xc04] ss:$8 sps:$4 sm:$0xff]  }
 0x3a6   :  { %8738 = vmatpush1.bf16.msra.mxu1 %v21331_v53  ;;  %7980 = vmatprep.subr.bf16.mxu0 %v21348_v31  ;;  %v21420_v53 = vld [vmem:[%s28225_s3 + $0x8f4] ss:$8 sps:$4 sm:$0xff]   ;;  %v21415_v31 = vld [vmem:[%s28225_s3 + $0xb60] ss:$8 sps:$4 sm:$0xff]  }
 0x3a7   :  { %8739 = vmatprep.subr.bf16.mxu1 %v21339_v33  ;;  %v26276_v33 = vrot.slane %v26254_v6, %v23077_v7 }
 0x3a9   :  { %7981 = vmatpush1.bf16.msra.mxu0 %v21346_v63  ;;  %v21424_v63 = vld [vmem:[%s28225_s3 + $0xc00] ss:$8 sps:$4 sm:$0xff]  }
 0x3aa   :  { %8740 = vmatpush1.bf16.msra.mxu1 %v21337_v16  ;;  %7982 = vmatprep.subr.bf16.mxu0 %v21354_v34  ;;  %v21418_v16 = vld [vmem:[%s28225_s3 + $0x8f0] ss:$8 sps:$4 sm:$0xff]   ;;  %v7389_v34 = vrot.slane %v26062_v57, %v23077_v7 }
 0x3ab   :  { %8741 = vmatprep.subr.bf16.mxu1 %v21345_v27  ;;  %v21423_v27 = vld [vmem:[%s28225_s3 + $0xb74] ss:$8 sps:$4 sm:$0xff]   ;;  %v21430_v57 = vld [vmem:[%s28225_s3 + $0xc10] ss:$8 sps:$4 sm:$0xff]  }
 0x3ad   :  { %7983 = vmatpush1.bf16.msra.mxu0 %v21352_v1 }
 0x3ae   :  { %8742 = vmatpush1.bf16.msra.mxu1 %v21343_v39  ;;  %7984 = vmatprep.subr.bf16.mxu0 %v21360_v30  ;;  %v8950_v39 = vcombine.high %v26276_v33, %v26276_v33  ;;  %v21429_v30 = vld [vmem:[%s28225_s3 + $0xb84] ss:$8 sps:$4 sm:$0xff]  }
 0x3af   :  { %8743 = vmatprep.subr.bf16.mxu1 %v21351_v43  ;;  %v21432_v43 = vld [vmem:[%s28225_s3 + $0xc14] ss:$8 sps:$4 sm:$0xff]  }
 0x3b0   :  { %v26304_v1 = vrot.slane %v8950_v39, %v23077_v7 }
 0x3b1   :  { %7985 = vmatpush1.bf16.msra.mxu0 %v21358_v44  ;;  %v21435_v44 = vld [vmem:[%s28225_s3 + $0xb94] ss:$8 sps:$4 sm:$0xff]  }
 0x3b2   :  { %8744 = vmatpush1.bf16.msra.mxu1 %v21349_v40  ;;  %7986 = vmatprep.subr.bf16.mxu0 %v21366_v36  ;;  %v21421_v40 = vld [vmem:[%s28225_s3 + $0xb70] ss:$8 sps:$4 sm:$0xff]   ;;  %v21436_v36 = vld [vmem:[%s28225_s3 + $0xc20] ss:$8 sps:$4 sm:$0xff]  }
 0x3b3   :  { %8745 = vmatprep.subr.bf16.mxu1 %v21357_v42  ;;  %v21438_v42 = vld [vmem:[%s28225_s3 + $0xc24] ss:$8 sps:$4 sm:$0xff]  }
 0x3b5   :  { %7987 = vmatpush1.bf16.msra.mxu0 %v21364_v47  ;;  %v21441_v47 = vld [vmem:[%s28225_s3 + $0xba4] ss:$8 sps:$4 sm:$0xff]  }
 0x3b6   :  { %8746 = vmatpush1.bf16.msra.mxu1 %v21355_v32  ;;  %7988 = vmatprep.subr.bf16.mxu0 %v21372_v17  ;;  %v21427_v32 = vld [vmem:[%s28225_s3 + $0xb80] ss:$8 sps:$4 sm:$0xff]  }
 0x3b7   :  { %8747 = vmatprep.subr.bf16.mxu1 %v21363_v45  ;;  %v21444_v45 = vld [vmem:[%s28225_s3 + $0xc34] ss:$8 sps:$4 sm:$0xff]   ;;  %v21439_v17 = vld [vmem:[%s28225_s3 + $0xba0] ss:$8 sps:$4 sm:$0xff]  }
 0x3b9   :  { %7989 = vmatpush1.bf16.msra.mxu0 %v21370_v3  ;;  %v21447_v3 = vld [vmem:[%s28225_s3 + $0xbb4] ss:$8 sps:$4 sm:$0xff]  }
 0x3ba   :  { %8748 = vmatpush1.bf16.msra.mxu1 %v21361_v35  ;;  %7990 = vmatprep.subr.bf16.mxu0 %v21378_v46  ;;  %v21433_v35 = vld [vmem:[%s28225_s3 + $0xb90] ss:$8 sps:$4 sm:$0xff]   ;;  %v21456_v46 = vld [vmem:[%s28225_s3 + $0xc54] ss:$8 sps:$4 sm:$0xff]  }
 0x3bb   :  { %8749 = vmatprep.subr.bf16.mxu1 %v21369_v48  ;;  %v21442_v48 = vld [vmem:[%s28225_s3 + $0xc30] ss:$8 sps:$4 sm:$0xff]  }
 0x3bd   :  { %7991 = vmatpush1.bf16.msra.mxu0 %v21376_v51  ;;  %v21453_v51 = vld [vmem:[%s28225_s3 + $0xbc4] ss:$8 sps:$4 sm:$0xff]  }
 0x3be   :  { %8750 = vmatpush1.bf16.msra.mxu1 %v21367_v38  ;;  %7992 = vmatprep.subr.bf16.mxu0 %v21384_v52  ;;  %v21450_v38 = vld [vmem:[%s28225_s3 + $0xc44] ss:$8 sps:$4 sm:$0xff]   ;;  %v26362_v52 = vrot.slane %v5673_v23, %v23922_v60 }
 0x3bf   :  { %8751 = vmatprep.subr.bf16.mxu1 %v21375_v24  ;;  %v21445_v24 = vld [vmem:[%s28225_s3 + $0xbb0] ss:$8 sps:$4 sm:$0xff]  }
 0x3c1   :  { %7993 = vmatpush1.bf16.msra.mxu0 %v21382_v61 }
 0x3c2   :  { %8752 = vmatpush1.bf16.msra.mxu1 %v21373_v54  ;;  %7994 = vmatprep.subr.bf16.mxu0 %v21390_v41  ;;  %v26365_v54 = vrot.slane %v5673_v23, %v23928_v62  ;;  %v21502_v23 = vld [vmem:[%s28225_s3 + $0xcd0] ss:$8 sps:$4 sm:$0xff]  }
 0x3c3   :  { %8762 = vmatprep.subr.bf16.mxu1 %v21381_v55  ;;  %v21454_v55 = vld [vmem:[%s28225_s3 + $0xc50] ss:$8 sps:$4 sm:$0xff]  }
 0x3c5   :  { %8754 = vmatmul.mubr.bf16.vlgmr.msra.gmra.mrb[44].mxu1 %v8192_v12  ;;  %7995 = vmatpush1.bf16.msra.mxu0 %v21388_v9 }
 0x3c6   :  { %8763 = vmatpush1.bf16.msra.mxu1 %v21379_v56  ;;  %8794 = vmatprep.mubr.bf16.mxu1 %v8191_v8  ;;  %v21462_v56 = vld [vmem:[%s28225_s3 + $0xc64] ss:$8 sps:$4 sm:$0xff]  }
 0x3c7   :  { %8764 = vmatprep.subr.bf16.mxu1 %v21387_v2  ;;  %7996 = vmatprep.subr.bf16.mxu0 %v21396_v21  ;;  %v21459_v2 = vld [vmem:[%s28225_s3 + $0xbd4] ss:$8 sps:$4 sm:$0xff]   ;;  %v21460_v21 = vld [vmem:[%s28225_s3 + $0xc60] ss:$8 sps:$4 sm:$0xff]  }
 0x3c9   :  { %7997 = vmatpush1.bf16.msra.mxu0 %v21394_v19  ;;  %v21468_v19 = vld [vmem:[%s28225_s3 + $0xc74] ss:$8 sps:$4 sm:$0xff]  }
 0x3ca   :  { %8765 = vmatpush1.bf16.msra.mxu1 %v21385_v49  ;;  %7998 = vmatprep.subr.bf16.mxu0 %v21402_v13 }
 0x3cb   :  { %8766 = vmatprep.subr.bf16.mxu1 %v21393_v11 }
 0x3cd   :  { %7999 = vmatpush1.bf16.msra.mxu0 %v21400_v14  ;;  %v21465_v14 = vld [vmem:[%s28225_s3 + $0xbe4] ss:$8 sps:$4 sm:$0xff]  }
 0x3ce   :  { %8767 = vmatpush1.bf16.msra.mxu1 %v21391_v20  ;;  %8000 = vmatprep.subr.bf16.mxu0 %v21408_v28  ;;  %v21457_v20 = vld [vmem:[%s28225_s3 + $0xbd0] ss:$8 sps:$4 sm:$0xff]  }
 0x3cf   :  { %8768 = vmatprep.subr.bf16.mxu1 %v21399_v15 }
 0x3d1   :  { %8001 = vmatpush1.bf16.msra.mxu0 %v21406_v0  ;;  %v26405_v0 = vld [vmem:[#allocation2 + $0x12] sm:$0x3f] }
 0x3d2   :  { %8769 = vmatpush1.bf16.msra.mxu1 %v21397_v10  ;;  %8002 = vmatprep.subr.bf16.mxu0 %v21414_v25  ;;  %v21466_v10 = vld [vmem:[%s28225_s3 + $0xc70] ss:$8 sps:$4 sm:$0xff]   ;;  %v21463_v25 = vld [vmem:[%s28225_s3 + $0xbe0] ss:$8 sps:$4 sm:$0xff]  }
 0x3d3   :  { %8770 = vmatprep.subr.bf16.mxu1 %v21405_v18  ;;  %v21474_v18 = vld [vmem:[%s28225_s3 + $0xc84] ss:$8 sps:$4 sm:$0xff]  }
 0x3d5   :  { %8003 = vmatpush1.bf16.msra.mxu0 %v21412_v4  ;;  %v26418_v4 = vrot.slane %v26405_v0, %v23077_v7 }
 0x3d6   :  { %8771 = vmatpush1.bf16.msra.mxu1 %v21403_v26  ;;  %8004 = vmatprep.subr.bf16.mxu0 %v21420_v53  ;;  %v21471_v26 = vld [vmem:[%s28225_s3 + $0xbf4] ss:$8 sps:$4 sm:$0xff]  }
 0x3d7   :  { %8772 = vmatprep.subr.bf16.mxu1 %v21411_v22  ;;  %v21472_v22 = vld [vmem:[%s28225_s3 + $0xc80] ss:$8 sps:$4 sm:$0xff]   ;;  %v21480_v53 = vld [vmem:[%s28225_s3 + $0xc94] ss:$8 sps:$4 sm:$0xff]  }
 0x3d9   :  { %8005 = vmatpush1.bf16.msra.mxu0 %v21418_v16  ;;  %v9738_v16 = vcombine.high %v26418_v4, %v26418_v4 }
 0x3da   :  { %8773 = vmatpush1.bf16.msra.mxu1 %v21409_v29  ;;  %9468 = vmatprep.subr.bf16.mxu0 %v21426_v37  ;;  %v21469_v29 = vld [vmem:[%s28225_s3 + $0xbf0] ss:$8 sps:$4 sm:$0xff]  }
 0x3db   :  { %8774 = vmatprep.subr.bf16.mxu1 %v21417_v59  ;;  %v21477_v59 = vld [vmem:[%s28225_s3 + $0xf04] ss:$8 sps:$4 sm:$0xff]   ;;  %v21478_v37 = vld [vmem:[%s28225_s3 + $0xc90] ss:$8 sps:$4 sm:$0xff]  }
 0x3dc   :  { %8007 = vmatmul.mubr.bf16.vlgmr.msra.gmra.mrb[36].mxu0 %v7389_v34  ;;  %v21483_v34 = vld [vmem:[%s28225_s3 + $0xf14] ss:$8 sps:$4 sm:$0xff]  }
 0x3dd   :  { %9469 = vmatpush1.bf16.msra.mxu0 %v21424_v63  ;;  %9500 = vmatprep.mubr.bf16.mxu0 %v26304_v1  ;;  %v8177_v63 = vrot.slane %v26184_v5, %v23077_v7  ;;  %v21492_v5 = vld [vmem:[%s28225_s3 + $0xcb4] ss:$8 sps:$4 sm:$0xff]  }
 0x3de   :  { %8775 = vmatpush1.bf16.msra.mxu1 %v21415_v31  ;;  %9470 = vmatprep.subr.bf16.mxu0 %v21432_v43  ;;  %v21486_v31 = vld [vmem:[%s28225_s3 + $0xca4] ss:$8 sps:$4 sm:$0xff]  }
 0x3df   :  { %8776 = vmatprep.subr.bf16.mxu1 %v21423_v27  ;;  %v21475_v27 = vld [vmem:[%s28225_s3 + $0xf00] ss:$8 sps:$4 sm:$0xff]  }
 0x3e1   :  { %9471 = vmatpush1.bf16.msra.mxu0 %v21430_v57  ;;  %v21484_v57 = vld [vmem:[%s28225_s3 + $0xca0] ss:$8 sps:$4 sm:$0xff]  }
 0x3e2   :  { %8777 = vmatpush1.bf16.msra.mxu1 %v21421_v40  ;;  %9472 = vmatprep.subr.bf16.mxu0 %v21438_v42 }
 0x3e3   :  { %8778 = vmatprep.subr.bf16.mxu1 %v21429_v30  ;;  %v26446_v30 = vrot.slane %v9738_v16, %v23077_v7  ;;  %v21517_v16 = vld [vmem:[%s28225_s3 + $0xf70] ss:$8 sps:$4 sm:$0xff]  }
 0x3e5   :  { %9473 = vmatpush1.bf16.msra.mxu0 %v21436_v36  ;;  %v21490_v36 = vld [vmem:[%s28225_s3 + $0xcb0] ss:$8 sps:$4 sm:$0xff]  }
 0x3e6   :  { %8779 = vmatpush1.bf16.msra.mxu1 %v21427_v32  ;;  %9474 = vmatprep.subr.bf16.mxu0 %v21444_v45  ;;  %v21481_v32 = vld [vmem:[%s28225_s3 + $0xf10] ss:$8 sps:$4 sm:$0xff]   ;;  %v21498_v45 = vld [vmem:[%s28225_s3 + $0xcc4] ss:$8 sps:$4 sm:$0xff]  }
 0x3e7   :  { %8780 = vmatprep.subr.bf16.mxu1 %v21435_v44  ;;  %v21489_v44 = vld [vmem:[%s28225_s3 + $0xf24] ss:$8 sps:$4 sm:$0xff]  }
 0x3e9   :  { %9475 = vmatpush1.bf16.msra.mxu0 %v21442_v48  ;;  %v21504_v48 = vld [vmem:[%s28225_s3 + $0xcd4] ss:$8 sps:$4 sm:$0xff]  }
 0x3ea   :  { %8781 = vmatpush1.bf16.msra.mxu1 %v21433_v35  ;;  %9476 = vmatprep.subr.bf16.mxu0 %v21450_v38  ;;  %v21487_v35 = vld [vmem:[%s28225_s3 + $0xf20] ss:$8 sps:$4 sm:$0xff]   ;;  %v21493_v38 = vld [vmem:[%s28225_s3 + $0xf30] ss:$8 sps:$4 sm:$0xff]  }
 0x3eb   :  { %8782 = vmatprep.subr.bf16.mxu1 %v21441_v47  ;;  %v21495_v47 = vld [vmem:[%s28225_s3 + $0xf34] ss:$8 sps:$4 sm:$0xff]  }
 0x3ed   :  { %9477 = vmatpush1.bf16.msra.mxu0 %v21448_v50 }
 0x3ee   :  { %8783 = vmatpush1.bf16.msra.mxu1 %v21439_v17  ;;  %9478 = vmatprep.subr.bf16.mxu0 %v21456_v46  ;;  %v21496_v17 = vld [vmem:[%s28225_s3 + $0xcc0] ss:$8 sps:$4 sm:$0xff]  }
 0x3ef   :  { %8784 = vmatprep.subr.bf16.mxu1 %v21447_v3  ;;  %v6432_v61 = vpop.f32.mrb[32].mxu0  ;;  %v21501_v3 = vld [vmem:[%s28225_s3 + $0xf44] ss:$8 sps:$4 sm:$0xff]  }
 0x3f0   :  { %v26377_v41 = vadd.f32 %v6432_v61, %v26362_v52  ;;  %v6434_v12 = vpop.f32.mrb[33].mxu0 }
 0x3f1   :  { %v26383_v8 = vadd.f32 %v6434_v12, %v26365_v54  ;;  %v6436_v9 = vpop.f32.mrb[34].mxu0  ;;  %9479 = vmatpush1.bf16.msra.mxu0 %v21454_v55  ;;  %v21516_v12 = vld [vmem:[%s28225_s3 + $0xcf4] ss:$8 sps:$4 sm:$0xff]  }
 0x3f2   :  { %8785 = vmatpush1.bf16.msra.mxu1 %v21445_v24  ;;  %v6439_v49 = vsub.f32 0.0, %v26377_v41  ;;  %v6437_v11 = vpop.f32.mrb[35].mxu0  ;;  %9480 = vmatprep.subr.bf16.mxu0 %v21462_v56  ;;  %v21499_v56 = vld [vmem:[%s28225_s3 + $0xf40] ss:$8 sps:$4 sm:$0xff]   ;;  %v21513_v9 = vld [vmem:[%s28225_s3 + $0xf64] ss:$8 sps:$4 sm:$0xff]  }
 0x3f3   :  { %8786 = vmatprep.subr.bf16.mxu1 %v21453_v51  ;;  %v6440_v13 = vsub.f32 0.0, %v26383_v8  ;;  %v21510_v51 = vld [vmem:[%s28225_s3 + $0xce4] ss:$8 sps:$4 sm:$0xff]  }
 0x3f4   :  { %v6441_v15 = vmul.f32 1.442695, %v6439_v49  ;;  %v21514_v49 = vld [vmem:[%s28225_s3 + $0xcf0] ss:$8 sps:$4 sm:$0xff]  }
 0x3f5   :  { %v6443_v28 = vmul.f32 1.442695, %v6440_v13  ;;  %9481 = vmatpush1.bf16.msra.mxu0 %v21460_v21  ;;  %v21522_v13 = vld [vmem:[%s28225_s3 + $0xd04] ss:$8 sps:$4 sm:$0xff]  }
 0x3f6   :  { %8787 = vmatpush1.bf16.msra.mxu1 %v21451_v58  ;;  %22843 = vpow2.f32 %v6441_v15  ;;  %9482 = vmatprep.subr.bf16.mxu0 %v21468_v19  ;;  %v21507_v58 = vld [vmem:[%s28225_s3 + $0xf54] ss:$8 sps:$4 sm:$0xff]  }
 0x3f7   :  { %8788 = vmatprep.subr.bf16.mxu1 %v21459_v2  ;;  %22845 = vpow2.f32 %v6443_v28 }
 0x3f9   :  { %9483 = vmatpush1.bf16.msra.mxu0 %v21466_v10 }
 0x3fa   :  { %8789 = vmatpush1.bf16.msra.mxu1 %v21457_v20  ;;  %9484 = vmatprep.subr.bf16.mxu0 %v21474_v18  ;;  %v21519_v18 = vld [vmem:[%s28225_s3 + $0xf74] ss:$8 sps:$4 sm:$0xff]  }
 0x3fb   :  { %8790 = vmatprep.subr.bf16.mxu1 %v21465_v14  ;;  %v21511_v14 = vld [vmem:[%s28225_s3 + $0xf60] ss:$8 sps:$4 sm:$0xff]  }
 0x3fd   :  { %9485 = vmatpush1.bf16.msra.mxu0 %v21472_v22 }
 0x3fe   :  { %8791 = vmatpush1.bf16.msra.mxu1 %v21463_v25  ;;  %9486 = vmatprep.subr.bf16.mxu0 %v21480_v53  ;;  %v26537_v53 = vrot.slane %v26276_v33, %v23077_v7  ;;  %v21525_v33 = vld [vmem:[%s28225_s3 + $0xf84] ss:$8 sps:$4 sm:$0xff]  }
 0x3ff   :  { %8792 = vmatprep.subr.bf16.mxu1 %v21471_v26  ;;  %v21520_v26 = vld [vmem:[%s28225_s3 + $0xd00] ss:$8 sps:$4 sm:$0xff]  }
 0x400   :  { %v22844_v39 = vpop.eup %22843 }
 0x401   :  { %v22846_v43 = vpop.eup %22845  ;;  %v6445_v40 = vadd.f32 1.0, %v22844_v39  ;;  %9487 = vmatpush1.bf16.msra.mxu0 %v21478_v37  ;;  %v8981_v37 = vcombine.high %v26304_v1, %v26304_v1  ;;  %v21534_v1 = vld [vmem:[%s28225_s3 + $0xd24] ss:$8 sps:$4 sm:$0xff]   ;;  %v21531_v39 = vld [vmem:[%s28225_s3 + $0xf94] ss:$8 sps:$4 sm:$0xff]  }
 0x402   :  { %8793 = vmatpush1.bf16.msra.mxu1 %v21469_v29  ;;  %v6446_v42 = vadd.f32 1.0, %v22846_v43  ;;  %9488 = vmatprep.subr.bf16.mxu0 %v21486_v31  ;;  %v21528_v29 = vld [vmem:[%s28225_s3 + $0xd14] ss:$8 sps:$4 sm:$0xff]   ;;  %v21526_v31 = vld [vmem:[%s28225_s3 + $0xd10] ss:$8 sps:$4 sm:$0xff]  }
 0x403   :  { %10256 = vmatprep.subr.bf16.mxu1 %v21477_v59  ;;  %22847 = vrcp.f32 %v6445_v40  ;;  %v21529_v43 = vld [vmem:[%s28225_s3 + $0xf90] ss:$8 sps:$4 sm:$0xff]   ;;  %v21537_v40 = vld [vmem:[%s28225_s3 + $0xfa4] ss:$8 sps:$4 sm:$0xff]  }
 0x404   :  { %22849 = vrcp.f32 %v6446_v42 }
 0x405   :  { %8795 = vmatmul.mubr.bf16.vlgmr.msra.gmra.mrb[44].mxu1 %v8177_v63  ;;  %9489 = vmatpush1.bf16.msra.mxu0 %v21484_v57  ;;  %v21532_v63 = vld [vmem:[%s28225_s3 + $0xd20] ss:$8 sps:$4 sm:$0xff]   ;;  %v21538_v57 = vld [vmem:[%s28225_s3 + $0xd30] ss:$8 sps:$4 sm:$0xff]  }
 0x406   :  { %10257 = vmatpush1.bf16.msra.mxu1 %v21475_v27  ;;  %10288 = vmatprep.mubr.bf16.mxu1 %v26446_v30  ;;  %v21523_v27 = vld [vmem:[%s28225_s3 + $0xf80] ss:$8 sps:$4 sm:$0xff]  }
 0x407   :  { %10258 = vmatprep.subr.bf16.mxu1 %v21483_v34  ;;  %9490 = vmatprep.subr.bf16.mxu0 %v21492_v5  ;;  %v21540_v34 = vld [vmem:[%s28225_s3 + $0xd34] ss:$8 sps:$4 sm:$0xff]   ;;  %v21546_v5 = vld [vmem:[%s28225_s3 + $0xd44] ss:$8 sps:$4 sm:$0xff]  }
 0x409   :  { %9491 = vmatpush1.bf16.msra.mxu0 %v21490_v36  ;;  %v21535_v36 = vld [vmem:[%s28225_s3 + $0xfa0] ss:$8 sps:$4 sm:$0xff]  }
 0x40a   :  { %10259 = vmatpush1.bf16.msra.mxu1 %v21481_v32  ;;  %9492 = vmatprep.subr.bf16.mxu0 %v21498_v45 }
 0x40b   :  { %10260 = vmatprep.subr.bf16.mxu1 %v21489_v44 }
 0x40d   :  { %v22848_v50 = vpop.eup %22847  ;;  %9493 = vmatpush1.bf16.msra.mxu0 %v21496_v17  ;;  %v21552_v17 = vld [vmem:[%s28225_s3 + $0xd54] ss:$8 sps:$4 sm:$0xff]  }
 0x40e   :  { %10261 = vmatpush1.bf16.msra.mxu1 %v21487_v35  ;;  %v22850_v46 = vpop.eup %22849  ;;  %v6449_v24 = vmul.f32 %v22848_v50, %v26377_v41  ;;  %9494 = vmatprep.subr.bf16.mxu0 %v21504_v48  ;;  %v21508_v41 = vld [vmem:[%s28225_s3 + $0xce0] ss:$8 sps:$4 sm:$0xff]   ;;  %v21543_v35 = vld [vmem:[%s28225_s3 + $0xfb4] ss:$8 sps:$4 sm:$0xff]   ;;  %v21541_v48 = vld [vmem:[%s28225_s3 + $0xfb0] ss:$8 sps:$4 sm:$0xff]  }
 0x40f   :  { %10262 = vmatprep.subr.bf16.mxu1 %v21495_v47  ;;  %v6450_v55 = vmul.f32 %v22850_v46, %v26383_v8  ;;  %v21505_v8 = vld [vmem:[%s28225_s3 + $0xf50] ss:$8 sps:$4 sm:$0xff]   ;;  %v21544_v47 = vld [vmem:[%s28225_s3 + $0xd40] ss:$8 sps:$4 sm:$0xff]   ;;  %v21558_v50 = vld [vmem:[%s28225_s3 + $0xd64] ss:$8 sps:$4 sm:$0xff]  }
 0x410   :  { %v21555_v46 = vld [vmem:[%s28225_s3 + $0xfd4] ss:$8 sps:$4 sm:$0xff]  }
 0x411   :  { %v17737_v61 = vpack.c.bf16 %v6450_v55, %v6449_v24  ;;  %9495 = vmatpush1.bf16.msra.mxu0 %v21502_v23  ;;  %v21547_v23 = vld [vmem:[%s28225_s3 + $0xfc0] ss:$8 sps:$4 sm:$0xff]  }
 0x412   :  { %10263 = vmatpush1.bf16.msra.mxu1 %v21493_v38  ;;  %9496 = vmatprep.subr.bf16.mxu0 %v21510_v51  ;;  %v21549_v38 = vld [vmem:[%s28225_s3 + $0xfc4] ss:$8 sps:$4 sm:$0xff]   ;;  %v21556_v24 = vld [vmem:[%s28225_s3 + $0xd60] ss:$8 sps:$4 sm:$0xff]   ;;  %v21564_v51 = vld [vmem:[%s28225_s3 + $0xd74] ss:$8 sps:$4 sm:$0xff]  }
 0x413   :  { %10264 = vmatprep.subr.bf16.mxu1 %v21501_v3  ;;  %v6462_v2 = vrot.slane %v17737_v61, %v23077_v7  ;;  %v21550_v3 = vld [vmem:[%s28225_s3 + $0xd50] ss:$8 sps:$4 sm:$0xff]  }
 0x415   :  { %17738 = vst.sshfl [vmem:[#allocation3] sm:$0x5 pattern:$0x73625140] %v6462_v2  ;;  %9497 = vmatpush1.bf16.msra.mxu0 %v21508_v41  ;;  %v21561_v41 = vld [vmem:[%s28225_s3 + $0xfe4] ss:$8 sps:$4 sm:$0xff]  }
 0x416   :  { %10265 = vmatpush1.bf16.msra.mxu1 %v21499_v56  ;;  %9498 = vmatprep.subr.bf16.mxu0 %v21516_v12  ;;  %v21553_v56 = vld [vmem:[%s28225_s3 + $0xfd0] ss:$8 sps:$4 sm:$0xff]  }
 0x417   :  { %10266 = vmatprep.subr.bf16.mxu1 %v21507_v58  ;;  %v21562_v2 = vld [vmem:[%s28225_s3 + $0xd70] ss:$8 sps:$4 sm:$0xff]  }
 0x418   :  { %v7220_v21 = vpop.f32.mrb[40].mxu1 }
 0x419   :  { %v26516_v11 = vadd.f32 %v7220_v21, %v26362_v52  ;;  %v7222_v19 = vpop.f32.mrb[41].mxu1  ;;  %9499 = vmatpush1.bf16.msra.mxu0 %v21514_v49  ;;  %v21559_v21 = vld [vmem:[%s28225_s3 + $0xfe0] ss:$8 sps:$4 sm:$0xff]   ;;  %v21567_v49 = vld [vmem:[%s28225_s3 + $0xff4] ss:$8 sps:$4 sm:$0xff]  }
 0x41a   :  { %v26522_v20 = vadd.f32 %v7222_v19, %v26365_v54  ;;  %v7224_v15 = vpop.f32.mrb[42].mxu1  ;;  %10267 = vmatpush1.bf16.msra.mxu1 %v21505_v8  ;;  %9509 = vmatprep.subr.bf16.mxu0 %v21522_v13  ;;  %v21570_v8 = vld [vmem:[%s28225_s3 + $0xd84] ss:$8 sps:$4 sm:$0xff]   ;;  %v21568_v19 = vld [vmem:[%s28225_s3 + $0xd80] ss:$8 sps:$4 sm:$0xff]  }
 0x41b   :  { %v7227_v28 = vsub.f32 0.0, %v26516_v11  ;;  %v7225_v10 = vpop.f32.mrb[43].mxu1  ;;  %10268 = vmatprep.subr.bf16.mxu1 %v21513_v9  ;;  %v21576_v13 = vld [vmem:[%s28225_s3 + $0xd94] ss:$8 sps:$4 sm:$0xff]   ;;  %v21573_v15 = vld [vmem:[%s28225_s3 + $0x1004] ss:$8 sps:$4 sm:$0xff]  }
 0x41c   :  { %v7228_v25 = vsub.f32 0.0, %v26522_v20  ;;  %9501 = vmatmul.mubr.bf16.vlgmr.msra.gmra.mrb[40].mxu0 %v26537_v53  ;;  %v21571_v10 = vld [vmem:[%s28225_s3 + $0x1000] ss:$8 sps:$4 sm:$0xff]  }
 0x41d   :  { %v7229_v22 = vmul.f32 1.442695, %v7227_v28  ;;  %9510 = vmatpush1.bf16.msra.mxu0 %v21520_v26  ;;  %9541 = vmatprep.mubr.bf16.mxu0 %v8981_v37  ;;  %v21582_v28 = vld [vmem:[%s28225_s3 + $0xda4] ss:$8 sps:$4 sm:$0xff]   ;;  %v9769_v26 = vcombine.high %v26446_v30, %v26446_v30  ;;  %v21583_v37 = vld [vmem:[%s28225_s3 + $0x1020] ss:$8 sps:$4 sm:$0xff]  }
 0x41e   :  { %v7231_v59 = vmul.f32 1.442695, %v7228_v25  ;;  %10269 = vmatpush1.bf16.msra.mxu1 %v21511_v14  ;;  %9511 = vmatprep.subr.bf16.mxu0 %v21528_v29  ;;  %v21574_v14 = vld [vmem:[%s28225_s3 + $0xd90] ss:$8 sps:$4 sm:$0xff]   ;;  %v21579_v25 = vld [vmem:[%s28225_s3 + $0x1014] ss:$8 sps:$4 sm:$0xff]  }
 0x41f   :  { %22851 = vpow2.f32 %v7229_v22  ;;  %10270 = vmatprep.subr.bf16.mxu1 %v21519_v18  ;;  %v26661_v18 = vrot.slane %v26418_v4, %v23077_v7  ;;  %v21580_v22 = vld [vmem:[%s28225_s3 + $0xda0] ss:$8 sps:$4 sm:$0xff]   ;;  %v21588_v4 = vld [vmem:[%s28225_s3 + $0xdb4] ss:$8 sps:$4 sm:$0xff]   ;;  %v21577_v29 = vld [vmem:[%s28225_s3 + $0x1010] ss:$8 sps:$4 sm:$0xff]  }
 0x420   :  { %22853 = vpow2.f32 %v7231_v59  ;;  %v21585_v30 = vld [vmem:[%s28225_s3 + $0x1024] ss:$8 sps:$4 sm:$0xff]   ;;  %v21586_v59 = vld [vmem:[%s28225_s3 + $0xdb0] ss:$8 sps:$4 sm:$0xff]  }
 0x421   :  { %9512 = vmatpush1.bf16.msra.mxu0 %v21526_v31  ;;  %v21592_v31 = vld [vmem:[%s28225_s3 + $0xdc0] ss:$8 sps:$4 sm:$0xff]  }
 0x422   :  { %10271 = vmatpush1.bf16.msra.mxu1 %v21517_v16  ;;  %9513 = vmatprep.subr.bf16.mxu0 %v21534_v1  ;;  %v21594_v16 = vld [vmem:[%s28225_s3 + $0xdc4] ss:$8 sps:$4 sm:$0xff]   ;;  %v21600_v1 = vld [vmem:[%s28225_s3 + $0xdd4] ss:$8 sps:$4 sm:$0xff]  }
 0x423   :  { %10272 = vmatprep.subr.bf16.mxu1 %v21525_v33  ;;  %v21591_v33 = vld [vmem:[%s28225_s3 + $0x1034] ss:$8 sps:$4 sm:$0xff]  }
 0x425   :  { %9514 = vmatpush1.bf16.msra.mxu0 %v21532_v63  ;;  %v21598_v63 = vld [vmem:[%s28225_s3 + $0xdd0] ss:$8 sps:$4 sm:$0xff]  }
 0x426   :  { %10273 = vmatpush1.bf16.msra.mxu1 %v21523_v27  ;;  %9515 = vmatprep.subr.bf16.mxu0 %v21540_v34  ;;  %v21589_v27 = vld [vmem:[%s28225_s3 + $0x1030] ss:$8 sps:$4 sm:$0xff]   ;;  %v21606_v34 = vld [vmem:[%s28225_s3 + $0xde4] ss:$8 sps:$4 sm:$0xff]  }
 0x427   :  { %10274 = vmatprep.subr.bf16.mxu1 %v21531_v39  ;;  %v21597_v39 = vld [vmem:[%s28225_s3 + $0x1044] ss:$8 sps:$4 sm:$0xff]  }
 0x429   :  { %v22852_v42 = vpop.eup %22851  ;;  %9516 = vmatpush1.bf16.msra.mxu0 %v21538_v57  ;;  %v21603_v57 = vld [vmem:[%s28225_s3 + $0x1054] ss:$8 sps:$4 sm:$0xff]  }
 0x42a   :  { %v22854_v32 = vpop.eup %22853  ;;  %v7233_v44 = vadd.f32 1.0, %v22852_v42  ;;  %10275 = vmatpush1.bf16.msra.mxu1 %v21529_v43  ;;  %9517 = vmatprep.subr.bf16.mxu0 %v21546_v5  ;;  %v21595_v43 = vld [vmem:[%s28225_s3 + $0x1040] ss:$8 sps:$4 sm:$0xff]   ;;  %v21612_v5 = vld [vmem:[%s28225_s3 + $0xdf4] ss:$8 sps:$4 sm:$0xff]  }
 0x42b   :  { %v7234_v45 = vadd.f32 1.0, %v22854_v32  ;;  %10276 = vmatprep.subr.bf16.mxu1 %v21537_v40  ;;  %v8935_v40 = vcombine.high %v26254_v6, %v26254_v6  ;;  %v21604_v42 = vld [vmem:[%s28225_s3 + $0xde0] ss:$8 sps:$4 sm:$0xff]   ;;  %v21601_v6 = vld [vmem:[%s28225_s3 + $0x1050] ss:$8 sps:$4 sm:$0xff]  }
 0x42c   :  { %22855 = vrcp.f32 %v7233_v44  ;;  %v21609_v44 = vld [vmem:[%s28225_s3 + $0x1064] ss:$8 sps:$4 sm:$0xff]  }
 0x42d   :  { %22857 = vrcp.f32 %v7234_v45  ;;  %9518 = vmatpush1.bf16.msra.mxu0 %v21544_v47  ;;  %v26729_v32 = vrot.slane %v8935_v40, %v23077_v7  ;;  %v21618_v45 = vld [vmem:[%s28225_s3 + $0xe04] ss:$8 sps:$4 sm:$0xff]  }
 0x42e   :  { %10277 = vmatpush1.bf16.msra.mxu1 %v21535_v36  ;;  %9519 = vmatprep.subr.bf16.mxu0 %v21552_v17  ;;  %v21610_v36 = vld [vmem:[%s28225_s3 + $0xdf0] ss:$8 sps:$4 sm:$0xff]   ;;  %v21615_v17 = vld [vmem:[%s28225_s3 + $0x1074] ss:$8 sps:$4 sm:$0xff]  }
 0x42f   :  { %10278 = vmatprep.subr.bf16.mxu1 %v21543_v35  ;;  %v21607_v35 = vld [vmem:[%s28225_s3 + $0x1060] ss:$8 sps:$4 sm:$0xff]   ;;  %v8951_v47 = vcombine.high %v26729_v32, %v26729_v32 }
 0x431   :  { %9520 = vmatpush1.bf16.msra.mxu0 %v21550_v3  ;;  %v21624_v3 = vld [vmem:[%s28225_s3 + $0xe14] ss:$8 sps:$4 sm:$0xff]  }
 0x432   :  { %10279 = vmatpush1.bf16.msra.mxu1 %v21541_v48  ;;  %9521 = vmatprep.subr.bf16.mxu0 %v21558_v50  ;;  %v21616_v48 = vld [vmem:[%s28225_s3 + $0xe00] ss:$8 sps:$4 sm:$0xff]   ;;  %v21613_v50 = vld [vmem:[%s28225_s3 + $0x1070] ss:$8 sps:$4 sm:$0xff]  }
 0x433   :  { %10280 = vmatprep.subr.bf16.mxu1 %v21549_v38  ;;  %v8980_v38 = vcombine.high %v26537_v53, %v26537_v53  ;;  %v21622_v53 = vld [vmem:[%s28225_s3 + $0xe10] ss:$8 sps:$4 sm:$0xff]  }
 0x435   :  { %9522 = vmatpush1.bf16.msra.mxu0 %v21556_v24  ;;  %v21630_v24 = vld [vmem:[%s28225_s3 + $0xe24] ss:$8 sps:$4 sm:$0xff]  }
 0x436   :  { %v22856_v55 = vpop.eup %22855  ;;  %10281 = vmatpush1.bf16.msra.mxu1 %v21547_v23  ;;  %9523 = vmatprep.subr.bf16.mxu0 %v21564_v51  ;;  %v8979_v23 = vrot.slane %v8951_v47, %v23077_v7  ;;  %v21619_v51 = vld [vmem:[%s28225_s3 + $0x1080] ss:$8 sps:$4 sm:$0xff]   ;;  %v21696_v47 = vld [vmem:[%s28225_s3 + $0xed4] ss:$8 sps:$4 sm:$0xff]  }
 0x437   :  { %v22858_v58 = vpop.eup %22857  ;;  %v7237_v61 = vmul.f32 %v22856_v55, %v26516_v11  ;;  %10282 = vmatprep.subr.bf16.mxu1 %v21555_v46  ;;  %v21621_v46 = vld [vmem:[%s28225_s3 + $0x1084] ss:$8 sps:$4 sm:$0xff]   ;;  %v21627_v55 = vld [vmem:[%s28225_s3 + $0x1094] ss:$8 sps:$4 sm:$0xff]  }
 0x438   :  { %v7238_v12 = vmul.f32 %v22858_v58, %v26522_v20  ;;  %v21565_v20 = vld [vmem:[%s28225_s3 + $0xff0] ss:$8 sps:$4 sm:$0xff]   ;;  %v21636_v58 = vld [vmem:[%s28225_s3 + $0xe34] ss:$8 sps:$4 sm:$0xff]  }
 0x439   :  { %9524 = vmatpush1.bf16.msra.mxu0 %v21562_v2  ;;  %v21642_v2 = vld [vmem:[%s28225_s3 + $0xe44] ss:$8 sps:$4 sm:$0xff]  }
 0x43a   :  { %v17931_v9 = vpack.c.bf16 %v7238_v12, %v7237_v61  ;;  %10283 = vmatpush1.bf16.msra.mxu1 %v21553_v56  ;;  %9525 = vmatprep.subr.bf16.mxu0 %v21570_v8  ;;  %v21628_v56 = vld [vmem:[%s28225_s3 + $0xe20] ss:$8 sps:$4 sm:$0xff]   ;;  %v21625_v61 = vld [vmem:[%s28225_s3 + $0x1090] ss:$8 sps:$4 sm:$0xff]  }
 0x43b   :  { %10284 = vmatprep.subr.bf16.mxu1 %v21561_v41  ;;  %v21633_v41 = vld [vmem:[%s28225_s3 + $0x10a4] ss:$8 sps:$4 sm:$0xff]   ;;  %v21634_v12 = vld [vmem:[%s28225_s3 + $0xe30] ss:$8 sps:$4 sm:$0xff]   ;;  %v21631_v8 = vld [vmem:[%s28225_s3 + $0x10a0] ss:$8 sps:$4 sm:$0xff]  }
 0x43c   :  { %v7250_v11 = vrot.slane %v17931_v9, %v23077_v7  ;;  %v21639_v9 = vld [vmem:[%s28225_s3 + $0x10b4] ss:$8 sps:$4 sm:$0xff]  }
 0x43d   :  { %9526 = vmatpush1.bf16.msra.mxu0 %v21568_v19  ;;  %v21645_v19 = vld [vmem:[%s28225_s3 + $0x10c4] ss:$8 sps:$4 sm:$0xff]  }
 0x43e   :  { %17932 = vst.sshfl [vmem:[#allocation3 + $0x2] sm:$0x5 pattern:$0x73625140] %v7250_v11  ;;  %10285 = vmatpush1.bf16.msra.mxu1 %v21559_v21  ;;  %9527 = vmatprep.subr.bf16.mxu0 %v21576_v13  ;;  %v21640_v21 = vld [vmem:[%s28225_s3 + $0xe40] ss:$8 sps:$4 sm:$0xff]  }
 0x43f   :  { %10286 = vmatprep.subr.bf16.mxu1 %v21567_v49  ;;  %v21648_v49 = vld [vmem:[%s28225_s3 + $0xe54] ss:$8 sps:$4 sm:$0xff]   ;;  %v21637_v11 = vld [vmem:[%s28225_s3 + $0x10b0] ss:$8 sps:$4 sm:$0xff]  }
 0x440   :  { %v21646_v13 = vld [vmem:[%s28225_s3 + $0xe50] ss:$8 sps:$4 sm:$0xff]  }
 0x441   :  { %9528 = vmatpush1.bf16.msra.mxu0 %v21574_v14  ;;  %v21651_v14 = vld [vmem:[%s28225_s3 + $0x10d4] ss:$8 sps:$4 sm:$0xff]  }
 0x442   :  { %10287 = vmatpush1.bf16.msra.mxu1 %v21565_v20  ;;  %9529 = vmatprep.subr.bf16.mxu0 %v21582_v28  ;;  %v21654_v20 = vld [vmem:[%s28225_s3 + $0xe64] ss:$8 sps:$4 sm:$0xff]   ;;  %v21652_v28 = vld [vmem:[%s28225_s3 + $0xe60] ss:$8 sps:$4 sm:$0xff]  }
 0x443   :  { %10297 = vmatprep.subr.bf16.mxu1 %v21573_v15  ;;  %v21643_v15 = vld [vmem:[%s28225_s3 + $0x10c0] ss:$8 sps:$4 sm:$0xff]  }
 0x445   :  { %10289 = vmatmul.mubr.bf16.vlgmr.msra.gmra.mrb[48].mxu1 %v26661_v18  ;;  %9530 = vmatpush1.bf16.msra.mxu0 %v21580_v22  ;;  %v21658_v22 = vld [vmem:[%s28225_s3 + $0xe70] ss:$8 sps:$4 sm:$0xff]  }
 0x446   :  { %10298 = vmatpush1.bf16.msra.mxu1 %v21571_v10  ;;  %10329 = vmatprep.mubr.bf16.mxu1 %v9769_v26  ;;  %v21660_v10 = vld [vmem:[%s28225_s3 + $0xe74] ss:$8 sps:$4 sm:$0xff]   ;;  %v21657_v26 = vld [vmem:[%s28225_s3 + $0x10e4] ss:$8 sps:$4 sm:$0xff]  }
 0x447   :  { %10299 = vmatprep.subr.bf16.mxu1 %v21579_v25  ;;  %9531 = vmatprep.subr.bf16.mxu0 %v21588_v4  ;;  %v21649_v25 = vld [vmem:[%s28225_s3 + $0x10d0] ss:$8 sps:$4 sm:$0xff]   ;;  %v9723_v4 = vcombine.high %v26405_v0, %v26405_v0  ;;  %v21664_v0 = vld [vmem:[%s28225_s3 + $0xe80] ss:$8 sps:$4 sm:$0xff]  }
 0x449   :  { %9532 = vmatpush1.bf16.msra.mxu0 %v21586_v59  ;;  %v21663_v59 = vld [vmem:[%s28225_s3 + $0x10f4] ss:$8 sps:$4 sm:$0xff]  }
 0x44a   :  { %10300 = vmatpush1.bf16.msra.mxu1 %v21577_v29  ;;  %9533 = vmatprep.subr.bf16.mxu0 %v21594_v16  ;;  %v21666_v29 = vld [vmem:[%s28225_s3 + $0xe84] ss:$8 sps:$4 sm:$0xff]   ;;  %v26853_v16 = vrot.slane %v9723_v4, %v23077_v7  ;;  %v21727_v4 = vld [vmem:[%s28225_s3 + $0x11a0] ss:$8 sps:$4 sm:$0xff]  }
 0x44b   :  { %10301 = vmatprep.subr.bf16.mxu1 %v21585_v30  ;;  %v21655_v30 = vld [vmem:[%s28225_s3 + $0x10e0] ss:$8 sps:$4 sm:$0xff]  }
 0x44d   :  { %9534 = vmatpush1.bf16.msra.mxu0 %v21592_v31  ;;  %v21669_v31 = vld [vmem:[%s28225_s3 + $0x1104] ss:$8 sps:$4 sm:$0xff]  }
 0x44e   :  { %10302 = vmatpush1.bf16.msra.mxu1 %v21583_v37  ;;  %9535 = vmatprep.subr.bf16.mxu0 %v21600_v1  ;;  %v21672_v37 = vld [vmem:[%s28225_s3 + $0xe94] ss:$8 sps:$4 sm:$0xff]   ;;  %v9739_v1 = vcombine.high %v26853_v16, %v26853_v16 }
 0x44f   :  { %10303 = vmatprep.subr.bf16.mxu1 %v21591_v33  ;;  %v21661_v33 = vld [vmem:[%s28225_s3 + $0x10f0] ss:$8 sps:$4 sm:$0xff]  }
 0x450   :  { %v9767_v40 = vrot.slane %v9739_v1, %v23077_v7  ;;  %v21739_v1 = vld [vmem:[%s28225_s3 + $0x11c0] ss:$8 sps:$4 sm:$0xff]  }
 0x451   :  { %9536 = vmatpush1.bf16.msra.mxu0 %v21598_v63  ;;  %v21667_v63 = vld [vmem:[%s28225_s3 + $0x1100] ss:$8 sps:$4 sm:$0xff]  }
 0x452   :  { %10304 = vmatpush1.bf16.msra.mxu1 %v21589_v27  ;;  %9537 = vmatprep.subr.bf16.mxu0 %v21606_v34  ;;  %v21670_v27 = vld [vmem:[%s28225_s3 + $0xe90] ss:$8 sps:$4 sm:$0xff]   ;;  %v9768_v34 = vcombine.high %v26661_v18, %v26661_v18 }
 0x453   :  { %10305 = vmatprep.subr.bf16.mxu1 %v21597_v39  ;;  %v21678_v39 = vld [vmem:[%s28225_s3 + $0xea4] ss:$8 sps:$4 sm:$0xff]   ;;  %v21673_v18 = vld [vmem:[%s28225_s3 + $0x1110] ss:$8 sps:$4 sm:$0xff]  }
 0x455   :  { %9538 = vmatpush1.bf16.msra.mxu0 %v21604_v42  ;;  %v21684_v42 = vld [vmem:[%s28225_s3 + $0xeb4] ss:$8 sps:$4 sm:$0xff]  }
 0x456   :  { %10306 = vmatpush1.bf16.msra.mxu1 %v21595_v43  ;;  %9539 = vmatprep.subr.bf16.mxu0 %v21612_v5  ;;  %v21675_v43 = vld [vmem:[%s28225_s3 + $0x1114] ss:$8 sps:$4 sm:$0xff]   ;;  %v21681_v5 = vld [vmem:[%s28225_s3 + $0x1124] ss:$8 sps:$4 sm:$0xff]  }
 0x457   :  { %10307 = vmatprep.subr.bf16.mxu1 %v21603_v57  ;;  %v21676_v57 = vld [vmem:[%s28225_s3 + $0xea0] ss:$8 sps:$4 sm:$0xff]  }
 0x459   :  { %9540 = vmatpush1.bf16.msra.mxu0 %v21610_v36  ;;  %v21679_v36 = vld [vmem:[%s28225_s3 + $0x1120] ss:$8 sps:$4 sm:$0xff]  }
 0x45a   :  { %10308 = vmatpush1.bf16.msra.mxu1 %v21601_v6  ;;  %9550 = vmatprep.subr.bf16.mxu0 %v21618_v45  ;;  %v21682_v6 = vld [vmem:[%s28225_s3 + $0xeb0] ss:$8 sps:$4 sm:$0xff]   ;;  %v21687_v45 = vld [vmem:[%s28225_s3 + $0x1134] ss:$8 sps:$4 sm:$0xff]  }
 0x45b   :  { %10309 = vmatprep.subr.bf16.mxu1 %v21609_v44  ;;  %v21690_v44 = vld [vmem:[%s28225_s3 + $0xec4] ss:$8 sps:$4 sm:$0xff]  }
 0x45c   :  { %9542 = vmatmul.mubr.bf16.vlgmr.msra.gmra.mrb[40].mxu0 %v8980_v38  ;;  %v21694_v38 = vld [vmem:[%s28225_s3 + $0xed0] ss:$8 sps:$4 sm:$0xff]  }
 0x45d   :  { %9551 = vmatpush1.bf16.msra.mxu0 %v21616_v48  ;;  %9582 = vmatprep.mubr.bf16.mxu0 %v8979_v23  ;;  %v21693_v48 = vld [vmem:[%s28225_s3 + $0x1144] ss:$8 sps:$4 sm:$0xff]   ;;  %v21699_v23 = vld [vmem:[%s28225_s3 + $0x1154] ss:$8 sps:$4 sm:$0xff]  }
 0x45e   :  { %10310 = vmatpush1.bf16.msra.mxu1 %v21607_v35  ;;  %9552 = vmatprep.subr.bf16.mxu0 %v21624_v3  ;;  %v21688_v35 = vld [vmem:[%s28225_s3 + $0xec0] ss:$8 sps:$4 sm:$0xff]   ;;  %v21702_v3 = vld [vmem:[%s28225_s3 + $0xee4] ss:$8 sps:$4 sm:$0xff]  }
 0x45f   :  { %10311 = vmatprep.subr.bf16.mxu1 %v21615_v17  ;;  %v21685_v17 = vld [vmem:[%s28225_s3 + $0x1130] ss:$8 sps:$4 sm:$0xff]  }
 0x461   :  { %9553 = vmatpush1.bf16.msra.mxu0 %v21622_v53  ;;  %v21700_v53 = vld [vmem:[%s28225_s3 + $0xee0] ss:$8 sps:$4 sm:$0xff]  }
 0x462   :  { %10312 = vmatpush1.bf16.msra.mxu1 %v21613_v50  ;;  %9554 = vmatprep.subr.bf16.mxu0 %v21630_v24  ;;  %v21691_v50 = vld [vmem:[%s28225_s3 + $0x1140] ss:$8 sps:$4 sm:$0xff]   ;;  %v21708_v24 = vld [vmem:[%s28225_s3 + $0xef4] ss:$8 sps:$4 sm:$0xff]  }
 0x463   :  { %10313 = vmatprep.subr.bf16.mxu1 %v21621_v46  ;;  %v26929_v46 = vld [vmem:[#allocation2 + $0x16] sm:$0x3f] }
 0x465   :  { %9555 = vmatpush1.bf16.msra.mxu0 %v21628_v56  ;;  %v21705_v56 = vld [vmem:[%s28225_s3 + $0x1164] ss:$8 sps:$4 sm:$0xff]  }
 0x466   :  { %10314 = vmatpush1.bf16.msra.mxu1 %v21619_v51  ;;  %9556 = vmatprep.subr.bf16.mxu0 %v21636_v58  ;;  %v21697_v51 = vld [vmem:[%s28225_s3 + $0x1150] ss:$8 sps:$4 sm:$0xff]  }
 0x467   :  { %10315 = vmatprep.subr.bf16.mxu1 %v21627_v55  ;;  %v26942_v55 = vrot.slane %v26929_v46, %v23077_v7  ;;  %v21706_v58 = vld [vmem:[%s28225_s3 + $0xef0] ss:$8 sps:$4 sm:$0xff]  }
 0x469   :  { %9557 = vmatpush1.bf16.msra.mxu0 %v21634_v12  ;;  %v10526_v12 = vcombine.high %v26942_v55, %v26942_v55 }
 0x46a   :  { %10316 = vmatpush1.bf16.msra.mxu1 %v21625_v61  ;;  %9558 = vmatprep.subr.bf16.mxu0 %v21642_v2  ;;  %v21714_v61 = vld [vmem:[%s28225_s3 + $0x1204] ss:$8 sps:$4 sm:$0xff]   ;;  %v21711_v2 = vld [vmem:[%s28225_s3 + $0x1174] ss:$8 sps:$4 sm:$0xff]  }
 0x46b   :  { %10317 = vmatprep.subr.bf16.mxu1 %v21633_v41  ;;  %v21703_v41 = vld [vmem:[%s28225_s3 + $0x1160] ss:$8 sps:$4 sm:$0xff]  }
 0x46d   :  { %9559 = vmatpush1.bf16.msra.mxu0 %v21640_v21  ;;  %v21720_v21 = vld [vmem:[%s28225_s3 + $0x1214] ss:$8 sps:$4 sm:$0xff]  }
 0x46e   :  { %10318 = vmatpush1.bf16.msra.mxu1 %v21631_v8  ;;  %9560 = vmatprep.subr.bf16.mxu0 %v21648_v49  ;;  %v21712_v8 = vld [vmem:[%s28225_s3 + $0x1200] ss:$8 sps:$4 sm:$0xff]   ;;  %v21709_v49 = vld [vmem:[%s28225_s3 + $0x1170] ss:$8 sps:$4 sm:$0xff]  }
 0x46f   :  { %10319 = vmatprep.subr.bf16.mxu1 %v21639_v9  ;;  %v8965_v9 = vrot.slane %v26729_v32, %v23077_v7  ;;  %v21718_v32 = vld [vmem:[%s28225_s3 + $0x1210] ss:$8 sps:$4 sm:$0xff]  }
 0x471   :  { %9561 = vmatpush1.bf16.msra.mxu0 %v21646_v13  ;;  %v21726_v13 = vld [vmem:[%s28225_s3 + $0x1224] ss:$8 sps:$4 sm:$0xff]  }
 0x472   :  { %10320 = vmatpush1.bf16.msra.mxu1 %v21637_v11  ;;  %9562 = vmatprep.subr.bf16.mxu0 %v21654_v20  ;;  %v26973_v11 = vrot.slane %v10526_v12, %v23077_v7  ;;  %v21715_v20 = vld [vmem:[%s28225_s3 + $0x1180] ss:$8 sps:$4 sm:$0xff]  }
 0x473   :  { %10321 = vmatprep.subr.bf16.mxu1 %v21645_v19  ;;  %v21717_v19 = vld [vmem:[%s28225_s3 + $0x1184] ss:$8 sps:$4 sm:$0xff]  }
 0x475   :  { %9563 = vmatpush1.bf16.msra.mxu0 %v21652_v28  ;;  %v21732_v28 = vld [vmem:[%s28225_s3 + $0x1234] ss:$8 sps:$4 sm:$0xff]  }
 0x476   :  { %10322 = vmatpush1.bf16.msra.mxu1 %v21643_v15  ;;  %9564 = vmatprep.subr.bf16.mxu0 %v21660_v10  ;;  %v21723_v15 = vld [vmem:[%s28225_s3 + $0x1194] ss:$8 sps:$4 sm:$0xff]   ;;  %v21721_v10 = vld [vmem:[%s28225_s3 + $0x1190] ss:$8 sps:$4 sm:$0xff]  }
 0x477   :  { %10323 = vmatprep.subr.bf16.mxu1 %v21651_v14  ;;  %v21724_v14 = vld [vmem:[%s28225_s3 + $0x1220] ss:$8 sps:$4 sm:$0xff]  }
 0x479   :  { %9565 = vmatpush1.bf16.msra.mxu0 %v21658_v22  ;;  %v21738_v22 = vld [vmem:[%s28225_s3 + $0x1244] ss:$8 sps:$4 sm:$0xff]  }
 0x47a   :  { %10324 = vmatpush1.bf16.msra.mxu1 %v21649_v25  ;;  %9566 = vmatprep.subr.bf16.mxu0 %v21666_v29  ;;  %v21729_v25 = vld [vmem:[%s28225_s3 + $0x11a4] ss:$8 sps:$4 sm:$0xff]   ;;  %v21735_v29 = vld [vmem:[%s28225_s3 + $0x11b4] ss:$8 sps:$4 sm:$0xff]  }
 0x47b   :  { %10325 = vmatprep.subr.bf16.mxu1 %v21657_v26  ;;  %v21730_v26 = vld [vmem:[%s28225_s3 + $0x1230] ss:$8 sps:$4 sm:$0xff]  }
 0x47d   :  { %9567 = vmatpush1.bf16.msra.mxu0 %v21664_v0  ;;  %v21733_v0 = vld [vmem:[%s28225_s3 + $0x11b0] ss:$8 sps:$4 sm:$0xff]  }
 0x47e   :  { %10326 = vmatpush1.bf16.msra.mxu1 %v21655_v30  ;;  %9568 = vmatprep.subr.bf16.mxu0 %v21672_v37  ;;  %v21736_v30 = vld [vmem:[%s28225_s3 + $0x1240] ss:$8 sps:$4 sm:$0xff]   ;;  %v21741_v37 = vld [vmem:[%s28225_s3 + $0x11c4] ss:$8 sps:$4 sm:$0xff]  }
 0x47f   :  { %10327 = vmatprep.subr.bf16.mxu1 %v21663_v59  ;;  %v21744_v59 = vld [vmem:[%s28225_s3 + $0x1254] ss:$8 sps:$4 sm:$0xff]  }
 0x481   :  { %9569 = vmatpush1.bf16.msra.mxu0 %v21670_v27 }
 0x482   :  { %10328 = vmatpush1.bf16.msra.mxu1 %v21661_v33  ;;  %9570 = vmatprep.subr.bf16.mxu0 %v21678_v39  ;;  %v21742_v33 = vld [vmem:[%s28225_s3 + $0x1250] ss:$8 sps:$4 sm:$0xff]  }
 0x483   :  { %10338 = vmatprep.subr.bf16.mxu1 %v21669_v31  ;;  %v21750_v31 = vld [vmem:[%s28225_s3 + $0x1264] ss:$8 sps:$4 sm:$0xff]  }
 0x485   :  { %10330 = vmatmul.mubr.bf16.vlgmr.msra.gmra.mrb[48].mxu1 %v9768_v34  ;;  %9571 = vmatpush1.bf16.msra.mxu0 %v21676_v57  ;;  %v21747_v34 = vld [vmem:[%s28225_s3 + $0x11d4] ss:$8 sps:$4 sm:$0xff]   ;;  %v21748_v57 = vld [vmem:[%s28225_s3 + $0x1260] ss:$8 sps:$4 sm:$0xff]  }
 0x486   :  { %10339 = vmatpush1.bf16.msra.mxu1 %v21667_v63  ;;  %10370 = vmatprep.mubr.bf16.mxu1 %v9767_v40 }
 0x487   :  { %10340 = vmatprep.subr.bf16.mxu1 %v21675_v43  ;;  %9572 = vmatprep.subr.bf16.mxu0 %v21684_v42 }
 0x489   :  { %9573 = vmatpush1.bf16.msra.mxu0 %v21682_v6 }
 0x48a   :  { %10341 = vmatpush1.bf16.msra.mxu1 %v21673_v18  ;;  %9574 = vmatprep.subr.bf16.mxu0 %v21690_v44  ;;  %v21745_v44 = vld [vmem:[%s28225_s3 + $0x11d0] ss:$8 sps:$4 sm:$0xff]  }
 0x48b   :  { %10342 = vmatprep.subr.bf16.mxu1 %v21681_v5  ;;  %v21756_v5 = vld [vmem:[%s28225_s3 + $0x1274] ss:$8 sps:$4 sm:$0xff]  }
 0x48d   :  { %9575 = vmatpush1.bf16.msra.mxu0 %v21688_v35 }
 0x48e   :  { %10343 = vmatpush1.bf16.msra.mxu1 %v21679_v36  ;;  %9576 = vmatprep.subr.bf16.mxu0 %v21696_v47  ;;  %v21754_v47 = vld [vmem:[%s28225_s3 + $0x1270] ss:$8 sps:$4 sm:$0xff]  }
 0x48f   :  { %10344 = vmatprep.subr.bf16.mxu1 %v21687_v45  ;;  %v21753_v45 = vld [vmem:[%s28225_s3 + $0x11e4] ss:$8 sps:$4 sm:$0xff]  }
 0x491   :  { %9577 = vmatpush1.bf16.msra.mxu0 %v21694_v38  ;;  %v21751_v38 = vld [vmem:[%s28225_s3 + $0x11e0] ss:$8 sps:$4 sm:$0xff]  }
 0x492   :  { %10345 = vmatpush1.bf16.msra.mxu1 %v21685_v17  ;;  %9578 = vmatprep.subr.bf16.mxu0 %v21702_v3  ;;  %v21762_v17 = vld [vmem:[%s28225_s3 + $0x1284] ss:$8 sps:$4 sm:$0xff]   ;;  %v21759_v3 = vld [vmem:[%s28225_s3 + $0x11f4] ss:$8 sps:$4 sm:$0xff]  }
 0x493   :  { %10346 = vmatprep.subr.bf16.mxu1 %v21693_v48  ;;  %v27065_v48 = vld [vmem:[#allocation2 + $0x1a] sm:$0x3f] }
 0x495   :  { %9579 = vmatpush1.bf16.msra.mxu0 %v21700_v53  ;;  %v21768_v53 = vld [vmem:[%s28225_s3 + $0x1294] ss:$8 sps:$4 sm:$0xff]  }
 0x496   :  { %10347 = vmatpush1.bf16.msra.mxu1 %v21691_v50  ;;  %9580 = vmatprep.subr.bf16.mxu0 %v21708_v24  ;;  %v21760_v50 = vld [vmem:[%s28225_s3 + $0x1280] ss:$8 sps:$4 sm:$0xff]   ;;  %v21757_v24 = vld [vmem:[%s28225_s3 + $0x11f0] ss:$8 sps:$4 sm:$0xff]  }
 0x497   :  { %10348 = vmatprep.subr.bf16.mxu1 %v21699_v23  ;;  %v27078_v23 = vrot.slane %v27065_v48, %v23077_v7 }
 0x499   :  { %9581 = vmatpush1.bf16.msra.mxu0 %v21706_v58  ;;  %v21766_v58 = vld [vmem:[%s28225_s3 + $0x1290] ss:$8 sps:$4 sm:$0xff]  }
 0x49a   :  { %10349 = vmatpush1.bf16.msra.mxu1 %v21697_v51  ;;  %11044 = vmatprep.subr.bf16.mxu0 %v21714_v61  ;;  %v21765_v51 = vld [vmem:[%s28225_s3 + $0x1504] ss:$8 sps:$4 sm:$0xff]  }
 0x49b   :  { %10350 = vmatprep.subr.bf16.mxu1 %v21705_v56  ;;  %v11314_v56 = vcombine.high %v27078_v23, %v27078_v23  ;;  %v21774_v61 = vld [vmem:[%s28225_s3 + $0x12a4] ss:$8 sps:$4 sm:$0xff]  }
 0x49c   :  { %9583 = vmatmul.mubr.bf16.vlgmr.msra.gmra.mrb[40].mxu0 %v8965_v9 }
 0x49d   :  { %11045 = vmatpush1.bf16.msra.mxu0 %v21712_v8  ;;  %11076 = vmatprep.mubr.bf16.mxu0 %v26973_v11  ;;  %v21771_v8 = vld [vmem:[%s28225_s3 + $0x1514] ss:$8 sps:$4 sm:$0xff]  }
 0x49e   :  { %10351 = vmatpush1.bf16.msra.mxu1 %v21703_v41  ;;  %11046 = vmatprep.subr.bf16.mxu0 %v21720_v21  ;;  %v21763_v41 = vld [vmem:[%s28225_s3 + $0x1500] ss:$8 sps:$4 sm:$0xff]  }
 0x49f   :  { %10352 = vmatprep.subr.bf16.mxu1 %v21711_v2  ;;  %v9753_v2 = vrot.slane %v26853_v16, %v23077_v7  ;;  %v21780_v16 = vld [vmem:[%s28225_s3 + $0x12b4] ss:$8 sps:$4 sm:$0xff]  }
 0x4a1   :  { %11047 = vmatpush1.bf16.msra.mxu0 %v21718_v32 }
 0x4a2   :  { %10353 = vmatpush1.bf16.msra.mxu1 %v21709_v49  ;;  %11048 = vmatprep.subr.bf16.mxu0 %v21726_v13  ;;  %v27106_v49 = vrot.slane %v11314_v56, %v23077_v7  ;;  %v21769_v13 = vld [vmem:[%s28225_s3 + $0x1510] ss:$8 sps:$4 sm:$0xff]  }
 0x4a3   :  { %10354 = vmatprep.subr.bf16.mxu1 %v21717_v19  ;;  %v21772_v19 = vld [vmem:[%s28225_s3 + $0x12a0] ss:$8 sps:$4 sm:$0xff]   ;;  %v21805_v56 = vld [vmem:[%s28225_s3 + $0x1570] ss:$8 sps:$4 sm:$0xff]  }
 0x4a5   :  { %11049 = vmatpush1.bf16.msra.mxu0 %v21724_v14  ;;  %v21786_v14 = vld [vmem:[%s28225_s3 + $0x12c4] ss:$8 sps:$4 sm:$0xff]  }
 0x4a6   :  { %10355 = vmatpush1.bf16.msra.mxu1 %v21715_v20  ;;  %11050 = vmatprep.subr.bf16.mxu0 %v21732_v28  ;;  %v21777_v20 = vld [vmem:[%s28225_s3 + $0x1524] ss:$8 sps:$4 sm:$0xff]   ;;  %v21775_v28 = vld [vmem:[%s28225_s3 + $0x1520] ss:$8 sps:$4 sm:$0xff]  }
 0x4a7   :  { %10356 = vmatprep.subr.bf16.mxu1 %v21723_v15  ;;  %v21778_v15 = vld [vmem:[%s28225_s3 + $0x12b0] ss:$8 sps:$4 sm:$0xff]  }
 0x4a9   :  { %11051 = vmatpush1.bf16.msra.mxu0 %v21730_v26  ;;  %v21792_v26 = vld [vmem:[%s28225_s3 + $0x12d4] ss:$8 sps:$4 sm:$0xff]  }
 0x4aa   :  { %10357 = vmatpush1.bf16.msra.mxu1 %v21721_v10  ;;  %11052 = vmatprep.subr.bf16.mxu0 %v21738_v22  ;;  %v21783_v10 = vld [vmem:[%s28225_s3 + $0x1534] ss:$8 sps:$4 sm:$0xff]   ;;  %v21781_v22 = vld [vmem:[%s28225_s3 + $0x1530] ss:$8 sps:$4 sm:$0xff]  }
 0x4ab   :  { %10358 = vmatprep.subr.bf16.mxu1 %v21729_v25  ;;  %v21784_v25 = vld [vmem:[%s28225_s3 + $0x12c0] ss:$8 sps:$4 sm:$0xff]  }
 0x4ad   :  { %11053 = vmatpush1.bf16.msra.mxu0 %v21736_v30  ;;  %v21790_v30 = vld [vmem:[%s28225_s3 + $0x12d0] ss:$8 sps:$4 sm:$0xff]  }
 0x4ae   :  { %10359 = vmatpush1.bf16.msra.mxu1 %v21727_v4  ;;  %11054 = vmatprep.subr.bf16.mxu0 %v21744_v59  ;;  %v21789_v4 = vld [vmem:[%s28225_s3 + $0x1544] ss:$8 sps:$4 sm:$0xff]  }
 0x4af   :  { %10360 = vmatprep.subr.bf16.mxu1 %v21735_v29  ;;  %v8008_v27 = vpop.f32.mrb[36].mxu0 }
 0x4b0   :  { %v27037_v39 = vadd.f32 %v8008_v27, %v26362_v52  ;;  %v8010_v63 = vpop.f32.mrb[37].mxu0 }
 0x4b1   :  { %v27043_v43 = vadd.f32 %v8010_v63, %v26365_v54  ;;  %v8012_v40 = vpop.f32.mrb[38].mxu0  ;;  %11055 = vmatpush1.bf16.msra.mxu0 %v21742_v33  ;;  %v21804_v63 = vld [vmem:[%s28225_s3 + $0x12f4] ss:$8 sps:$4 sm:$0xff]  }
 0x4b2   :  { %10361 = vmatpush1.bf16.msra.mxu1 %v21733_v0  ;;  %v8015_v42 = vsub.f32 0.0, %v27037_v39  ;;  %v8013_v18 = vpop.f32.mrb[39].mxu0  ;;  %11056 = vmatprep.subr.bf16.mxu0 %v21750_v31  ;;  %v21787_v31 = vld [vmem:[%s28225_s3 + $0x1540] ss:$8 sps:$4 sm:$0xff]   ;;  %v21801_v40 = vld [vmem:[%s28225_s3 + $0x1564] ss:$8 sps:$4 sm:$0xff]  }
 0x4b3   :  { %10362 = vmatprep.subr.bf16.mxu1 %v21741_v37  ;;  %v8016_v6 = vsub.f32 0.0, %v27043_v43  ;;  %v21798_v37 = vld [vmem:[%s28225_s3 + $0x12e4] ss:$8 sps:$4 sm:$0xff]  }
 0x4b4   :  { %v8017_v36 = vmul.f32 1.442695, %v8015_v42  ;;  %v21802_v42 = vld [vmem:[%s28225_s3 + $0x12f0] ss:$8 sps:$4 sm:$0xff]  }
 0x4b5   :  { %v8019_v35 = vmul.f32 1.442695, %v8016_v6  ;;  %11057 = vmatpush1.bf16.msra.mxu0 %v21748_v57  ;;  %v21810_v6 = vld [vmem:[%s28225_s3 + $0x1304] ss:$8 sps:$4 sm:$0xff]  }
 0x4b6   :  { %10363 = vmatpush1.bf16.msra.mxu1 %v21739_v1  ;;  %22859 = vpow2.f32 %v8017_v36  ;;  %11058 = vmatprep.subr.bf16.mxu0 %v21756_v5  ;;  %v21795_v1 = vld [vmem:[%s28225_s3 + $0x1554] ss:$8 sps:$4 sm:$0xff]  }
 0x4b7   :  { %10364 = vmatprep.subr.bf16.mxu1 %v21747_v34  ;;  %22861 = vpow2.f32 %v8019_v35 }
 0x4b9   :  { %11059 = vmatpush1.bf16.msra.mxu0 %v21754_v47 }
 0x4ba   :  { %10365 = vmatpush1.bf16.msra.mxu1 %v21745_v44  ;;  %11060 = vmatprep.subr.bf16.mxu0 %v21762_v17  ;;  %v21807_v17 = vld [vmem:[%s28225_s3 + $0x1574] ss:$8 sps:$4 sm:$0xff]  }
 0x4bb   :  { %10366 = vmatprep.subr.bf16.mxu1 %v21753_v45  ;;  %v21799_v45 = vld [vmem:[%s28225_s3 + $0x1560] ss:$8 sps:$4 sm:$0xff]  }
 0x4bd   :  { %11061 = vmatpush1.bf16.msra.mxu0 %v21760_v50 }
 0x4be   :  { %10367 = vmatpush1.bf16.msra.mxu1 %v21751_v38  ;;  %11062 = vmatprep.subr.bf16.mxu0 %v21768_v53  ;;  %v27197_v53 = vrot.slane %v26942_v55, %v23077_v7  ;;  %v21813_v55 = vld [vmem:[%s28225_s3 + $0x1584] ss:$8 sps:$4 sm:$0xff]  }
 0x4bf   :  { %10368 = vmatprep.subr.bf16.mxu1 %v21759_v3  ;;  %v21808_v3 = vld [vmem:[%s28225_s3 + $0x1300] ss:$8 sps:$4 sm:$0xff]  }
 0x4c0   :  { %v22860_v12 = vpop.eup %22859 }
 0x4c1   :  { %v22862_v9 = vpop.eup %22861  ;;  %v8021_v21 = vadd.f32 1.0, %v22860_v12  ;;  %11063 = vmatpush1.bf16.msra.mxu0 %v21766_v58  ;;  %v10557_v58 = vcombine.high %v26973_v11, %v26973_v11  ;;  %v21822_v11 = vld [vmem:[%s28225_s3 + $0x1324] ss:$8 sps:$4 sm:$0xff]   ;;  %v21819_v12 = vld [vmem:[%s28225_s3 + $0x1594] ss:$8 sps:$4 sm:$0xff]  }
 0x4c2   :  { %10369 = vmatpush1.bf16.msra.mxu1 %v21757_v24  ;;  %v8022_v32 = vadd.f32 1.0, %v22862_v9  ;;  %11064 = vmatprep.subr.bf16.mxu0 %v21774_v61  ;;  %v21816_v24 = vld [vmem:[%s28225_s3 + $0x1314] ss:$8 sps:$4 sm:$0xff]   ;;  %v21814_v61 = vld [vmem:[%s28225_s3 + $0x1310] ss:$8 sps:$4 sm:$0xff]  }
 0x4c3   :  { %11832 = vmatprep.subr.bf16.mxu1 %v21765_v51  ;;  %22863 = vrcp.f32 %v8021_v21  ;;  %v21817_v9 = vld [vmem:[%s28225_s3 + $0x1590] ss:$8 sps:$4 sm:$0xff]   ;;  %v21825_v21 = vld [vmem:[%s28225_s3 + $0x15a4] ss:$8 sps:$4 sm:$0xff]  }
 0x4c4   :  { %22865 = vrcp.f32 %v8022_v32 }
 0x4c5   :  { %10371 = vmatmul.mubr.bf16.vlgmr.msra.gmra.mrb[48].mxu1 %v9753_v2  ;;  %11065 = vmatpush1.bf16.msra.mxu0 %v21772_v19  ;;  %v21820_v2 = vld [vmem:[%s28225_s3 + $0x1320] ss:$8 sps:$4 sm:$0xff]   ;;  %v21826_v19 = vld [vmem:[%s28225_s3 + $0x1330] ss:$8 sps:$4 sm:$0xff]  }
 0x4c6   :  { %11833 = vmatpush1.bf16.msra.mxu1 %v21763_v41  ;;  %11864 = vmatprep.mubr.bf16.mxu1 %v27106_v49  ;;  %v21811_v41 = vld [vmem:[%s28225_s3 + $0x1580] ss:$8 sps:$4 sm:$0xff]  }
 0x4c7   :  { %11834 = vmatprep.subr.bf16.mxu1 %v21771_v8  ;;  %11066 = vmatprep.subr.bf16.mxu0 %v21780_v16  ;;  %v21828_v8 = vld [vmem:[%s28225_s3 + $0x1334] ss:$8 sps:$4 sm:$0xff]   ;;  %v21834_v16 = vld [vmem:[%s28225_s3 + $0x1344] ss:$8 sps:$4 sm:$0xff]  }
 0x4c9   :  { %11067 = vmatpush1.bf16.msra.mxu0 %v21778_v15  ;;  %v21823_v15 = vld [vmem:[%s28225_s3 + $0x15a0] ss:$8 sps:$4 sm:$0xff]  }
 0x4ca   :  { %11835 = vmatpush1.bf16.msra.mxu1 %v21769_v13  ;;  %11068 = vmatprep.subr.bf16.mxu0 %v21786_v14 }
 0x4cb   :  { %11836 = vmatprep.subr.bf16.mxu1 %v21777_v20 }
 0x4cd   :  { %v22864_v29 = vpop.eup %22863  ;;  %11069 = vmatpush1.bf16.msra.mxu0 %v21784_v25  ;;  %v21840_v25 = vld [vmem:[%s28225_s3 + $0x1354] ss:$8 sps:$4 sm:$0xff]  }
 0x4ce   :  { %11837 = vmatpush1.bf16.msra.mxu1 %v21775_v28  ;;  %v22866_v59 = vpop.eup %22865  ;;  %v8025_v0 = vmul.f32 %v22864_v29, %v27037_v39  ;;  %11070 = vmatprep.subr.bf16.mxu0 %v21792_v26  ;;  %v21796_v39 = vld [vmem:[%s28225_s3 + $0x12e0] ss:$8 sps:$4 sm:$0xff]   ;;  %v21831_v28 = vld [vmem:[%s28225_s3 + $0x15b4] ss:$8 sps:$4 sm:$0xff]   ;;  %v21829_v26 = vld [vmem:[%s28225_s3 + $0x15b0] ss:$8 sps:$4 sm:$0xff]  }
 0x4cf   :  { %11838 = vmatprep.subr.bf16.mxu1 %v21783_v10  ;;  %v8026_v33 = vmul.f32 %v22866_v59, %v27043_v43  ;;  %v21793_v43 = vld [vmem:[%s28225_s3 + $0x1550] ss:$8 sps:$4 sm:$0xff]   ;;  %v21832_v10 = vld [vmem:[%s28225_s3 + $0x1340] ss:$8 sps:$4 sm:$0xff]   ;;  %v21846_v29 = vld [vmem:[%s28225_s3 + $0x1364] ss:$8 sps:$4 sm:$0xff]  }
 0x4d0   :  { %v21843_v59 = vld [vmem:[%s28225_s3 + $0x15d4] ss:$8 sps:$4 sm:$0xff]  }
 0x4d1   :  { %v18125_v27 = vpack.c.bf16 %v8026_v33, %v8025_v0  ;;  %11071 = vmatpush1.bf16.msra.mxu0 %v21790_v30  ;;  %v21835_v30 = vld [vmem:[%s28225_s3 + $0x15c0] ss:$8 sps:$4 sm:$0xff]  }
 0x4d2   :  { %11839 = vmatpush1.bf16.msra.mxu1 %v21781_v22  ;;  %11072 = vmatprep.subr.bf16.mxu0 %v21798_v37  ;;  %v21837_v22 = vld [vmem:[%s28225_s3 + $0x15c4] ss:$8 sps:$4 sm:$0xff]   ;;  %v21844_v0 = vld [vmem:[%s28225_s3 + $0x1360] ss:$8 sps:$4 sm:$0xff]   ;;  %v21852_v37 = vld [vmem:[%s28225_s3 + $0x1374] ss:$8 sps:$4 sm:$0xff]  }
 0x4d3   :  { %11840 = vmatprep.subr.bf16.mxu1 %v21789_v4  ;;  %v8038_v34 = vrot.slane %v18125_v27, %v23077_v7  ;;  %v21838_v4 = vld [vmem:[%s28225_s3 + $0x1350] ss:$8 sps:$4 sm:$0xff]  }
 0x4d5   :  { %18126 = vst.sshfl [vmem:[#allocation3 + $0x4] sm:$0x5 pattern:$0x73625140] %v8038_v34  ;;  %11073 = vmatpush1.bf16.msra.mxu0 %v21796_v39  ;;  %v21849_v39 = vld [vmem:[%s28225_s3 + $0x15e4] ss:$8 sps:$4 sm:$0xff]  }
 0x4d6   :  { %11841 = vmatpush1.bf16.msra.mxu1 %v21787_v31  ;;  %11074 = vmatprep.subr.bf16.mxu0 %v21804_v63  ;;  %v21841_v31 = vld [vmem:[%s28225_s3 + $0x15d0] ss:$8 sps:$4 sm:$0xff]  }
 0x4d7   :  { %11842 = vmatprep.subr.bf16.mxu1 %v21795_v1  ;;  %v21850_v34 = vld [vmem:[%s28225_s3 + $0x1370] ss:$8 sps:$4 sm:$0xff]  }
 0x4d8   :  { %v8796_v57 = vpop.f32.mrb[44].mxu1 }
 0x4d9   :  { %v27176_v18 = vadd.f32 %v8796_v57, %v26362_v52  ;;  %v8798_v5 = vpop.f32.mrb[45].mxu1  ;;  %11075 = vmatpush1.bf16.msra.mxu0 %v21802_v42  ;;  %v21847_v57 = vld [vmem:[%s28225_s3 + $0x15e0] ss:$8 sps:$4 sm:$0xff]   ;;  %v21855_v42 = vld [vmem:[%s28225_s3 + $0x15f4] ss:$8 sps:$4 sm:$0xff]  }
 0x4da   :  { %v27182_v44 = vadd.f32 %v8798_v5, %v26365_v54  ;;  %v8800_v36 = vpop.f32.mrb[46].mxu1  ;;  %11843 = vmatpush1.bf16.msra.mxu1 %v21793_v43  ;;  %11085 = vmatprep.subr.bf16.mxu0 %v21810_v6  ;;  %v21858_v43 = vld [vmem:[%s28225_s3 + $0x1384] ss:$8 sps:$4 sm:$0xff]   ;;  %v21856_v5 = vld [vmem:[%s28225_s3 + $0x1380] ss:$8 sps:$4 sm:$0xff]  }
 0x4db   :  { %v8803_v35 = vsub.f32 0.0, %v27176_v18  ;;  %v8801_v47 = vpop.f32.mrb[47].mxu1  ;;  %11844 = vmatprep.subr.bf16.mxu1 %v21801_v40  ;;  %v21864_v6 = vld [vmem:[%s28225_s3 + $0x1394] ss:$8 sps:$4 sm:$0xff]   ;;  %v21861_v36 = vld [vmem:[%s28225_s3 + $0x1604] ss:$8 sps:$4 sm:$0xff]  }
 0x4dc   :  { %v8804_v38 = vsub.f32 0.0, %v27182_v44  ;;  %11077 = vmatmul.mubr.bf16.vlgmr.msra.gmra.mrb[44].mxu0 %v27197_v53  ;;  %v21859_v47 = vld [vmem:[%s28225_s3 + $0x1600] ss:$8 sps:$4 sm:$0xff]  }
 0x4dd   :  { %v8805_v50 = vmul.f32 1.442695, %v8803_v35  ;;  %11086 = vmatpush1.bf16.msra.mxu0 %v21808_v3  ;;  %11117 = vmatprep.mubr.bf16.mxu0 %v10557_v58  ;;  %v21870_v35 = vld [vmem:[%s28225_s3 + $0x13a4] ss:$8 sps:$4 sm:$0xff]   ;;  %v11345_v3 = vcombine.high %v27106_v49, %v27106_v49  ;;  %v21871_v58 = vld [vmem:[%s28225_s3 + $0x1620] ss:$8 sps:$4 sm:$0xff]  }
 0x4de   :  { %v8807_v51 = vmul.f32 1.442695, %v8804_v38  ;;  %11845 = vmatpush1.bf16.msra.mxu1 %v21799_v45  ;;  %11087 = vmatprep.subr.bf16.mxu0 %v21816_v24  ;;  %v21862_v45 = vld [vmem:[%s28225_s3 + $0x1390] ss:$8 sps:$4 sm:$0xff]   ;;  %v21867_v38 = vld [vmem:[%s28225_s3 + $0x1614] ss:$8 sps:$4 sm:$0xff]  }
 0x4df   :  { %22867 = vpow2.f32 %v8805_v50  ;;  %11846 = vmatprep.subr.bf16.mxu1 %v21807_v17  ;;  %v27321_v17 = vrot.slane %v27078_v23, %v23077_v7  ;;  %v21868_v50 = vld [vmem:[%s28225_s3 + $0x13a0] ss:$8 sps:$4 sm:$0xff]   ;;  %v21876_v23 = vld [vmem:[%s28225_s3 + $0x13b4] ss:$8 sps:$4 sm:$0xff]   ;;  %v21865_v24 = vld [vmem:[%s28225_s3 + $0x1610] ss:$8 sps:$4 sm:$0xff]  }
 0x4e0   :  { %22869 = vpow2.f32 %v8807_v51  ;;  %v21873_v49 = vld [vmem:[%s28225_s3 + $0x1624] ss:$8 sps:$4 sm:$0xff]   ;;  %v21874_v51 = vld [vmem:[%s28225_s3 + $0x13b0] ss:$8 sps:$4 sm:$0xff]  }
 0x4e1   :  { %11088 = vmatpush1.bf16.msra.mxu0 %v21814_v61  ;;  %v21880_v61 = vld [vmem:[%s28225_s3 + $0x13c0] ss:$8 sps:$4 sm:$0xff]  }
 0x4e2   :  { %11847 = vmatpush1.bf16.msra.mxu1 %v21805_v56  ;;  %11089 = vmatprep.subr.bf16.mxu0 %v21822_v11  ;;  %v21882_v56 = vld [vmem:[%s28225_s3 + $0x13c4] ss:$8 sps:$4 sm:$0xff]   ;;  %v21888_v11 = vld [vmem:[%s28225_s3 + $0x13d4] ss:$8 sps:$4 sm:$0xff]  }
 0x4e3   :  { %11848 = vmatprep.subr.bf16.mxu1 %v21813_v55  ;;  %v21879_v55 = vld [vmem:[%s28225_s3 + $0x1634] ss:$8 sps:$4 sm:$0xff]  }
 0x4e5   :  { %11090 = vmatpush1.bf16.msra.mxu0 %v21820_v2  ;;  %v21886_v2 = vld [vmem:[%s28225_s3 + $0x13d0] ss:$8 sps:$4 sm:$0xff]  }
 0x4e6   :  { %11849 = vmatpush1.bf16.msra.mxu1 %v21811_v41  ;;  %11091 = vmatprep.subr.bf16.mxu0 %v21828_v8  ;;  %v21877_v41 = vld [vmem:[%s28225_s3 + $0x1630] ss:$8 sps:$4 sm:$0xff]   ;;  %v21894_v8 = vld [vmem:[%s28225_s3 + $0x13e4] ss:$8 sps:$4 sm:$0xff]  }
 0x4e7   :  { %11850 = vmatprep.subr.bf16.mxu1 %v21819_v12  ;;  %v21885_v12 = vld [vmem:[%s28225_s3 + $0x1644] ss:$8 sps:$4 sm:$0xff]  }
 0x4e9   :  { %v22868_v32 = vpop.eup %22867  ;;  %11092 = vmatpush1.bf16.msra.mxu0 %v21826_v19  ;;  %v21891_v19 = vld [vmem:[%s28225_s3 + $0x1654] ss:$8 sps:$4 sm:$0xff]  }
 0x4ea   :  { %v22870_v13 = vpop.eup %22869  ;;  %v8809_v20 = vadd.f32 1.0, %v22868_v32  ;;  %11851 = vmatpush1.bf16.msra.mxu1 %v21817_v9  ;;  %11093 = vmatprep.subr.bf16.mxu0 %v21834_v16  ;;  %v21883_v9 = vld [vmem:[%s28225_s3 + $0x1640] ss:$8 sps:$4 sm:$0xff]   ;;  %v21900_v16 = vld [vmem:[%s28225_s3 + $0x13f4] ss:$8 sps:$4 sm:$0xff]  }
 0x4eb   :  { %v8810_v14 = vadd.f32 1.0, %v22870_v13  ;;  %11852 = vmatprep.subr.bf16.mxu1 %v21825_v21  ;;  %v10511_v21 = vcombine.high %v26929_v46, %v26929_v46  ;;  %v21892_v32 = vld [vmem:[%s28225_s3 + $0x13e0] ss:$8 sps:$4 sm:$0xff]   ;;  %v21889_v46 = vld [vmem:[%s28225_s3 + $0x1650] ss:$8 sps:$4 sm:$0xff]  }
 0x4ec   :  { %22871 = vrcp.f32 %v8809_v20  ;;  %v21897_v20 = vld [vmem:[%s28225_s3 + $0x1664] ss:$8 sps:$4 sm:$0xff]  }
 0x4ed   :  { %22873 = vrcp.f32 %v8810_v14  ;;  %11094 = vmatpush1.bf16.msra.mxu0 %v21832_v10  ;;  %v27389_v13 = vrot.slane %v10511_v21, %v23077_v7  ;;  %v21906_v14 = vld [vmem:[%s28225_s3 + $0x1404] ss:$8 sps:$4 sm:$0xff]  }
 0x4ee   :  { %11853 = vmatpush1.bf16.msra.mxu1 %v21823_v15  ;;  %11095 = vmatprep.subr.bf16.mxu0 %v21840_v25  ;;  %v21898_v15 = vld [vmem:[%s28225_s3 + $0x13f0] ss:$8 sps:$4 sm:$0xff]   ;;  %v21903_v25 = vld [vmem:[%s28225_s3 + $0x1674] ss:$8 sps:$4 sm:$0xff]  }
 0x4ef   :  { %11854 = vmatprep.subr.bf16.mxu1 %v21831_v28  ;;  %v21895_v28 = vld [vmem:[%s28225_s3 + $0x1660] ss:$8 sps:$4 sm:$0xff]   ;;  %v10527_v10 = vcombine.high %v27389_v13, %v27389_v13 }
 0x4f1   :  { %11096 = vmatpush1.bf16.msra.mxu0 %v21838_v4  ;;  %v21912_v4 = vld [vmem:[%s28225_s3 + $0x1414] ss:$8 sps:$4 sm:$0xff]  }
 0x4f2   :  { %11855 = vmatpush1.bf16.msra.mxu1 %v21829_v26  ;;  %11097 = vmatprep.subr.bf16.mxu0 %v21846_v29  ;;  %v21904_v26 = vld [vmem:[%s28225_s3 + $0x1400] ss:$8 sps:$4 sm:$0xff]   ;;  %v21901_v29 = vld [vmem:[%s28225_s3 + $0x1670] ss:$8 sps:$4 sm:$0xff]  }
 0x4f3   :  { %11856 = vmatprep.subr.bf16.mxu1 %v21837_v22  ;;  %v10556_v22 = vcombine.high %v27197_v53, %v27197_v53  ;;  %v21910_v53 = vld [vmem:[%s28225_s3 + $0x1410] ss:$8 sps:$4 sm:$0xff]  }
 0x4f5   :  { %11098 = vmatpush1.bf16.msra.mxu0 %v21844_v0  ;;  %v21918_v0 = vld [vmem:[%s28225_s3 + $0x1424] ss:$8 sps:$4 sm:$0xff]  }
 0x4f6   :  { %v22872_v33 = vpop.eup %22871  ;;  %11857 = vmatpush1.bf16.msra.mxu1 %v21835_v30  ;;  %11099 = vmatprep.subr.bf16.mxu0 %v21852_v37  ;;  %v10555_v30 = vrot.slane %v10527_v10, %v23077_v7  ;;  %v21907_v37 = vld [vmem:[%s28225_s3 + $0x1680] ss:$8 sps:$4 sm:$0xff]   ;;  %v21984_v10 = vld [vmem:[%s28225_s3 + $0x14d4] ss:$8 sps:$4 sm:$0xff]  }
 0x4f7   :  { %v22874_v1 = vpop.eup %22873  ;;  %v8813_v27 = vmul.f32 %v22872_v33, %v27176_v18  ;;  %11858 = vmatprep.subr.bf16.mxu1 %v21843_v59  ;;  %v21909_v59 = vld [vmem:[%s28225_s3 + $0x1684] ss:$8 sps:$4 sm:$0xff]   ;;  %v21915_v33 = vld [vmem:[%s28225_s3 + $0x1694] ss:$8 sps:$4 sm:$0xff]  }
 0x4f8   :  { %v8814_v63 = vmul.f32 %v22874_v1, %v27182_v44  ;;  %v21853_v44 = vld [vmem:[%s28225_s3 + $0x15f0] ss:$8 sps:$4 sm:$0xff]   ;;  %v21924_v1 = vld [vmem:[%s28225_s3 + $0x1434] ss:$8 sps:$4 sm:$0xff]  }
 0x4f9   :  { %11100 = vmatpush1.bf16.msra.mxu0 %v21850_v34  ;;  %v21930_v34 = vld [vmem:[%s28225_s3 + $0x1444] ss:$8 sps:$4 sm:$0xff]  }
 0x4fa   :  { %v18319_v40 = vpack.c.bf16 %v8814_v63, %v8813_v27  ;;  %11859 = vmatpush1.bf16.msra.mxu1 %v21841_v31  ;;  %11101 = vmatprep.subr.bf16.mxu0 %v21858_v43  ;;  %v21916_v31 = vld [vmem:[%s28225_s3 + $0x1420] ss:$8 sps:$4 sm:$0xff]   ;;  %v21913_v27 = vld [vmem:[%s28225_s3 + $0x1690] ss:$8 sps:$4 sm:$0xff]  }
 0x4fb   :  { %11860 = vmatprep.subr.bf16.mxu1 %v21849_v39  ;;  %v21921_v39 = vld [vmem:[%s28225_s3 + $0x16a4] ss:$8 sps:$4 sm:$0xff]   ;;  %v21922_v63 = vld [vmem:[%s28225_s3 + $0x1430] ss:$8 sps:$4 sm:$0xff]   ;;  %v21919_v43 = vld [vmem:[%s28225_s3 + $0x16a0] ss:$8 sps:$4 sm:$0xff]  }
 0x4fc   :  { %v8826_v18 = vrot.slane %v18319_v40, %v23077_v7  ;;  %v21927_v40 = vld [vmem:[%s28225_s3 + $0x16b4] ss:$8 sps:$4 sm:$0xff]  }
 0x4fd   :  { %11102 = vmatpush1.bf16.msra.mxu0 %v21856_v5  ;;  %v21933_v5 = vld [vmem:[%s28225_s3 + $0x16c4] ss:$8 sps:$4 sm:$0xff]  }
 0x4fe   :  { %18320 = vst.sshfl [vmem:[#allocation3 + $0x6] sm:$0x5 pattern:$0x73625140] %v8826_v18  ;;  %11861 = vmatpush1.bf16.msra.mxu1 %v21847_v57  ;;  %11103 = vmatprep.subr.bf16.mxu0 %v21864_v6  ;;  %v21928_v57 = vld [vmem:[%s28225_s3 + $0x1440] ss:$8 sps:$4 sm:$0xff]  }
 0x4ff   :  { %11862 = vmatprep.subr.bf16.mxu1 %v21855_v42  ;;  %v21936_v42 = vld [vmem:[%s28225_s3 + $0x1454] ss:$8 sps:$4 sm:$0xff]   ;;  %v21925_v18 = vld [vmem:[%s28225_s3 + $0x16b0] ss:$8 sps:$4 sm:$0xff]  }
 0x500   :  { %v21934_v6 = vld [vmem:[%s28225_s3 + $0x1450] ss:$8 sps:$4 sm:$0xff]  }
 0x501   :  { %11104 = vmatpush1.bf16.msra.mxu0 %v21862_v45  ;;  %v21939_v45 = vld [vmem:[%s28225_s3 + $0x16d4] ss:$8 sps:$4 sm:$0xff]  }
 0x502   :  { %11863 = vmatpush1.bf16.msra.mxu1 %v21853_v44  ;;  %11105 = vmatprep.subr.bf16.mxu0 %v21870_v35  ;;  %v21942_v44 = vld [vmem:[%s28225_s3 + $0x1464] ss:$8 sps:$4 sm:$0xff]   ;;  %v21940_v35 = vld [vmem:[%s28225_s3 + $0x1460] ss:$8 sps:$4 sm:$0xff]  }
 0x503   :  { %11873 = vmatprep.subr.bf16.mxu1 %v21861_v36  ;;  %v21931_v36 = vld [vmem:[%s28225_s3 + $0x16c0] ss:$8 sps:$4 sm:$0xff]  }
 0x505   :  { %11865 = vmatmul.mubr.bf16.vlgmr.msra.gmra.mrb[52].mxu1 %v27321_v17  ;;  %11106 = vmatpush1.bf16.msra.mxu0 %v21868_v50  ;;  %v21946_v50 = vld [vmem:[%s28225_s3 + $0x1470] ss:$8 sps:$4 sm:$0xff]  }
 0x506   :  { %11874 = vmatpush1.bf16.msra.mxu1 %v21859_v47  ;;  %11905 = vmatprep.mubr.bf16.mxu1 %v11345_v3  ;;  %v21948_v47 = vld [vmem:[%s28225_s3 + $0x1474] ss:$8 sps:$4 sm:$0xff]   ;;  %v21945_v3 = vld [vmem:[%s28225_s3 + $0x16e4] ss:$8 sps:$4 sm:$0xff]  }
 0x507   :  { %11875 = vmatprep.subr.bf16.mxu1 %v21867_v38  ;;  %11107 = vmatprep.subr.bf16.mxu0 %v21876_v23  ;;  %v21937_v38 = vld [vmem:[%s28225_s3 + $0x16d0] ss:$8 sps:$4 sm:$0xff]   ;;  %v11299_v23 = vcombine.high %v27065_v48, %v27065_v48  ;;  %v21952_v48 = vld [vmem:[%s28225_s3 + $0x1480] ss:$8 sps:$4 sm:$0xff]  }
 0x509   :  { %11108 = vmatpush1.bf16.msra.mxu0 %v21874_v51  ;;  %v21951_v51 = vld [vmem:[%s28225_s3 + $0x16f4] ss:$8 sps:$4 sm:$0xff]  }
 0x50a   :  { %11876 = vmatpush1.bf16.msra.mxu1 %v21865_v24  ;;  %11109 = vmatprep.subr.bf16.mxu0 %v21882_v56  ;;  %v21954_v24 = vld [vmem:[%s28225_s3 + $0x1484] ss:$8 sps:$4 sm:$0xff]   ;;  %v27513_v56 = vrot.slane %v11299_v23, %v23077_v7  ;;  %v22015_v23 = vld [vmem:[%s28225_s3 + $0x17a0] ss:$8 sps:$4 sm:$0xff]  }
 0x50b   :  { %11877 = vmatprep.subr.bf16.mxu1 %v21873_v49  ;;  %v21943_v49 = vld [vmem:[%s28225_s3 + $0x16e0] ss:$8 sps:$4 sm:$0xff]  }
 0x50d   :  { %11110 = vmatpush1.bf16.msra.mxu0 %v21880_v61  ;;  %v21957_v61 = vld [vmem:[%s28225_s3 + $0x1704] ss:$8 sps:$4 sm:$0xff]  }
 0x50e   :  { %11878 = vmatpush1.bf16.msra.mxu1 %v21871_v58  ;;  %11111 = vmatprep.subr.bf16.mxu0 %v21888_v11  ;;  %v21960_v58 = vld [vmem:[%s28225_s3 + $0x1494] ss:$8 sps:$4 sm:$0xff]   ;;  %v11315_v11 = vcombine.high %v27513_v56, %v27513_v56 }
 0x50f   :  { %11879 = vmatprep.subr.bf16.mxu1 %v21879_v55  ;;  %v21949_v55 = vld [vmem:[%s28225_s3 + $0x16f0] ss:$8 sps:$4 sm:$0xff]  }
 0x510   :  { %v11343_v21 = vrot.slane %v11315_v11, %v23077_v7  ;;  %v22027_v11 = vld [vmem:[%s28225_s3 + $0x17c0] ss:$8 sps:$4 sm:$0xff]  }
 0x511   :  { %11112 = vmatpush1.bf16.msra.mxu0 %v21886_v2  ;;  %v21955_v2 = vld [vmem:[%s28225_s3 + $0x1700] ss:$8 sps:$4 sm:$0xff]  }
 0x512   :  { %11880 = vmatpush1.bf16.msra.mxu1 %v21877_v41  ;;  %11113 = vmatprep.subr.bf16.mxu0 %v21894_v8  ;;  %v21958_v41 = vld [vmem:[%s28225_s3 + $0x1490] ss:$8 sps:$4 sm:$0xff]   ;;  %v11344_v8 = vcombine.high %v27321_v17, %v27321_v17 }
 0x513   :  { %11881 = vmatprep.subr.bf16.mxu1 %v21885_v12  ;;  %v21966_v12 = vld [vmem:[%s28225_s3 + $0x14a4] ss:$8 sps:$4 sm:$0xff]   ;;  %v21961_v17 = vld [vmem:[%s28225_s3 + $0x1710] ss:$8 sps:$4 sm:$0xff]  }
 0x515   :  { %11114 = vmatpush1.bf16.msra.mxu0 %v21892_v32  ;;  %v21972_v32 = vld [vmem:[%s28225_s3 + $0x14b4] ss:$8 sps:$4 sm:$0xff]  }
 0x516   :  { %11882 = vmatpush1.bf16.msra.mxu1 %v21883_v9  ;;  %11115 = vmatprep.subr.bf16.mxu0 %v21900_v16  ;;  %v21963_v9 = vld [vmem:[%s28225_s3 + $0x1714] ss:$8 sps:$4 sm:$0xff]   ;;  %v21969_v16 = vld [vmem:[%s28225_s3 + $0x1724] ss:$8 sps:$4 sm:$0xff]  }
 0x517   :  { %11883 = vmatprep.subr.bf16.mxu1 %v21891_v19  ;;  %v21964_v19 = vld [vmem:[%s28225_s3 + $0x14a0] ss:$8 sps:$4 sm:$0xff]  }
 0x519   :  { %11116 = vmatpush1.bf16.msra.mxu0 %v21898_v15  ;;  %v21967_v15 = vld [vmem:[%s28225_s3 + $0x1720] ss:$8 sps:$4 sm:$0xff]  }
 0x51a   :  { %11884 = vmatpush1.bf16.msra.mxu1 %v21889_v46  ;;  %11126 = vmatprep.subr.bf16.mxu0 %v21906_v14  ;;  %v21970_v46 = vld [vmem:[%s28225_s3 + $0x14b0] ss:$8 sps:$4 sm:$0xff]   ;;  %v21975_v14 = vld [vmem:[%s28225_s3 + $0x1734] ss:$8 sps:$4 sm:$0xff]  }
 0x51b   :  { %11885 = vmatprep.subr.bf16.mxu1 %v21897_v20  ;;  %v21978_v20 = vld [vmem:[%s28225_s3 + $0x14c4] ss:$8 sps:$4 sm:$0xff]  }
 0x51c   :  { %11118 = vmatmul.mubr.bf16.vlgmr.msra.gmra.mrb[44].mxu0 %v10556_v22  ;;  %v21982_v22 = vld [vmem:[%s28225_s3 + $0x14d0] ss:$8 sps:$4 sm:$0xff]  }
 0x51d   :  { %11127 = vmatpush1.bf16.msra.mxu0 %v21904_v26  ;;  %11158 = vmatprep.mubr.bf16.mxu0 %v10555_v30  ;;  %v21981_v26 = vld [vmem:[%s28225_s3 + $0x1744] ss:$8 sps:$4 sm:$0xff]   ;;  %v21987_v30 = vld [vmem:[%s28225_s3 + $0x1754] ss:$8 sps:$4 sm:$0xff]  }
 0x51e   :  { %11886 = vmatpush1.bf16.msra.mxu1 %v21895_v28  ;;  %11128 = vmatprep.subr.bf16.mxu0 %v21912_v4  ;;  %v21976_v28 = vld [vmem:[%s28225_s3 + $0x14c0] ss:$8 sps:$4 sm:$0xff]   ;;  %v21990_v4 = vld [vmem:[%s28225_s3 + $0x14e4] ss:$8 sps:$4 sm:$0xff]  }
 0x51f   :  { %11887 = vmatprep.subr.bf16.mxu1 %v21903_v25  ;;  %v21973_v25 = vld [vmem:[%s28225_s3 + $0x1730] ss:$8 sps:$4 sm:$0xff]  }
 0x521   :  { %11129 = vmatpush1.bf16.msra.mxu0 %v21910_v53  ;;  %v21988_v53 = vld [vmem:[%s28225_s3 + $0x14e0] ss:$8 sps:$4 sm:$0xff]  }
 0x522   :  { %11888 = vmatpush1.bf16.msra.mxu1 %v21901_v29  ;;  %11130 = vmatprep.subr.bf16.mxu0 %v21918_v0  ;;  %v21979_v29 = vld [vmem:[%s28225_s3 + $0x1740] ss:$8 sps:$4 sm:$0xff]   ;;  %v21996_v0 = vld [vmem:[%s28225_s3 + $0x14f4] ss:$8 sps:$4 sm:$0xff]  }
 0x523   :  { %11889 = vmatprep.subr.bf16.mxu1 %v21909_v59  ;;  %v27589_v59 = vld [vmem:[#allocation3] sm:$0x3f] }
 0x525   :  { %11131 = vmatpush1.bf16.msra.mxu0 %v21916_v31  ;;  %v21993_v31 = vld [vmem:[%s28225_s3 + $0x1764] ss:$8 sps:$4 sm:$0xff]  }
 0x526   :  { %11890 = vmatpush1.bf16.msra.mxu1 %v21907_v37  ;;  %11132 = vmatprep.subr.bf16.mxu0 %v21924_v1  ;;  %v21985_v37 = vld [vmem:[%s28225_s3 + $0x1750] ss:$8 sps:$4 sm:$0xff]  }
 0x527   :  { %11891 = vmatprep.subr.bf16.mxu1 %v21915_v33  ;;  %v27602_v33 = vrot.slane %v27589_v59, %v23077_v7  ;;  %v21994_v1 = vld [vmem:[%s28225_s3 + $0x14f0] ss:$8 sps:$4 sm:$0xff]  }
 0x529   :  { %11133 = vmatpush1.bf16.msra.mxu0 %v21922_v63  ;;  %v12113_v63 = vcombine.high %v27602_v33, %v27602_v33 }
 0x52a   :  { %11892 = vmatpush1.bf16.msra.mxu1 %v21913_v27  ;;  %11134 = vmatprep.subr.bf16.mxu0 %v21930_v34  ;;  %v22002_v27 = vld [vmem:[#allocation7 + $0x4] ss:$8 sps:$4 sm:$0xff]  }
 0x52b   :  { %11893 = vmatprep.subr.bf16.mxu1 %v21921_v39  ;;  %v21991_v39 = vld [vmem:[%s28225_s3 + $0x1760] ss:$8 sps:$4 sm:$0xff]   ;;  %v21999_v34 = vld [vmem:[%s28225_s3 + $0x1774] ss:$8 sps:$4 sm:$0xff]  }
 0x52d   :  { %11135 = vmatpush1.bf16.msra.mxu0 %v21928_v57  ;;  %v22008_v57 = vld [vmem:[#allocation7 + $0x14] ss:$8 sps:$4 sm:$0xff]  }
 0x52e   :  { %11894 = vmatpush1.bf16.msra.mxu1 %v21919_v43  ;;  %11136 = vmatprep.subr.bf16.mxu0 %v21936_v42  ;;  %v22000_v43 = vld [vmem:[#allocation7] ss:$8 sps:$4 sm:$0xff]  }
 0x52f   :  { %11895 = vmatprep.subr.bf16.mxu1 %v21927_v40  ;;  %v10541_v40 = vrot.slane %v27389_v13, %v23077_v7  ;;  %v21997_v42 = vld [vmem:[%s28225_s3 + $0x1770] ss:$8 sps:$4 sm:$0xff]  }
 0x530   :  { %v22006_v13 = vld [vmem:[#allocation7 + $0x10] ss:$8 sps:$4 sm:$0xff]  }
 0x531   :  { %11137 = vmatpush1.bf16.msra.mxu0 %v21934_v6  ;;  %v22014_v6 = vld [vmem:[#allocation7 + $0x24] ss:$8 sps:$4 sm:$0xff]  }
 0x532   :  { %11896 = vmatpush1.bf16.msra.mxu1 %v21925_v18  ;;  %11138 = vmatprep.subr.bf16.mxu0 %v21942_v44  ;;  %v27624_v18 = vrot.slane %v12113_v63, %v23077_v7  ;;  %v22003_v44 = vld [vmem:[%s28225_s3 + $0x1780] ss:$8 sps:$4 sm:$0xff]  }
 0x533   :  { %11897 = vmatprep.subr.bf16.mxu1 %v21933_v5  ;;  %v22005_v5 = vld [vmem:[%s28225_s3 + $0x1784] ss:$8 sps:$4 sm:$0xff]  }
 0x535   :  { %11139 = vmatpush1.bf16.msra.mxu0 %v21940_v35  ;;  %v22020_v35 = vld [vmem:[#allocation7 + $0x34] ss:$8 sps:$4 sm:$0xff]  }
 0x536   :  { %11898 = vmatpush1.bf16.msra.mxu1 %v21931_v36  ;;  %11140 = vmatprep.subr.bf16.mxu0 %v21948_v47  ;;  %v22011_v36 = vld [vmem:[%s28225_s3 + $0x1794] ss:$8 sps:$4 sm:$0xff]   ;;  %v22009_v47 = vld [vmem:[%s28225_s3 + $0x1790] ss:$8 sps:$4 sm:$0xff]  }
 0x537   :  { %11899 = vmatprep.subr.bf16.mxu1 %v21939_v45  ;;  %v22012_v45 = vld [vmem:[#allocation7 + $0x20] ss:$8 sps:$4 sm:$0xff]  }
 0x539   :  { %11141 = vmatpush1.bf16.msra.mxu0 %v21946_v50  ;;  %v22026_v50 = vld [vmem:[#allocation7 + $0x44] ss:$8 sps:$4 sm:$0xff]  }
 0x53a   :  { %11900 = vmatpush1.bf16.msra.mxu1 %v21937_v38  ;;  %11142 = vmatprep.subr.bf16.mxu0 %v21954_v24  ;;  %v22017_v38 = vld [vmem:[%s28225_s3 + $0x17a4] ss:$8 sps:$4 sm:$0xff]   ;;  %v22023_v24 = vld [vmem:[%s28225_s3 + $0x17b4] ss:$8 sps:$4 sm:$0xff]  }
 0x53b   :  { %11901 = vmatprep.subr.bf16.mxu1 %v21945_v3  ;;  %v22018_v3 = vld [vmem:[#allocation7 + $0x30] ss:$8 sps:$4 sm:$0xff]  }
 0x53d   :  { %11143 = vmatpush1.bf16.msra.mxu0 %v21952_v48  ;;  %v22021_v48 = vld [vmem:[%s28225_s3 + $0x17b0] ss:$8 sps:$4 sm:$0xff]  }
 0x53e   :  { %11902 = vmatpush1.bf16.msra.mxu1 %v21943_v49  ;;  %11144 = vmatprep.subr.bf16.mxu0 %v21960_v58  ;;  %v22024_v49 = vld [vmem:[#allocation7 + $0x40] ss:$8 sps:$4 sm:$0xff]  }
 0x53f   :  { %11903 = vmatprep.subr.bf16.mxu1 %v21951_v51  ;;  %v22032_v51 = vld [vmem:[#allocation7 + $0x54] ss:$8 sps:$4 sm:$0xff]  }
 0x540   :  { %v22029_v58 = vld [vmem:[%s28225_s3 + $0x17c4] ss:$8 sps:$4 sm:$0xff]  }
 0x541   :  { %11145 = vmatpush1.bf16.msra.mxu0 %v21958_v41 }
 0x542   :  { %11904 = vmatpush1.bf16.msra.mxu1 %v21949_v55  ;;  %11146 = vmatprep.subr.bf16.mxu0 %v21966_v12  ;;  %v22030_v55 = vld [vmem:[#allocation7 + $0x50] ss:$8 sps:$4 sm:$0xff]  }
 0x543   :  { %11914 = vmatprep.subr.bf16.mxu1 %v21957_v61  ;;  %v22038_v61 = vld [vmem:[#allocation7 + $0x64] ss:$8 sps:$4 sm:$0xff]  }
 0x545   :  { %11906 = vmatmul.mubr.bf16.vlgmr.msra.gmra.mrb[52].mxu1 %v11344_v8  ;;  %11147 = vmatpush1.bf16.msra.mxu0 %v21964_v19  ;;  %v22035_v8 = vld [vmem:[%s28225_s3 + $0x17d4] ss:$8 sps:$4 sm:$0xff]  }
 0x546   :  { %11915 = vmatpush1.bf16.msra.mxu1 %v21955_v2  ;;  %11946 = vmatprep.mubr.bf16.mxu1 %v11343_v21  ;;  %v22036_v19 = vld [vmem:[#allocation7 + $0x60] ss:$8 sps:$4 sm:$0xff]  }
 0x547   :  { %11916 = vmatprep.subr.bf16.mxu1 %v21963_v9  ;;  %11148 = vmatprep.subr.bf16.mxu0 %v21972_v32 }
 0x549   :  { %11149 = vmatpush1.bf16.msra.mxu0 %v21970_v46 }
 0x54a   :  { %11917 = vmatpush1.bf16.msra.mxu1 %v21961_v17  ;;  %11150 = vmatprep.subr.bf16.mxu0 %v21978_v20  ;;  %v22033_v20 = vld [vmem:[%s28225_s3 + $0x17d0] ss:$8 sps:$4 sm:$0xff]  }
 0x54b   :  { %11918 = vmatprep.subr.bf16.mxu1 %v21969_v16  ;;  %v22044_v16 = vld [vmem:[#allocation7 + $0x74] ss:$8 sps:$4 sm:$0xff]  }
 0x54d   :  { %11151 = vmatpush1.bf16.msra.mxu0 %v21976_v28 }
 0x54e   :  { %11919 = vmatpush1.bf16.msra.mxu1 %v21967_v15  ;;  %11152 = vmatprep.subr.bf16.mxu0 %v21984_v10  ;;  %v22042_v10 = vld [vmem:[#allocation7 + $0x70] ss:$8 sps:$4 sm:$0xff]  }
 0x54f   :  { %11920 = vmatprep.subr.bf16.mxu1 %v21975_v14  ;;  %v22041_v14 = vld [vmem:[%s28225_s3 + $0x17e4] ss:$8 sps:$4 sm:$0xff]  }
 0x551   :  { %11153 = vmatpush1.bf16.msra.mxu0 %v21982_v22  ;;  %v22039_v22 = vld [vmem:[%s28225_s3 + $0x17e0] ss:$8 sps:$4 sm:$0xff]  }
 0x552   :  { %11921 = vmatpush1.bf16.msra.mxu1 %v21973_v25  ;;  %11154 = vmatprep.subr.bf16.mxu0 %v21990_v4  ;;  %v22050_v25 = vld [vmem:[#allocation7 + $0x84] ss:$8 sps:$4 sm:$0xff]  }
 0x553   :  { %11922 = vmatprep.subr.bf16.mxu1 %v21981_v26  ;;  %v27674_v26 = vld [vmem:[#allocation3 + $0x2] sm:$0x3f]  ;;  %v22047_v4 = vld [vmem:[%s28225_s3 + $0x17f4] ss:$8 sps:$4 sm:$0xff]  }
 0x555   :  { %11155 = vmatpush1.bf16.msra.mxu0 %v21988_v53  ;;  %v22056_v53 = vld [vmem:[#allocation7 + $0x94] ss:$8 sps:$4 sm:$0xff]  }
 0x556   :  { %11923 = vmatpush1.bf16.msra.mxu1 %v21979_v29  ;;  %11156 = vmatprep.subr.bf16.mxu0 %v21996_v0  ;;  %v22048_v29 = vld [vmem:[#allocation7 + $0x80] ss:$8 sps:$4 sm:$0xff]  }
 0x557   :  { %11924 = vmatprep.subr.bf16.mxu1 %v21987_v30  ;;  %v27684_v30 = vrot.slane %v27674_v26, %v23077_v7  ;;  %v22045_v0 = vld [vmem:[%s28225_s3 + $0x17f0] ss:$8 sps:$4 sm:$0xff]  }
 0x559   :  { %11157 = vmatpush1.bf16.msra.mxu0 %v21994_v1  ;;  %v22054_v1 = vld [vmem:[#allocation7 + $0x90] ss:$8 sps:$4 sm:$0xff]  }
 0x55a   :  { %11925 = vmatpush1.bf16.msra.mxu1 %v21985_v37  ;;  %12631 = vmatprep.subr.bf16.mxu0 %v22002_v27  ;;  %v22053_v37 = vld [vmem:[#allocation7 + $0x304] ss:$8 sps:$4 sm:$0xff]  }
 0x55b   :  { %11926 = vmatprep.subr.bf16.mxu1 %v21993_v31  ;;  %v12901_v31 = vcombine.high %v27684_v30, %v27684_v30  ;;  %v22062_v27 = vld [vmem:[#allocation7 + $0xa4] ss:$8 sps:$4 sm:$0xff]  }
 0x55c   :  { %11159 = vmatmul.mubr.bf16.vlgmr.msra.gmra.mrb[44].mxu0 %v10541_v40 }
 0x55d   :  { %12632 = vmatpush1.bf16.msra.mxu0 %v22000_v43  ;;  %12663 = vmatprep.mubr.bf16.mxu0 %v27624_v18  ;;  %v22059_v43 = vld [vmem:[#allocation7 + $0x314] ss:$8 sps:$4 sm:$0xff]  }
 0x55e   :  { %11927 = vmatpush1.bf16.msra.mxu1 %v21991_v39  ;;  %12633 = vmatprep.subr.bf16.mxu0 %v22008_v57  ;;  %v22051_v39 = vld [vmem:[#allocation7 + $0x300] ss:$8 sps:$4 sm:$0xff]  }
 0x55f   :  { %11928 = vmatprep.subr.bf16.mxu1 %v21999_v34  ;;  %v11329_v34 = vrot.slane %v27513_v56, %v23077_v7  ;;  %v22065_v56 = vld [vmem:[#allocation7 + $0x324] ss:$8 sps:$4 sm:$0xff]  }
 0x561   :  { %12634 = vmatpush1.bf16.msra.mxu0 %v22006_v13 }
 0x562   :  { %11929 = vmatpush1.bf16.msra.mxu1 %v21997_v42  ;;  %12635 = vmatprep.subr.bf16.mxu0 %v22014_v6  ;;  %v27694_v42 = vrot.slane %v12901_v31, %v23077_v7  ;;  %v22068_v6 = vld [vmem:[#allocation7 + $0xb4] ss:$8 sps:$4 sm:$0xff]   ;;  %v22093_v31 = vld [vmem:[#allocation7 + $0x370] ss:$8 sps:$4 sm:$0xff]  }
 0x563   :  { %11930 = vmatprep.subr.bf16.mxu1 %v22005_v5  ;;  %v22060_v5 = vld [vmem:[#allocation7 + $0xa0] ss:$8 sps:$4 sm:$0xff]  }
 0x565   :  { %12636 = vmatpush1.bf16.msra.mxu0 %v22012_v45  ;;  %v22074_v45 = vld [vmem:[#allocation7 + $0xc4] ss:$8 sps:$4 sm:$0xff]  }
 0x566   :  { %11931 = vmatpush1.bf16.msra.mxu1 %v22003_v44  ;;  %12637 = vmatprep.subr.bf16.mxu0 %v22020_v35  ;;  %v22057_v44 = vld [vmem:[#allocation7 + $0x310] ss:$8 sps:$4 sm:$0xff]   ;;  %v22063_v35 = vld [vmem:[#allocation7 + $0x320] ss:$8 sps:$4 sm:$0xff]  }
 0x567   :  { %11932 = vmatprep.subr.bf16.mxu1 %v22011_v36  ;;  %v22066_v36 = vld [vmem:[#allocation7 + $0xb0] ss:$8 sps:$4 sm:$0xff]  }
 0x569   :  { %12638 = vmatpush1.bf16.msra.mxu0 %v22018_v3  ;;  %v22080_v3 = vld [vmem:[#allocation7 + $0xd4] ss:$8 sps:$4 sm:$0xff]  }
 0x56a   :  { %11933 = vmatpush1.bf16.msra.mxu1 %v22009_v47  ;;  %12639 = vmatprep.subr.bf16.mxu0 %v22026_v50  ;;  %v22071_v47 = vld [vmem:[#allocation7 + $0x334] ss:$8 sps:$4 sm:$0xff]   ;;  %v22069_v50 = vld [vmem:[#allocation7 + $0x330] ss:$8 sps:$4 sm:$0xff]  }
 0x56b   :  { %11934 = vmatprep.subr.bf16.mxu1 %v22017_v38  ;;  %v22072_v38 = vld [vmem:[#allocation7 + $0xc0] ss:$8 sps:$4 sm:$0xff]  }
 0x56d   :  { %12640 = vmatpush1.bf16.msra.mxu0 %v22024_v49  ;;  %v22078_v49 = vld [vmem:[#allocation7 + $0xd0] ss:$8 sps:$4 sm:$0xff]  }
 0x56e   :  { %11935 = vmatpush1.bf16.msra.mxu1 %v22015_v23  ;;  %12641 = vmatprep.subr.bf16.mxu0 %v22032_v51  ;;  %v22077_v23 = vld [vmem:[#allocation7 + $0x344] ss:$8 sps:$4 sm:$0xff]  }
 0x56f   :  { %11936 = vmatprep.subr.bf16.mxu1 %v22023_v24  ;;  %v9584_v41 = vpop.f32.mrb[40].mxu0 }
 0x570   :  { %v27658_v12 = vadd.f32 %v9584_v41, %v26362_v52  ;;  %v9586_v2 = vpop.f32.mrb[41].mxu0 }
 0x571   :  { %v27664_v9 = vadd.f32 %v9586_v2, %v26365_v54  ;;  %v9588_v21 = vpop.f32.mrb[42].mxu0  ;;  %12642 = vmatpush1.bf16.msra.mxu0 %v22030_v55  ;;  %v22084_v2 = vld [vmem:[#allocation7 + $0xe0] ss:$8 sps:$4 sm:$0xff]  }
 0x572   :  { %11937 = vmatpush1.bf16.msra.mxu1 %v22021_v48  ;;  %v9591_v32 = vsub.f32 0.0, %v27658_v12  ;;  %v9589_v17 = vpop.f32.mrb[43].mxu0  ;;  %12643 = vmatprep.subr.bf16.mxu0 %v22038_v61  ;;  %v22075_v61 = vld [vmem:[#allocation7 + $0x340] ss:$8 sps:$4 sm:$0xff]  }
 0x573   :  { %11938 = vmatprep.subr.bf16.mxu1 %v22029_v58  ;;  %v9592_v46 = vsub.f32 0.0, %v27664_v9  ;;  %v22086_v58 = vld [vmem:[#allocation7 + $0xe4] ss:$8 sps:$4 sm:$0xff]   ;;  %v22090_v17 = vld [vmem:[#allocation7 + $0xf0] ss:$8 sps:$4 sm:$0xff]  }
 0x574   :  { %v9593_v15 = vmul.f32 1.442695, %v9591_v32  ;;  %v22089_v32 = vld [vmem:[#allocation7 + $0x364] ss:$8 sps:$4 sm:$0xff]  }
 0x575   :  { %v9595_v28 = vmul.f32 1.442695, %v9592_v46  ;;  %12644 = vmatpush1.bf16.msra.mxu0 %v22036_v19  ;;  %v22081_v19 = vld [vmem:[#allocation7 + $0x350] ss:$8 sps:$4 sm:$0xff]   ;;  %v22098_v46 = vld [vmem:[#allocation7 + $0x104] ss:$8 sps:$4 sm:$0xff]  }
 0x576   :  { %11939 = vmatpush1.bf16.msra.mxu1 %v22027_v11  ;;  %22875 = vpow2.f32 %v9593_v15  ;;  %12645 = vmatprep.subr.bf16.mxu0 %v22044_v16  ;;  %v22083_v11 = vld [vmem:[#allocation7 + $0x354] ss:$8 sps:$4 sm:$0xff]  }
 0x577   :  { %11940 = vmatprep.subr.bf16.mxu1 %v22035_v8  ;;  %22877 = vpow2.f32 %v9595_v28  ;;  %v22092_v8 = vld [vmem:[#allocation7 + $0xf4] ss:$8 sps:$4 sm:$0xff]  }
 0x579   :  { %12646 = vmatpush1.bf16.msra.mxu0 %v22042_v10 }
 0x57a   :  { %11941 = vmatpush1.bf16.msra.mxu1 %v22033_v20  ;;  %12647 = vmatprep.subr.bf16.mxu0 %v22050_v25  ;;  %v22095_v25 = vld [vmem:[#allocation7 + $0x374] ss:$8 sps:$4 sm:$0xff]  }
 0x57b   :  { %11942 = vmatprep.subr.bf16.mxu1 %v22041_v14  ;;  %v22087_v14 = vld [vmem:[#allocation7 + $0x360] ss:$8 sps:$4 sm:$0xff]  }
 0x57d   :  { %12648 = vmatpush1.bf16.msra.mxu0 %v22048_v29 }
 0x57e   :  { %11943 = vmatpush1.bf16.msra.mxu1 %v22039_v22  ;;  %12649 = vmatprep.subr.bf16.mxu0 %v22056_v53  ;;  %v27710_v53 = vrot.slane %v27602_v33, %v23077_v7  ;;  %v22110_v33 = vld [vmem:[#allocation7 + $0x124] ss:$8 sps:$4 sm:$0xff]  }
 0x57f   :  { %11944 = vmatprep.subr.bf16.mxu1 %v22047_v4  ;;  %v22096_v4 = vld [vmem:[#allocation7 + $0x100] ss:$8 sps:$4 sm:$0xff]  }
 0x580   :  { %v22876_v63 = vpop.eup %22875 }
 0x581   :  { %v22878_v40 = vpop.eup %22877  ;;  %v9597_v57 = vadd.f32 1.0, %v22876_v63  ;;  %12650 = vmatpush1.bf16.msra.mxu0 %v22054_v1  ;;  %v12144_v1 = vcombine.high %v27624_v18, %v27624_v18  ;;  %v22099_v63 = vld [vmem:[#allocation7 + $0x380] ss:$8 sps:$4 sm:$0xff]   ;;  %v22105_v18 = vld [vmem:[#allocation7 + $0x390] ss:$8 sps:$4 sm:$0xff]  }
 0x582   :  { %11945 = vmatpush1.bf16.msra.mxu1 %v22045_v0  ;;  %v9598_v13 = vadd.f32 1.0, %v22878_v40  ;;  %12651 = vmatprep.subr.bf16.mxu0 %v22062_v27  ;;  %v22104_v0 = vld [vmem:[#allocation7 + $0x114] ss:$8 sps:$4 sm:$0xff]   ;;  %v22101_v27 = vld [vmem:[#allocation7 + $0x384] ss:$8 sps:$4 sm:$0xff]  }
 0x583   :  { %13419 = vmatprep.subr.bf16.mxu1 %v22053_v37  ;;  %22879 = vrcp.f32 %v9597_v57  ;;  %v22116_v40 = vld [vmem:[#allocation7 + $0x134] ss:$8 sps:$4 sm:$0xff]   ;;  %v22113_v57 = vld [vmem:[#allocation7 + $0x3a4] ss:$8 sps:$4 sm:$0xff]  }
 0x584   :  { %22881 = vrcp.f32 %v9598_v13 }
 0x585   :  { %11947 = vmatmul.mubr.bf16.vlgmr.msra.gmra.mrb[52].mxu1 %v11329_v34  ;;  %12652 = vmatpush1.bf16.msra.mxu0 %v22060_v5  ;;  %v22107_v34 = vld [vmem:[#allocation7 + $0x394] ss:$8 sps:$4 sm:$0xff]   ;;  %v22114_v5 = vld [vmem:[#allocation7 + $0x130] ss:$8 sps:$4 sm:$0xff]  }
 0x586   :  { %13420 = vmatpush1.bf16.msra.mxu1 %v22051_v39  ;;  %13451 = vmatprep.mubr.bf16.mxu1 %v27694_v42  ;;  %v22102_v39 = vld [vmem:[#allocation7 + $0x110] ss:$8 sps:$4 sm:$0xff]  }
 0x587   :  { %13421 = vmatprep.subr.bf16.mxu1 %v22059_v43  ;;  %12653 = vmatprep.subr.bf16.mxu0 %v22068_v6  ;;  %v22108_v43 = vld [vmem:[#allocation7 + $0x120] ss:$8 sps:$4 sm:$0xff]   ;;  %v22122_v6 = vld [vmem:[#allocation7 + $0x144] ss:$8 sps:$4 sm:$0xff]  }
 0x589   :  { %12654 = vmatpush1.bf16.msra.mxu0 %v22066_v36  ;;  %v22111_v36 = vld [vmem:[#allocation7 + $0x3a0] ss:$8 sps:$4 sm:$0xff]  }
 0x58a   :  { %13422 = vmatpush1.bf16.msra.mxu1 %v22057_v44  ;;  %12655 = vmatprep.subr.bf16.mxu0 %v22074_v45 }
 0x58b   :  { %13423 = vmatprep.subr.bf16.mxu1 %v22065_v56 }
 0x58d   :  { %v22880_v24 = vpop.eup %22879  ;;  %12656 = vmatpush1.bf16.msra.mxu0 %v22072_v38  ;;  %v22128_v38 = vld [vmem:[#allocation7 + $0x154] ss:$8 sps:$4 sm:$0xff]  }
 0x58e   :  { %13424 = vmatpush1.bf16.msra.mxu1 %v22063_v35  ;;  %v22882_v51 = vpop.eup %22881  ;;  %v9601_v48 = vmul.f32 %v22880_v24, %v27658_v12  ;;  %12657 = vmatprep.subr.bf16.mxu0 %v22080_v3  ;;  %v22119_v35 = vld [vmem:[#allocation7 + $0x3b4] ss:$8 sps:$4 sm:$0xff]   ;;  %v22117_v3 = vld [vmem:[#allocation7 + $0x3b0] ss:$8 sps:$4 sm:$0xff]   ;;  %v22134_v24 = vld [vmem:[#allocation7 + $0x164] ss:$8 sps:$4 sm:$0xff]  }
 0x58f   :  { %13425 = vmatprep.subr.bf16.mxu1 %v22071_v47  ;;  %v9602_v55 = vmul.f32 %v22882_v51, %v27664_v9  ;;  %v22120_v47 = vld [vmem:[#allocation7 + $0x140] ss:$8 sps:$4 sm:$0xff]   ;;  %v22131_v51 = vld [vmem:[#allocation7 + $0x3d4] ss:$8 sps:$4 sm:$0xff]  }
 0x591   :  { %v18513_v41 = vpack.c.bf16 %v9602_v55, %v9601_v48  ;;  %12658 = vmatpush1.bf16.msra.mxu0 %v22078_v49  ;;  %v22123_v49 = vld [vmem:[#allocation7 + $0x3c0] ss:$8 sps:$4 sm:$0xff]  }
 0x592   :  { %13426 = vmatpush1.bf16.msra.mxu1 %v22069_v50  ;;  %12659 = vmatprep.subr.bf16.mxu0 %v22086_v58  ;;  %v22125_v50 = vld [vmem:[#allocation7 + $0x3c4] ss:$8 sps:$4 sm:$0xff]   ;;  %v22132_v48 = vld [vmem:[#allocation7 + $0x160] ss:$8 sps:$4 sm:$0xff]   ;;  %v22140_v58 = vld [vmem:[#allocation7 + $0x174] ss:$8 sps:$4 sm:$0xff]  }
 0x593   :  { %13427 = vmatprep.subr.bf16.mxu1 %v22077_v23  ;;  %v9614_v21 = vrot.slane %v18513_v41, %v23077_v7  ;;  %v22126_v23 = vld [vmem:[#allocation7 + $0x150] ss:$8 sps:$4 sm:$0xff]  }
 0x595   :  { %18514 = vst.sshfl [vmem:[#allocation3 + $0x8] sm:$0x5 pattern:$0x73625140] %v9614_v21  ;;  %12660 = vmatpush1.bf16.msra.mxu0 %v22084_v2  ;;  %v22137_v2 = vld [vmem:[#allocation7 + $0x3e4] ss:$8 sps:$4 sm:$0xff]  }
 0x596   :  { %13428 = vmatpush1.bf16.msra.mxu1 %v22075_v61  ;;  %12661 = vmatprep.subr.bf16.mxu0 %v22092_v8  ;;  %v22129_v61 = vld [vmem:[#allocation7 + $0x3d0] ss:$8 sps:$4 sm:$0xff]  }
 0x597   :  { %13429 = vmatprep.subr.bf16.mxu1 %v22083_v11  ;;  %v22138_v21 = vld [vmem:[#allocation7 + $0x170] ss:$8 sps:$4 sm:$0xff]  }
 0x598   :  { %v10372_v12 = vpop.f32.mrb[48].mxu1 }
 0x599   :  { %v27701_v9 = vadd.f32 %v10372_v12, %v26362_v52  ;;  %v10374_v16 = vpop.f32.mrb[49].mxu1  ;;  %12662 = vmatpush1.bf16.msra.mxu0 %v22090_v17  ;;  %v22135_v12 = vld [vmem:[#allocation7 + $0x3e0] ss:$8 sps:$4 sm:$0xff]   ;;  %v22143_v17 = vld [vmem:[#allocation7 + $0x3f4] ss:$8 sps:$4 sm:$0xff]  }
 0x59a   :  { %v27704_v20 = vadd.f32 %v10374_v16, %v26365_v54  ;;  %v10376_v15 = vpop.f32.mrb[50].mxu1  ;;  %13430 = vmatpush1.bf16.msra.mxu1 %v22081_v19  ;;  %12672 = vmatprep.subr.bf16.mxu0 %v22098_v46  ;;  %v22146_v19 = vld [vmem:[#allocation7 + $0x184] ss:$8 sps:$4 sm:$0xff]   ;;  %v22144_v46 = vld [vmem:[#allocation7 + $0x180] ss:$8 sps:$4 sm:$0xff]  }
 0x59b   :  { %v10379_v28 = vsub.f32 0.0, %v27701_v9  ;;  %v10377_v10 = vpop.f32.mrb[51].mxu1  ;;  %13431 = vmatprep.subr.bf16.mxu1 %v22089_v32  ;;  %v22152_v15 = vld [vmem:[#allocation7 + $0x194] ss:$8 sps:$4 sm:$0xff]  }
 0x59c   :  { %v10380_v22 = vsub.f32 0.0, %v27704_v20  ;;  %12664 = vmatmul.mubr.bf16.vlgmr.msra.gmra.mrb[48].mxu0 %v27710_v53  ;;  %v22147_v10 = vld [vmem:[#allocation7 + $0x400] ss:$8 sps:$4 sm:$0xff]  }
 0x59d   :  { %v10381_v29 = vmul.f32 1.442695, %v10379_v28  ;;  %12673 = vmatpush1.bf16.msra.mxu0 %v22096_v4  ;;  %12704 = vmatprep.mubr.bf16.mxu0 %v12144_v1  ;;  %v22158_v28 = vld [vmem:[#allocation7 + $0x1a4] ss:$8 sps:$4 sm:$0xff]   ;;  %v12932_v4 = vcombine.high %v27694_v42, %v27694_v42  ;;  %v22162_v1 = vld [vmem:[#allocation7 + $0x1b0] ss:$8 sps:$4 sm:$0xff]  }
 0x59e   :  { %v10383_v37 = vmul.f32 1.442695, %v10380_v22  ;;  %13432 = vmatpush1.bf16.msra.mxu1 %v22087_v14  ;;  %12674 = vmatprep.subr.bf16.mxu0 %v22104_v0  ;;  %v22150_v14 = vld [vmem:[#allocation7 + $0x190] ss:$8 sps:$4 sm:$0xff]   ;;  %v22155_v22 = vld [vmem:[#allocation7 + $0x414] ss:$8 sps:$4 sm:$0xff]  }
 0x59f   :  { %22883 = vpow2.f32 %v10381_v29  ;;  %13433 = vmatprep.subr.bf16.mxu1 %v22095_v25  ;;  %v27720_v25 = vrot.slane %v27684_v30, %v23077_v7  ;;  %v22156_v29 = vld [vmem:[#allocation7 + $0x1a0] ss:$8 sps:$4 sm:$0xff]   ;;  %v22164_v0 = vld [vmem:[#allocation7 + $0x1b4] ss:$8 sps:$4 sm:$0xff]   ;;  %v22170_v30 = vld [vmem:[#allocation7 + $0x1c4] ss:$8 sps:$4 sm:$0xff]  }
 0x5a0   :  { %22885 = vpow2.f32 %v10383_v37  ;;  %v22153_v37 = vld [vmem:[#allocation7 + $0x410] ss:$8 sps:$4 sm:$0xff]   ;;  %v22168_v42 = vld [vmem:[#allocation7 + $0x1c0] ss:$8 sps:$4 sm:$0xff]  }
 0x5a1   :  { %12675 = vmatpush1.bf16.msra.mxu0 %v22102_v39  ;;  %v22167_v39 = vld [vmem:[#allocation7 + $0x434] ss:$8 sps:$4 sm:$0xff]  }
 0x5a2   :  { %13434 = vmatpush1.bf16.msra.mxu1 %v22093_v31  ;;  %12676 = vmatprep.subr.bf16.mxu0 %v22110_v33  ;;  %v22161_v31 = vld [vmem:[#allocation7 + $0x424] ss:$8 sps:$4 sm:$0xff]   ;;  %v22176_v33 = vld [vmem:[#allocation7 + $0x1d4] ss:$8 sps:$4 sm:$0xff]  }
 0x5a3   :  { %13435 = vmatprep.subr.bf16.mxu1 %v22101_v27  ;;  %v22159_v27 = vld [vmem:[#allocation7 + $0x420] ss:$8 sps:$4 sm:$0xff]  }
 0x5a5   :  { %12677 = vmatpush1.bf16.msra.mxu0 %v22108_v43  ;;  %v22174_v43 = vld [vmem:[#allocation7 + $0x1d0] ss:$8 sps:$4 sm:$0xff]  }
 0x5a6   :  { %13436 = vmatpush1.bf16.msra.mxu1 %v22099_v63  ;;  %12678 = vmatprep.subr.bf16.mxu0 %v22116_v40  ;;  %v22165_v63 = vld [vmem:[#allocation7 + $0x430] ss:$8 sps:$4 sm:$0xff]   ;;  %v22182_v40 = vld [vmem:[#allocation7 + $0x1e4] ss:$8 sps:$4 sm:$0xff]  }
 0x5a7   :  { %13437 = vmatprep.subr.bf16.mxu1 %v22107_v34  ;;  %v22173_v34 = vld [vmem:[#allocation7 + $0x444] ss:$8 sps:$4 sm:$0xff]  }
 0x5a9   :  { %v22884_v13 = vpop.eup %22883  ;;  %12679 = vmatpush1.bf16.msra.mxu0 %v22114_v5  ;;  %v22179_v5 = vld [vmem:[#allocation7 + $0x454] ss:$8 sps:$4 sm:$0xff]  }
 0x5aa   :  { %v22886_v44 = vpop.eup %22885  ;;  %v10385_v56 = vadd.f32 1.0, %v22884_v13  ;;  %13438 = vmatpush1.bf16.msra.mxu1 %v22105_v18  ;;  %12680 = vmatprep.subr.bf16.mxu0 %v22122_v6  ;;  %v22171_v18 = vld [vmem:[#allocation7 + $0x440] ss:$8 sps:$4 sm:$0xff]   ;;  %v22188_v6 = vld [vmem:[#allocation7 + $0x1f4] ss:$8 sps:$4 sm:$0xff]  }
 0x5ab   :  { %v10386_v45 = vadd.f32 1.0, %v22886_v44  ;;  %13439 = vmatprep.subr.bf16.mxu1 %v22113_v57  ;;  %v12098_v57 = vcombine.high %v27589_v59, %v27589_v59  ;;  %v22180_v13 = vld [vmem:[#allocation7 + $0x1e0] ss:$8 sps:$4 sm:$0xff]   ;;  %v22177_v44 = vld [vmem:[#allocation7 + $0x450] ss:$8 sps:$4 sm:$0xff]  }
 0x5ac   :  { %22887 = vrcp.f32 %v10385_v56 }
 0x5ad   :  { %22889 = vrcp.f32 %v10386_v45  ;;  %12681 = vmatpush1.bf16.msra.mxu0 %v22120_v47  ;;  %v27728_v56 = vrot.slane %v12098_v57, %v23077_v7  ;;  %v22186_v45 = vld [vmem:[#allocation7 + $0x1f0] ss:$8 sps:$4 sm:$0xff]   ;;  %v22183_v47 = vld [vmem:[#allocation7 + $0x460] ss:$8 sps:$4 sm:$0xff]  }
 0x5ae   :  { %13440 = vmatpush1.bf16.msra.mxu1 %v22111_v36  ;;  %12682 = vmatprep.subr.bf16.mxu0 %v22128_v38  ;;  %v22185_v36 = vld [vmem:[#allocation7 + $0x464] ss:$8 sps:$4 sm:$0xff]   ;;  %v22191_v38 = vld [vmem:[#allocation7 + $0x474] ss:$8 sps:$4 sm:$0xff]  }
 0x5af   :  { %13441 = vmatprep.subr.bf16.mxu1 %v22119_v35  ;;  %v22194_v35 = vld [vmem:[#allocation7 + $0x204] ss:$8 sps:$4 sm:$0xff]   ;;  %v12114_v59 = vcombine.high %v27728_v56, %v27728_v56 }
 0x5b1   :  { %12683 = vmatpush1.bf16.msra.mxu0 %v22126_v23  ;;  %v22200_v23 = vld [vmem:[#allocation7 + $0x214] ss:$8 sps:$4 sm:$0xff]  }
 0x5b2   :  { %13442 = vmatpush1.bf16.msra.mxu1 %v22117_v3  ;;  %12684 = vmatprep.subr.bf16.mxu0 %v22134_v24  ;;  %v22192_v3 = vld [vmem:[#allocation7 + $0x200] ss:$8 sps:$4 sm:$0xff]   ;;  %v22189_v24 = vld [vmem:[#allocation7 + $0x470] ss:$8 sps:$4 sm:$0xff]  }
 0x5b3   :  { %13443 = vmatprep.subr.bf16.mxu1 %v22125_v50  ;;  %v12143_v50 = vcombine.high %v27710_v53, %v27710_v53  ;;  %v22204_v53 = vld [vmem:[#allocation7 + $0x220] ss:$8 sps:$4 sm:$0xff]  }
 0x5b5   :  { %12685 = vmatpush1.bf16.msra.mxu0 %v22132_v48  ;;  %v22198_v48 = vld [vmem:[#allocation7 + $0x210] ss:$8 sps:$4 sm:$0xff]  }
 0x5b6   :  { %v22888_v55 = vpop.eup %22887  ;;  %13444 = vmatpush1.bf16.msra.mxu1 %v22123_v49  ;;  %12686 = vmatprep.subr.bf16.mxu0 %v22140_v58  ;;  %v12142_v49 = vrot.slane %v12114_v59, %v23077_v7  ;;  %v22206_v58 = vld [vmem:[#allocation7 + $0x224] ss:$8 sps:$4 sm:$0xff]   ;;  %v22272_v59 = vld [vmem:[#allocation7 + $0x2d4] ss:$8 sps:$4 sm:$0xff]  }
 0x5b7   :  { %v22890_v11 = vpop.eup %22889  ;;  %v10389_v41 = vmul.f32 %v22888_v55, %v27701_v9  ;;  %13445 = vmatprep.subr.bf16.mxu1 %v22131_v51  ;;  %v22141_v9 = vld [vmem:[#allocation7 + $0x3f0] ss:$8 sps:$4 sm:$0xff]   ;;  %v22197_v51 = vld [vmem:[#allocation7 + $0x484] ss:$8 sps:$4 sm:$0xff]   ;;  %v22195_v55 = vld [vmem:[#allocation7 + $0x480] ss:$8 sps:$4 sm:$0xff]  }
 0x5b8   :  { %v10390_v8 = vmul.f32 %v22890_v11, %v27704_v20  ;;  %v22149_v20 = vld [vmem:[#allocation7 + $0x404] ss:$8 sps:$4 sm:$0xff]   ;;  %v22212_v11 = vld [vmem:[#allocation7 + $0x234] ss:$8 sps:$4 sm:$0xff]  }
 0x5b9   :  { %12687 = vmatpush1.bf16.msra.mxu0 %v22138_v21  ;;  %v22218_v21 = vld [vmem:[#allocation7 + $0x244] ss:$8 sps:$4 sm:$0xff]  }
 0x5ba   :  { %v18707_v32 = vpack.c.bf16 %v10390_v8, %v10389_v41  ;;  %13446 = vmatpush1.bf16.msra.mxu1 %v22129_v61  ;;  %12688 = vmatprep.subr.bf16.mxu0 %v22146_v19  ;;  %v22203_v61 = vld [vmem:[#allocation7 + $0x494] ss:$8 sps:$4 sm:$0xff]   ;;  %v22201_v41 = vld [vmem:[#allocation7 + $0x490] ss:$8 sps:$4 sm:$0xff]   ;;  %v22207_v19 = vld [vmem:[#allocation7 + $0x4a0] ss:$8 sps:$4 sm:$0xff]  }
 0x5bb   :  { %13447 = vmatprep.subr.bf16.mxu1 %v22137_v2  ;;  %v22209_v2 = vld [vmem:[#allocation7 + $0x4a4] ss:$8 sps:$4 sm:$0xff]   ;;  %v22210_v8 = vld [vmem:[#allocation7 + $0x230] ss:$8 sps:$4 sm:$0xff]  }
 0x5bc   :  { %v10402_v16 = vrot.slane %v18707_v32, %v23077_v7  ;;  %v22215_v32 = vld [vmem:[#allocation7 + $0x4b4] ss:$8 sps:$4 sm:$0xff]  }
 0x5bd   :  { %12689 = vmatpush1.bf16.msra.mxu0 %v22144_v46  ;;  %v22221_v46 = vld [vmem:[#allocation7 + $0x4c4] ss:$8 sps:$4 sm:$0xff]  }
 0x5be   :  { %18708 = vst.sshfl [vmem:[#allocation3 + $0xa] sm:$0x5 pattern:$0x73625140] %v10402_v16  ;;  %13448 = vmatpush1.bf16.msra.mxu1 %v22135_v12  ;;  %12690 = vmatprep.subr.bf16.mxu0 %v22152_v15  ;;  %v22216_v12 = vld [vmem:[#allocation7 + $0x240] ss:$8 sps:$4 sm:$0xff]  }
 0x5bf   :  { %13449 = vmatprep.subr.bf16.mxu1 %v22143_v17  ;;  %v22224_v17 = vld [vmem:[#allocation7 + $0x254] ss:$8 sps:$4 sm:$0xff]   ;;  %v22213_v16 = vld [vmem:[#allocation7 + $0x4b0] ss:$8 sps:$4 sm:$0xff]  }
 0x5c0   :  { %v22222_v15 = vld [vmem:[#allocation7 + $0x250] ss:$8 sps:$4 sm:$0xff]  }
 0x5c1   :  { %12691 = vmatpush1.bf16.msra.mxu0 %v22150_v14  ;;  %v22227_v14 = vld [vmem:[#allocation7 + $0x4d4] ss:$8 sps:$4 sm:$0xff]  }
 0x5c2   :  { %13450 = vmatpush1.bf16.msra.mxu1 %v22141_v9  ;;  %12692 = vmatprep.subr.bf16.mxu0 %v22158_v28  ;;  %v22230_v9 = vld [vmem:[#allocation7 + $0x264] ss:$8 sps:$4 sm:$0xff]   ;;  %v22228_v28 = vld [vmem:[#allocation7 + $0x260] ss:$8 sps:$4 sm:$0xff]  }
 0x5c3   :  { %13460 = vmatprep.subr.bf16.mxu1 %v22149_v20  ;;  %v22219_v20 = vld [vmem:[#allocation7 + $0x4c0] ss:$8 sps:$4 sm:$0xff]  }
 0x5c5   :  { %13452 = vmatmul.mubr.bf16.vlgmr.msra.gmra.mrb[56].mxu1 %v27720_v25  ;;  %12693 = vmatpush1.bf16.msra.mxu0 %v22156_v29  ;;  %v22234_v29 = vld [vmem:[#allocation7 + $0x270] ss:$8 sps:$4 sm:$0xff]  }
 0x5c6   :  { %13461 = vmatpush1.bf16.msra.mxu1 %v22147_v10  ;;  %13492 = vmatprep.mubr.bf16.mxu1 %v12932_v4  ;;  %v22236_v10 = vld [vmem:[#allocation7 + $0x274] ss:$8 sps:$4 sm:$0xff]   ;;  %v22233_v4 = vld [vmem:[#allocation7 + $0x4e4] ss:$8 sps:$4 sm:$0xff]  }
 0x5c7   :  { %13462 = vmatprep.subr.bf16.mxu1 %v22155_v22  ;;  %12694 = vmatprep.subr.bf16.mxu0 %v22164_v0  ;;  %v22225_v22 = vld [vmem:[#allocation7 + $0x4d0] ss:$8 sps:$4 sm:$0xff]   ;;  %v12886_v0 = vcombine.high %v27674_v26, %v27674_v26 }
 0x5c9   :  { %12695 = vmatpush1.bf16.msra.mxu0 %v22162_v1  ;;  %v22239_v1 = vld [vmem:[#allocation7 + $0x4f4] ss:$8 sps:$4 sm:$0xff]  }
 0x5ca   :  { %13463 = vmatpush1.bf16.msra.mxu1 %v22153_v37  ;;  %12696 = vmatprep.subr.bf16.mxu0 %v22170_v30  ;;  %v22242_v37 = vld [vmem:[#allocation7 + $0x284] ss:$8 sps:$4 sm:$0xff]   ;;  %v22240_v30 = vld [vmem:[#allocation7 + $0x280] ss:$8 sps:$4 sm:$0xff]  }
 0x5cb   :  { %13464 = vmatprep.subr.bf16.mxu1 %v22161_v31  ;;  %v22231_v31 = vld [vmem:[#allocation7 + $0x4e0] ss:$8 sps:$4 sm:$0xff]  }
 0x5cd   :  { %12697 = vmatpush1.bf16.msra.mxu0 %v22168_v42  ;;  %v22237_v42 = vld [vmem:[#allocation7 + $0x4f0] ss:$8 sps:$4 sm:$0xff]  }
 0x5ce   :  { %13465 = vmatpush1.bf16.msra.mxu1 %v22159_v27  ;;  %12698 = vmatprep.subr.bf16.mxu0 %v22176_v33  ;;  %v27738_v27 = vrot.slane %v12886_v0, %v23077_v7  ;;  %v22245_v33 = vld [vmem:[#allocation7 + $0x504] ss:$8 sps:$4 sm:$0xff]   ;;  %v22303_v0 = vld [vmem:[#allocation7 + $0x5a0] ss:$8 sps:$4 sm:$0xff]  }
 0x5cf   :  { %13466 = vmatprep.subr.bf16.mxu1 %v22167_v39  ;;  %v22248_v39 = vld [vmem:[#allocation7 + $0x294] ss:$8 sps:$4 sm:$0xff]  }
 0x5d0   :  { %v12902_v26 = vcombine.high %v27738_v27, %v27738_v27 }
 0x5d1   :  { %12699 = vmatpush1.bf16.msra.mxu0 %v22174_v43  ;;  %v22243_v43 = vld [vmem:[#allocation7 + $0x500] ss:$8 sps:$4 sm:$0xff]  }
 0x5d2   :  { %13467 = vmatpush1.bf16.msra.mxu1 %v22165_v63  ;;  %12700 = vmatprep.subr.bf16.mxu0 %v22182_v40  ;;  %v22246_v63 = vld [vmem:[#allocation7 + $0x290] ss:$8 sps:$4 sm:$0xff]   ;;  %v12931_v40 = vcombine.high %v27720_v25, %v27720_v25  ;;  %v12930_v57 = vrot.slane %v12902_v26, %v23077_v7  ;;  %v22255_v25 = vld [vmem:[#allocation7 + $0x520] ss:$8 sps:$4 sm:$0xff]  }
 0x5d3   :  { %13468 = vmatprep.subr.bf16.mxu1 %v22173_v34  ;;  %v22254_v34 = vld [vmem:[#allocation7 + $0x2a4] ss:$8 sps:$4 sm:$0xff]   ;;  %v22315_v26 = vld [vmem:[#allocation7 + $0x5c0] ss:$8 sps:$4 sm:$0xff]  }
 0x5d5   :  { %12701 = vmatpush1.bf16.msra.mxu0 %v22180_v13  ;;  %v22260_v13 = vld [vmem:[#allocation7 + $0x2b4] ss:$8 sps:$4 sm:$0xff]  }
 0x5d6   :  { %13469 = vmatpush1.bf16.msra.mxu1 %v22171_v18  ;;  %12702 = vmatprep.subr.bf16.mxu0 %v22188_v6  ;;  %v22251_v18 = vld [vmem:[#allocation7 + $0x514] ss:$8 sps:$4 sm:$0xff]   ;;  %v22249_v6 = vld [vmem:[#allocation7 + $0x510] ss:$8 sps:$4 sm:$0xff]  }
 0x5d7   :  { %13470 = vmatprep.subr.bf16.mxu1 %v22179_v5  ;;  %v22252_v5 = vld [vmem:[#allocation7 + $0x2a0] ss:$8 sps:$4 sm:$0xff]  }
 0x5d9   :  { %12703 = vmatpush1.bf16.msra.mxu0 %v22186_v45  ;;  %v22266_v45 = vld [vmem:[#allocation7 + $0x2c4] ss:$8 sps:$4 sm:$0xff]  }
 0x5da   :  { %13471 = vmatpush1.bf16.msra.mxu1 %v22177_v44  ;;  %12713 = vmatprep.subr.bf16.mxu0 %v22194_v35  ;;  %v22257_v44 = vld [vmem:[#allocation7 + $0x524] ss:$8 sps:$4 sm:$0xff]   ;;  %v22263_v35 = vld [vmem:[#allocation7 + $0x534] ss:$8 sps:$4 sm:$0xff]  }
 0x5db   :  { %13472 = vmatprep.subr.bf16.mxu1 %v22185_v36  ;;  %v22258_v36 = vld [vmem:[#allocation7 + $0x2b0] ss:$8 sps:$4 sm:$0xff]  }
 0x5dc   :  { %12705 = vmatmul.mubr.bf16.vlgmr.msra.gmra.mrb[48].mxu0 %v12143_v50  ;;  %v22270_v50 = vld [vmem:[#allocation7 + $0x2d0] ss:$8 sps:$4 sm:$0xff]  }
 0x5dd   :  { %12714 = vmatpush1.bf16.msra.mxu0 %v22192_v3  ;;  %12745 = vmatprep.mubr.bf16.mxu0 %v12142_v49  ;;  %v22269_v3 = vld [vmem:[#allocation7 + $0x544] ss:$8 sps:$4 sm:$0xff]   ;;  %v22275_v49 = vld [vmem:[#allocation7 + $0x554] ss:$8 sps:$4 sm:$0xff]  }
 0x5de   :  { %13473 = vmatpush1.bf16.msra.mxu1 %v22183_v47  ;;  %12715 = vmatprep.subr.bf16.mxu0 %v22200_v23  ;;  %v22264_v47 = vld [vmem:[#allocation7 + $0x2c0] ss:$8 sps:$4 sm:$0xff]   ;;  %v22278_v23 = vld [vmem:[#allocation7 + $0x2e4] ss:$8 sps:$4 sm:$0xff]  }
 0x5df   :  { %13474 = vmatprep.subr.bf16.mxu1 %v22191_v38  ;;  %v22261_v38 = vld [vmem:[#allocation7 + $0x530] ss:$8 sps:$4 sm:$0xff]  }
 0x5e1   :  { %12716 = vmatpush1.bf16.msra.mxu0 %v22198_v48  ;;  %v22276_v48 = vld [vmem:[#allocation7 + $0x2e0] ss:$8 sps:$4 sm:$0xff]  }
 0x5e2   :  { %13475 = vmatpush1.bf16.msra.mxu1 %v22189_v24  ;;  %12717 = vmatprep.subr.bf16.mxu0 %v22206_v58  ;;  %v22267_v24 = vld [vmem:[#allocation7 + $0x540] ss:$8 sps:$4 sm:$0xff]   ;;  %v22284_v58 = vld [vmem:[#allocation7 + $0x2f4] ss:$8 sps:$4 sm:$0xff]  }
 0x5e3   :  { %13476 = vmatprep.subr.bf16.mxu1 %v22197_v51  ;;  %v27745_v51 = vld [vmem:[#allocation3 + $0x6] sm:$0x3f] }
 0x5e5   :  { %12718 = vmatpush1.bf16.msra.mxu0 %v22204_v53  ;;  %v22281_v53 = vld [vmem:[#allocation7 + $0x564] ss:$8 sps:$4 sm:$0xff]  }
 0x5e6   :  { %13477 = vmatpush1.bf16.msra.mxu1 %v22195_v55  ;;  %12719 = vmatprep.subr.bf16.mxu0 %v22212_v11  ;;  %v22273_v55 = vld [vmem:[#allocation7 + $0x550] ss:$8 sps:$4 sm:$0xff]  }
 0x5e7   :  { %13478 = vmatprep.subr.bf16.mxu1 %v22203_v61  ;;  %v27749_v61 = vrot.slane %v27745_v51, %v23077_v7  ;;  %v22282_v11 = vld [vmem:[#allocation7 + $0x2f0] ss:$8 sps:$4 sm:$0xff]  }
 0x5e9   :  { %12720 = vmatpush1.bf16.msra.mxu0 %v22210_v8  ;;  %v13689_v8 = vcombine.high %v27749_v61, %v27749_v61 }
 0x5ea   :  { %13479 = vmatpush1.bf16.msra.mxu1 %v22201_v41  ;;  %12721 = vmatprep.subr.bf16.mxu0 %v22218_v21  ;;  %v22290_v41 = vld [vmem:[#allocation7 + $0x604] ss:$8 sps:$4 sm:$0xff]   ;;  %v22287_v21 = vld [vmem:[#allocation7 + $0x574] ss:$8 sps:$4 sm:$0xff]  }
 0x5eb   :  { %13480 = vmatprep.subr.bf16.mxu1 %v22209_v2  ;;  %v22279_v2 = vld [vmem:[#allocation7 + $0x560] ss:$8 sps:$4 sm:$0xff]  }
 0x5ed   :  { %12722 = vmatpush1.bf16.msra.mxu0 %v22216_v12  ;;  %v22296_v12 = vld [vmem:[#allocation7 + $0x614] ss:$8 sps:$4 sm:$0xff]  }
 0x5ee   :  { %13481 = vmatpush1.bf16.msra.mxu1 %v22207_v19  ;;  %12723 = vmatprep.subr.bf16.mxu0 %v22224_v17  ;;  %v22288_v19 = vld [vmem:[#allocation7 + $0x600] ss:$8 sps:$4 sm:$0xff]   ;;  %v22285_v17 = vld [vmem:[#allocation7 + $0x570] ss:$8 sps:$4 sm:$0xff]  }
 0x5ef   :  { %13482 = vmatprep.subr.bf16.mxu1 %v22215_v32  ;;  %v12128_v32 = vrot.slane %v27728_v56, %v23077_v7  ;;  %v22299_v56 = vld [vmem:[#allocation7 + $0x594] ss:$8 sps:$4 sm:$0xff]  }
 0x5f1   :  { %12724 = vmatpush1.bf16.msra.mxu0 %v22222_v15  ;;  %v22294_v15 = vld [vmem:[#allocation7 + $0x610] ss:$8 sps:$4 sm:$0xff]  }
 0x5f2   :  { %13483 = vmatpush1.bf16.msra.mxu1 %v22213_v16  ;;  %12725 = vmatprep.subr.bf16.mxu0 %v22230_v9  ;;  %v27756_v16 = vrot.slane %v13689_v8, %v23077_v7  ;;  %v22302_v9 = vld [vmem:[#allocation7 + $0x624] ss:$8 sps:$4 sm:$0xff]  }
 0x5f3   :  { %13484 = vmatprep.subr.bf16.mxu1 %v22221_v46  ;;  %v22293_v46 = vld [vmem:[#allocation7 + $0x584] ss:$8 sps:$4 sm:$0xff]  }
 0x5f5   :  { %12726 = vmatpush1.bf16.msra.mxu0 %v22228_v28  ;;  %v22308_v28 = vld [vmem:[#allocation7 + $0x634] ss:$8 sps:$4 sm:$0xff]  }
 0x5f6   :  { %13485 = vmatpush1.bf16.msra.mxu1 %v22219_v20  ;;  %12727 = vmatprep.subr.bf16.mxu0 %v22236_v10  ;;  %v22291_v20 = vld [vmem:[#allocation7 + $0x580] ss:$8 sps:$4 sm:$0xff]   ;;  %v22297_v10 = vld [vmem:[#allocation7 + $0x590] ss:$8 sps:$4 sm:$0xff]  }
 0x5f7   :  { %13486 = vmatprep.subr.bf16.mxu1 %v22227_v14  ;;  %v22300_v14 = vld [vmem:[#allocation7 + $0x620] ss:$8 sps:$4 sm:$0xff]  }
 0x5f9   :  { %12728 = vmatpush1.bf16.msra.mxu0 %v22234_v29  ;;  %v22314_v29 = vld [vmem:[#allocation7 + $0x644] ss:$8 sps:$4 sm:$0xff]  }
 0x5fa   :  { %13487 = vmatpush1.bf16.msra.mxu1 %v22225_v22  ;;  %12729 = vmatprep.subr.bf16.mxu0 %v22242_v37  ;;  %v22305_v22 = vld [vmem:[#allocation7 + $0x5a4] ss:$8 sps:$4 sm:$0xff]   ;;  %v22311_v37 = vld [vmem:[#allocation7 + $0x5b4] ss:$8 sps:$4 sm:$0xff]  }
 0x5fb   :  { %13488 = vmatprep.subr.bf16.mxu1 %v22233_v4  ;;  %v22306_v4 = vld [vmem:[#allocation7 + $0x630] ss:$8 sps:$4 sm:$0xff]  }
 0x5fd   :  { %12730 = vmatpush1.bf16.msra.mxu0 %v22240_v30  ;;  %v22309_v30 = vld [vmem:[#allocation7 + $0x5b0] ss:$8 sps:$4 sm:$0xff]  }
 0x5fe   :  { %13489 = vmatpush1.bf16.msra.mxu1 %v22231_v31  ;;  %12731 = vmatprep.subr.bf16.mxu0 %v22248_v39  ;;  %v22312_v31 = vld [vmem:[#allocation7 + $0x640] ss:$8 sps:$4 sm:$0xff]   ;;  %v22317_v39 = vld [vmem:[#allocation7 + $0x5c4] ss:$8 sps:$4 sm:$0xff]  }
 0x5ff   :  { %13490 = vmatprep.subr.bf16.mxu1 %v22239_v1  ;;  %v22320_v1 = vld [vmem:[#allocation7 + $0x654] ss:$8 sps:$4 sm:$0xff]  }
 0x601   :  { %12732 = vmatpush1.bf16.msra.mxu0 %v22246_v63 }
 0x602   :  { %13491 = vmatpush1.bf16.msra.mxu1 %v22237_v42  ;;  %12733 = vmatprep.subr.bf16.mxu0 %v22254_v34  ;;  %v22318_v42 = vld [vmem:[#allocation7 + $0x650] ss:$8 sps:$4 sm:$0xff]  }
 0x603   :  { %13501 = vmatprep.subr.bf16.mxu1 %v22245_v33  ;;  %v22326_v33 = vld [vmem:[#allocation7 + $0x664] ss:$8 sps:$4 sm:$0xff]  }
 0x605   :  { %13493 = vmatmul.mubr.bf16.vlgmr.msra.gmra.mrb[56].mxu1 %v12931_v40  ;;  %12734 = vmatpush1.bf16.msra.mxu0 %v22252_v5  ;;  %v22323_v40 = vld [vmem:[#allocation7 + $0x5d4] ss:$8 sps:$4 sm:$0xff]   ;;  %v22324_v5 = vld [vmem:[#allocation7 + $0x660] ss:$8 sps:$4 sm:$0xff]  }
 0x606   :  { %13502 = vmatpush1.bf16.msra.mxu1 %v22243_v43  ;;  %13533 = vmatprep.mubr.bf16.mxu1 %v12930_v57 }
 0x607   :  { %13503 = vmatprep.subr.bf16.mxu1 %v22251_v18  ;;  %12735 = vmatprep.subr.bf16.mxu0 %v22260_v13 }
 0x609   :  { %12736 = vmatpush1.bf16.msra.mxu0 %v22258_v36 }
 0x60a   :  { %13504 = vmatpush1.bf16.msra.mxu1 %v22249_v6  ;;  %12737 = vmatprep.subr.bf16.mxu0 %v22266_v45  ;;  %v22321_v45 = vld [vmem:[#allocation7 + $0x5d0] ss:$8 sps:$4 sm:$0xff]  }
 0x60b   :  { %13505 = vmatprep.subr.bf16.mxu1 %v22257_v44  ;;  %v22332_v44 = vld [vmem:[#allocation7 + $0x674] ss:$8 sps:$4 sm:$0xff]  }
 0x60d   :  { %12738 = vmatpush1.bf16.msra.mxu0 %v22264_v47 }
 0x60e   :  { %13506 = vmatpush1.bf16.msra.mxu1 %v22255_v25  ;;  %12739 = vmatprep.subr.bf16.mxu0 %v22272_v59  ;;  %v22330_v59 = vld [vmem:[#allocation7 + $0x670] ss:$8 sps:$4 sm:$0xff]  }
 0x60f   :  { %13507 = vmatprep.subr.bf16.mxu1 %v22263_v35  ;;  %v22329_v35 = vld [vmem:[#allocation7 + $0x5e4] ss:$8 sps:$4 sm:$0xff]  }
 0x611   :  { %12740 = vmatpush1.bf16.msra.mxu0 %v22270_v50  ;;  %v22335_v50 = vld [vmem:[#allocation7 + $0x5f4] ss:$8 sps:$4 sm:$0xff]  }
 0x612   :  { %13508 = vmatpush1.bf16.msra.mxu1 %v22261_v38  ;;  %12741 = vmatprep.subr.bf16.mxu0 %v22278_v23  ;;  %v22338_v38 = vld [vmem:[#allocation7 + $0x684] ss:$8 sps:$4 sm:$0xff]   ;;  %v22336_v23 = vld [vmem:[#allocation7 + $0x680] ss:$8 sps:$4 sm:$0xff]  }
 0x613   :  { %13509 = vmatprep.subr.bf16.mxu1 %v22269_v3  ;;  %v22327_v3 = vld [vmem:[#allocation7 + $0x5e0] ss:$8 sps:$4 sm:$0xff]  }
 0x615   :  { %12742 = vmatpush1.bf16.msra.mxu0 %v22276_v48  ;;  %v22347_v48 = vld [vmem:[#allocation7 + $0x904] ss:$8 sps:$4 sm:$0xff]  }
 0x616   :  { %13510 = vmatpush1.bf16.msra.mxu1 %v22267_v24  ;;  %12743 = vmatprep.subr.bf16.mxu0 %v22284_v58  ;;  %v22341_v24 = vld [vmem:[#allocation7 + $0x694] ss:$8 sps:$4 sm:$0xff]   ;;  %v22339_v58 = vld [vmem:[#allocation7 + $0x690] ss:$8 sps:$4 sm:$0xff]  }
 0x617   :  { %13511 = vmatprep.subr.bf16.mxu1 %v22275_v49  ;;  %v22333_v49 = vld [vmem:[#allocation7 + $0x5f0] ss:$8 sps:$4 sm:$0xff]  }
 0x619   :  { %12744 = vmatpush1.bf16.msra.mxu0 %v22282_v11 }
 0x61a   :  { %13512 = vmatpush1.bf16.msra.mxu1 %v22273_v55  ;;  %14207 = vmatprep.subr.bf16.mxu0 %v22290_v41  ;;  %v22344_v55 = vld [vmem:[#allocation7 + $0x6a4] ss:$8 sps:$4 sm:$0xff]   ;;  %v12916_v41 = vrot.slane %v27738_v27, %v23077_v7 }
 0x61b   :  { %13513 = vmatprep.subr.bf16.mxu1 %v22281_v53  ;;  %v22345_v53 = vld [vmem:[#allocation7 + $0x900] ss:$8 sps:$4 sm:$0xff]   ;;  %v22356_v27 = vld [vmem:[#allocation7 + $0x6c4] ss:$8 sps:$4 sm:$0xff]  }
 0x61c   :  { %12746 = vmatmul.mubr.bf16.vlgmr.msra.gmra.mrb[48].mxu0 %v12128_v32 }
 0x61d   :  { %14208 = vmatpush1.bf16.msra.mxu0 %v22288_v19  ;;  %14239 = vmatprep.mubr.bf16.mxu0 %v27756_v16  ;;  %v22342_v19 = vld [vmem:[#allocation7 + $0x6a0] ss:$8 sps:$4 sm:$0xff]  }
 0x61e   :  { %13514 = vmatpush1.bf16.msra.mxu1 %v22279_v2  ;;  %14209 = vmatprep.subr.bf16.mxu0 %v22296_v12  ;;  %v22353_v2 = vld [vmem:[#allocation7 + $0x914] ss:$8 sps:$4 sm:$0xff]  }
 0x61f   :  { %13515 = vmatprep.subr.bf16.mxu1 %v22287_v21  ;;  %v22350_v12 = vld [vmem:[#allocation7 + $0x6b4] ss:$8 sps:$4 sm:$0xff]  }
 0x621   :  { %14210 = vmatpush1.bf16.msra.mxu0 %v22294_v15  ;;  %v22348_v15 = vld [vmem:[#allocation7 + $0x6b0] ss:$8 sps:$4 sm:$0xff]  }
 0x622   :  { %13516 = vmatpush1.bf16.msra.mxu1 %v22285_v17  ;;  %14211 = vmatprep.subr.bf16.mxu0 %v22302_v9  ;;  %v22351_v17 = vld [vmem:[#allocation7 + $0x910] ss:$8 sps:$4 sm:$0xff]   ;;  %v22357_v9 = vld [vmem:[#allocation7 + $0x920] ss:$8 sps:$4 sm:$0xff]  }
 0x623   :  { %13517 = vmatprep.subr.bf16.mxu1 %v22293_v46  ;;  %v22359_v46 = vld [vmem:[#allocation7 + $0x924] ss:$8 sps:$4 sm:$0xff]  }
 0x625   :  { %14212 = vmatpush1.bf16.msra.mxu0 %v22300_v14  ;;  %v22362_v14 = vld [vmem:[#allocation7 + $0x6d4] ss:$8 sps:$4 sm:$0xff]  }
 0x626   :  { %13518 = vmatpush1.bf16.msra.mxu1 %v22291_v20  ;;  %14213 = vmatprep.subr.bf16.mxu0 %v22308_v28  ;;  %v22365_v20 = vld [vmem:[#allocation7 + $0x934] ss:$8 sps:$4 sm:$0xff]   ;;  %v22363_v28 = vld [vmem:[#allocation7 + $0x930] ss:$8 sps:$4 sm:$0xff]  }
 0x627   :  { %13519 = vmatprep.subr.bf16.mxu1 %v22299_v56  ;;  %v22354_v56 = vld [vmem:[#allocation7 + $0x6c0] ss:$8 sps:$4 sm:$0xff]  }
 0x629   :  { %14214 = vmatpush1.bf16.msra.mxu0 %v22306_v4  ;;  %v22360_v4 = vld [vmem:[#allocation7 + $0x6d0] ss:$8 sps:$4 sm:$0xff]  }
 0x62a   :  { %13520 = vmatpush1.bf16.msra.mxu1 %v22297_v10  ;;  %14215 = vmatprep.subr.bf16.mxu0 %v22314_v29  ;;  %v22371_v10 = vld [vmem:[#allocation7 + $0x944] ss:$8 sps:$4 sm:$0xff]  }
 0x62b   :  { %13521 = vmatprep.subr.bf16.mxu1 %v22305_v22 }
 0x62d   :  { %14216 = vmatpush1.bf16.msra.mxu0 %v22312_v31 }
 0x62e   :  { %13522 = vmatpush1.bf16.msra.mxu1 %v22303_v0  ;;  %14217 = vmatprep.subr.bf16.mxu0 %v22320_v1  ;;  %v22369_v1 = vld [vmem:[#allocation7 + $0x940] ss:$8 sps:$4 sm:$0xff]  }
 0x62f   :  { %13523 = vmatprep.subr.bf16.mxu1 %v22311_v37  ;;  %v11160_v63 = vpop.f32.mrb[44].mxu0  ;;  %v22368_v37 = vld [vmem:[#allocation7 + $0x6e4] ss:$8 sps:$4 sm:$0xff]  }
 0x630   :  { %v27760_v34 = vadd.f32 %v11160_v63, %v26362_v52  ;;  %v11162_v43 = vpop.f32.mrb[45].mxu0  ;;  %v22375_v63 = vld [vmem:[#allocation7 + $0x950] ss:$8 sps:$4 sm:$0xff]  }
 0x631   :  { %v27763_v18 = vadd.f32 %v11162_v43, %v26365_v54  ;;  %v11164_v57 = vpop.f32.mrb[46].mxu0  ;;  %14218 = vmatpush1.bf16.msra.mxu0 %v22318_v42  ;;  %v22366_v42 = vld [vmem:[#allocation7 + $0x6e0] ss:$8 sps:$4 sm:$0xff]   ;;  %v22383_v43 = vld [vmem:[#allocation7 + $0x964] ss:$8 sps:$4 sm:$0xff]  }
 0x632   :  { %13524 = vmatpush1.bf16.msra.mxu1 %v22309_v30  ;;  %v11167_v13 = vsub.f32 0.0, %v27760_v34  ;;  %v11165_v6 = vpop.f32.mrb[47].mxu0  ;;  %14219 = vmatprep.subr.bf16.mxu0 %v22326_v33  ;;  %v22377_v30 = vld [vmem:[#allocation7 + $0x954] ss:$8 sps:$4 sm:$0xff]  }
 0x633   :  { %13525 = vmatprep.subr.bf16.mxu1 %v22317_v39  ;;  %v11168_v36 = vsub.f32 0.0, %v27763_v18  ;;  %v22374_v33 = vld [vmem:[#allocation7 + $0x6f4] ss:$8 sps:$4 sm:$0xff]  }
 0x634   :  { %v11169_v25 = vmul.f32 1.442695, %v11167_v13 }
 0x635   :  { %v11171_v47 = vmul.f32 1.442695, %v11168_v36  ;;  %14220 = vmatpush1.bf16.msra.mxu0 %v22324_v5  ;;  %v22380_v5 = vld [vmem:[#allocation7 + $0x704] ss:$8 sps:$4 sm:$0xff]  }
 0x636   :  { %13526 = vmatpush1.bf16.msra.mxu1 %v22315_v26  ;;  %22891 = vpow2.f32 %v11169_v25  ;;  %14221 = vmatprep.subr.bf16.mxu0 %v22332_v44  ;;  %v22381_v44 = vld [vmem:[#allocation7 + $0x960] ss:$8 sps:$4 sm:$0xff]   ;;  %v22389_v25 = vld [vmem:[#allocation7 + $0x974] ss:$8 sps:$4 sm:$0xff]  }
 0x637   :  { %13527 = vmatprep.subr.bf16.mxu1 %v22323_v40  ;;  %22893 = vpow2.f32 %v11171_v47  ;;  %v22372_v40 = vld [vmem:[#allocation7 + $0x6f0] ss:$8 sps:$4 sm:$0xff]   ;;  %v22378_v47 = vld [vmem:[#allocation7 + $0x700] ss:$8 sps:$4 sm:$0xff]  }
 0x639   :  { %14222 = vmatpush1.bf16.msra.mxu0 %v22330_v59  ;;  %v27782_v59 = vrot.slane %v27749_v61, %v23077_v7  ;;  %v22392_v61 = vld [vmem:[#allocation7 + $0x724] ss:$8 sps:$4 sm:$0xff]  }
 0x63a   :  { %13528 = vmatpush1.bf16.msra.mxu1 %v22321_v45  ;;  %14223 = vmatprep.subr.bf16.mxu0 %v22338_v38 }
 0x63b   :  { %13529 = vmatprep.subr.bf16.mxu1 %v22329_v35 }
 0x63d   :  { %14224 = vmatpush1.bf16.msra.mxu0 %v22336_v23  ;;  %v22395_v23 = vld [vmem:[#allocation7 + $0x984] ss:$8 sps:$4 sm:$0xff]  }
 0x63e   :  { %13530 = vmatpush1.bf16.msra.mxu1 %v22327_v3  ;;  %14225 = vmatprep.subr.bf16.mxu0 %v22341_v24  ;;  %v13720_v3 = vcombine.high %v27756_v16, %v27756_v16  ;;  %v22384_v24 = vld [vmem:[#allocation7 + $0x710] ss:$8 sps:$4 sm:$0xff]   ;;  %v22398_v16 = vld [vmem:[#allocation7 + $0x734] ss:$8 sps:$4 sm:$0xff]  }
 0x63f   :  { %13531 = vmatprep.subr.bf16.mxu1 %v22335_v50  ;;  %v22387_v50 = vld [vmem:[#allocation7 + $0x970] ss:$8 sps:$4 sm:$0xff]  }
 0x640   :  { %v22892_v11 = vpop.eup %22891 }
 0x641   :  { %v22894_v8 = vpop.eup %22893  ;;  %v11173_v21 = vadd.f32 1.0, %v22892_v11  ;;  %14226 = vmatpush1.bf16.msra.mxu0 %v22339_v58  ;;  %v22390_v58 = vld [vmem:[#allocation7 + $0x720] ss:$8 sps:$4 sm:$0xff]   ;;  %v22396_v11 = vld [vmem:[#allocation7 + $0x730] ss:$8 sps:$4 sm:$0xff]  }
 0x642   :  { %13532 = vmatpush1.bf16.msra.mxu1 %v22333_v49  ;;  %v11174_v32 = vadd.f32 1.0, %v22894_v8  ;;  %14227 = vmatprep.subr.bf16.mxu0 %v22344_v55  ;;  %v22393_v49 = vld [vmem:[#allocation7 + $0x980] ss:$8 sps:$4 sm:$0xff]   ;;  %v22399_v55 = vld [vmem:[#allocation7 + $0x990] ss:$8 sps:$4 sm:$0xff]  }
 0x643   :  { %14995 = vmatprep.subr.bf16.mxu1 %v22347_v48  ;;  %22895 = vrcp.f32 %v11173_v21  ;;  %v22401_v48 = vld [vmem:[#allocation7 + $0x994] ss:$8 sps:$4 sm:$0xff]  }
 0x644   :  { %22897 = vrcp.f32 %v11174_v32 }
 0x645   :  { %13534 = vmatmul.mubr.bf16.vlgmr.msra.gmra.mrb[56].mxu1 %v12916_v41  ;;  %14228 = vmatpush1.bf16.msra.mxu0 %v22342_v19  ;;  %v22405_v19 = vld [vmem:[#allocation7 + $0x9a0] ss:$8 sps:$4 sm:$0xff]  }
 0x646   :  { %14996 = vmatpush1.bf16.msra.mxu1 %v22345_v53  ;;  %14229 = vmatprep.subr.bf16.mxu0 %v22350_v12  ;;  %v22407_v53 = vld [vmem:[#allocation7 + $0x9a4] ss:$8 sps:$4 sm:$0xff]   ;;  %v22413_v12 = vld [vmem:[#allocation7 + $0x9b4] ss:$8 sps:$4 sm:$0xff]  }
 0x647   :  { %14997 = vmatprep.subr.bf16.mxu1 %v22353_v2  ;;  %v22404_v2 = vld [vmem:[#allocation7 + $0x744] ss:$8 sps:$4 sm:$0xff]  }
 0x649   :  { %14230 = vmatpush1.bf16.msra.mxu0 %v22348_v15  ;;  %v22411_v15 = vld [vmem:[#allocation7 + $0x9b0] ss:$8 sps:$4 sm:$0xff]  }
 0x64a   :  { %14998 = vmatpush1.bf16.msra.mxu1 %v22351_v17  ;;  %14231 = vmatprep.subr.bf16.mxu0 %v22356_v27  ;;  %v22402_v17 = vld [vmem:[#allocation7 + $0x740] ss:$8 sps:$4 sm:$0xff]   ;;  %v22419_v27 = vld [vmem:[#allocation7 + $0x9c4] ss:$8 sps:$4 sm:$0xff]  }
 0x64b   :  { %14999 = vmatprep.subr.bf16.mxu1 %v22359_v46  ;;  %v22410_v46 = vld [vmem:[#allocation7 + $0x754] ss:$8 sps:$4 sm:$0xff]  }
 0x64d   :  { %v22896_v22 = vpop.eup %22895  ;;  %14232 = vmatpush1.bf16.msra.mxu0 %v22354_v56  ;;  %v22417_v56 = vld [vmem:[#allocation7 + $0x9c0] ss:$8 sps:$4 sm:$0xff]  }
 0x64e   :  { %15000 = vmatpush1.bf16.msra.mxu1 %v22357_v9  ;;  %v22898_v29 = vpop.eup %22897  ;;  %v11177_v0 = vmul.f32 %v22896_v22, %v27760_v34  ;;  %14233 = vmatprep.subr.bf16.mxu0 %v22362_v14  ;;  %v22408_v9 = vld [vmem:[#allocation7 + $0x750] ss:$8 sps:$4 sm:$0xff]   ;;  %v22425_v14 = vld [vmem:[#allocation7 + $0x9d4] ss:$8 sps:$4 sm:$0xff]  }
 0x64f   :  { %15001 = vmatprep.subr.bf16.mxu1 %v22365_v20  ;;  %v11178_v31 = vmul.f32 %v22898_v29, %v27763_v18  ;;  %v22416_v20 = vld [vmem:[#allocation7 + $0x764] ss:$8 sps:$4 sm:$0xff]  }
 0x651   :  { %v18901_v39 = vpack.c.bf16 %v11178_v31, %v11177_v0  ;;  %14234 = vmatpush1.bf16.msra.mxu0 %v22360_v4  ;;  %v22423_v4 = vld [vmem:[#allocation7 + $0x9d0] ss:$8 sps:$4 sm:$0xff]  }
 0x652   :  { %15002 = vmatpush1.bf16.msra.mxu1 %v22363_v28  ;;  %14235 = vmatprep.subr.bf16.mxu0 %v22368_v37  ;;  %v22414_v28 = vld [vmem:[#allocation7 + $0x760] ss:$8 sps:$4 sm:$0xff]   ;;  %v22431_v37 = vld [vmem:[#allocation7 + $0x9e4] ss:$8 sps:$4 sm:$0xff]  }
 0x653   :  { %15003 = vmatprep.subr.bf16.mxu1 %v22371_v10  ;;  %v11190_v26 = vrot.slane %v18901_v39, %v23077_v7  ;;  %v22422_v10 = vld [vmem:[#allocation7 + $0x774] ss:$8 sps:$4 sm:$0xff]  }
 0x655   :  { %18902 = vst.sshfl [vmem:[#allocation3 + $0xc] sm:$0x5 pattern:$0x73625140] %v11190_v26  ;;  %14236 = vmatpush1.bf16.msra.mxu0 %v22366_v42  ;;  %v22429_v42 = vld [vmem:[#allocation7 + $0x9e0] ss:$8 sps:$4 sm:$0xff]  }
 0x656   :  { %15004 = vmatpush1.bf16.msra.mxu1 %v22369_v1  ;;  %14237 = vmatprep.subr.bf16.mxu0 %v22374_v33  ;;  %v22420_v1 = vld [vmem:[#allocation7 + $0x770] ss:$8 sps:$4 sm:$0xff]   ;;  %v22437_v33 = vld [vmem:[#allocation7 + $0x9f4] ss:$8 sps:$4 sm:$0xff]  }
 0x657   :  { %15005 = vmatprep.subr.bf16.mxu1 %v22377_v30  ;;  %v22428_v30 = vld [vmem:[#allocation7 + $0x784] ss:$8 sps:$4 sm:$0xff]  }
 0x658   :  { %v11948_v34 = vpop.f32.mrb[52].mxu1 }
 0x659   :  { %v27773_v18 = vadd.f32 %v11948_v34, %v26362_v52  ;;  %v11950_v57 = vpop.f32.mrb[53].mxu1  ;;  %14238 = vmatpush1.bf16.msra.mxu0 %v22372_v40  ;;  %v22435_v34 = vld [vmem:[#allocation7 + $0x9f0] ss:$8 sps:$4 sm:$0xff]   ;;  %v22443_v40 = vld [vmem:[#allocation7 + $0xa04] ss:$8 sps:$4 sm:$0xff]  }
 0x65a   :  { %v27776_v13 = vadd.f32 %v11950_v57, %v26365_v54  ;;  %v11952_v6 = vpop.f32.mrb[54].mxu1  ;;  %15006 = vmatpush1.bf16.msra.mxu1 %v22375_v63  ;;  %14248 = vmatprep.subr.bf16.mxu0 %v22380_v5  ;;  %v22386_v54 = vld [vmem:[#allocation7 + $0x714] ss:$8 sps:$4 sm:$0xff]   ;;  %v22426_v63 = vld [vmem:[#allocation7 + $0x780] ss:$8 sps:$4 sm:$0xff]  }
 0x65b   :  { %v11955_v36 = vsub.f32 0.0, %v27773_v18  ;;  %v11953_v45 = vpop.f32.mrb[55].mxu1  ;;  %15007 = vmatprep.subr.bf16.mxu1 %v22383_v43  ;;  %v22434_v43 = vld [vmem:[#allocation7 + $0x794] ss:$8 sps:$4 sm:$0xff]   ;;  %v22440_v57 = vld [vmem:[#allocation7 + $0x7a4] ss:$8 sps:$4 sm:$0xff]  }
 0x65c   :  { %v11956_v35 = vsub.f32 0.0, %v27776_v13  ;;  %14240 = vmatmul.mubr.bf16.vlgmr.msra.gmra.mrb[52].mxu0 %v27782_v59  ;;  %v22438_v5 = vld [vmem:[#allocation7 + $0x7a0] ss:$8 sps:$4 sm:$0xff]   ;;  %v22446_v6 = vld [vmem:[#allocation7 + $0x7b4] ss:$8 sps:$4 sm:$0xff]  }
 0x65d   :  { %v11957_v52 = vmul.f32 1.442695, %v11955_v36  ;;  %14249 = vmatpush1.bf16.msra.mxu0 %v22378_v47  ;;  %14280 = vmatprep.mubr.bf16.mxu0 %v13720_v3  ;;  %v22444_v45 = vld [vmem:[#allocation7 + $0x7b0] ss:$8 sps:$4 sm:$0xff]   ;;  %v22441_v47 = vld [vmem:[#allocation7 + $0xa00] ss:$8 sps:$4 sm:$0xff]  }
 0x65e   :  { %v11959_v38 = vmul.f32 1.442695, %v11956_v35  ;;  %15008 = vmatpush1.bf16.msra.mxu1 %v22381_v44  ;;  %14250 = vmatprep.subr.bf16.mxu0 %v22386_v54  ;;  %v22449_v54 = vld [vmem:[#allocation7 + $0xa14] ss:$8 sps:$4 sm:$0xff]   ;;  %v22450_v3 = vld [vmem:[#allocation7 + $0x7c0] ss:$8 sps:$4 sm:$0xff]  }
 0x65f   :  { %22899 = vpow2.f32 %v11957_v52  ;;  %15009 = vmatprep.subr.bf16.mxu1 %v22389_v25  ;;  %v22452_v25 = vld [vmem:[#allocation7 + $0x7c4] ss:$8 sps:$4 sm:$0xff]  }
 0x660   :  { %22901 = vpow2.f32 %v11959_v38 }
 0x661   :  { %14251 = vmatpush1.bf16.msra.mxu0 %v22384_v24  ;;  %v22455_v24 = vld [vmem:[#allocation7 + $0xa24] ss:$8 sps:$4 sm:$0xff]  }
 0x662   :  { %15010 = vmatpush1.bf16.msra.mxu1 %v22387_v50  ;;  %14252 = vmatprep.subr.bf16.mxu0 %v22392_v61  ;;  %v22458_v50 = vld [vmem:[#allocation7 + $0x7d4] ss:$8 sps:$4 sm:$0xff]   ;;  %v22456_v61 = vld [vmem:[#allocation7 + $0x7d0] ss:$8 sps:$4 sm:$0xff]  }
 0x663   :  { %15011 = vmatprep.subr.bf16.mxu1 %v22395_v23  ;;  %v22447_v23 = vld [vmem:[#allocation7 + $0xa10] ss:$8 sps:$4 sm:$0xff]  }
 0x665   :  { %14253 = vmatpush1.bf16.msra.mxu0 %v22390_v58  ;;  %v13674_v58 = vcombine.high %v27745_v51, %v27745_v51 }
 0x666   :  { %15012 = vmatpush1.bf16.msra.mxu1 %v22393_v49  ;;  %14254 = vmatprep.subr.bf16.mxu0 %v22398_v16  ;;  %v22464_v49 = vld [vmem:[#allocation7 + $0x7e4] ss:$8 sps:$4 sm:$0xff]   ;;  %v22461_v16 = vld [vmem:[#allocation7 + $0xa34] ss:$8 sps:$4 sm:$0xff]  }
 0x667   :  { %15013 = vmatprep.subr.bf16.mxu1 %v22401_v48  ;;  %v22453_v48 = vld [vmem:[#allocation7 + $0xa20] ss:$8 sps:$4 sm:$0xff]  }
 0x669   :  { %v22900_v41 = vpop.eup %22899  ;;  %14255 = vmatpush1.bf16.msra.mxu0 %v22396_v11  ;;  %v22459_v11 = vld [vmem:[#allocation7 + $0xa30] ss:$8 sps:$4 sm:$0xff]  }
 0x66a   :  { %v22902_v8 = vpop.eup %22901  ;;  %v11961_v21 = vadd.f32 1.0, %v22900_v41  ;;  %15014 = vmatpush1.bf16.msra.mxu1 %v22399_v55  ;;  %14256 = vmatprep.subr.bf16.mxu0 %v22404_v2  ;;  %v22462_v55 = vld [vmem:[#allocation7 + $0x7e0] ss:$8 sps:$4 sm:$0xff]   ;;  %v27802_v41 = vrot.slane %v13674_v58, %v23077_v7  ;;  %v22467_v2 = vld [vmem:[#allocation7 + $0xa44] ss:$8 sps:$4 sm:$0xff]  }
 0x66b   :  { %v11962_v32 = vadd.f32 1.0, %v22902_v8  ;;  %15015 = vmatprep.subr.bf16.mxu1 %v22407_v53  ;;  %v22470_v53 = vld [vmem:[#allocation7 + $0x7f4] ss:$8 sps:$4 sm:$0xff]   ;;  %v22468_v8 = vld [vmem:[#allocation7 + $0x7f0] ss:$8 sps:$4 sm:$0xff]  }
 0x66c   :  { %22903 = vrcp.f32 %v11961_v21  ;;  %v22476_v21 = vld [vmem:[#allocation7 + $0x804] ss:$8 sps:$4 sm:$0xff]   ;;  %v13690_v51 = vcombine.high %v27802_v41, %v27802_v41 }
 0x66d   :  { %22905 = vrcp.f32 %v11962_v32  ;;  %14257 = vmatpush1.bf16.msra.mxu0 %v22402_v17  ;;  %v22473_v32 = vld [vmem:[#allocation7 + $0xa54] ss:$8 sps:$4 sm:$0xff]   ;;  %v13719_v17 = vcombine.high %v27782_v59, %v27782_v59  ;;  %v22486_v59 = vld [vmem:[#allocation7 + $0x820] ss:$8 sps:$4 sm:$0xff]   ;;  %v22539_v58 = vld [vmem:[#allocation7 + $0xb04] ss:$8 sps:$4 sm:$0xff]  }
 0x66e   :  { %15016 = vmatpush1.bf16.msra.mxu1 %v22405_v19  ;;  %14258 = vmatprep.subr.bf16.mxu0 %v22410_v46  ;;  %v22465_v19 = vld [vmem:[#allocation7 + $0xa40] ss:$8 sps:$4 sm:$0xff]   ;;  %v22482_v46 = vld [vmem:[#allocation7 + $0x814] ss:$8 sps:$4 sm:$0xff]  }
 0x66f   :  { %15017 = vmatprep.subr.bf16.mxu1 %v22413_v12  ;;  %v22474_v12 = vld [vmem:[#allocation7 + $0x800] ss:$8 sps:$4 sm:$0xff]  }
 0x671   :  { %14259 = vmatpush1.bf16.msra.mxu0 %v22408_v9  ;;  %v22479_v9 = vld [vmem:[#allocation7 + $0xa64] ss:$8 sps:$4 sm:$0xff]  }
 0x672   :  { %15018 = vmatpush1.bf16.msra.mxu1 %v22411_v15  ;;  %14260 = vmatprep.subr.bf16.mxu0 %v22416_v20  ;;  %v22471_v15 = vld [vmem:[#allocation7 + $0xa50] ss:$8 sps:$4 sm:$0xff]  }
 0x673   :  { %15019 = vmatprep.subr.bf16.mxu1 %v22419_v27  ;;  %v13718_v27 = vrot.slane %v13690_v51, %v23077_v7  ;;  %v22480_v20 = vld [vmem:[#allocation7 + $0x810] ss:$8 sps:$4 sm:$0xff]  }
 0x674   :  { %v22544_v51 = vld [vmem:[#allocation7 + $0xb10] ss:$8 sps:$4 sm:$0xff]  }
 0x675   :  { %14261 = vmatpush1.bf16.msra.mxu0 %v22414_v28  ;;  %v22485_v28 = vld [vmem:[#allocation7 + $0xa74] ss:$8 sps:$4 sm:$0xff]  }
 0x676   :  { %v22904_v22 = vpop.eup %22903  ;;  %15020 = vmatpush1.bf16.msra.mxu1 %v22417_v56  ;;  %14262 = vmatprep.subr.bf16.mxu0 %v22422_v10  ;;  %v22488_v56 = vld [vmem:[#allocation7 + $0x824] ss:$8 sps:$4 sm:$0xff]   ;;  %v22494_v10 = vld [vmem:[#allocation7 + $0x834] ss:$8 sps:$4 sm:$0xff]  }
 0x677   :  { %v22906_v29 = vpop.eup %22905  ;;  %v11965_v0 = vmul.f32 %v22904_v22, %v27773_v18  ;;  %15021 = vmatprep.subr.bf16.mxu1 %v22425_v14  ;;  %v22432_v18 = vld [vmem:[#allocation7 + $0x790] ss:$8 sps:$4 sm:$0xff]   ;;  %v22477_v14 = vld [vmem:[#allocation7 + $0xa60] ss:$8 sps:$4 sm:$0xff]  }
 0x678   :  { %v11966_v31 = vmul.f32 %v22906_v29, %v27776_v13  ;;  %v22483_v22 = vld [vmem:[#allocation7 + $0xa70] ss:$8 sps:$4 sm:$0xff]  }
 0x679   :  { %14263 = vmatpush1.bf16.msra.mxu0 %v22420_v1  ;;  %v22492_v29 = vld [vmem:[#allocation7 + $0x830] ss:$8 sps:$4 sm:$0xff]   ;;  %v22498_v1 = vld [vmem:[#allocation7 + $0x840] ss:$8 sps:$4 sm:$0xff]  }
 0x67a   :  { %v19095_v39 = vpack.c.bf16 %v11966_v31, %v11965_v0  ;;  %15022 = vmatpush1.bf16.msra.mxu1 %v22423_v4  ;;  %14264 = vmatprep.subr.bf16.mxu0 %v22428_v30  ;;  %v22491_v4 = vld [vmem:[#allocation7 + $0xa84] ss:$8 sps:$4 sm:$0xff]   ;;  %v22497_v31 = vld [vmem:[#allocation7 + $0xa94] ss:$8 sps:$4 sm:$0xff]  }
 0x67b   :  { %15023 = vmatprep.subr.bf16.mxu1 %v22431_v37  ;;  %v22500_v0 = vld [vmem:[#allocation7 + $0x844] ss:$8 sps:$4 sm:$0xff]   ;;  %v22489_v37 = vld [vmem:[#allocation7 + $0xa80] ss:$8 sps:$4 sm:$0xff]   ;;  %v22506_v30 = vld [vmem:[#allocation7 + $0x854] ss:$8 sps:$4 sm:$0xff]  }
 0x67c   :  { %v11978_v26 = vrot.slane %v19095_v39, %v23077_v7  ;;  %v22495_v39 = vld [vmem:[#allocation7 + $0xa90] ss:$8 sps:$4 sm:$0xff]  }
 0x67d   :  { %14265 = vmatpush1.bf16.msra.mxu0 %v22426_v63  ;;  %v22501_v63 = vld [vmem:[#allocation7 + $0xaa0] ss:$8 sps:$4 sm:$0xff]  }
 0x67e   :  { %19096 = vst.sshfl [vmem:[#allocation3 + $0xe] sm:$0x5 pattern:$0x73625140] %v11978_v26  ;;  %15024 = vmatpush1.bf16.msra.mxu1 %v22429_v42  ;;  %14266 = vmatprep.subr.bf16.mxu0 %v22434_v43  ;;  %v22503_v42 = vld [vmem:[#allocation7 + $0xaa4] ss:$8 sps:$4 sm:$0xff]  }
 0x67f   :  { %15025 = vmatprep.subr.bf16.mxu1 %v22437_v33  ;;  %v22504_v33 = vld [vmem:[#allocation7 + $0x850] ss:$8 sps:$4 sm:$0xff]   ;;  %v22512_v26 = vld [vmem:[#allocation7 + $0x864] ss:$8 sps:$4 sm:$0xff]   ;;  %v22509_v43 = vld [vmem:[#allocation7 + $0xab4] ss:$8 sps:$4 sm:$0xff]  }
 0x681   :  { %14267 = vmatpush1.bf16.msra.mxu0 %v22432_v18  ;;  %v22507_v18 = vld [vmem:[#allocation7 + $0xab0] ss:$8 sps:$4 sm:$0xff]  }
 0x682   :  { %15026 = vmatpush1.bf16.msra.mxu1 %v22435_v34  ;;  %14268 = vmatprep.subr.bf16.mxu0 %v22440_v57  ;;  %v22510_v34 = vld [vmem:[#allocation7 + $0x860] ss:$8 sps:$4 sm:$0xff]   ;;  %v22515_v57 = vld [vmem:[#allocation7 + $0xac4] ss:$8 sps:$4 sm:$0xff]  }
 0x683   :  { %15036 = vmatprep.subr.bf16.mxu1 %v22443_v40  ;;  %v22518_v40 = vld [vmem:[#allocation7 + $0x874] ss:$8 sps:$4 sm:$0xff]  }
 0x685   :  { %v27790_v13 = vld [vmem:[#allocation3 + $0xa] sm:$0x3f]  ;;  %14269 = vmatpush1.bf16.msra.mxu0 %v22438_v5 }
 0x686   :  { %v14469_v44 = vrot.slane %v27790_v13, %v23077_v7  ;;  %14270 = vmatprep.subr.bf16.mxu0 %v22446_v6  ;;  %v22516_v5 = vld [vmem:[#allocation7 + $0x870] ss:$8 sps:$4 sm:$0xff]   ;;  %v22524_v6 = vld [vmem:[#allocation7 + $0x884] ss:$8 sps:$4 sm:$0xff]  }
 0x688   :  { %v14477_v36 = vcombine.high %v14469_v44, %v14469_v44  ;;  %v27796_v52 = vrot.slane %v14469_v44, %v23077_v7  ;;  %v22513_v44 = vld [vmem:[#allocation7 + $0xac0] ss:$8 sps:$4 sm:$0xff]  }
 0x689   :  { %14271 = vmatpush1.bf16.msra.mxu0 %v22444_v45  ;;  %v22522_v45 = vld [vmem:[#allocation7 + $0x880] ss:$8 sps:$4 sm:$0xff]  }
 0x68a   :  { %v14499_v35 = vrot.slane %v14477_v36, %v23077_v7  ;;  %14272 = vmatprep.subr.bf16.mxu0 %v22452_v25  ;;  %v22521_v36 = vld [vmem:[#allocation7 + $0xad4] ss:$8 sps:$4 sm:$0xff]  }
 0x68b   :  { %v22530_v25 = vld [vmem:[#allocation7 + $0x894] ss:$8 sps:$4 sm:$0xff]  }
 0x68c   :  { %15027 = vmatprep.mubr.bf16.mxu1 %v14499_v35  ;;  %v14508_v38 = vcombine.high %v14499_v35, %v14499_v35  ;;  %v22519_v35 = vld [vmem:[#allocation7 + $0xad0] ss:$8 sps:$4 sm:$0xff]  }
 0x68d   :  { %15028 = vmatmul.mubr.bf16.vlgmr.msra.gmra.mrb[60].mxu1 %v27796_v52  ;;  %14273 = vmatpush1.bf16.msra.mxu0 %v22450_v3  ;;  %v22536_v3 = vld [vmem:[#allocation7 + $0x8a4] ss:$8 sps:$4 sm:$0xff]  }
 0x68e   :  { %15037 = vmatpush1.bf16.msra.mxu1 %v22441_v47  ;;  %15068 = vmatprep.mubr.bf16.mxu1 %v14508_v38  ;;  %v22527_v47 = vld [vmem:[#allocation7 + $0xae4] ss:$8 sps:$4 sm:$0xff]   ;;  %v14462_v38 = vcombine.high %v27790_v13, %v27790_v13 }
 0x68f   :  { %15038 = vmatprep.subr.bf16.mxu1 %v22449_v54  ;;  %14274 = vmatprep.subr.bf16.mxu0 %v22458_v50  ;;  %v22528_v54 = vld [vmem:[#allocation7 + $0x890] ss:$8 sps:$4 sm:$0xff]   ;;  %v22525_v50 = vld [vmem:[#allocation7 + $0xae0] ss:$8 sps:$4 sm:$0xff]  }
 0x691   :  { %14275 = vmatpush1.bf16.msra.mxu0 %v22456_v61  ;;  %v27812_v61 = vrot.slane %v14462_v38, %v23077_v7  ;;  %v22595_v38 = vld [vmem:[#allocation7 + $0xbe0] ss:$8 sps:$4 sm:$0xff]  }
 0x692   :  { %15039 = vmatpush1.bf16.msra.mxu1 %v22447_v23  ;;  %14276 = vmatprep.subr.bf16.mxu0 %v22464_v49  ;;  %v22533_v23 = vld [vmem:[#allocation7 + $0xaf4] ss:$8 sps:$4 sm:$0xff]  }
 0x693   :  { %15040 = vmatprep.subr.bf16.mxu1 %v22455_v24  ;;  %v22534_v24 = vld [vmem:[#allocation7 + $0x8a0] ss:$8 sps:$4 sm:$0xff]   ;;  %v22543_v49 = vld [vmem:[#allocation7 + $0x8b4] ss:$8 sps:$4 sm:$0xff]   ;;  %v14478_v13 = vcombine.high %v27812_v61, %v27812_v61 }
 0x695   :  { %14277 = vmatpush1.bf16.msra.mxu0 %v22462_v55  ;;  %v22549_v55 = vld [vmem:[#allocation7 + $0x8c4] ss:$8 sps:$4 sm:$0xff]  }
 0x696   :  { %15041 = vmatpush1.bf16.msra.mxu1 %v22453_v48  ;;  %14278 = vmatprep.subr.bf16.mxu0 %v22470_v53  ;;  %v22531_v48 = vld [vmem:[#allocation7 + $0xaf0] ss:$8 sps:$4 sm:$0xff]   ;;  %v22537_v53 = vld [vmem:[#allocation7 + $0xb00] ss:$8 sps:$4 sm:$0xff]  }
 0x697   :  { %15042 = vmatprep.subr.bf16.mxu1 %v22461_v16  ;;  %v22541_v16 = vld [vmem:[#allocation7 + $0x8b0] ss:$8 sps:$4 sm:$0xff]  }
 0x699   :  { %14279 = vmatpush1.bf16.msra.mxu0 %v22468_v8  ;;  %v14506_v8 = vrot.slane %v14478_v13, %v23077_v7 }
 0x69a   :  { %15043 = vmatpush1.bf16.msra.mxu1 %v22459_v11  ;;  %14289 = vmatprep.subr.bf16.mxu0 %v22476_v21  ;;  %v14507_v11 = vcombine.high %v27796_v52, %v27796_v52  ;;  %v22547_v21 = vld [vmem:[#allocation7 + $0x8c0] ss:$8 sps:$4 sm:$0xff]  }
 0x69b   :  { %15044 = vmatprep.subr.bf16.mxu1 %v22467_v2  ;;  %v22546_v2 = vld [vmem:[#allocation7 + $0xb14] ss:$8 sps:$4 sm:$0xff]   ;;  %v22550_v52 = vld [vmem:[#allocation7 + $0xb20] ss:$8 sps:$4 sm:$0xff]  }
 0x69c   :  { %14281 = vmatmul.mubr.bf16.vlgmr.msra.gmra.mrb[52].mxu0 %v13719_v17  ;;  %v22561_v17 = vld [vmem:[#allocation7 + $0x8e4] ss:$8 sps:$4 sm:$0xff]  }
 0x69d   :  { %14290 = vmatpush1.bf16.msra.mxu0 %v22474_v12  ;;  %14321 = vmatprep.mubr.bf16.mxu0 %v13718_v27  ;;  %v22553_v12 = vld [vmem:[#allocation7 + $0x8d0] ss:$8 sps:$4 sm:$0xff]   ;;  %v22567_v27 = vld [vmem:[#allocation7 + $0x8f4] ss:$8 sps:$4 sm:$0xff]  }
 0x69e   :  { %15045 = vmatpush1.bf16.msra.mxu1 %v22465_v19  ;;  %14291 = vmatprep.subr.bf16.mxu0 %v22482_v46  ;;  %v22555_v19 = vld [vmem:[#allocation7 + $0x8d4] ss:$8 sps:$4 sm:$0xff]  }
 0x69f   :  { %15046 = vmatprep.subr.bf16.mxu1 %v22473_v32  ;;  %v22552_v32 = vld [vmem:[#allocation7 + $0xb24] ss:$8 sps:$4 sm:$0xff]   ;;  %v22558_v46 = vld [vmem:[#allocation7 + $0xb34] ss:$8 sps:$4 sm:$0xff]  }
 0x6a1   :  { %14292 = vmatpush1.bf16.msra.mxu0 %v22480_v20  ;;  %v22564_v20 = vld [vmem:[#allocation7 + $0xb44] ss:$8 sps:$4 sm:$0xff]  }
 0x6a2   :  { %15047 = vmatpush1.bf16.msra.mxu1 %v22471_v15  ;;  %14293 = vmatprep.subr.bf16.mxu0 %v22488_v56  ;;  %v22559_v15 = vld [vmem:[#allocation7 + $0x8e0] ss:$8 sps:$4 sm:$0xff]   ;;  %v22565_v56 = vld [vmem:[#allocation7 + $0x8f0] ss:$8 sps:$4 sm:$0xff]  }
 0x6a3   :  { %15048 = vmatprep.subr.bf16.mxu1 %v22479_v9  ;;  %v22556_v9 = vld [vmem:[#allocation7 + $0xb30] ss:$8 sps:$4 sm:$0xff]  }
 0x6a5   :  { %14294 = vmatpush1.bf16.msra.mxu0 %v22486_v59  ;;  %v13704_v59 = vrot.slane %v27802_v41, %v23077_v7  ;;  %v11988_v41 = vld [vmem:[%s28228_s6] sm:$0x3] }
 0x6a6   :  { %15049 = vmatpush1.bf16.msra.mxu1 %v22477_v14  ;;  %14295 = vmatprep.subr.bf16.mxu0 %v22494_v10  ;;  %v22562_v14 = vld [vmem:[#allocation7 + $0xb40] ss:$8 sps:$4 sm:$0xff]   ;;  %v22568_v10 = vld [vmem:[#allocation7 + $0xb50] ss:$8 sps:$4 sm:$0xff]  }
 0x6a7   :  { %15050 = vmatprep.subr.bf16.mxu1 %v22485_v28  ;;  %v22570_v28 = vld [vmem:[#allocation7 + $0xb54] ss:$8 sps:$4 sm:$0xff]  }
 0x6a9   :  { %14296 = vmatpush1.bf16.msra.mxu0 %v22492_v29  ;;  %v22576_v29 = vld [vmem:[#allocation7 + $0xb74] ss:$8 sps:$4 sm:$0xff]  }
 0x6aa   :  { %15051 = vmatpush1.bf16.msra.mxu1 %v22483_v22  ;;  %14297 = vmatprep.subr.bf16.mxu0 %v22500_v0  ;;  %v22573_v22 = vld [vmem:[#allocation7 + $0xb64] ss:$8 sps:$4 sm:$0xff]   ;;  %v22574_v0 = vld [vmem:[#allocation7 + $0xb70] ss:$8 sps:$4 sm:$0xff]  }
 0x6ab   :  { %15052 = vmatprep.subr.bf16.mxu1 %v22491_v4  ;;  %v22571_v4 = vld [vmem:[#allocation7 + $0xb60] ss:$8 sps:$4 sm:$0xff]  }
 0x6ad   :  { %14298 = vmatpush1.bf16.msra.mxu0 %v22498_v1  ;;  %v22582_v1 = vld [vmem:[#allocation7 + $0xb94] ss:$8 sps:$4 sm:$0xff]  }
 0x6ae   :  { %15053 = vmatpush1.bf16.msra.mxu1 %v22489_v37  ;;  %14299 = vmatprep.subr.bf16.mxu0 %v22506_v30  ;;  %v22579_v37 = vld [vmem:[#allocation7 + $0xb84] ss:$8 sps:$4 sm:$0xff]   ;;  %v22580_v30 = vld [vmem:[#allocation7 + $0xb90] ss:$8 sps:$4 sm:$0xff]  }
 0x6af   :  { %15054 = vmatprep.subr.bf16.mxu1 %v22497_v31  ;;  %v22577_v31 = vld [vmem:[#allocation7 + $0xb80] ss:$8 sps:$4 sm:$0xff]  }
 0x6b1   :  { %14300 = vmatpush1.bf16.msra.mxu0 %v22504_v33  ;;  %v27828_v33 = vrot.slane %v11988_v41, %v23928_v62  ;;  %v22591_v62 = vld [vmem:[#allocation7 + $0xbc4] ss:$8 sps:$4 sm:$0xff]  }
 0x6b2   :  { %15055 = vmatpush1.bf16.msra.mxu1 %v22495_v39  ;;  %14301 = vmatprep.subr.bf16.mxu0 %v22512_v26  ;;  %v22585_v39 = vld [vmem:[#allocation7 + $0xba4] ss:$8 sps:$4 sm:$0xff]   ;;  %v22583_v26 = vld [vmem:[#allocation7 + $0xba0] ss:$8 sps:$4 sm:$0xff]  }
 0x6b3   :  { %15056 = vmatprep.subr.bf16.mxu1 %v22503_v42  ;;  %v27825_v42 = vrot.slane %v11988_v41, %v23922_v60  ;;  %v22586_v60 = vld [vmem:[#allocation7 + $0xbb0] ss:$8 sps:$4 sm:$0xff]  }
 0x6b4   :  { %v22607_v41 = vld [vmem:[%s28229_s7 + $0xc8] sm:$0xff]  }
 0x6b5   :  { %14302 = vmatpush1.bf16.msra.mxu0 %v22510_v34 }
 0x6b6   :  { %15057 = vmatpush1.bf16.msra.mxu1 %v22501_v63  ;;  %14303 = vmatprep.subr.bf16.mxu0 %v22518_v40  ;;  %v22588_v40 = vld [vmem:[#allocation7 + $0xbb4] ss:$8 sps:$4 sm:$0xff]  }
 0x6b7   :  { %15058 = vmatprep.subr.bf16.mxu1 %v22509_v43 }
 0x6b9   :  { %14304 = vmatpush1.bf16.msra.mxu0 %v22516_v5 }
 0x6ba   :  { %15059 = vmatpush1.bf16.msra.mxu1 %v22507_v18  ;;  %14305 = vmatprep.subr.bf16.mxu0 %v22524_v6 }
 0x6bb   :  { %15060 = vmatprep.subr.bf16.mxu1 %v22515_v57 }
 0x6bd   :  { %14306 = vmatpush1.bf16.msra.mxu0 %v22522_v45 }
 0x6be   :  { %15061 = vmatpush1.bf16.msra.mxu1 %v22513_v44  ;;  %14307 = vmatprep.subr.bf16.mxu0 %v22530_v25  ;;  %v22589_v25 = vld [vmem:[#allocation7 + $0xbc0] ss:$8 sps:$4 sm:$0xff]  }
 0x6bf   :  { %15062 = vmatprep.subr.bf16.mxu1 %v22521_v36 }
 0x6c1   :  { %14308 = vmatpush1.bf16.msra.mxu0 %v22528_v54  ;;  %v22597_v54 = vld [vmem:[#allocation7 + $0xbe4] ss:$8 sps:$4 sm:$0xff]  }
 0x6c2   :  { %15063 = vmatpush1.bf16.msra.mxu1 %v22519_v35  ;;  %14309 = vmatprep.subr.bf16.mxu0 %v22536_v3  ;;  %v22594_v35 = vld [vmem:[#allocation7 + $0xbd4] ss:$8 sps:$4 sm:$0xff]  }
 0x6c3   :  { %15064 = vmatprep.subr.bf16.mxu1 %v22527_v47  ;;  %v22592_v47 = vld [vmem:[#allocation7 + $0xbd0] ss:$8 sps:$4 sm:$0xff]  }
 0x6c5   :  { %14310 = vmatpush1.bf16.msra.mxu0 %v22534_v24 }
 0x6c6   :  { %15065 = vmatpush1.bf16.msra.mxu1 %v22525_v50  ;;  %14311 = vmatprep.subr.bf16.mxu0 %v22543_v49  ;;  %v22600_v50 = vld [vmem:[#allocation7 + $0xbf4] ss:$8 sps:$4 sm:$0xff]  }
 0x6c7   :  { %15066 = vmatprep.subr.bf16.mxu1 %v22533_v23 }
 0x6c9   :  { %14312 = vmatpush1.bf16.msra.mxu0 %v22541_v16 }
 0x6ca   :  { %15067 = vmatpush1.bf16.msra.mxu1 %v22531_v48  ;;  %14313 = vmatprep.subr.bf16.mxu0 %v22549_v55  ;;  %v22598_v48 = vld [vmem:[#allocation7 + $0xbf0] ss:$8 sps:$4 sm:$0xff]  }
 0x6cb   :  { %15077 = vmatprep.subr.bf16.mxu1 %v22539_v58  ;;  %v14492_v58 = vrot.slane %v27812_v61, %v23077_v7 }
 0x6cd   :  { %15069 = vmatmul.mubr.bf16.vlgmr.msra.gmra.mrb[60].mxu1 %v14507_v11  ;;  %14314 = vmatpush1.bf16.msra.mxu0 %v22547_v21 }
 0x6ce   :  { %15078 = vmatpush1.bf16.msra.mxu1 %v22537_v53  ;;  %15109 = vmatprep.mubr.bf16.mxu1 %v14506_v8 }
 0x6cf   :  { %15079 = vmatprep.subr.bf16.mxu1 %v22546_v2  ;;  %14315 = vmatprep.subr.bf16.mxu0 %v22555_v19 }
 0x6d1   :  { %14316 = vmatpush1.bf16.msra.mxu0 %v22553_v12 }
 0x6d2   :  { %15080 = vmatpush1.bf16.msra.mxu1 %v22544_v51  ;;  %14317 = vmatprep.subr.bf16.mxu0 %v22561_v17 }
 0x6d3   :  { %15081 = vmatprep.subr.bf16.mxu1 %v22552_v32 }
 0x6d5   :  { %14318 = vmatpush1.bf16.msra.mxu0 %v22559_v15 }
 0x6d6   :  { %15082 = vmatpush1.bf16.msra.mxu1 %v22550_v52  ;;  %14319 = vmatprep.subr.bf16.mxu0 %v22567_v27 }
 0x6d7   :  { %15083 = vmatprep.subr.bf16.mxu1 %v22558_v46 }
 0x6d9   :  { %14320 = vmatpush1.bf16.msra.mxu0 %v22565_v56 }
 0x6da   :  { %15084 = vmatpush1.bf16.msra.mxu1 %v22556_v9 }
 0x6db   :  { %15085 = vmatprep.subr.bf16.mxu1 %v22564_v20 }
 0x6dc   :  { %14322 = vmatmul.mubr.bf16.vlgmr.msra.gmra.mrb[52].mxu0 %v13704_v59 }
 0x6de   :  { %15086 = vmatpush1.bf16.msra.mxu1 %v22562_v14 }
 0x6df   :  { %15087 = vmatprep.subr.bf16.mxu1 %v22570_v28 }
 0x6e2   :  { %15088 = vmatpush1.bf16.msra.mxu1 %v22568_v10 }
 0x6e3   :  { %15089 = vmatprep.subr.bf16.mxu1 %v22573_v22 }
 0x6e6   :  { %15090 = vmatpush1.bf16.msra.mxu1 %v22571_v4  ;;  %v22601_v4 = vld [vmem:[%s28229_s7 + $0x40] sm:$0xff]  }
 0x6e7   :  { %15091 = vmatprep.subr.bf16.mxu1 %v22576_v29  ;;  %v22602_v29 = vld [vmem:[%s28229_s7] sm:$0xff]   ;;  %19701 = vmatprep.subr.bf16.mxu0 %v22601_v4 }
 0x6e8   :  { %19702 = vmatpush3.bf16.msra.mxu0 %v22602_v29 }
 0x6ea   :  { %15092 = vmatpush1.bf16.msra.mxu1 %v22574_v0  ;;  %v22603_v0 = vld [vmem:[%s28229_s7 + $0xc0] sm:$0xff]  }
 0x6eb   :  { %15093 = vmatprep.subr.bf16.mxu1 %v22579_v37  ;;  %v22604_v37 = vld [vmem:[%s28229_s7 + $0x48] sm:$0xff]  }
 0x6ec   :  { %19703 = vmatprep.subr.bf16.mxu0 %v22604_v37 }
 0x6ee   :  { %15094 = vmatpush1.bf16.msra.mxu1 %v22577_v31  ;;  %v22605_v31 = vld [vmem:[%s28229_s7 + $0x80] sm:$0xff]  }
 0x6ef   :  { %15095 = vmatprep.subr.bf16.mxu1 %v22582_v1  ;;  %v12747_v63 = vpop.f32.mrb[48].mxu0  ;;  %v22606_v1 = vld [vmem:[%s28229_s7 + $0x8] sm:$0xff]  }
 0x6f0   :  { %v19907_v43 = vadd.f32 %v12747_v63, %v27825_v42  ;;  %v12749_v34 = vpop.f32.mrb[49].mxu0  ;;  %19704 = vmatpush3.bf16.msra.mxu0 %v22606_v1  ;;  %v22611_v63 = vld [vmem:[%s28229_s7 + $0xd0] sm:$0xff]  }
 0x6f1   :  { %v19908_v18 = vadd.f32 %v12749_v34, %v27828_v33  ;;  %v12751_v57 = vpop.f32.mrb[50].mxu0  ;;  %v22613_v34 = vld [vmem:[%s28229_s7 + $0x90] sm:$0xff]  }
 0x6f2   :  { %15096 = vmatpush1.bf16.msra.mxu1 %v22580_v30  ;;  %v12754_v5 = vsub.f32 0.0, %v19907_v43  ;;  %v12752_v6 = vpop.f32.mrb[51].mxu0  ;;  %v22608_v30 = vld [vmem:[%s28229_s7 + $0x50] sm:$0xff]   ;;  %v22616_v57 = vld [vmem:[%s28229_s7 + $0x60] sm:$0xff]  }
 0x6f3   :  { %15097 = vmatprep.subr.bf16.mxu1 %v22585_v39  ;;  %v12755_v44 = vsub.f32 0.0, %v19908_v18  ;;  %v22609_v39 = vld [vmem:[%s28229_s7 + $0x88] sm:$0xff]   ;;  %19705 = vmatprep.subr.bf16.mxu0 %v22608_v30  ;;  %v22618_v6 = vld [vmem:[%s28229_s7 + $0x20] sm:$0xff]  }
 0x6f4   :  { %v12756_v36 = vmul.f32 1.442695, %v12754_v5  ;;  %v22617_v5 = vld [vmem:[%s28229_s7 + $0x98] sm:$0xff]  }
 0x6f5   :  { %v12758_v45 = vmul.f32 1.442695, %v12755_v44  ;;  %v22619_v44 = vld [vmem:[%s28229_s7 + $0xe0] sm:$0xff]  }
 0x6f6   :  { %15098 = vmatpush1.bf16.msra.mxu1 %v22583_v26  ;;  %22907 = vpow2.f32 %v12756_v36  ;;  %v22610_v26 = vld [vmem:[%s28229_s7 + $0x10] sm:$0xff]   ;;  %v22621_v36 = vld [vmem:[%s28229_s7 + $0xa0] sm:$0xff]  }
 0x6f7   :  { %15099 = vmatprep.subr.bf16.mxu1 %v22588_v40  ;;  %22909 = vpow2.f32 %v12758_v45  ;;  %19706 = vmatpush3.bf16.msra.mxu0 %v22610_v26  ;;  %v22614_v40 = vld [vmem:[%s28229_s7 + $0x18] sm:$0xff]   ;;  %v22623_v45 = vld [vmem:[%s28229_s7 + $0xe8] sm:$0xff]  }
 0x6fa   :  { %15100 = vmatpush1.bf16.msra.mxu1 %v22586_v60  ;;  %v22620_v60 = vld [vmem:[%s28229_s7 + $0x68] sm:$0xff]  }
 0x6fb   :  { %15101 = vmatprep.subr.bf16.mxu1 %v22591_v62  ;;  %v22622_v62 = vld [vmem:[%s28229_s7 + $0x28] sm:$0xff]  }
 0x6fe   :  { %15102 = vmatpush1.bf16.msra.mxu1 %v22589_v25  ;;  %v22624_v25 = vld [vmem:[%s28229_s7 + $0x70] sm:$0xff]  }
 0x6ff   :  { %15103 = vmatprep.subr.bf16.mxu1 %v22594_v35  ;;  %v22625_v35 = vld [vmem:[%s28229_s7 + $0xa8] sm:$0xff]  }
 0x700   :  { %v22908_v3 = vpop.eup %22907 }
 0x701   :  { %v22910_v23 = vpop.eup %22909  ;;  %v12760_v24 = vadd.f32 1.0, %v22908_v3  ;;  %v22629_v3 = vld [vmem:[%s28229_s7 + $0xb0] sm:$0xff]  }
 0x702   :  { %15104 = vmatpush1.bf16.msra.mxu1 %v22592_v47  ;;  %v12761_v49 = vadd.f32 1.0, %v22910_v23  ;;  %v22626_v47 = vld [vmem:[%s28229_s7 + $0x30] sm:$0xff]   ;;  %v22631_v23 = vld [vmem:[%s28229_s7 + $0xf8] sm:$0xff]  }
 0x703   :  { %15105 = vmatprep.subr.bf16.mxu1 %v22597_v54  ;;  %22911 = vrcp.f32 %v12760_v24  ;;  %v22627_v54 = vld [vmem:[%s28229_s7 + $0xf0] sm:$0xff]   ;;  %v22632_v24 = vld [vmem:[%s28229_s7 + $0xb8] sm:$0xff]  }
 0x704   :  { %22913 = vrcp.f32 %v12761_v49  ;;  %v22633_v49 = vld [vmem:[%s28229_s7 + $0x140] sm:$0xff]  }
 0x706   :  { %15106 = vmatpush1.bf16.msra.mxu1 %v22595_v38  ;;  %v22628_v38 = vld [vmem:[%s28229_s7 + $0x78] sm:$0xff]  }
 0x707   :  { %15107 = vmatprep.subr.bf16.mxu1 %v22600_v50  ;;  %v22630_v50 = vld [vmem:[%s28229_s7 + $0x38] sm:$0xff]  }
 0x70a   :  { %15108 = vmatpush1.bf16.msra.mxu1 %v22598_v48  ;;  %v22640_v48 = vld [vmem:[%s28229_s7 + $0x1c0] sm:$0xff]  }
 0x70b   :  { %19723 = vmatprep.subr.bf16.mxu1 %v22603_v0 }
 0x70d   :  { %15110 = vmatmul.mubr.bf16.vlgmr.msra.gmra.mrb[60].mxu1 %v14492_v58  ;;  %v22912_v13 = vpop.eup %22911 }
 0x70e   :  { %v22914_v16 = vpop.eup %22913  ;;  %v12764_v55 = vmul.f32 %v22912_v13, %v19907_v43  ;;  %19724 = vmatpush3.bf16.msra.mxu1 %v22605_v31  ;;  %v22612_v43 = vld [vmem:[%s28229_s7 + $0x58] sm:$0xff]  }
 0x70f   :  { %v12765_v53 = vmul.f32 %v22914_v16, %v19908_v18  ;;  %19725 = vmatprep.subr.bf16.mxu1 %v22607_v41  ;;  %19707 = vmatprep.subr.bf16.mxu0 %v22612_v43  ;;  %v22615_v18 = vld [vmem:[%s28229_s7 + $0xd8] sm:$0xff]  }
 0x710   :  { %19708 = vmatpush3.bf16.msra.mxu0 %v22614_v40  ;;  %v22641_v40 = vld [vmem:[%s28229_s7 + $0x180] sm:$0xff]  }
 0x711   :  { %v19193_v11 = vpack.c.bf16 %v12765_v53, %v12764_v55  ;;  %19709 = vmatprep.subr.bf16.mxu0 %v22616_v57  ;;  %v22644_v57 = vld [vmem:[%s28229_s7 + $0x1c8] sm:$0xff]  }
 0x712   :  { %19726 = vmatpush3.bf16.msra.mxu1 %v22609_v39 }
 0x713   :  { %v12777_v2 = vrot.slane %v19193_v11, %v23077_v7  ;;  %19727 = vmatprep.subr.bf16.mxu1 %v22611_v63 }
 0x714   :  { %19710 = vmatpush3.bf16.msra.mxu0 %v22618_v6  ;;  %v22638_v6 = vld [vmem:[%s28229_s7 + $0x150] sm:$0xff]  }
 0x715   :  { %19194 = vst.sshfl [vmem:[#allocation4] sm:$0x5 pattern:$0x73625140] %v12777_v2  ;;  %19711 = vmatprep.subr.bf16.mxu0 %v22620_v60  ;;  %v22648_v60 = vld [vmem:[%s28229_s7 + $0x1d0] sm:$0xff]  }
 0x716   :  { %19728 = vmatpush3.bf16.msra.mxu1 %v22613_v34  ;;  %v22636_v34 = vld [vmem:[%s28229_s7 + $0x148] sm:$0xff]  }
 0x717   :  { %19729 = vmatprep.subr.bf16.mxu1 %v22615_v18 }
 0x718   :  { %v13535_v8 = vpop.f32.mrb[56].mxu1  ;;  %19712 = vmatpush3.bf16.msra.mxu0 %v22622_v62  ;;  %v22642_v62 = vld [vmem:[%s28229_s7 + $0x158] sm:$0xff]  }
 0x719   :  { %v19909_v21 = vadd.f32 %v13535_v8, %v27825_v42  ;;  %v13537_v19 = vpop.f32.mrb[57].mxu1  ;;  %19713 = vmatprep.subr.bf16.mxu0 %v22624_v25  ;;  %v22652_v25 = vld [vmem:[%s28229_s7 + $0x1d8] sm:$0xff]  }
 0x71a   :  { %v19910_v51 = vadd.f32 %v13537_v19, %v27828_v33  ;;  %v13539_v32 = vpop.f32.mrb[58].mxu1  ;;  %19730 = vmatpush3.bf16.msra.mxu1 %v22617_v5  ;;  %v22637_v5 = vld [vmem:[%s28229_s7 + $0x108] sm:$0xff]  }
 0x71b   :  { %v13542_v12 = vsub.f32 0.0, %v19909_v21  ;;  %v13540_v17 = vpop.f32.mrb[59].mxu1  ;;  %19731 = vmatprep.subr.bf16.mxu1 %v22619_v44  ;;  %v22645_v44 = vld [vmem:[%s28229_s7 + $0x188] sm:$0xff]  }
 0x71c   :  { %v13543_v52 = vsub.f32 0.0, %v19910_v51  ;;  %19714 = vmatpush3.bf16.msra.mxu0 %v22626_v47 }
 0x71d   :  { %v13544_v61 = vmul.f32 1.442695, %v13542_v12  ;;  %19715 = vmatprep.subr.bf16.mxu0 %v22628_v38 }
 0x71e   :  { %v13546_v46 = vmul.f32 1.442695, %v13543_v52  ;;  %19732 = vmatpush3.bf16.msra.mxu1 %v22621_v36  ;;  %v22639_v36 = vld [vmem:[%s28229_s7 + $0x110] sm:$0xff]  }
 0x71f   :  { %22915 = vpow2.f32 %v13544_v61  ;;  %19733 = vmatprep.subr.bf16.mxu1 %v22623_v45  ;;  %v22649_v45 = vld [vmem:[%s28229_s7 + $0x190] sm:$0xff]  }
 0x720   :  { %22917 = vpow2.f32 %v13546_v46  ;;  %19716 = vmatpush3.bf16.msra.mxu0 %v22630_v50  ;;  %v22653_v50 = vld [vmem:[%s28229_s7 + $0x198] sm:$0xff]  }
 0x721   :  { %19745 = vmatprep.subr.bf16.mxu0 %v22633_v49  ;;  %v22647_v49 = vld [vmem:[%s28229_s7 + $0x120] sm:$0xff]  }
 0x722   :  { %19734 = vmatpush3.bf16.msra.mxu1 %v22625_v35  ;;  %v22643_v35 = vld [vmem:[%s28229_s7 + $0x118] sm:$0xff]  }
 0x723   :  { %19735 = vmatprep.subr.bf16.mxu1 %v22627_v54  ;;  %v22646_v54 = vld [vmem:[%s28229_s7 + $0x160] sm:$0xff]  }
 0x726   :  { %19736 = vmatpush3.bf16.msra.mxu1 %v22629_v3 }
 0x727   :  { %19737 = vmatprep.subr.bf16.mxu1 %v22631_v23 }
 0x729   :  { %v22916_v15 = vpop.eup %22915 }
 0x72a   :  { %v22918_v27 = vpop.eup %22917  ;;  %v13548_v9 = vadd.f32 1.0, %v22916_v15  ;;  %19738 = vmatpush3.bf16.msra.mxu1 %v22632_v24  ;;  %v22656_v24 = vld [vmem:[%s28229_s7 + $0x1e0] sm:$0xff]  }
 0x72b   :  { %v13549_v20 = vadd.f32 1.0, %v22918_v27  ;;  %19767 = vmatprep.subr.bf16.mxu1 %v22640_v48  ;;  %v22650_v48 = vld [vmem:[%s28229_s7 + $0x168] sm:$0xff]  }
 0x72c   :  { %22919 = vrcp.f32 %v13548_v9 }
 0x72d   :  { %22921 = vrcp.f32 %v13549_v20 }
 0x736   :  { %v22920_v56 = vpop.eup %22919 }
 0x737   :  { %v22922_v14 = vpop.eup %22921  ;;  %v13552_v28 = vmul.f32 %v22920_v56, %v19909_v21 }
 0x738   :  { %v13553_v59 = vmul.f32 %v22922_v14, %v19910_v51 }
 0x73a   :  { %v19291_v10 = vpack.c.bf16 %v13553_v59, %v13552_v28 }
 0x73c   :  { %v13565_v22 = vrot.slane %v19291_v10, %v23077_v7 }
 0x73e   :  { %19292 = vst.sshfl [vmem:[#allocation4 + $0x2] sm:$0x5 pattern:$0x73625140] %v13565_v22 }
 0x7af   :  { %v14323_v58 = vpop.f32.mrb[52].mxu0 }
 0x7b0   :  { %v19911_v13 = vadd.f32 %v14323_v58, %v27825_v42  ;;  %v14325_v16 = vpop.f32.mrb[53].mxu0  ;;  %v22657_v58 = vld [vmem:[%s28229_s7 + $0x1a0] sm:$0xff]  }
 0x7b1   :  { %v19912_v55 = vadd.f32 %v14325_v16, %v27828_v33  ;;  %v14327_v53 = vpop.f32.mrb[54].mxu0  ;;  %v22651_v16 = vld [vmem:[%s28229_s7 + $0x128] sm:$0xff]  }
 0x7b2   :  { %v14330_v11 = vsub.f32 0.0, %v19911_v13  ;;  %v14328_v2 = vpop.f32.mrb[55].mxu0  ;;  %v22661_v53 = vld [vmem:[%s28229_s7 + $0x1a8] sm:$0xff]  }
 0x7b3   :  { %v14331_v8 = vsub.f32 0.0, %v19912_v55  ;;  %v22655_v2 = vld [vmem:[%s28229_s7 + $0x130] sm:$0xff]  }
 0x7b4   :  { %v14332_v21 = vmul.f32 1.442695, %v14330_v11  ;;  %v22663_v11 = vld [vmem:[%s28229_s7 + $0x1f0] sm:$0xff]  }
 0x7b5   :  { %v14334_v19 = vmul.f32 1.442695, %v14331_v8  ;;  %v22658_v8 = vld [vmem:[%s28229_s7 + $0x178] sm:$0xff]  }
 0x7b6   :  { %22923 = vpow2.f32 %v14332_v21 }
 0x7b7   :  { %22925 = vpow2.f32 %v14334_v19  ;;  %v22665_v19 = vld [vmem:[%s28229_s7 + $0x1b0] sm:$0xff]  }
 0x7c0   :  { %v22924_v51 = vpop.eup %22923 }
 0x7c1   :  { %v22926_v32 = vpop.eup %22925  ;;  %v14336_v12 = vadd.f32 1.0, %v22924_v51 }
 0x7c2   :  { %v14337_v17 = vadd.f32 1.0, %v22926_v32 }
 0x7c3   :  { %22927 = vrcp.f32 %v14336_v12  ;;  %v22667_v12 = vld [vmem:[%s28229_s7 + $0x1f8] sm:$0xff]  }
 0x7c4   :  { %22929 = vrcp.f32 %v14337_v17 }
 0x7cd   :  { %v22928_v52 = vpop.eup %22927 }
 0x7ce   :  { %v22930_v61 = vpop.eup %22929  ;;  %v14340_v46 = vmul.f32 %v22928_v52, %v19911_v13  ;;  %v22660_v13 = vld [vmem:[%s28229_s7 + $0x1e8] sm:$0xff]   ;;  %v22659_v52 = vld [vmem:[%s28229_s7 + $0x138] sm:$0xff]  }
 0x7cf   :  { %v14341_v15 = vmul.f32 %v22930_v61, %v19912_v55  ;;  %v22654_v55 = vld [vmem:[%s28229_s7 + $0x170] sm:$0xff]   ;;  %v22662_v61 = vld [vmem:[%s28229_s7 + $0x240] sm:$0xff]  }
 0x7d1   :  { %v19389_v27 = vpack.c.bf16 %v14341_v15, %v14340_v46  ;;  %v22669_v15 = vld [vmem:[%s28229_s7 + $0x1b8] sm:$0xff]  }
 0x7d3   :  { %v14353_v9 = vrot.slane %v19389_v27, %v23077_v7  ;;  %v22672_v27 = vld [vmem:[%s28229_s7 + $0x2c0] sm:$0xff]  }
 0x7d5   :  { %19390 = vst.sshfl [vmem:[#allocation4 + $0x4] sm:$0x5 pattern:$0x73625140] %v14353_v9 }
 0x7dc   :  { %v15158_v20 = vld [vmem:[#allocation4] sm:$0x3f] }
 0x7dd   :  { %v15263_v14 = vrot.slane %v15158_v20, %v23077_v7  ;;  %v15256_v28 = vcombine.high %v15158_v20, %v15158_v20  ;;  %v22664_v20 = vld [vmem:[%s28229_s7 + $0x200] sm:$0xff]  }
 0x7df   :  { %v15271_v29 = vcombine.high %v15263_v14, %v15263_v14  ;;  %v27951_v0 = vrot.slane %v15256_v28, %v23077_v7  ;;  %v15279_v1 = vrot.slane %v15263_v14, %v23077_v7  ;;  %v22666_v14 = vld [vmem:[%s28229_s7 + $0x248] sm:$0xff]  }
 0x7e0   :  { %v15111_v56 = vpop.f32.mrb[60].mxu1  ;;  %v22668_v28 = vld [vmem:[%s28229_s7 + $0x208] sm:$0xff]  }
 0x7e1   :  { %v27945_v59 = vadd.f32 %v15111_v56, %v27825_v42  ;;  %v15113_v10 = vpop.f32.mrb[61].mxu1  ;;  %v15293_v30 = vrot.slane %v15271_v29, %v23077_v7  ;;  %v22634_v42 = vld [vmem:[%s28229_s7 + $0x100] sm:$0xff]   ;;  %v15301_v18 = vcombine.high %v15279_v1, %v15279_v1  ;;  %v15286_v56 = vrot.slane %v27951_v0, %v23077_v7 }
 0x7e2   :  { %v27948_v22 = vadd.f32 %v15113_v10, %v27828_v33  ;;  %v15115_v4 = vpop.f32.mrb[62].mxu1  ;;  %v15272_v33 = vcombine.high %v27951_v0, %v27951_v0  ;;  %v22671_v10 = vld [vmem:[%s28229_s7 + $0x210] sm:$0xff]  }
 0x7e3   :  { %v15118_v37 = vsub.f32 0.0, %v27945_v59  ;;  %v15116_v31 = vpop.f32.mrb[63].mxu1  ;;  %15629 = vmatprep.mubr.bf16.mxu0 %v15293_v30  ;;  %v15302_v63 = vcombine.high %v15293_v30, %v15293_v30  ;;  %v22675_v4 = vld [vmem:[%s28229_s7 + $0x258] sm:$0xff]  }
 0x7e4   :  { %v15119_v41 = vsub.f32 0.0, %v27948_v22  ;;  %v15300_v43 = vrot.slane %v15272_v33, %v23077_v7  ;;  %15630 = vmatmul.mubr.bf16.vlgmr.msra.gmra.mrb[56].mxu0 %v15279_v1  ;;  %v22676_v1 = vld [vmem:[%s28229_s7 + $0x218] sm:$0xff]  }
 0x7e5   :  { %v15120_v39 = vmul.f32 1.442695, %v15118_v37  ;;  %19746 = vmatpush3.bf16.msra.mxu0 %v22634_v42  ;;  %15669 = vmatprep.mubr.bf16.mxu1 %v15302_v63  ;;  %v22673_v42 = vld [vmem:[%s28229_s7 + $0x280] sm:$0xff]  }
 0x7e6   :  { %v15122_v26 = vmul.f32 1.442695, %v15119_v41  ;;  %15709 = vmatprep.mubr.bf16.mxu0 %v15300_v43  ;;  %15670 = vmatmul.mubr.bf16.vlgmr.msra.gmra.mrb[64].mxu1 %v15301_v18  ;;  %v22679_v41 = vld [vmem:[%s28229_s7 + $0x260] sm:$0xff]   ;;  %v22678_v18 = vld [vmem:[%s28229_s7 + $0x288] sm:$0xff]  }
 0x7e7   :  { %22931 = vpow2.f32 %v15120_v39  ;;  %19747 = vmatprep.subr.bf16.mxu0 %v22636_v34  ;;  %19768 = vmatpush3.bf16.msra.mxu1 %v22641_v40  ;;  %v22680_v34 = vld [vmem:[%s28229_s7 + $0x220] sm:$0xff]   ;;  %v22683_v40 = vld [vmem:[%s28229_s7 + $0x268] sm:$0xff]  }
 0x7e8   :  { %22933 = vpow2.f32 %v15122_v26  ;;  %19769 = vmatprep.subr.bf16.mxu1 %v22644_v57  ;;  %v22677_v26 = vld [vmem:[%s28229_s7 + $0x2c8] sm:$0xff]   ;;  %v22681_v57 = vld [vmem:[%s28229_s7 + $0x2d0] sm:$0xff]  }
 0x7e9   :  { %19748 = vmatpush3.bf16.msra.mxu0 %v22637_v5  ;;  %v22684_v5 = vld [vmem:[%s28229_s7 + $0x228] sm:$0xff]  }
 0x7ea   :  { %19749 = vmatprep.subr.bf16.mxu0 %v22638_v6  ;;  %v22687_v6 = vld [vmem:[%s28229_s7 + $0x270] sm:$0xff]  }
 0x7eb   :  { %19770 = vmatpush3.bf16.msra.mxu1 %v22645_v44  ;;  %v22682_v44 = vld [vmem:[%s28229_s7 + $0x290] sm:$0xff]  }
 0x7ec   :  { %19771 = vmatprep.subr.bf16.mxu1 %v22648_v60  ;;  %v22685_v60 = vld [vmem:[%s28229_s7 + $0x2d8] sm:$0xff]  }
 0x7ed   :  { %19750 = vmatpush3.bf16.msra.mxu0 %v22639_v36  ;;  %v22688_v36 = vld [vmem:[%s28229_s7 + $0x230] sm:$0xff]  }
 0x7ee   :  { %19751 = vmatprep.subr.bf16.mxu0 %v22642_v62  ;;  %v22691_v62 = vld [vmem:[%s28229_s7 + $0x278] sm:$0xff]  }
 0x7ef   :  { %19772 = vmatpush3.bf16.msra.mxu1 %v22649_v45  ;;  %v22686_v45 = vld [vmem:[%s28229_s7 + $0x298] sm:$0xff]  }
 0x7f0   :  { %19773 = vmatprep.subr.bf16.mxu1 %v22652_v25  ;;  %v22689_v25 = vld [vmem:[%s28229_s7 + $0x2e0] sm:$0xff]  }
 0x7f1   :  { %v22932_v47 = vpop.eup %22931  ;;  %19752 = vmatpush3.bf16.msra.mxu0 %v22643_v35  ;;  %v22692_v35 = vld [vmem:[%s28229_s7 + $0x238] sm:$0xff]  }
 0x7f2   :  { %v22934_v38 = vpop.eup %22933  ;;  %v15124_v3 = vadd.f32 1.0, %v22932_v47  ;;  %19753 = vmatprep.subr.bf16.mxu0 %v22646_v54  ;;  %v22690_v47 = vld [vmem:[%s28229_s7 + $0x2a0] sm:$0xff]   ;;  %v22693_v54 = vld [vmem:[%s28229_s7 + $0x2e8] sm:$0xff]  }
 0x7f3   :  { %v15125_v23 = vadd.f32 1.0, %v22934_v38  ;;  %19774 = vmatpush3.bf16.msra.mxu1 %v22653_v50  ;;  %v22695_v50 = vld [vmem:[%s28229_s7 + $0x2f0] sm:$0xff]  }
 0x7f4   :  { %22935 = vrcp.f32 %v15124_v3  ;;  %19775 = vmatprep.subr.bf16.mxu1 %v22656_v24  ;;  %v22694_v3 = vld [vmem:[%s28229_s7 + $0x2a8] sm:$0xff]   ;;  %v22697_v24 = vld [vmem:[%s28229_s7 + $0x2f8] sm:$0xff]  }
 0x7f5   :  { %22937 = vrcp.f32 %v15125_v23  ;;  %19754 = vmatpush3.bf16.msra.mxu0 %v22647_v49  ;;  %v22696_v23 = vld [vmem:[%s28229_s7 + $0x2b0] sm:$0xff]   ;;  %v22698_v49 = vld [vmem:[%s28229_s7 + $0x2b8] sm:$0xff]  }
 0x7f6   :  { %19755 = vmatprep.subr.bf16.mxu0 %v22650_v48 }
 0x7f7   :  { %19776 = vmatpush3.bf16.msra.mxu1 %v22657_v58  ;;  %v22699_v58 = vld [vmem:[%s28231_s9 + $0x40] sm:$0xff]  }
 0x7f8   :  { %19777 = vmatprep.subr.bf16.mxu1 %v22660_v13  ;;  %v22700_v13 = vld [vmem:[%s28231_s9] sm:$0xff]  }
 0x7f9   :  { %19756 = vmatpush3.bf16.msra.mxu0 %v22651_v16  ;;  %v22701_v16 = vld [vmem:[%s28231_s9 + $0x48] sm:$0xff]  }
 0x7fa   :  { %19757 = vmatprep.subr.bf16.mxu0 %v22654_v55  ;;  %v22702_v55 = vld [vmem:[%s28231_s9 + $0x8] sm:$0xff]  }
 0x7fb   :  { %19778 = vmatpush3.bf16.msra.mxu1 %v22661_v53  ;;  %v22703_v53 = vld [vmem:[%s28231_s9 + $0x50] sm:$0xff]  }
 0x7fc   :  { %19779 = vmatprep.subr.bf16.mxu1 %v22663_v11  ;;  %v22704_v11 = vld [vmem:[%s28231_s9 + $0x10] sm:$0xff]  }
 0x7fd   :  { %19758 = vmatpush3.bf16.msra.mxu0 %v22655_v2  ;;  %v22705_v2 = vld [vmem:[%s28231_s9 + $0x58] sm:$0xff]  }
 0x7fe   :  { %v22936_v21 = vpop.eup %22935  ;;  %19759 = vmatprep.subr.bf16.mxu0 %v22658_v8  ;;  %v22706_v8 = vld [vmem:[%s28231_s9 + $0x18] sm:$0xff]  }
 0x7ff   :  { %v22938_v51 = vpop.eup %22937  ;;  %v15128_v32 = vmul.f32 %v22936_v21, %v27945_v59  ;;  %19780 = vmatpush3.bf16.msra.mxu1 %v22665_v19  ;;  %v22670_v59 = vld [vmem:[%s28229_s7 + $0x250] sm:$0xff]   ;;  %v22707_v21 = vld [vmem:[%s28231_s9 + $0x60] sm:$0xff]  }
 0x800   :  { %v15129_v17 = vmul.f32 %v22938_v51, %v27948_v22  ;;  %19781 = vmatprep.subr.bf16.mxu1 %v22667_v12  ;;  %v22708_v19 = vld [vmem:[%s28231_s9 + $0x20] sm:$0xff]   ;;  %v22709_v51 = vld [vmem:[%s28231_s9 + $0x68] sm:$0xff]   ;;  %v22711_v12 = vld [vmem:[%s28231_s9 + $0x70] sm:$0xff]  }
 0x801   :  { %19760 = vmatpush3.bf16.msra.mxu0 %v22659_v52  ;;  %v22713_v52 = vld [vmem:[%s28231_s9 + $0x78] sm:$0xff]  }
 0x802   :  { %v19487_v46 = vpack.c.bf16 %v15129_v17, %v15128_v32  ;;  %19789 = vmatprep.subr.bf16.mxu0 %v22662_v61  ;;  %v22710_v32 = vld [vmem:[%s28231_s9 + $0x28] sm:$0xff]   ;;  %v22712_v17 = vld [vmem:[%s28231_s9 + $0x30] sm:$0xff]   ;;  %v22714_v61 = vld [vmem:[%s28231_s9 + $0x38] sm:$0xff]  }
 0x803   :  { %19782 = vmatpush3.bf16.msra.mxu1 %v22669_v15  ;;  %v19489_v15 = vld [vmem:[%s28230_s8] ss:$0 sm:$0xff] }
 0x804   :  { %v15141_v9 = vrot.slane %v19487_v46, %v23077_v7  ;;  %15710 = vmatmul.mubr.bf16.vlgmr.msra.gmra.mrb[60].mxu0 %v15286_v56  ;;  %19811 = vmatprep.subr.bf16.mxu1 %v22672_v27 }
 0x805   :  { %19790 = vmatpush3.bf16.msra.mxu0 %v22664_v20 }
 0x806   :  { %19488 = vst.sshfl [vmem:[#allocation4 + $0x6] sm:$0x5 pattern:$0x73625140] %v15141_v9  ;;  %19791 = vmatprep.subr.bf16.mxu0 %v22666_v14 }
 0x809   :  { %19792 = vmatpush3.bf16.msra.mxu0 %v22668_v28 }
 0x80a   :  { %19793 = vmatprep.subr.bf16.mxu0 %v22670_v59 }
 0x80d   :  { %v15725_v22 = vld [vmem:[#allocation4 + $0x2] sm:$0x3f]  ;;  %19794 = vmatpush3.bf16.msra.mxu0 %v22671_v10 }
 0x80e   :  { %v15831_v29 = vrot.slane %v15725_v22, %v23077_v7  ;;  %v15824_v0 = vcombine.high %v15725_v22, %v15725_v22  ;;  %19795 = vmatprep.subr.bf16.mxu0 %v22675_v4 }
 0x810   :  { %v15839_v37 = vcombine.high %v15831_v29, %v15831_v29  ;;  %v15838_v31 = vrot.slane %v15824_v0, %v23077_v7  ;;  %v15847_v39 = vrot.slane %v15831_v29, %v23077_v7 }
 0x811   :  { %19796 = vmatpush3.bf16.msra.mxu0 %v22676_v1 }
 0x812   :  { %v15861_v30 = vrot.slane %v15839_v37, %v23077_v7  ;;  %v15840_v33 = vcombine.high %v15838_v31, %v15838_v31  ;;  %19797 = vmatprep.subr.bf16.mxu0 %v22679_v41  ;;  %v15869_v38 = vcombine.high %v15847_v39, %v15847_v39  ;;  %v15854_v48 = vrot.slane %v15838_v31, %v23077_v7 }
 0x814   :  { %16197 = vmatprep.mubr.bf16.mxu1 %v15861_v30  ;;  %v15870_v63 = vcombine.high %v15861_v30, %v15861_v30  ;;  %v15868_v43 = vrot.slane %v15840_v33, %v23077_v7 }
 0x815   :  { %16198 = vmatmul.mubr.bf16.vlgmr.msra.gmra.mrb[68].mxu1 %v15847_v39  ;;  %19798 = vmatpush3.bf16.msra.mxu0 %v22680_v34 }
 0x816   :  { %19812 = vmatpush3.bf16.msra.mxu1 %v22673_v42  ;;  %16237 = vmatprep.mubr.bf16.mxu0 %v15870_v63 }
 0x817   :  { %16277 = vmatprep.mubr.bf16.mxu1 %v15868_v43  ;;  %19813 = vmatprep.subr.bf16.mxu1 %v22677_v26 }
 0x818   :  { %19799 = vmatprep.subr.bf16.mxu0 %v22683_v40 }
 0x819   :  { %19800 = vmatpush3.bf16.msra.mxu0 %v22684_v5 }
 0x81a   :  { %19814 = vmatpush3.bf16.msra.mxu1 %v22678_v18  ;;  %19801 = vmatprep.subr.bf16.mxu0 %v22687_v6 }
 0x81b   :  { %19815 = vmatprep.subr.bf16.mxu1 %v22681_v57 }
 0x81d   :  { %19802 = vmatpush3.bf16.msra.mxu0 %v22688_v36 }
 0x81e   :  { %19816 = vmatpush3.bf16.msra.mxu1 %v22682_v44  ;;  %19803 = vmatprep.subr.bf16.mxu0 %v22691_v62 }
 0x81f   :  { %19817 = vmatprep.subr.bf16.mxu1 %v22685_v60 }
 0x821   :  { %19804 = vmatpush3.bf16.msra.mxu0 %v22692_v35 }
 0x822   :  { %19818 = vmatpush3.bf16.msra.mxu1 %v22686_v45  ;;  %19833 = vmatprep.subr.bf16.mxu0 %v22699_v58 }
 0x823   :  { %19819 = vmatprep.subr.bf16.mxu1 %v22689_v25 }
 0x824   :  { %16238 = vmatmul.mubr.bf16.vlgmr.msra.gmra.mrb[64].mxu0 %v15869_v38 }
 0x825   :  { %19834 = vmatpush3.bf16.msra.mxu0 %v22700_v13 }
 0x826   :  { %19820 = vmatpush3.bf16.msra.mxu1 %v22690_v47  ;;  %19835 = vmatprep.subr.bf16.mxu0 %v22701_v16 }
 0x827   :  { %19821 = vmatprep.subr.bf16.mxu1 %v22693_v54 }
 0x829   :  { %19836 = vmatpush3.bf16.msra.mxu0 %v22702_v55 }
 0x82a   :  { %19822 = vmatpush3.bf16.msra.mxu1 %v22694_v3  ;;  %19837 = vmatprep.subr.bf16.mxu0 %v22703_v53 }
 0x82b   :  { %19823 = vmatprep.subr.bf16.mxu1 %v22695_v50 }
 0x82d   :  { %19838 = vmatpush3.bf16.msra.mxu0 %v22704_v11 }
 0x82e   :  { %19824 = vmatpush3.bf16.msra.mxu1 %v22696_v23  ;;  %19839 = vmatprep.subr.bf16.mxu0 %v22705_v2 }
 0x82f   :  { %19825 = vmatprep.subr.bf16.mxu1 %v22697_v24 }
 0x831   :  { %19840 = vmatpush3.bf16.msra.mxu0 %v22706_v8 }
 0x832   :  { %19826 = vmatpush3.bf16.msra.mxu1 %v22698_v49  ;;  %19841 = vmatprep.subr.bf16.mxu0 %v22707_v21 }
 0x835   :  { %16278 = vmatmul.mubr.bf16.vlgmr.msra.gmra.mrb[72].mxu1 %v15854_v48  ;;  %19842 = vmatpush3.bf16.msra.mxu0 %v22708_v19  ;;  %v19682_v19 = vld [vmem:[%s28232_s10] ss:$0 sm:$0xff] }
 0x836   :  { %19843 = vmatprep.subr.bf16.mxu0 %v22709_v51 }
 0x839   :  { %19844 = vmatpush3.bf16.msra.mxu0 %v22710_v32 }
 0x83a   :  { %19845 = vmatprep.subr.bf16.mxu0 %v22711_v12 }
 0x83d   :  { %19846 = vmatpush3.bf16.msra.mxu0 %v22712_v17 }
 0x83e   :  { %19847 = vmatprep.subr.bf16.mxu0 %v22713_v52 }
 0x841   :  { %19848 = vmatpush3.bf16.msra.mxu0 %v22714_v61 }
 0x8b7   :  { %v19717_v46 = vpop.f32.mrb[56].mxu0 }
 0x8b8   :  { %v19718_v27 = vpop.f32.mrb[57].mxu0 }
 0x8b9   :  { %v19719_v9 = vadd.f32 %v19718_v27, %v19717_v46  ;;  %v19720_v20 = vpop.f32.mrb[58].mxu0  ;;  %v19739_v56 = vpop.f32.mrb[64].mxu1 }
 0x8ba   :  { %v19721_v14 = vpop.f32.mrb[59].mxu0  ;;  %v19740_v28 = vpop.f32.mrb[65].mxu1 }
 0x8bb   :  { %v15632_v59 = vadd.f32 %v19719_v9, %v19489_v15  ;;  %v19741_v10 = vadd.f32 %v19740_v28, %v19739_v56  ;;  %v19742_v22 = vpop.f32.mrb[66].mxu1  ;;  %v16513_v28 = vstv %s28234_s12 }
 0x8bc   :  { %v19743_v4 = vpop.f32.mrb[67].mxu1 }
 0x8bd   :  { %v15672_v29 = vadd.f32 %v19741_v10, %v15632_v59 }
 0x8d7   :  { %v19761_v0 = vpop.f32.mrb[60].mxu0 }
 0x8d8   :  { %v19762_v37 = vpop.f32.mrb[61].mxu0 }
 0x8d9   :  { %v19763_v31 = vadd.f32 %v19762_v37, %v19761_v0  ;;  %v19764_v1 = vpop.f32.mrb[62].mxu0 }
 0x8da   :  { %v19765_v41 = vpop.f32.mrb[63].mxu0 }
 0x8db   :  { %v15712_v30 = vadd.f32 %v19763_v31, %v15672_v29 }
 0x8dd   :  { %v15717_v42 = vsub.f32 0.0, %v15712_v30 }
 0x8df   :  { %v15718_v33 = vmul.f32 1.442695, %v15717_v42 }
 0x8e1   :  { %22939 = vpow2.f32 %v15718_v33 }
 0x8e8   :  { %v19783_v39 = vpop.f32.mrb[68].mxu1 }
 0x8e9   :  { %v19784_v26 = vpop.f32.mrb[69].mxu1 }
 0x8ea   :  { %v19785_v63 = vadd.f32 %v19784_v26, %v19783_v39  ;;  %v19786_v43 = vpop.f32.mrb[70].mxu1 }
 0x8eb   :  { %v19787_v34 = vpop.f32.mrb[71].mxu1  ;;  %v22940_v40 = vpop.eup %22939 }
 0x8ec   :  { %v15720_v18 = vadd.f32 1.0, %v22940_v40  ;;  %v16200_v60 = vadd.f32 %v19785_v63, %v19489_v15 }
 0x8ee   :  { %22941 = vrcp.f32 %v15720_v18 }
 0x8f7   :  { %v19805_v57 = vpop.f32.mrb[64].mxu0 }
 0x8f8   :  { %v22942_v5 = vpop.eup %22941  ;;  %v19806_v6 = vpop.f32.mrb[65].mxu0 }
 0x8f9   :  { %v15722_v44 = vmul.f32 %v22942_v5, %v15712_v30  ;;  %v19807_v36 = vadd.f32 %v19806_v6, %v19805_v57  ;;  %v19808_v62 = vpop.f32.mrb[66].mxu0 }
 0x8fa   :  { %v19809_v45 = vpop.f32.mrb[67].mxu0 }
 0x8fb   :  { %v15723_v25 = vpack.c.bf16 %v15722_v44, %v15722_v44  ;;  %v16240_v35 = vadd.f32 %v19807_v36, %v16200_v60 }
 0x8fd   :  { %15724 = vst [vmem:[#allocation5] sm:$0x1] %v15723_v25 }
 0x908   :  { %v19827_v47 = vpop.f32.mrb[72].mxu1 }
 0x909   :  { %v19828_v54 = vpop.f32.mrb[73].mxu1 }
 0x90a   :  { %v19829_v38 = vadd.f32 %v19828_v54, %v19827_v47  ;;  %v19830_v3 = vpop.f32.mrb[74].mxu1 }
 0x90b   :  { %v19831_v50 = vpop.f32.mrb[75].mxu1 }
 0x90c   :  { %v16280_v23 = vadd.f32 %v19829_v38, %v16240_v35 }
 0x90e   :  { %v16285_v24 = vsub.f32 0.0, %v16280_v23 }
 0x910   :  { %v16286_v49 = vmul.f32 1.442695, %v16285_v24 }
 0x912   :  { %22943 = vpow2.f32 %v16286_v49 }
 0x91c   :  { %v22944_v48 = vpop.eup %22943 }
 0x91d   :  { %v16288_v58 = vadd.f32 1.0, %v22944_v48 }
 0x91f   :  { %22945 = vrcp.f32 %v16288_v58 }
 0x929   :  { %v22946_v13 = vpop.eup %22945 }
 0x92a   :  { %v16290_v16 = vmul.f32 %v22946_v13, %v16280_v23 }
 0x92c   :  { %v16291_v55 = vpack.c.bf16 %v16290_v16, %v16290_v16 }
 0x92e   :  { %16292 = vst [vmem:[#allocation5 + $0x1] sm:$0x1] %v16291_v55 }
 0x935   :  { %v19683_v53 = vld.sshfl [vmem:[#allocation5] sm:$0x11 pattern:$0x75316420] }
 0x936   :  { %v16341_v11 = vcombine.high %v19683_v53, %v19683_v53  ;;  %v16348_v8 = vrot.slane %v19683_v53, %v23077_v7 }
 0x938   :  { %v16355_v2 = vrot.slane %v16341_v11, %v23077_v7  ;;  %v19700_v7 = vld [vmem:[%s28233_s11] ss:$0 sm:$0xff] }
 0x93a   :  { %16486 = vmatprep.mubr.bf16.mxu0 %v16355_v2 }
 0x93b   :  { %16487 = vmatmul.mubr.bf16.vlgmr.msra.gmra.mrb[68].mxu0 %v16348_v8 }
 0xa0e   :  { %v19849_v21 = vpop.f32.mrb[68].mxu0 }
 0xa0f   :  { %v19850_v51 = vpop.f32.mrb[69].mxu0 }
 0xa10   :  { %v19851_v32 = vadd.f32 %v19850_v51, %v19849_v21  ;;  %v19852_v12 = vpop.f32.mrb[70].mxu0 }
 0xa11   :  { %v19853_v17 = vpop.f32.mrb[71].mxu0 }
 0xa12   :  { %v16489_v52 = vadd.f32 %v19851_v32, %v19682_v19 }
 0xa14   :  { %v16494_v61 = vsub.f32 0.0, %v16489_v52 }
 0xa16   :  { %v16495_v46 = vmul.f32 1.442695, %v16494_v61 }
 0xa18   :  { %22947 = vpow2.f32 %v16495_v46 }
 0xa22   :  { %v22948_v15 = vpop.eup %22947 }
 0xa23   :  { %v16497_v27 = vadd.f32 1.0, %v22948_v15 }
 0xa25   :  { %22949 = vrcp.f32 %v16497_v27 }
 0xa2f   :  { %v22950_v9 = vpop.eup %22949 }
 0xa30   :  { %v16499_v20 = vmul.f32 %v22950_v9, %v16489_v52 }
 0xa32   :  { %v16507_v56 = vmul.f32 %v19700_v7, %v16499_v20 }
 0xa34   :  { %v16509_v14 = vsel %vm16508_vm2, %v16507_v56, 0.0 }
 0xa35   :  { %16510 = vadd.xlane.f32.xlu0 %v16509_v14 }
 0xac2   :  { %v16511_v59 = vpop.xlane.xlu0 %16510 }
 0xac3   :  { %v16514_v10 = vadd.f32 %v16513_v28, %v16511_v59 }
 0xac5   :  { %16516 = vst.msk [vmem:[%s28235_s13] sm:$0x3] %vm16515_vm3, %v16514_v10 }
 0xac6   :  { %16521 = vsyncpa [#allocation8], 1 }

</bundles_post_ra>
